<compile_context>
chip_gen: v6e
topology: v6e:2x2x1
jax: 0.10.0
libtpu: 0.0.40
codegen_flags: <defaults>
</compile_context>

<pallas_src>
import math

import jax
import jax.numpy as jnp
import numpy as np
from jax.experimental import pallas as pl
from jax.experimental.pallas import tpu as pltpu

HEADS = 4
K_NEIGHBORS = 32
LEAKY_SLOPE = 0.2
BN_EPS = 1e-5


# --------------------------------------------------------------------------
# Kernel 1: knn neighbor score.
#   score[n, m] = 2 * <p_n, p_m> - |p_m|^2
# This equals the reference "negative squared distance" up to a per-row
# constant (-|p_n|^2), which does not change the per-row top-k ordering, so the
# transposed point cloud and the column-norm term are dropped (one less HBM
# read, no host transpose, no lane-sparse (N, C) block).
# TODO(synk): for large point clouds, tile the (N, N) output block by rows
#             (256-512) to respect the v7x 64 MiB VMEM budget.
# --------------------------------------------------------------------------
def _score_kernel(x_ref, o_ref):
    x = x_ref[...]                                                    # (C, N)
    inner = jax.lax.dot_general(                                      # p_n . p_m
        x, x, (((0,), (0,)), ((), ())),
        preferred_element_type=jnp.float32)                           # (N, N)
    aa = jnp.sum(x * x, axis=0, keepdims=True)                        # (1, N) = |p_m|^2
    o_ref[...] = 2.0 * inner - aa


def neighbor_score(x):
    B, C, N = x.shape
    return pl.pallas_call(
        _score_kernel,
        out_shape=jax.ShapeDtypeStruct((B, N, N), jnp.float32),
        grid=(B,),
        in_specs=[pl.BlockSpec((None, C, N), lambda b: (b, 0, 0))],
        out_specs=pl.BlockSpec((None, N, N), lambda b: (b, 0, 0)),
        compiler_params=pltpu.CompilerParams(dimension_semantics=("parallel",)),
    )(x)


# --------------------------------------------------------------------------
# Kernel 2: neighbor attention, one grid step per batch.
#   * one stacked matmul on x:   [Wq/sqrt(D); Wv] @ x  -> q, v_hat
#   * one stacked lane-dense matmul on the gathered neighbors:
#       [Wk; Wv] @ x[:, idx]     -> kg, vg   (M = 2C)
#   * single-pass online softmax over the K neighbor slots
#   * output = x + attn - v_hat  (residual + linearity self-term), written
#     lane-concatenated as (C, B*N) so the tail needs no transpose.
# Gathered neighbors use flat index k*N + n so per-slot views are 128-aligned
# lane slices and per-head views are sublane splits (both free).
# TODO(synk): fuse the gather in-kernel (scalar-prefetched idx + lane gather /
#             DMA gather) so the (B, C, K*N) neighbor tensor never hits HBM.
# TODO(synk): on v7x, make K a grid axis ("arbitrary", online softmax carries
#             across steps) with a (C, Kc*N) block, and pipeline_mode=
#             pl.Buffered(3) on that input for v5e.
# TODO(synk): optionally feed xg / weights as bf16 with f32 accumulation on
#             v6e/v7x (kept f32 here for the strict f32 reference tolerance).
# --------------------------------------------------------------------------
def _attn_kernel(x_ref, xg_ref, wx_ref, wg_ref, o_ref):
    C, N = x_ref.shape
    KN = xg_ref.shape[1]
    K = KN // N
    H = HEADS
    D = C // H

    x = x_ref[...]                                                    # (C, N)

    # Center-point projections, one stacked matmul: rows [0:C] = scaled q,
    # rows [C:2C] = v_hat = Wv @ x (for the linearity self-subtraction).
    px = jnp.dot(wx_ref[...], x, preferred_element_type=jnp.float32)  # (2C, N)
    qh = px[0:C].reshape(H, D, N)
    vhat = px[C:2 * C]                                                 # (C, N)

    # Gathered-neighbor projections: ONE lane-dense (2C,C)x(C,K*N) matmul.
    kv = jnp.dot(wg_ref[...], xg_ref[...],
                 preferred_element_type=jnp.float32)                   # (2C, K*N)

    def slot(k):
        kg = kv[0:C, k * N:(k + 1) * N].reshape(H, D, N)               # aligned lane slice
        vg = kv[C:2 * C, k * N:(k + 1) * N].reshape(H, D, N)
        e = jnp.sum(qh * kg, axis=1)                                   # (H, N)
        return e, vg

    # Online softmax over K neighbor slots (single pass, low vreg pressure).
    m, acc = slot(0)
    denom = jnp.ones((H, N), jnp.float32)
    for k in range(1, K):
        e, vg = slot(k)
        m_new = jnp.maximum(m, e)
        alpha = jnp.exp(m - m_new)
        p = jnp.exp(e - m_new)
        denom = alpha * denom + p
        acc = alpha[:, None, :] * acc + p[:, None, :] * vg
        m = m_new

    inv = pl.reciprocal(denom, approx=True)                            # EUP slot, ~1e-4 rel err
    out = acc * inv[:, None, :]                                        # (H, D, N)

    # channel order h*D+d matches torch rearrange 'B H N 1 D -> B (H D) N'.
    # Linearity: k self-term cancels in softmax; v self-term is exactly -v_hat.
    o_ref[...] = x + out.reshape(C, N) - vhat                          # residual fused


def neighbor_attention(x, xg, w_x, w_g):
    """x: (B, C, N); xg: gathered neighbors (B, C, K*N), flat index k*N+n;
    w_x: (2C, C) stacked [Wq/sqrt(D); Wv]; w_g: (2C, C) stacked [Wk; Wv].

    Returns x + attention output, lane-concatenated as (C, B*N)."""
    B, C, N = x.shape
    KN = xg.shape[-1]
    return pl.pallas_call(
        _attn_kernel,
        out_shape=jax.ShapeDtypeStruct((C, B * N), jnp.float32),
        grid=(B,),
        in_specs=[
            pl.BlockSpec((None, C, N), lambda b: (b, 0, 0)),
            pl.BlockSpec((None, C, KN), lambda b: (b, 0, 0)),
            pl.BlockSpec((2 * C, C), lambda b: (0, 0)),
            pl.BlockSpec((2 * C, C), lambda b: (0, 0)),
        ],
        out_specs=pl.BlockSpec((C, N), lambda b: (0, b)),
        compiler_params=pltpu.CompilerParams(dimension_semantics=("parallel",)),
    )(x, xg, w_x, w_g)


# --------------------------------------------------------------------------
# Kernel 3: fused tail — BN1(training stats) -> FF (C->512, LeakyReLU, 512->C)
#           -> residual -> BN2, all on one lane-concatenated (C, B*N) slab.
# Input y = x + attention output (residual already applied in kernel 2).
# BN stats are two-pass / centered (no E[x^2]-mean^2 cancellation).
# TODO(synk): for large B*N, tile the point axis (grid + separate stats pass or
#             Welford) so the (512, B*N) hidden fits v7x VMEM and both
#             TensorCores are used.
# --------------------------------------------------------------------------
def _tail_kernel(y_ref, g1_ref, b1_ref, w1_ref, w2_ref, g2_ref, b2_ref, o_ref):
    C, M = y_ref.shape                     # M = B * N
    B, _, N = o_ref.shape
    inv_m = 1.0 / M
    y = y_ref[...]

    # BN1 batch statistics per channel over the lane axis (biased variance).
    mean1 = jnp.sum(y, axis=1, keepdims=True) * inv_m
    yc = y - mean1
    var1 = jnp.sum(yc * yc, axis=1, keepdims=True) * inv_m
    y1 = yc * jax.lax.rsqrt(var1 + BN_EPS) * g1_ref[...] + b1_ref[...]  # (C, B*N)

    # Feed-forward on the full slab (wide lane dim for the MXU) + residual.
    h = jnp.dot(w1_ref[...], y1, preferred_element_type=jnp.float32)    # (512, B*N)
    h = jnp.where(h > 0, h, LEAKY_SLOPE * h)
    z = y1 + jnp.dot(w2_ref[...], h, preferred_element_type=jnp.float32)

    # BN2 batch statistics, same two-pass scheme.
    mean2 = jnp.sum(z, axis=1, keepdims=True) * inv_m
    zc = z - mean2
    var2 = jnp.sum(zc * zc, axis=1, keepdims=True) * inv_m
    out = zc * jax.lax.rsqrt(var2 + BN_EPS) * g2_ref[...] + b2_ref[...]

    for b in range(B):
        o_ref[b] = out[:, b * N:(b + 1) * N]


def fused_tail(y2d, params, B, N):
    C = y2d.shape[0]
    return pl.pallas_call(
        _tail_kernel,
        out_shape=jax.ShapeDtypeStruct((B, C, N), jnp.float32),
    )(y2d,
      params["bn1_gamma"].reshape(C, 1), params["bn1_beta"].reshape(C, 1),
      params["ff_w1"], params["ff_w2"],
      params["bn2_gamma"].reshape(C, 1), params["bn2_beta"].reshape(C, 1))


# --------------------------------------------------------------------------
# Full forward pass
# --------------------------------------------------------------------------
def nr_attention_forward(x, params):
    B, C, N = x.shape
    D = C // HEADS
    K = K_NEIGHBORS

    score = neighbor_score(x)                                         # (B, N, N)

    # TODO(synk): top-k selection and the data-dependent neighbor gather stay
    # in plain JAX; an in-kernel DMA/lane gather with scalar-prefetched idx is
    # the next step (removes the (B, C, K*N) HBM materialization entirely).
    idx = jax.lax.top_k(score, K)[1]                                  # (B, N, K)
    idx_t = jnp.transpose(idx, (0, 2, 1))                             # (B, K, N)
    xg = jax.vmap(lambda xb, ib: xb[:, ib])(x, idx_t).reshape(B, C, K * N)

    # Stacked weights: 1/sqrt(D) folded into wq; [wq; wv] for x, [wk; wv] for xg.
    w_x = jnp.concatenate([params["wq"] * (1.0 / math.sqrt(D)), params["wv"]], axis=0)
    w_g = jnp.concatenate([params["wk"], params["wv"]], axis=0)

    y2d = neighbor_attention(x, xg, w_x, w_g)                         # (C, B*N), residual fused
    return fused_tail(y2d, params, B, N)                              # bn1 -> ff -> +res -> bn2


# --------------------------------------------------------------------------
# Pure-JAX reference mirroring the torch module semantics (for sanity check)
# --------------------------------------------------------------------------
def reference_forward(x, params):
    B, C, N = x.shape
    H, D = HEADS, C // HEADS
    pcd = jnp.transpose(x, (0, 2, 1))
    inner = -2.0 * jnp.einsum('bnc,bmc->bnm', pcd, pcd)
    aa = jnp.sum(pcd ** 2, axis=2, keepdims=True)
    pd = -aa - inner - jnp.transpose(aa, (0, 2, 1))
    idx = jax.lax.top_k(pd, K_NEIGHBORS)[1]
    neighbors = jax.vmap(lambda p, i: p[i])(pcd, idx)                 # (B, N, K, C)
    diff = neighbors - pcd[:, :, None, :]
    diff_t = jnp.transpose(diff, (0, 3, 1, 2))                        # (B, C, N, K)

    q = jnp.einsum('oc,bcn->bon', params["wq"], x)
    k = jnp.einsum('oc,bcnk->bonk', params["wk"], diff_t)
    v = jnp.einsum('oc,bcnk->bonk', params["wv"], diff_t)

    qh = q.reshape(B, H, D, N)
    kh = k.reshape(B, H, D, N, K_NEIGHBORS)
    vh = v.reshape(B, H, D, N, K_NEIGHBORS)
    energy = jnp.einsum('bhdn,bhdnk->bhnk', qh, kh) / math.sqrt(D)
    attn = jax.nn.softmax(energy, axis=-1)
    outh = jnp.einsum('bhnk,bhdnk->bhdn', attn, vh)
    tmp = outh.reshape(B, C, N)

    def bn(y, g, b):
        mean = jnp.mean(y, axis=(0, 2), keepdims=True)
        var = jnp.mean((y - mean) ** 2, axis=(0, 2), keepdims=True)
        return (y - mean) / jnp.sqrt(var + BN_EPS) * g.reshape(1, C, 1) + b.reshape(1, C, 1)

    y = bn(x + tmp, params["bn1_gamma"], params["bn1_beta"])
    h = jnp.einsum('oc,bcn->bon', params["ff_w1"], y)
    h = jnp.where(h > 0, h, LEAKY_SLOPE * h)
    ff = jnp.einsum('co,bon->bcn', params["ff_w2"], h)
    return bn(y + ff, params["bn2_gamma"], params["bn2_beta"])


def init_params(key, C):
    keys = jax.random.split(key, 5)

    def w(k, shape):
        fan_in = shape[1]
        return (jax.random.normal(k, shape, jnp.float32) / np.sqrt(fan_in)).astype(jnp.float32)

    return {
        "wq": w(keys[0], (C, C)),         # q_conv (1x1, no bias)
        "wk": w(keys[1], (C, C)),         # k_conv
        "wv": w(keys[2], (C, C)),         # v_conv
        "ff_w1": w(keys[3], (512, C)),    # Conv1d(C, 512, 1, bias=False)
        "ff_w2": w(keys[4], (C, 512)),    # Conv1d(512, C, 1, bias=False)
        "bn1_gamma": jnp.ones((C,), jnp.float32),
        "bn1_beta": jnp.zeros((C,), jnp.float32),
        "bn2_gamma": jnp.ones((C,), jnp.float32),
        "bn2_beta": jnp.zeros((C,), jnp.float32),
    }


if __name__ == "__main__":
    B, C, N = 2, 32, 128          # in_dim=32 (divisible by 4 heads), N >= K=32
    key = jax.random.PRNGKey(0)
    kx, kp = jax.random.split(key)
    x = jax.random.normal(kx, (B, C, N), jnp.float32)
    params = init_params(kp, C)

    out = jax.jit(nr_attention_forward)(x, params)
    out = jax.block_until_ready(out)

    ref = reference_forward(x, params)
    err = float(jnp.max(jnp.abs(out - ref)))
    assert out.shape == (B, C, N), out.shape
    assert err < 5e-3, f"max abs err {err}"
    print("KERNEL_OK")
</pallas_src>

<mosaic_0001>
module attributes {stable_mosaic.version = 11 : i64} {
  func.func @_score_kernel(%arg0: i32, %arg1: memref<1x32x128xf32, #tpu.memory_space<vmem>>, %arg2: memref<1x128x128xf32, #tpu.memory_space<vmem>>) attributes {dimension_semantics = [#tpu.dimension_semantics<parallel>], iteration_bounds = array<i64: 2>, scalar_prefetch = 0 : i64, scratch_operands = 0 : i64, tpu.core_type = #tpu.core_type<tc>, window_params = [{transform_indices = @transform_0, window_bounds = array<i64: 1, 32, 128>}, {transform_indices = @transform_1, window_bounds = array<i64: 1, 128, 128>}]} {
    %c0 = arith.constant 0 : index
    %c0_0 = arith.constant 0 : index
    %c0_1 = arith.constant 0 : index
    %0 = vector.load %arg1[%c0, %c0_0, %c0_1] : memref<1x32x128xf32, #tpu.memory_space<vmem>>, vector<1x32x128xf32>
    %1 = vector.shape_cast %0 : vector<1x32x128xf32> to vector<32x128xf32>
    %cst = arith.constant dense<0.000000e+00> : vector<128x128xf32>
    %2 = tpu.matmul %1, %1, %cst {dimension_numbers = #tpu.dot_dimension_numbers<[0], [0], [1], [1], [0, 1, 1, 1], [], []>} : vector<32x128xf32>, vector<32x128xf32>, vector<128x128xf32> -> vector<128x128xf32>
    %3 = arith.mulf %1, %1 : vector<32x128xf32>
    %cst_2 = arith.constant dense<0.000000e+00> : vector<128xf32>
    %4 = vector.multi_reduction <add>, %3, %cst_2 [0] : vector<32x128xf32> to vector<128xf32>
    %5 = vector.shape_cast %4 : vector<128xf32> to vector<1x128xf32>
    %cst_3 = arith.constant 2.000000e+00 : f32
    %6 = vector.broadcast %cst_3 : f32 to vector<128x128xf32>
    %7 = arith.mulf %6, %2 : vector<128x128xf32>
    %8 = vector.broadcast %5 : vector<1x128xf32> to vector<128x128xf32>
    %9 = arith.subf %7, %8 : vector<128x128xf32>
    %c0_4 = arith.constant 0 : index
    %c0_5 = arith.constant 0 : index
    %c0_6 = arith.constant 0 : index
    %10 = vector.load %arg2[%c0_4, %c0_5, %c0_6] : memref<1x128x128xf32, #tpu.memory_space<vmem>>, vector<1x128x128xf32>
    %11 = vector.shape_cast %10 : vector<1x128x128xf32> to vector<128x128xf32>
    %12 = vector.shape_cast %9 : vector<128x128xf32> to vector<1x128x128xf32>
    tpu.vector_store %arg2[%c0_4, %c0_5, %c0_6], %12 {strides = array<i32>} : memref<1x128x128xf32, #tpu.memory_space<vmem>>, vector<1x128x128xf32>,
    return
  }
  func.func @transform_0(%arg0: i32) -> (i32, i32, i32) {
    %c0_i32 = arith.constant 0 : i32
    %c0_i32_0 = arith.constant 0 : i32
    %c0_i32_1 = arith.constant 0 : i32
    return %arg0, %c0_i32, %c0_i32_0 : i32, i32, i32
  }
  func.func @transform_1(%arg0: i32) -> (i32, i32, i32) {
    %c0_i32 = arith.constant 0 : i32
    %c0_i32_0 = arith.constant 0 : i32
    %c0_i32_1 = arith.constant 0 : i32
    return %arg0, %c0_i32, %c0_i32_0 : i32, i32, i32
  }
}

module attributes {stable_mosaic.version = 11 : i64} {
  func.func @_attn_kernel(%arg0: i32, %arg1: memref<1x32x128xf32, #tpu.memory_space<vmem>>, %arg2: memref<1x32x4096xf32, #tpu.memory_space<vmem>>, %arg3: memref<64x32xf32, #tpu.memory_space<vmem>>, %arg4: memref<64x32xf32, #tpu.memory_space<vmem>>, %arg5: memref<32x128xf32, #tpu.memory_space<vmem>>) attributes {dimension_semantics = [#tpu.dimension_semantics<parallel>], iteration_bounds = array<i64: 2>, scalar_prefetch = 0 : i64, scratch_operands = 0 : i64, tpu.core_type = #tpu.core_type<tc>, window_params = [{transform_indices = @transform_0, window_bounds = array<i64: 1, 32, 128>}, {transform_indices = @transform_1, window_bounds = array<i64: 1, 32, 4096>}, {pipeline_mode = #tpu.pipeline_mode<synchronous>, transform_indices = @transform_2, window_bounds = array<i64: 64, 32>}, {pipeline_mode = #tpu.pipeline_mode<synchronous>, transform_indices = @transform_3, window_bounds = array<i64: 64, 32>}, {transform_indices = @transform_4, window_bounds = array<i64: 32, 128>}]} {
    %c0 = arith.constant 0 : index
    %c0_0 = arith.constant 0 : index
    %c0_1 = arith.constant 0 : index
    %0 = vector.load %arg1[%c0, %c0_0, %c0_1] : memref<1x32x128xf32, #tpu.memory_space<vmem>>, vector<1x32x128xf32>
    %1 = vector.shape_cast %0 : vector<1x32x128xf32> to vector<32x128xf32>
    %c0_2 = arith.constant 0 : index
    %c0_3 = arith.constant 0 : index
    %2 = vector.load %arg3[%c0_2, %c0_3] : memref<64x32xf32, #tpu.memory_space<vmem>>, vector<64x32xf32>
    %cst = arith.constant dense<0.000000e+00> : vector<64x128xf32>
    %3 = tpu.matmul %2, %1, %cst {dimension_numbers = #tpu.dot_dimension_numbers<[1], [0], [0], [1], [0, 0, 1, 1], [], []>} : vector<64x32xf32>, vector<32x128xf32>, vector<64x128xf32> -> vector<64x128xf32>
    %4 = vector.extract_strided_slice %3 {offsets = [0, 0], sizes = [32, 128], strides = [1, 1]} : vector<64x128xf32> to vector<32x128xf32>
    %5 = vector.shape_cast %4 : vector<32x128xf32> to vector<4x8x128xf32>
    %6 = vector.extract_strided_slice %3 {offsets = [32, 0], sizes = [32, 128], strides = [1, 1]} : vector<64x128xf32> to vector<32x128xf32>
    %c0_4 = arith.constant 0 : index
    %c0_5 = arith.constant 0 : index
    %7 = vector.load %arg4[%c0_4, %c0_5] : memref<64x32xf32, #tpu.memory_space<vmem>>, vector<64x32xf32>
    %c0_6 = arith.constant 0 : index
    %c0_7 = arith.constant 0 : index
    %c0_8 = arith.constant 0 : index
    %8 = vector.load %arg2[%c0_6, %c0_7, %c0_8] : memref<1x32x4096xf32, #tpu.memory_space<vmem>>, vector<1x32x4096xf32>
    %9 = vector.shape_cast %8 : vector<1x32x4096xf32> to vector<32x4096xf32>
    %cst_9 = arith.constant dense<0.000000e+00> : vector<64x4096xf32>
    %10 = tpu.matmul %7, %9, %cst_9 {dimension_numbers = #tpu.dot_dimension_numbers<[1], [0], [0], [1], [0, 0, 1, 1], [], []>} : vector<64x32xf32>, vector<32x4096xf32>, vector<64x4096xf32> -> vector<64x4096xf32>
    %11 = vector.extract_strided_slice %10 {offsets = [0, 0], sizes = [32, 128], strides = [1, 1]} : vector<64x4096xf32> to vector<32x128xf32>
    %12 = vector.shape_cast %11 : vector<32x128xf32> to vector<4x8x128xf32>
    %13 = vector.extract_strided_slice %10 {offsets = [32, 0], sizes = [32, 128], strides = [1, 1]} : vector<64x4096xf32> to vector<32x128xf32>
    %14 = vector.shape_cast %13 : vector<32x128xf32> to vector<4x8x128xf32>
    %15 = arith.mulf %5, %12 : vector<4x8x128xf32>
    %cst_10 = arith.constant dense<0.000000e+00> : vector<4x128xf32>
    %16 = vector.multi_reduction <add>, %15, %cst_10 [1] : vector<4x8x128xf32> to vector<4x128xf32>
    %cst_11 = arith.constant 1.000000e+00 : f32
    %17 = vector.broadcast %cst_11 : f32 to vector<4x128xf32>
    %18 = vector.extract_strided_slice %10 {offsets = [0, 128], sizes = [32, 128], strides = [1, 1]} : vector<64x4096xf32> to vector<32x128xf32>
    %19 = vector.shape_cast %18 : vector<32x128xf32> to vector<4x8x128xf32>
    %20 = vector.extract_strided_slice %10 {offsets = [32, 128], sizes = [32, 128], strides = [1, 1]} : vector<64x4096xf32> to vector<32x128xf32>
    %21 = vector.shape_cast %20 : vector<32x128xf32> to vector<4x8x128xf32>
    %22 = arith.mulf %5, %19 : vector<4x8x128xf32>
    %cst_12 = arith.constant dense<0.000000e+00> : vector<4x128xf32>
    %23 = vector.multi_reduction <add>, %22, %cst_12 [1] : vector<4x8x128xf32> to vector<4x128xf32>
    %24 = arith.maximumf %16, %23 : vector<4x128xf32>
    %25 = arith.subf %16, %24 : vector<4x128xf32>
    %26 = math.exp %25 : vector<4x128xf32>
    %27 = arith.subf %23, %24 : vector<4x128xf32>
    %28 = math.exp %27 : vector<4x128xf32>
    %29 = arith.mulf %26, %17 : vector<4x128xf32>
    %30 = arith.addf %29, %28 : vector<4x128xf32>
    %31 = vector.shape_cast %26 : vector<4x128xf32> to vector<4x1x128xf32>
    %32 = vector.broadcast %31 : vector<4x1x128xf32> to vector<4x8x128xf32>
    %33 = arith.mulf %32, %14 : vector<4x8x128xf32>
    %34 = vector.shape_cast %28 : vector<4x128xf32> to vector<4x1x128xf32>
    %35 = vector.broadcast %34 : vector<4x1x128xf32> to vector<4x8x128xf32>
    %36 = arith.mulf %35, %21 : vector<4x8x128xf32>
    %37 = arith.addf %33, %36 : vector<4x8x128xf32>
    %38 = vector.extract_strided_slice %10 {offsets = [0, 256], sizes = [32, 128], strides = [1, 1]} : vector<64x4096xf32> to vector<32x128xf32>
    %39 = vector.shape_cast %38 : vector<32x128xf32> to vector<4x8x128xf32>
    %40 = vector.extract_strided_slice %10 {offsets = [32, 256], sizes = [32, 128], strides = [1, 1]} : vector<64x4096xf32> to vector<32x128xf32>
    %41 = vector.shape_cast %40 : vector<32x128xf32> to vector<4x8x128xf32>
    %42 = arith.mulf %5, %39 : vector<4x8x128xf32>
    %cst_13 = arith.constant dense<0.000000e+00> : vector<4x128xf32>
    %43 = vector.multi_reduction <add>, %42, %cst_13 [1] : vector<4x8x128xf32> to vector<4x128xf32>
    %44 = arith.maximumf %24, %43 : vector<4x128xf32>
    %45 = arith.subf %24, %44 : vector<4x128xf32>
    %46 = math.exp %45 : vector<4x128xf32>
    %47 = arith.subf %43, %44 : vector<4x128xf32>
    %48 = math.exp %47 : vector<4x128xf32>
    %49 = arith.mulf %46, %30 : vector<4x128xf32>
    %50 = arith.addf %49, %48 : vector<4x128xf32>
    %51 = vector.shape_cast %46 : vector<4x128xf32> to vector<4x1x128xf32>
    %52 = vector.broadcast %51 : vector<4x1x128xf32> to vector<4x8x128xf32>
    %53 = arith.mulf %52, %37 : vector<4x8x128xf32>
    %54 = vector.shape_cast %48 : vector<4x128xf32> to vector<4x1x128xf32>
    %55 = vector.broadcast %54 : vector<4x1x128xf32> to vector<4x8x128xf32>
    %56 = arith.mulf %55, %41 : vector<4x8x128xf32>
    %57 = arith.addf %53, %56 : vector<4x8x128xf32>
    %58 = vector.extract_strided_slice %10 {offsets = [0, 384], sizes = [32, 128], strides = [1, 1]} : vector<64x4096xf32> to vector<32x128xf32>
    %59 = vector.shape_cast %58 : vector<32x128xf32> to vector<4x8x128xf32>
    %60 = vector.extract_strided_slice %10 {offsets = [32, 384], sizes = [32, 128], strides = [1, 1]} : vector<64x4096xf32> to vector<32x128xf32>
    %61 = vector.shape_cast %60 : vector<32x128xf32> to vector<4x8x128xf32>
    %62 = arith.mulf %5, %59 : vector<4x8x128xf32>
    %cst_14 = arith.constant dense<0.000000e+00> : vector<4x128xf32>
    %63 = vector.multi_reduction <add>, %62, %cst_14 [1] : vector<4x8x128xf32> to vector<4x128xf32>
    %64 = arith.maximumf %44, %63 : vector<4x128xf32>
    %65 = arith.subf %44, %64 : vector<4x128xf32>
    %66 = math.exp %65 : vector<4x128xf32>
    %67 = arith.subf %63, %64 : vector<4x128xf32>
    %68 = math.exp %67 : vector<4x128xf32>
    %69 = arith.mulf %66, %50 : vector<4x128xf32>
    %70 = arith.addf %69, %68 : vector<4x128xf32>
    %71 = vector.shape_cast %66 : vector<4x128xf32> to vector<4x1x128xf32>
    %72 = vector.broadcast %71 : vector<4x1x128xf32> to vector<4x8x128xf32>
    %73 = arith.mulf %72, %57 : vector<4x8x128xf32>
    %74 = vector.shape_cast %68 : vector<4x128xf32> to vector<4x1x128xf32>
    %75 = vector.broadcast %74 : vector<4x1x128xf32> to vector<4x8x128xf32>
    %76 = arith.mulf %75, %61 : vector<4x8x128xf32>
    %77 = arith.addf %73, %76 : vector<4x8x128xf32>
    %78 = vector.extract_strided_slice %10 {offsets = [0, 512], sizes = [32, 128], strides = [1, 1]} : vector<64x4096xf32> to vector<32x128xf32>
    %79 = vector.shape_cast %78 : vector<32x128xf32> to vector<4x8x128xf32>
    %80 = vector.extract_strided_slice %10 {offsets = [32, 512], sizes = [32, 128], strides = [1, 1]} : vector<64x4096xf32> to vector<32x128xf32>
    %81 = vector.shape_cast %80 : vector<32x128xf32> to vector<4x8x128xf32>
    %82 = arith.mulf %5, %79 : vector<4x8x128xf32>
    %cst_15 = arith.constant dense<0.000000e+00> : vector<4x128xf32>
    %83 = vector.multi_reduction <add>, %82, %cst_15 [1] : vector<4x8x128xf32> to vector<4x128xf32>
    %84 = arith.maximumf %64, %83 : vector<4x128xf32>
    %85 = arith.subf %64, %84 : vector<4x128xf32>
    %86 = math.exp %85 : vector<4x128xf32>
    %87 = arith.subf %83, %84 : vector<4x128xf32>
    %88 = math.exp %87 : vector<4x128xf32>
    %89 = arith.mulf %86, %70 : vector<4x128xf32>
    %90 = arith.addf %89, %88 : vector<4x128xf32>
    %91 = vector.shape_cast %86 : vector<4x128xf32> to vector<4x1x128xf32>
    %92 = vector.broadcast %91 : vector<4x1x128xf32> to vector<4x8x128xf32>
    %93 = arith.mulf %92, %77 : vector<4x8x128xf32>
    %94 = vector.shape_cast %88 : vector<4x128xf32> to vector<4x1x128xf32>
    %95 = vector.broadcast %94 : vector<4x1x128xf32> to vector<4x8x128xf32>
    %96 = arith.mulf %95, %81 : vector<4x8x128xf32>
    %97 = arith.addf %93, %96 : vector<4x8x128xf32>
    %98 = vector.extract_strided_slice %10 {offsets = [0, 640], sizes = [32, 128], strides = [1, 1]} : vector<64x4096xf32> to vector<32x128xf32>
    %99 = vector.shape_cast %98 : vector<32x128xf32> to vector<4x8x128xf32>
    %100 = vector.extract_strided_slice %10 {offsets = [32, 640], sizes = [32, 128], strides = [1, 1]} : vector<64x4096xf32> to vector<32x128xf32>
    %101 = vector.shape_cast %100 : vector<32x128xf32> to vector<4x8x128xf32>
    %102 = arith.mulf %5, %99 : vector<4x8x128xf32>
    %cst_16 = arith.constant dense<0.000000e+00> : vector<4x128xf32>
    %103 = vector.multi_reduction <add>, %102, %cst_16 [1] : vector<4x8x128xf32> to vector<4x128xf32>
    %104 = arith.maximumf %84, %103 : vector<4x128xf32>
    %105 = arith.subf %84, %104 : vector<4x128xf32>
    %106 = math.exp %105 : vector<4x128xf32>
    %107 = arith.subf %103, %104 : vector<4x128xf32>
    %108 = math.exp %107 : vector<4x128xf32>
    %109 = arith.mulf %106, %90 : vector<4x128xf32>
    %110 = arith.addf %109, %108 : vector<4x128xf32>
    %111 = vector.shape_cast %106 : vector<4x128xf32> to vector<4x1x128xf32>
    %112 = vector.broadcast %111 : vector<4x1x128xf32> to vector<4x8x128xf32>
    %113 = arith.mulf %112, %97 : vector<4x8x128xf32>
    %114 = vector.shape_cast %108 : vector<4x128xf32> to vector<4x1x128xf32>
    %115 = vector.broadcast %114 : vector<4x1x128xf32> to vector<4x8x128xf32>
    %116 = arith.mulf %115, %101 : vector<4x8x128xf32>
    %117 = arith.addf %113, %116 : vector<4x8x128xf32>
    %118 = vector.extract_strided_slice %10 {offsets = [0, 768], sizes = [32, 128], strides = [1, 1]} : vector<64x4096xf32> to vector<32x128xf32>
    %119 = vector.shape_cast %118 : vector<32x128xf32> to vector<4x8x128xf32>
    %120 = vector.extract_strided_slice %10 {offsets = [32, 768], sizes = [32, 128], strides = [1, 1]} : vector<64x4096xf32> to vector<32x128xf32>
    %121 = vector.shape_cast %120 : vector<32x128xf32> to vector<4x8x128xf32>
    %122 = arith.mulf %5, %119 : vector<4x8x128xf32>
    %cst_17 = arith.constant dense<0.000000e+00> : vector<4x128xf32>
    %123 = vector.multi_reduction <add>, %122, %cst_17 [1] : vector<4x8x128xf32> to vector<4x128xf32>
    %124 = arith.maximumf %104, %123 : vector<4x128xf32>
    %125 = arith.subf %104, %124 : vector<4x128xf32>
    %126 = math.exp %125 : vector<4x128xf32>
    %127 = arith.subf %123, %124 : vector<4x128xf32>
    %128 = math.exp %127 : vector<4x128xf32>
    %129 = arith.mulf %126, %110 : vector<4x128xf32>
    %130 = arith.addf %129, %128 : vector<4x128xf32>
    %131 = vector.shape_cast %126 : vector<4x128xf32> to vector<4x1x128xf32>
    %132 = vector.broadcast %131 : vector<4x1x128xf32> to vector<4x8x128xf32>
    %133 = arith.mulf %132, %117 : vector<4x8x128xf32>
    %134 = vector.shape_cast %128 : vector<4x128xf32> to vector<4x1x128xf32>
    %135 = vector.broadcast %134 : vector<4x1x128xf32> to vector<4x8x128xf32>
    %136 = arith.mulf %135, %121 : vector<4x8x128xf32>
    %137 = arith.addf %133, %136 : vector<4x8x128xf32>
    %138 = vector.extract_strided_slice %10 {offsets = [0, 896], sizes = [32, 128], strides = [1, 1]} : vector<64x4096xf32> to vector<32x128xf32>
    %139 = vector.shape_cast %138 : vector<32x128xf32> to vector<4x8x128xf32>
    %140 = vector.extract_strided_slice %10 {offsets = [32, 896], sizes = [32, 128], strides = [1, 1]} : vector<64x4096xf32> to vector<32x128xf32>
    %141 = vector.shape_cast %140 : vector<32x128xf32> to vector<4x8x128xf32>
    %142 = arith.mulf %5, %139 : vector<4x8x128xf32>
    %cst_18 = arith.constant dense<0.000000e+00> : vector<4x128xf32>
    %143 = vector.multi_reduction <add>, %142, %cst_18 [1] : vector<4x8x128xf32> to vector<4x128xf32>
    %144 = arith.maximumf %124, %143 : vector<4x128xf32>
    %145 = arith.subf %124, %144 : vector<4x128xf32>
    %146 = math.exp %145 : vector<4x128xf32>
    %147 = arith.subf %143, %144 : vector<4x128xf32>
    %148 = math.exp %147 : vector<4x128xf32>
    %149 = arith.mulf %146, %130 : vector<4x128xf32>
    %150 = arith.addf %149, %148 : vector<4x128xf32>
    %151 = vector.shape_cast %146 : vector<4x128xf32> to vector<4x1x128xf32>
    %152 = vector.broadcast %151 : vector<4x1x128xf32> to vector<4x8x128xf32>
    %153 = arith.mulf %152, %137 : vector<4x8x128xf32>
    %154 = vector.shape_cast %148 : vector<4x128xf32> to vector<4x1x128xf32>
    %155 = vector.broadcast %154 : vector<4x1x128xf32> to vector<4x8x128xf32>
    %156 = arith.mulf %155, %141 : vector<4x8x128xf32>
    %157 = arith.addf %153, %156 : vector<4x8x128xf32>
    %158 = vector.extract_strided_slice %10 {offsets = [0, 1024], sizes = [32, 128], strides = [1, 1]} : vector<64x4096xf32> to vector<32x128xf32>
    %159 = vector.shape_cast %158 : vector<32x128xf32> to vector<4x8x128xf32>
    %160 = vector.extract_strided_slice %10 {offsets = [32, 1024], sizes = [32, 128], strides = [1, 1]} : vector<64x4096xf32> to vector<32x128xf32>
    %161 = vector.shape_cast %160 : vector<32x128xf32> to vector<4x8x128xf32>
    %162 = arith.mulf %5, %159 : vector<4x8x128xf32>
    %cst_19 = arith.constant dense<0.000000e+00> : vector<4x128xf32>
    %163 = vector.multi_reduction <add>, %162, %cst_19 [1] : vector<4x8x128xf32> to vector<4x128xf32>
    %164 = arith.maximumf %144, %163 : vector<4x128xf32>
    %165 = arith.subf %144, %164 : vector<4x128xf32>
    %166 = math.exp %165 : vector<4x128xf32>
    %167 = arith.subf %163, %164 : vector<4x128xf32>
    %168 = math.exp %167 : vector<4x128xf32>
    %169 = arith.mulf %166, %150 : vector<4x128xf32>
    %170 = arith.addf %169, %168 : vector<4x128xf32>
    %171 = vector.shape_cast %166 : vector<4x128xf32> to vector<4x1x128xf32>
    %172 = vector.broadcast %171 : vector<4x1x128xf32> to vector<4x8x128xf32>
    %173 = arith.mulf %172, %157 : vector<4x8x128xf32>
    %174 = vector.shape_cast %168 : vector<4x128xf32> to vector<4x1x128xf32>
    %175 = vector.broadcast %174 : vector<4x1x128xf32> to vector<4x8x128xf32>
    %176 = arith.mulf %175, %161 : vector<4x8x128xf32>
    %177 = arith.addf %173, %176 : vector<4x8x128xf32>
    %178 = vector.extract_strided_slice %10 {offsets = [0, 1152], sizes = [32, 128], strides = [1, 1]} : vector<64x4096xf32> to vector<32x128xf32>
    %179 = vector.shape_cast %178 : vector<32x128xf32> to vector<4x8x128xf32>
    %180 = vector.extract_strided_slice %10 {offsets = [32, 1152], sizes = [32, 128], strides = [1, 1]} : vector<64x4096xf32> to vector<32x128xf32>
    %181 = vector.shape_cast %180 : vector<32x128xf32> to vector<4x8x128xf32>
    %182 = arith.mulf %5, %179 : vector<4x8x128xf32>
    %cst_20 = arith.constant dense<0.000000e+00> : vector<4x128xf32>
    %183 = vector.multi_reduction <add>, %182, %cst_20 [1] : vector<4x8x128xf32> to vector<4x128xf32>
    %184 = arith.maximumf %164, %183 : vector<4x128xf32>
    %185 = arith.subf %164, %184 : vector<4x128xf32>
    %186 = math.exp %185 : vector<4x128xf32>
    %187 = arith.subf %183, %184 : vector<4x128xf32>
    %188 = math.exp %187 : vector<4x128xf32>
    %189 = arith.mulf %186, %170 : vector<4x128xf32>
    %190 = arith.addf %189, %188 : vector<4x128xf32>
    %191 = vector.shape_cast %186 : vector<4x128xf32> to vector<4x1x128xf32>
    %192 = vector.broadcast %191 : vector<4x1x128xf32> to vector<4x8x128xf32>
    %193 = arith.mulf %192, %177 : vector<4x8x128xf32>
    %194 = vector.shape_cast %188 : vector<4x128xf32> to vector<4x1x128xf32>
    %195 = vector.broadcast %194 : vector<4x1x128xf32> to vector<4x8x128xf32>
    %196 = arith.mulf %195, %181 : vector<4x8x128xf32>
    %197 = arith.addf %193, %196 : vector<4x8x128xf32>
    %198 = vector.extract_strided_slice %10 {offsets = [0, 1280], sizes = [32, 128], strides = [1, 1]} : vector<64x4096xf32> to vector<32x128xf32>
    %199 = vector.shape_cast %198 : vector<32x128xf32> to vector<4x8x128xf32>
    %200 = vector.extract_strided_slice %10 {offsets = [32, 1280], sizes = [32, 128], strides = [1, 1]} : vector<64x4096xf32> to vector<32x128xf32>
    %201 = vector.shape_cast %200 : vector<32x128xf32> to vector<4x8x128xf32>
    %202 = arith.mulf %5, %199 : vector<4x8x128xf32>
    %cst_21 = arith.constant dense<0.000000e+00> : vector<4x128xf32>
    %203 = vector.multi_reduction <add>, %202, %cst_21 [1] : vector<4x8x128xf32> to vector<4x128xf32>
    %204 = arith.maximumf %184, %203 : vector<4x128xf32>
    %205 = arith.subf %184, %204 : vector<4x128xf32>
    %206 = math.exp %205 : vector<4x128xf32>
    %207 = arith.subf %203, %204 : vector<4x128xf32>
    %208 = math.exp %207 : vector<4x128xf32>
    %209 = arith.mulf %206, %190 : vector<4x128xf32>
    %210 = arith.addf %209, %208 : vector<4x128xf32>
    %211 = vector.shape_cast %206 : vector<4x128xf32> to vector<4x1x128xf32>
    %212 = vector.broadcast %211 : vector<4x1x128xf32> to vector<4x8x128xf32>
    %213 = arith.mulf %212, %197 : vector<4x8x128xf32>
    %214 = vector.shape_cast %208 : vector<4x128xf32> to vector<4x1x128xf32>
    %215 = vector.broadcast %214 : vector<4x1x128xf32> to vector<4x8x128xf32>
    %216 = arith.mulf %215, %201 : vector<4x8x128xf32>
    %217 = arith.addf %213, %216 : vector<4x8x128xf32>
    %218 = vector.extract_strided_slice %10 {offsets = [0, 1408], sizes = [32, 128], strides = [1, 1]} : vector<64x4096xf32> to vector<32x128xf32>
    %219 = vector.shape_cast %218 : vector<32x128xf32> to vector<4x8x128xf32>
    %220 = vector.extract_strided_slice %10 {offsets = [32, 1408], sizes = [32, 128], strides = [1, 1]} : vector<64x4096xf32> to vector<32x128xf32>
    %221 = vector.shape_cast %220 : vector<32x128xf32> to vector<4x8x128xf32>
    %222 = arith.mulf %5, %219 : vector<4x8x128xf32>
    %cst_22 = arith.constant dense<0.000000e+00> : vector<4x128xf32>
    %223 = vector.multi_reduction <add>, %222, %cst_22 [1] : vector<4x8x128xf32> to vector<4x128xf32>
    %224 = arith.maximumf %204, %223 : vector<4x128xf32>
    %225 = arith.subf %204, %224 : vector<4x128xf32>
    %226 = math.exp %225 : vector<4x128xf32>
    %227 = arith.subf %223, %224 : vector<4x128xf32>
    %228 = math.exp %227 : vector<4x128xf32>
    %229 = arith.mulf %226, %210 : vector<4x128xf32>
    %230 = arith.addf %229, %228 : vector<4x128xf32>
    %231 = vector.shape_cast %226 : vector<4x128xf32> to vector<4x1x128xf32>
    %232 = vector.broadcast %231 : vector<4x1x128xf32> to vector<4x8x128xf32>
    %233 = arith.mulf %232, %217 : vector<4x8x128xf32>
    %234 = vector.shape_cast %228 : vector<4x128xf32> to vector<4x1x128xf32>
    %235 = vector.broadcast %234 : vector<4x1x128xf32> to vector<4x8x128xf32>
    %236 = arith.mulf %235, %221 : vector<4x8x128xf32>
    %237 = arith.addf %233, %236 : vector<4x8x128xf32>
    %238 = vector.extract_strided_slice %10 {offsets = [0, 1536], sizes = [32, 128], strides = [1, 1]} : vector<64x4096xf32> to vector<32x128xf32>
    %239 = vector.shape_cast %238 : vector<32x128xf32> to vector<4x8x128xf32>
    %240 = vector.extract_strided_slice %10 {offsets = [32, 1536], sizes = [32, 128], strides = [1, 1]} : vector<64x4096xf32> to vector<32x128xf32>
    %241 = vector.shape_cast %240 : vector<32x128xf32> to vector<4x8x128xf32>
    %242 = arith.mulf %5, %239 : vector<4x8x128xf32>
    %cst_23 = arith.constant dense<0.000000e+00> : vector<4x128xf32>
    %243 = vector.multi_reduction <add>, %242, %cst_23 [1] : vector<4x8x128xf32> to vector<4x128xf32>
    %244 = arith.maximumf %224, %243 : vector<4x128xf32>
    %245 = arith.subf %224, %244 : vector<4x128xf32>
    %246 = math.exp %245 : vector<4x128xf32>
    %247 = arith.subf %243, %244 : vector<4x128xf32>
    %248 = math.exp %247 : vector<4x128xf32>
    %249 = arith.mulf %246, %230 : vector<4x128xf32>
    %250 = arith.addf %249, %248 : vector<4x128xf32>
    %251 = vector.shape_cast %246 : vector<4x128xf32> to vector<4x1x128xf32>
    %252 = vector.broadcast %251 : vector<4x1x128xf32> to vector<4x8x128xf32>
    %253 = arith.mulf %252, %237 : vector<4x8x128xf32>
    %254 = vector.shape_cast %248 : vector<4x128xf32> to vector<4x1x128xf32>
    %255 = vector.broadcast %254 : vector<4x1x128xf32> to vector<4x8x128xf32>
    %256 = arith.mulf %255, %241 : vector<4x8x128xf32>
    %257 = arith.addf %253, %256 : vector<4x8x128xf32>
    %258 = vector.extract_strided_slice %10 {offsets = [0, 1664], sizes = [32, 128], strides = [1, 1]} : vector<64x4096xf32> to vector<32x128xf32>
    %259 = vector.shape_cast %258 : vector<32x128xf32> to vector<4x8x128xf32>
    %260 = vector.extract_strided_slice %10 {offsets = [32, 1664], sizes = [32, 128], strides = [1, 1]} : vector<64x4096xf32> to vector<32x128xf32>
    %261 = vector.shape_cast %260 : vector<32x128xf32> to vector<4x8x128xf32>
    %262 = arith.mulf %5, %259 : vector<4x8x128xf32>
    %cst_24 = arith.constant dense<0.000000e+00> : vector<4x128xf32>
    %263 = vector.multi_reduction <add>, %262, %cst_24 [1] : vector<4x8x128xf32> to vector<4x128xf32>
    %264 = arith.maximumf %244, %263 : vector<4x128xf32>
    %265 = arith.subf %244, %264 : vector<4x128xf32>
    %266 = math.exp %265 : vector<4x128xf32>
    %267 = arith.subf %263, %264 : vector<4x128xf32>
    %268 = math.exp %267 : vector<4x128xf32>
    %269 = arith.mulf %266, %250 : vector<4x128xf32>
    %270 = arith.addf %269, %268 : vector<4x128xf32>
    %271 = vector.shape_cast %266 : vector<4x128xf32> to vector<4x1x128xf32>
    %272 = vector.broadcast %271 : vector<4x1x128xf32> to vector<4x8x128xf32>
    %273 = arith.mulf %272, %257 : vector<4x8x128xf32>
    %274 = vector.shape_cast %268 : vector<4x128xf32> to vector<4x1x128xf32>
    %275 = vector.broadcast %274 : vector<4x1x128xf32> to vector<4x8x128xf32>
    %276 = arith.mulf %275, %261 : vector<4x8x128xf32>
    %277 = arith.addf %273, %276 : vector<4x8x128xf32>
    %278 = vector.extract_strided_slice %10 {offsets = [0, 1792], sizes = [32, 128], strides = [1, 1]} : vector<64x4096xf32> to vector<32x128xf32>
    %279 = vector.shape_cast %278 : vector<32x128xf32> to vector<4x8x128xf32>
    %280 = vector.extract_strided_slice %10 {offsets = [32, 1792], sizes = [32, 128], strides = [1, 1]} : vector<64x4096xf32> to vector<32x128xf32>
    %281 = vector.shape_cast %280 : vector<32x128xf32> to vector<4x8x128xf32>
    %282 = arith.mulf %5, %279 : vector<4x8x128xf32>
    %cst_25 = arith.constant dense<0.000000e+00> : vector<4x128xf32>
    %283 = vector.multi_reduction <add>, %282, %cst_25 [1] : vector<4x8x128xf32> to vector<4x128xf32>
    %284 = arith.maximumf %264, %283 : vector<4x128xf32>
    %285 = arith.subf %264, %284 : vector<4x128xf32>
    %286 = math.exp %285 : vector<4x128xf32>
    %287 = arith.subf %283, %284 : vector<4x128xf32>
    %288 = math.exp %287 : vector<4x128xf32>
    %289 = arith.mulf %286, %270 : vector<4x128xf32>
    %290 = arith.addf %289, %288 : vector<4x128xf32>
    %291 = vector.shape_cast %286 : vector<4x128xf32> to vector<4x1x128xf32>
    %292 = vector.broadcast %291 : vector<4x1x128xf32> to vector<4x8x128xf32>
    %293 = arith.mulf %292, %277 : vector<4x8x128xf32>
    %294 = vector.shape_cast %288 : vector<4x128xf32> to vector<4x1x128xf32>
    %295 = vector.broadcast %294 : vector<4x1x128xf32> to vector<4x8x128xf32>
    %296 = arith.mulf %295, %281 : vector<4x8x128xf32>
    %297 = arith.addf %293, %296 : vector<4x8x128xf32>
    %298 = vector.extract_strided_slice %10 {offsets = [0, 1920], sizes = [32, 128], strides = [1, 1]} : vector<64x4096xf32> to vector<32x128xf32>
    %299 = vector.shape_cast %298 : vector<32x128xf32> to vector<4x8x128xf32>
    %300 = vector.extract_strided_slice %10 {offsets = [32, 1920], sizes = [32, 128], strides = [1, 1]} : vector<64x4096xf32> to vector<32x128xf32>
    %301 = vector.shape_cast %300 : vector<32x128xf32> to vector<4x8x128xf32>
    %302 = arith.mulf %5, %299 : vector<4x8x128xf32>
    %cst_26 = arith.constant dense<0.000000e+00> : vector<4x128xf32>
    %303 = vector.multi_reduction <add>, %302, %cst_26 [1] : vector<4x8x128xf32> to vector<4x128xf32>
    %304 = arith.maximumf %284, %303 : vector<4x128xf32>
    %305 = arith.subf %284, %304 : vector<4x128xf32>
    %306 = math.exp %305 : vector<4x128xf32>
    %307 = arith.subf %303, %304 : vector<4x128xf32>
    %308 = math.exp %307 : vector<4x128xf32>
    %309 = arith.mulf %306, %290 : vector<4x128xf32>
    %310 = arith.addf %309, %308 : vector<4x128xf32>
    %311 = vector.shape_cast %306 : vector<4x128xf32> to vector<4x1x128xf32>
    %312 = vector.broadcast %311 : vector<4x1x128xf32> to vector<4x8x128xf32>
    %313 = arith.mulf %312, %297 : vector<4x8x128xf32>
    %314 = vector.shape_cast %308 : vector<4x128xf32> to vector<4x1x128xf32>
    %315 = vector.broadcast %314 : vector<4x1x128xf32> to vector<4x8x128xf32>
    %316 = arith.mulf %315, %301 : vector<4x8x128xf32>
    %317 = arith.addf %313, %316 : vector<4x8x128xf32>
    %318 = vector.extract_strided_slice %10 {offsets = [0, 2048], sizes = [32, 128], strides = [1, 1]} : vector<64x4096xf32> to vector<32x128xf32>
    %319 = vector.shape_cast %318 : vector<32x128xf32> to vector<4x8x128xf32>
    %320 = vector.extract_strided_slice %10 {offsets = [32, 2048], sizes = [32, 128], strides = [1, 1]} : vector<64x4096xf32> to vector<32x128xf32>
    %321 = vector.shape_cast %320 : vector<32x128xf32> to vector<4x8x128xf32>
    %322 = arith.mulf %5, %319 : vector<4x8x128xf32>
    %cst_27 = arith.constant dense<0.000000e+00> : vector<4x128xf32>
    %323 = vector.multi_reduction <add>, %322, %cst_27 [1] : vector<4x8x128xf32> to vector<4x128xf32>
    %324 = arith.maximumf %304, %323 : vector<4x128xf32>
    %325 = arith.subf %304, %324 : vector<4x128xf32>
    %326 = math.exp %325 : vector<4x128xf32>
    %327 = arith.subf %323, %324 : vector<4x128xf32>
    %328 = math.exp %327 : vector<4x128xf32>
    %329 = arith.mulf %326, %310 : vector<4x128xf32>
    %330 = arith.addf %329, %328 : vector<4x128xf32>
    %331 = vector.shape_cast %326 : vector<4x128xf32> to vector<4x1x128xf32>
    %332 = vector.broadcast %331 : vector<4x1x128xf32> to vector<4x8x128xf32>
    %333 = arith.mulf %332, %317 : vector<4x8x128xf32>
    %334 = vector.shape_cast %328 : vector<4x128xf32> to vector<4x1x128xf32>
    %335 = vector.broadcast %334 : vector<4x1x128xf32> to vector<4x8x128xf32>
    %336 = arith.mulf %335, %321 : vector<4x8x128xf32>
    %337 = arith.addf %333, %336 : vector<4x8x128xf32>
    %338 = vector.extract_strided_slice %10 {offsets = [0, 2176], sizes = [32, 128], strides = [1, 1]} : vector<64x4096xf32> to vector<32x128xf32>
    %339 = vector.shape_cast %338 : vector<32x128xf32> to vector<4x8x128xf32>
    %340 = vector.extract_strided_slice %10 {offsets = [32, 2176], sizes = [32, 128], strides = [1, 1]} : vector<64x4096xf32> to vector<32x128xf32>
    %341 = vector.shape_cast %340 : vector<32x128xf32> to vector<4x8x128xf32>
    %342 = arith.mulf %5, %339 : vector<4x8x128xf32>
    %cst_28 = arith.constant dense<0.000000e+00> : vector<4x128xf32>
    %343 = vector.multi_reduction <add>, %342, %cst_28 [1] : vector<4x8x128xf32> to vector<4x128xf32>
    %344 = arith.maximumf %324, %343 : vector<4x128xf32>
    %345 = arith.subf %324, %344 : vector<4x128xf32>
    %346 = math.exp %345 : vector<4x128xf32>
    %347 = arith.subf %343, %344 : vector<4x128xf32>
    %348 = math.exp %347 : vector<4x128xf32>
    %349 = arith.mulf %346, %330 : vector<4x128xf32>
    %350 = arith.addf %349, %348 : vector<4x128xf32>
    %351 = vector.shape_cast %346 : vector<4x128xf32> to vector<4x1x128xf32>
    %352 = vector.broadcast %351 : vector<4x1x128xf32> to vector<4x8x128xf32>
    %353 = arith.mulf %352, %337 : vector<4x8x128xf32>
    %354 = vector.shape_cast %348 : vector<4x128xf32> to vector<4x1x128xf32>
    %355 = vector.broadcast %354 : vector<4x1x128xf32> to vector<4x8x128xf32>
    %356 = arith.mulf %355, %341 : vector<4x8x128xf32>
    %357 = arith.addf %353, %356 : vector<4x8x128xf32>
    %358 = vector.extract_strided_slice %10 {offsets = [0, 2304], sizes = [32, 128], strides = [1, 1]} : vector<64x4096xf32> to vector<32x128xf32>
    %359 = vector.shape_cast %358 : vector<32x128xf32> to vector<4x8x128xf32>
    %360 = vector.extract_strided_slice %10 {offsets = [32, 2304], sizes = [32, 128], strides = [1, 1]} : vector<64x4096xf32> to vector<32x128xf32>
    %361 = vector.shape_cast %360 : vector<32x128xf32> to vector<4x8x128xf32>
    %362 = arith.mulf %5, %359 : vector<4x8x128xf32>
    %cst_29 = arith.constant dense<0.000000e+00> : vector<4x128xf32>
    %363 = vector.multi_reduction <add>, %362, %cst_29 [1] : vector<4x8x128xf32> to vector<4x128xf32>
    %364 = arith.maximumf %344, %363 : vector<4x128xf32>
    %365 = arith.subf %344, %364 : vector<4x128xf32>
    %366 = math.exp %365 : vector<4x128xf32>
    %367 = arith.subf %363, %364 : vector<4x128xf32>
    %368 = math.exp %367 : vector<4x128xf32>
    %369 = arith.mulf %366, %350 : vector<4x128xf32>
    %370 = arith.addf %369, %368 : vector<4x128xf32>
    %371 = vector.shape_cast %366 : vector<4x128xf32> to vector<4x1x128xf32>
    %372 = vector.broadcast %371 : vector<4x1x128xf32> to vector<4x8x128xf32>
    %373 = arith.mulf %372, %357 : vector<4x8x128xf32>
    %374 = vector.shape_cast %368 : vector<4x128xf32> to vector<4x1x128xf32>
    %375 = vector.broadcast %374 : vector<4x1x128xf32> to vector<4x8x128xf32>
    %376 = arith.mulf %375, %361 : vector<4x8x128xf32>
    %377 = arith.addf %373, %376 : vector<4x8x128xf32>
    %378 = vector.extract_strided_slice %10 {offsets = [0, 2432], sizes = [32, 128], strides = [1, 1]} : vector<64x4096xf32> to vector<32x128xf32>
    %379 = vector.shape_cast %378 : vector<32x128xf32> to vector<4x8x128xf32>
    %380 = vector.extract_strided_slice %10 {offsets = [32, 2432], sizes = [32, 128], strides = [1, 1]} : vector<64x4096xf32> to vector<32x128xf32>
    %381 = vector.shape_cast %380 : vector<32x128xf32> to vector<4x8x128xf32>
    %382 = arith.mulf %5, %379 : vector<4x8x128xf32>
    %cst_30 = arith.constant dense<0.000000e+00> : vector<4x128xf32>
    %383 = vector.multi_reduction <add>, %382, %cst_30 [1] : vector<4x8x128xf32> to vector<4x128xf32>
    %384 = arith.maximumf %364, %383 : vector<4x128xf32>
    %385 = arith.subf %364, %384 : vector<4x128xf32>
    %386 = math.exp %385 : vector<4x128xf32>
    %387 = arith.subf %383, %384 : vector<4x128xf32>
    %388 = math.exp %387 : vector<4x128xf32>
    %389 = arith.mulf %386, %370 : vector<4x128xf32>
    %390 = arith.addf %389, %388 : vector<4x128xf32>
    %391 = vector.shape_cast %386 : vector<4x128xf32> to vector<4x1x128xf32>
    %392 = vector.broadcast %391 : vector<4x1x128xf32> to vector<4x8x128xf32>
    %393 = arith.mulf %392, %377 : vector<4x8x128xf32>
    %394 = vector.shape_cast %388 : vector<4x128xf32> to vector<4x1x128xf32>
    %395 = vector.broadcast %394 : vector<4x1x128xf32> to vector<4x8x128xf32>
    %396 = arith.mulf %395, %381 : vector<4x8x128xf32>
    %397 = arith.addf %393, %396 : vector<4x8x128xf32>
    %398 = vector.extract_strided_slice %10 {offsets = [0, 2560], sizes = [32, 128], strides = [1, 1]} : vector<64x4096xf32> to vector<32x128xf32>
    %399 = vector.shape_cast %398 : vector<32x128xf32> to vector<4x8x128xf32>
    %400 = vector.extract_strided_slice %10 {offsets = [32, 2560], sizes = [32, 128], strides = [1, 1]} : vector<64x4096xf32> to vector<32x128xf32>
    %401 = vector.shape_cast %400 : vector<32x128xf32> to vector<4x8x128xf32>
    %402 = arith.mulf %5, %399 : vector<4x8x128xf32>
    %cst_31 = arith.constant dense<0.000000e+00> : vector<4x128xf32>
    %403 = vector.multi_reduction <add>, %402, %cst_31 [1] : vector<4x8x128xf32> to vector<4x128xf32>
    %404 = arith.maximumf %384, %403 : vector<4x128xf32>
    %405 = arith.subf %384, %404 : vector<4x128xf32>
    %406 = math.exp %405 : vector<4x128xf32>
    %407 = arith.subf %403, %404 : vector<4x128xf32>
    %408 = math.exp %407 : vector<4x128xf32>
    %409 = arith.mulf %406, %390 : vector<4x128xf32>
    %410 = arith.addf %409, %408 : vector<4x128xf32>
    %411 = vector.shape_cast %406 : vector<4x128xf32> to vector<4x1x128xf32>
    %412 = vector.broadcast %411 : vector<4x1x128xf32> to vector<4x8x128xf32>
    %413 = arith.mulf %412, %397 : vector<4x8x128xf32>
    %414 = vector.shape_cast %408 : vector<4x128xf32> to vector<4x1x128xf32>
    %415 = vector.broadcast %414 : vector<4x1x128xf32> to vector<4x8x128xf32>
    %416 = arith.mulf %415, %401 : vector<4x8x128xf32>
    %417 = arith.addf %413, %416 : vector<4x8x128xf32>
    %418 = vector.extract_strided_slice %10 {offsets = [0, 2688], sizes = [32, 128], strides = [1, 1]} : vector<64x4096xf32> to vector<32x128xf32>
    %419 = vector.shape_cast %418 : vector<32x128xf32> to vector<4x8x128xf32>
    %420 = vector.extract_strided_slice %10 {offsets = [32, 2688], sizes = [32, 128], strides = [1, 1]} : vector<64x4096xf32> to vector<32x128xf32>
    %421 = vector.shape_cast %420 : vector<32x128xf32> to vector<4x8x128xf32>
    %422 = arith.mulf %5, %419 : vector<4x8x128xf32>
    %cst_32 = arith.constant dense<0.000000e+00> : vector<4x128xf32>
    %423 = vector.multi_reduction <add>, %422, %cst_32 [1] : vector<4x8x128xf32> to vector<4x128xf32>
    %424 = arith.maximumf %404, %423 : vector<4x128xf32>
    %425 = arith.subf %404, %424 : vector<4x128xf32>
    %426 = math.exp %425 : vector<4x128xf32>
    %427 = arith.subf %423, %424 : vector<4x128xf32>
    %428 = math.exp %427 : vector<4x128xf32>
    %429 = arith.mulf %426, %410 : vector<4x128xf32>
    %430 = arith.addf %429, %428 : vector<4x128xf32>
    %431 = vector.shape_cast %426 : vector<4x128xf32> to vector<4x1x128xf32>
    %432 = vector.broadcast %431 : vector<4x1x128xf32> to vector<4x8x128xf32>
    %433 = arith.mulf %432, %417 : vector<4x8x128xf32>
    %434 = vector.shape_cast %428 : vector<4x128xf32> to vector<4x1x128xf32>
    %435 = vector.broadcast %434 : vector<4x1x128xf32> to vector<4x8x128xf32>
    %436 = arith.mulf %435, %421 : vector<4x8x128xf32>
    %437 = arith.addf %433, %436 : vector<4x8x128xf32>
    %438 = vector.extract_strided_slice %10 {offsets = [0, 2816], sizes = [32, 128], strides = [1, 1]} : vector<64x4096xf32> to vector<32x128xf32>
    %439 = vector.shape_cast %438 : vector<32x128xf32> to vector<4x8x128xf32>
    %440 = vector.extract_strided_slice %10 {offsets = [32, 2816], sizes = [32, 128], strides = [1, 1]} : vector<64x4096xf32> to vector<32x128xf32>
    %441 = vector.shape_cast %440 : vector<32x128xf32> to vector<4x8x128xf32>
    %442 = arith.mulf %5, %439 : vector<4x8x128xf32>
    %cst_33 = arith.constant dense<0.000000e+00> : vector<4x128xf32>
    %443 = vector.multi_reduction <add>, %442, %cst_33 [1] : vector<4x8x128xf32> to vector<4x128xf32>
    %444 = arith.maximumf %424, %443 : vector<4x128xf32>
    %445 = arith.subf %424, %444 : vector<4x128xf32>
    %446 = math.exp %445 : vector<4x128xf32>
    %447 = arith.subf %443, %444 : vector<4x128xf32>
    %448 = math.exp %447 : vector<4x128xf32>
    %449 = arith.mulf %446, %430 : vector<4x128xf32>
    %450 = arith.addf %449, %448 : vector<4x128xf32>
    %451 = vector.shape_cast %446 : vector<4x128xf32> to vector<4x1x128xf32>
    %452 = vector.broadcast %451 : vector<4x1x128xf32> to vector<4x8x128xf32>
    %453 = arith.mulf %452, %437 : vector<4x8x128xf32>
    %454 = vector.shape_cast %448 : vector<4x128xf32> to vector<4x1x128xf32>
    %455 = vector.broadcast %454 : vector<4x1x128xf32> to vector<4x8x128xf32>
    %456 = arith.mulf %455, %441 : vector<4x8x128xf32>
    %457 = arith.addf %453, %456 : vector<4x8x128xf32>
    %458 = vector.extract_strided_slice %10 {offsets = [0, 2944], sizes = [32, 128], strides = [1, 1]} : vector<64x4096xf32> to vector<32x128xf32>
    %459 = vector.shape_cast %458 : vector<32x128xf32> to vector<4x8x128xf32>
    %460 = vector.extract_strided_slice %10 {offsets = [32, 2944], sizes = [32, 128], strides = [1, 1]} : vector<64x4096xf32> to vector<32x128xf32>
    %461 = vector.shape_cast %460 : vector<32x128xf32> to vector<4x8x128xf32>
    %462 = arith.mulf %5, %459 : vector<4x8x128xf32>
    %cst_34 = arith.constant dense<0.000000e+00> : vector<4x128xf32>
    %463 = vector.multi_reduction <add>, %462, %cst_34 [1] : vector<4x8x128xf32> to vector<4x128xf32>
    %464 = arith.maximumf %444, %463 : vector<4x128xf32>
    %465 = arith.subf %444, %464 : vector<4x128xf32>
    %466 = math.exp %465 : vector<4x128xf32>
    %467 = arith.subf %463, %464 : vector<4x128xf32>
    %468 = math.exp %467 : vector<4x128xf32>
    %469 = arith.mulf %466, %450 : vector<4x128xf32>
    %470 = arith.addf %469, %468 : vector<4x128xf32>
    %471 = vector.shape_cast %466 : vector<4x128xf32> to vector<4x1x128xf32>
    %472 = vector.broadcast %471 : vector<4x1x128xf32> to vector<4x8x128xf32>
    %473 = arith.mulf %472, %457 : vector<4x8x128xf32>
    %474 = vector.shape_cast %468 : vector<4x128xf32> to vector<4x1x128xf32>
    %475 = vector.broadcast %474 : vector<4x1x128xf32> to vector<4x8x128xf32>
    %476 = arith.mulf %475, %461 : vector<4x8x128xf32>
    %477 = arith.addf %473, %476 : vector<4x8x128xf32>
    %478 = vector.extract_strided_slice %10 {offsets = [0, 3072], sizes = [32, 128], strides = [1, 1]} : vector<64x4096xf32> to vector<32x128xf32>
    %479 = vector.shape_cast %478 : vector<32x128xf32> to vector<4x8x128xf32>
    %480 = vector.extract_strided_slice %10 {offsets = [32, 3072], sizes = [32, 128], strides = [1, 1]} : vector<64x4096xf32> to vector<32x128xf32>
    %481 = vector.shape_cast %480 : vector<32x128xf32> to vector<4x8x128xf32>
    %482 = arith.mulf %5, %479 : vector<4x8x128xf32>
    %cst_35 = arith.constant dense<0.000000e+00> : vector<4x128xf32>
    %483 = vector.multi_reduction <add>, %482, %cst_35 [1] : vector<4x8x128xf32> to vector<4x128xf32>
    %484 = arith.maximumf %464, %483 : vector<4x128xf32>
    %485 = arith.subf %464, %484 : vector<4x128xf32>
    %486 = math.exp %485 : vector<4x128xf32>
    %487 = arith.subf %483, %484 : vector<4x128xf32>
    %488 = math.exp %487 : vector<4x128xf32>
    %489 = arith.mulf %486, %470 : vector<4x128xf32>
    %490 = arith.addf %489, %488 : vector<4x128xf32>
    %491 = vector.shape_cast %486 : vector<4x128xf32> to vector<4x1x128xf32>
    %492 = vector.broadcast %491 : vector<4x1x128xf32> to vector<4x8x128xf32>
    %493 = arith.mulf %492, %477 : vector<4x8x128xf32>
    %494 = vector.shape_cast %488 : vector<4x128xf32> to vector<4x1x128xf32>
    %495 = vector.broadcast %494 : vector<4x1x128xf32> to vector<4x8x128xf32>
    %496 = arith.mulf %495, %481 : vector<4x8x128xf32>
    %497 = arith.addf %493, %496 : vector<4x8x128xf32>
    %498 = vector.extract_strided_slice %10 {offsets = [0, 3200], sizes = [32, 128], strides = [1, 1]} : vector<64x4096xf32> to vector<32x128xf32>
    %499 = vector.shape_cast %498 : vector<32x128xf32> to vector<4x8x128xf32>
    %500 = vector.extract_strided_slice %10 {offsets = [32, 3200], sizes = [32, 128], strides = [1, 1]} : vector<64x4096xf32> to vector<32x128xf32>
    %501 = vector.shape_cast %500 : vector<32x128xf32> to vector<4x8x128xf32>
    %502 = arith.mulf %5, %499 : vector<4x8x128xf32>
    %cst_36 = arith.constant dense<0.000000e+00> : vector<4x128xf32>
    %503 = vector.multi_reduction <add>, %502, %cst_36 [1] : vector<4x8x128xf32> to vector<4x128xf32>
    %504 = arith.maximumf %484, %503 : vector<4x128xf32>
    %505 = arith.subf %484, %504 : vector<4x128xf32>
    %506 = math.exp %505 : vector<4x128xf32>
    %507 = arith.subf %503, %504 : vector<4x128xf32>
    %508 = math.exp %507 : vector<4x128xf32>
    %509 = arith.mulf %506, %490 : vector<4x128xf32>
    %510 = arith.addf %509, %508 : vector<4x128xf32>
    %511 = vector.shape_cast %506 : vector<4x128xf32> to vector<4x1x128xf32>
    %512 = vector.broadcast %511 : vector<4x1x128xf32> to vector<4x8x128xf32>
    %513 = arith.mulf %512, %497 : vector<4x8x128xf32>
    %514 = vector.shape_cast %508 : vector<4x128xf32> to vector<4x1x128xf32>
    %515 = vector.broadcast %514 : vector<4x1x128xf32> to vector<4x8x128xf32>
    %516 = arith.mulf %515, %501 : vector<4x8x128xf32>
    %517 = arith.addf %513, %516 : vector<4x8x128xf32>
    %518 = vector.extract_strided_slice %10 {offsets = [0, 3328], sizes = [32, 128], strides = [1, 1]} : vector<64x4096xf32> to vector<32x128xf32>
    %519 = vector.shape_cast %518 : vector<32x128xf32> to vector<4x8x128xf32>
    %520 = vector.extract_strided_slice %10 {offsets = [32, 3328], sizes = [32, 128], strides = [1, 1]} : vector<64x4096xf32> to vector<32x128xf32>
    %521 = vector.shape_cast %520 : vector<32x128xf32> to vector<4x8x128xf32>
    %522 = arith.mulf %5, %519 : vector<4x8x128xf32>
    %cst_37 = arith.constant dense<0.000000e+00> : vector<4x128xf32>
    %523 = vector.multi_reduction <add>, %522, %cst_37 [1] : vector<4x8x128xf32> to vector<4x128xf32>
    %524 = arith.maximumf %504, %523 : vector<4x128xf32>
    %525 = arith.subf %504, %524 : vector<4x128xf32>
    %526 = math.exp %525 : vector<4x128xf32>
    %527 = arith.subf %523, %524 : vector<4x128xf32>
    %528 = math.exp %527 : vector<4x128xf32>
    %529 = arith.mulf %526, %510 : vector<4x128xf32>
    %530 = arith.addf %529, %528 : vector<4x128xf32>
    %531 = vector.shape_cast %526 : vector<4x128xf32> to vector<4x1x128xf32>
    %532 = vector.broadcast %531 : vector<4x1x128xf32> to vector<4x8x128xf32>
    %533 = arith.mulf %532, %517 : vector<4x8x128xf32>
    %534 = vector.shape_cast %528 : vector<4x128xf32> to vector<4x1x128xf32>
    %535 = vector.broadcast %534 : vector<4x1x128xf32> to vector<4x8x128xf32>
    %536 = arith.mulf %535, %521 : vector<4x8x128xf32>
    %537 = arith.addf %533, %536 : vector<4x8x128xf32>
    %538 = vector.extract_strided_slice %10 {offsets = [0, 3456], sizes = [32, 128], strides = [1, 1]} : vector<64x4096xf32> to vector<32x128xf32>
    %539 = vector.shape_cast %538 : vector<32x128xf32> to vector<4x8x128xf32>
    %540 = vector.extract_strided_slice %10 {offsets = [32, 3456], sizes = [32, 128], strides = [1, 1]} : vector<64x4096xf32> to vector<32x128xf32>
    %541 = vector.shape_cast %540 : vector<32x128xf32> to vector<4x8x128xf32>
    %542 = arith.mulf %5, %539 : vector<4x8x128xf32>
    %cst_38 = arith.constant dense<0.000000e+00> : vector<4x128xf32>
    %543 = vector.multi_reduction <add>, %542, %cst_38 [1] : vector<4x8x128xf32> to vector<4x128xf32>
    %544 = arith.maximumf %524, %543 : vector<4x128xf32>
    %545 = arith.subf %524, %544 : vector<4x128xf32>
    %546 = math.exp %545 : vector<4x128xf32>
    %547 = arith.subf %543, %544 : vector<4x128xf32>
    %548 = math.exp %547 : vector<4x128xf32>
    %549 = arith.mulf %546, %530 : vector<4x128xf32>
    %550 = arith.addf %549, %548 : vector<4x128xf32>
    %551 = vector.shape_cast %546 : vector<4x128xf32> to vector<4x1x128xf32>
    %552 = vector.broadcast %551 : vector<4x1x128xf32> to vector<4x8x128xf32>
    %553 = arith.mulf %552, %537 : vector<4x8x128xf32>
    %554 = vector.shape_cast %548 : vector<4x128xf32> to vector<4x1x128xf32>
    %555 = vector.broadcast %554 : vector<4x1x128xf32> to vector<4x8x128xf32>
    %556 = arith.mulf %555, %541 : vector<4x8x128xf32>
    %557 = arith.addf %553, %556 : vector<4x8x128xf32>
    %558 = vector.extract_strided_slice %10 {offsets = [0, 3584], sizes = [32, 128], strides = [1, 1]} : vector<64x4096xf32> to vector<32x128xf32>
    %559 = vector.shape_cast %558 : vector<32x128xf32> to vector<4x8x128xf32>
    %560 = vector.extract_strided_slice %10 {offsets = [32, 3584], sizes = [32, 128], strides = [1, 1]} : vector<64x4096xf32> to vector<32x128xf32>
    %561 = vector.shape_cast %560 : vector<32x128xf32> to vector<4x8x128xf32>
    %562 = arith.mulf %5, %559 : vector<4x8x128xf32>
    %cst_39 = arith.constant dense<0.000000e+00> : vector<4x128xf32>
    %563 = vector.multi_reduction <add>, %562, %cst_39 [1] : vector<4x8x128xf32> to vector<4x128xf32>
    %564 = arith.maximumf %544, %563 : vector<4x128xf32>
    %565 = arith.subf %544, %564 : vector<4x128xf32>
    %566 = math.exp %565 : vector<4x128xf32>
    %567 = arith.subf %563, %564 : vector<4x128xf32>
    %568 = math.exp %567 : vector<4x128xf32>
    %569 = arith.mulf %566, %550 : vector<4x128xf32>
    %570 = arith.addf %569, %568 : vector<4x128xf32>
    %571 = vector.shape_cast %566 : vector<4x128xf32> to vector<4x1x128xf32>
    %572 = vector.broadcast %571 : vector<4x1x128xf32> to vector<4x8x128xf32>
    %573 = arith.mulf %572, %557 : vector<4x8x128xf32>
    %574 = vector.shape_cast %568 : vector<4x128xf32> to vector<4x1x128xf32>
    %575 = vector.broadcast %574 : vector<4x1x128xf32> to vector<4x8x128xf32>
    %576 = arith.mulf %575, %561 : vector<4x8x128xf32>
    %577 = arith.addf %573, %576 : vector<4x8x128xf32>
    %578 = vector.extract_strided_slice %10 {offsets = [0, 3712], sizes = [32, 128], strides = [1, 1]} : vector<64x4096xf32> to vector<32x128xf32>
    %579 = vector.shape_cast %578 : vector<32x128xf32> to vector<4x8x128xf32>
    %580 = vector.extract_strided_slice %10 {offsets = [32, 3712], sizes = [32, 128], strides = [1, 1]} : vector<64x4096xf32> to vector<32x128xf32>
    %581 = vector.shape_cast %580 : vector<32x128xf32> to vector<4x8x128xf32>
    %582 = arith.mulf %5, %579 : vector<4x8x128xf32>
    %cst_40 = arith.constant dense<0.000000e+00> : vector<4x128xf32>
    %583 = vector.multi_reduction <add>, %582, %cst_40 [1] : vector<4x8x128xf32> to vector<4x128xf32>
    %584 = arith.maximumf %564, %583 : vector<4x128xf32>
    %585 = arith.subf %564, %584 : vector<4x128xf32>
    %586 = math.exp %585 : vector<4x128xf32>
    %587 = arith.subf %583, %584 : vector<4x128xf32>
    %588 = math.exp %587 : vector<4x128xf32>
    %589 = arith.mulf %586, %570 : vector<4x128xf32>
    %590 = arith.addf %589, %588 : vector<4x128xf32>
    %591 = vector.shape_cast %586 : vector<4x128xf32> to vector<4x1x128xf32>
    %592 = vector.broadcast %591 : vector<4x1x128xf32> to vector<4x8x128xf32>
    %593 = arith.mulf %592, %577 : vector<4x8x128xf32>
    %594 = vector.shape_cast %588 : vector<4x128xf32> to vector<4x1x128xf32>
    %595 = vector.broadcast %594 : vector<4x1x128xf32> to vector<4x8x128xf32>
    %596 = arith.mulf %595, %581 : vector<4x8x128xf32>
    %597 = arith.addf %593, %596 : vector<4x8x128xf32>
    %598 = vector.extract_strided_slice %10 {offsets = [0, 3840], sizes = [32, 128], strides = [1, 1]} : vector<64x4096xf32> to vector<32x128xf32>
    %599 = vector.shape_cast %598 : vector<32x128xf32> to vector<4x8x128xf32>
    %600 = vector.extract_strided_slice %10 {offsets = [32, 3840], sizes = [32, 128], strides = [1, 1]} : vector<64x4096xf32> to vector<32x128xf32>
    %601 = vector.shape_cast %600 : vector<32x128xf32> to vector<4x8x128xf32>
    %602 = arith.mulf %5, %599 : vector<4x8x128xf32>
    %cst_41 = arith.constant dense<0.000000e+00> : vector<4x128xf32>
    %603 = vector.multi_reduction <add>, %602, %cst_41 [1] : vector<4x8x128xf32> to vector<4x128xf32>
    %604 = arith.maximumf %584, %603 : vector<4x128xf32>
    %605 = arith.subf %584, %604 : vector<4x128xf32>
    %606 = math.exp %605 : vector<4x128xf32>
    %607 = arith.subf %603, %604 : vector<4x128xf32>
    %608 = math.exp %607 : vector<4x128xf32>
    %609 = arith.mulf %606, %590 : vector<4x128xf32>
    %610 = arith.addf %609, %608 : vector<4x128xf32>
    %611 = vector.shape_cast %606 : vector<4x128xf32> to vector<4x1x128xf32>
    %612 = vector.broadcast %611 : vector<4x1x128xf32> to vector<4x8x128xf32>
    %613 = arith.mulf %612, %597 : vector<4x8x128xf32>
    %614 = vector.shape_cast %608 : vector<4x128xf32> to vector<4x1x128xf32>
    %615 = vector.broadcast %614 : vector<4x1x128xf32> to vector<4x8x128xf32>
    %616 = arith.mulf %615, %601 : vector<4x8x128xf32>
    %617 = arith.addf %613, %616 : vector<4x8x128xf32>
    %618 = vector.extract_strided_slice %10 {offsets = [0, 3968], sizes = [32, 128], strides = [1, 1]} : vector<64x4096xf32> to vector<32x128xf32>
    %619 = vector.shape_cast %618 : vector<32x128xf32> to vector<4x8x128xf32>
    %620 = vector.extract_strided_slice %10 {offsets = [32, 3968], sizes = [32, 128], strides = [1, 1]} : vector<64x4096xf32> to vector<32x128xf32>
    %621 = vector.shape_cast %620 : vector<32x128xf32> to vector<4x8x128xf32>
    %622 = arith.mulf %5, %619 : vector<4x8x128xf32>
    %cst_42 = arith.constant dense<0.000000e+00> : vector<4x128xf32>
    %623 = vector.multi_reduction <add>, %622, %cst_42 [1] : vector<4x8x128xf32> to vector<4x128xf32>
    %624 = arith.maximumf %604, %623 : vector<4x128xf32>
    %625 = arith.subf %604, %624 : vector<4x128xf32>
    %626 = math.exp %625 : vector<4x128xf32>
    %627 = arith.subf %623, %624 : vector<4x128xf32>
    %628 = math.exp %627 : vector<4x128xf32>
    %629 = arith.mulf %626, %610 : vector<4x128xf32>
    %630 = arith.addf %629, %628 : vector<4x128xf32>
    %631 = vector.shape_cast %626 : vector<4x128xf32> to vector<4x1x128xf32>
    %632 = vector.broadcast %631 : vector<4x1x128xf32> to vector<4x8x128xf32>
    %633 = arith.mulf %632, %617 : vector<4x8x128xf32>
    %634 = vector.shape_cast %628 : vector<4x128xf32> to vector<4x1x128xf32>
    %635 = vector.broadcast %634 : vector<4x1x128xf32> to vector<4x8x128xf32>
    %636 = arith.mulf %635, %621 : vector<4x8x128xf32>
    %637 = arith.addf %633, %636 : vector<4x8x128xf32>
    %638 = tpu.reciprocal %630 {approx = true} : vector<4x128xf32> -> vector<4x128xf32>
    %639 = vector.shape_cast %638 : vector<4x128xf32> to vector<4x1x128xf32>
    %640 = vector.broadcast %639 : vector<4x1x128xf32> to vector<4x8x128xf32>
    %641 = arith.mulf %637, %640 : vector<4x8x128xf32>
    %642 = vector.shape_cast %641 : vector<4x8x128xf32> to vector<32x128xf32>
    %643 = arith.addf %1, %642 : vector<32x128xf32>
    %644 = arith.subf %643, %6 : vector<32x128xf32>
    %c0_43 = arith.constant 0 : index
    %c0_44 = arith.constant 0 : index
    %645 = vector.load %arg5[%c0_43, %c0_44] : memref<32x128xf32, #tpu.memory_space<vmem>>, vector<32x128xf32>
    tpu.vector_store %arg5[%c0_43, %c0_44], %644 {strides = array<i32>} : memref<32x128xf32, #tpu.memory_space<vmem>>, vector<32x128xf32>,
    return
  }
  func.func @transform_0(%arg0: i32) -> (i32, i32, i32) {
    %c0_i32 = arith.constant 0 : i32
    %c0_i32_0 = arith.constant 0 : i32
    %c0_i32_1 = arith.constant 0 : i32
    return %arg0, %c0_i32, %c0_i32_0 : i32, i32, i32
  }
  func.func @transform_1(%arg0: i32) -> (i32, i32, i32) {
    %c0_i32 = arith.constant 0 : i32
    %c0_i32_0 = arith.constant 0 : i32
    %c0_i32_1 = arith.constant 0 : i32
    return %arg0, %c0_i32, %c0_i32_0 : i32, i32, i32
  }
  func.func @transform_2(%arg0: i32) -> (i32, i32) {
    %c0_i32 = arith.constant 0 : i32
    %c0_i32_0 = arith.constant 0 : i32
    %c0_i32_1 = arith.constant 0 : i32
    return %c0_i32, %c0_i32_0 : i32, i32
  }
  func.func @transform_3(%arg0: i32) -> (i32, i32) {
    %c0_i32 = arith.constant 0 : i32
    %c0_i32_0 = arith.constant 0 : i32
    %c0_i32_1 = arith.constant 0 : i32
    return %c0_i32, %c0_i32_0 : i32, i32
  }
  func.func @transform_4(%arg0: i32) -> (i32, i32) {
    %c0_i32 = arith.constant 0 : i32
    %c0_i32_0 = arith.constant 0 : i32
    return %c0_i32, %arg0 : i32, i32
  }
}

module attributes {stable_mosaic.version = 11 : i64} {
  func.func @_tail_kernel(%arg0: memref<32x256xf32, #tpu.memory_space<vmem>>, %arg1: memref<32x1xf32, #tpu.memory_space<vmem>>, %arg2: memref<32x1xf32, #tpu.memory_space<vmem>>, %arg3: memref<512x32xf32, #tpu.memory_space<vmem>>, %arg4: memref<32x512xf32, #tpu.memory_space<vmem>>, %arg5: memref<32x1xf32, #tpu.memory_space<vmem>>, %arg6: memref<32x1xf32, #tpu.memory_space<vmem>>, %arg7: memref<2x32x128xf32, #tpu.memory_space<vmem>>) attributes {dimension_semantics = [], scalar_prefetch = 0 : i64, scratch_operands = 0 : i64, tpu.core_type = #tpu.core_type<tc>} {
    %c0 = arith.constant 0 : index
    %c0_0 = arith.constant 0 : index
    %0 = vector.load %arg0[%c0, %c0_0] : memref<32x256xf32, #tpu.memory_space<vmem>>, vector<32x256xf32>
    %cst = arith.constant dense<0.000000e+00> : vector<32xf32>
    %1 = vector.multi_reduction <add>, %0, %cst [1] : vector<32x256xf32> to vector<32xf32>
    %2 = vector.shape_cast %1 : vector<32xf32> to vector<32x1xf32>
    %cst_1 = arith.constant 3.906250e-03 : f32
    %3 = vector.broadcast %cst_1 : f32 to vector<32x1xf32>
    %4 = arith.mulf %2, %3 : vector<32x1xf32>
    %5 = vector.broadcast %4 : vector<32x1xf32> to vector<32x256xf32>
    %6 = arith.subf %0, %5 : vector<32x256xf32>
    %7 = arith.mulf %6, %6 : vector<32x256xf32>
    %cst_2 = arith.constant dense<0.000000e+00> : vector<32xf32>
    %8 = vector.multi_reduction <add>, %7, %cst_2 [1] : vector<32x256xf32> to vector<32xf32>
    %9 = vector.shape_cast %8 : vector<32xf32> to vector<32x1xf32>
    %cst_3 = arith.constant 3.906250e-03 : f32
    %10 = vector.broadcast %cst_3 : f32 to vector<32x1xf32>
    %11 = arith.mulf %9, %10 : vector<32x1xf32>
    %cst_4 = arith.constant 9.99999974E-6 : f32
    %12 = vector.broadcast %cst_4 : f32 to vector<32x1xf32>
    %13 = arith.addf %11, %12 : vector<32x1xf32>
    %14 = math.rsqrt %13 : vector<32x1xf32>
    %15 = vector.broadcast %14 : vector<32x1xf32> to vector<32x256xf32>
    %16 = arith.mulf %6, %15 : vector<32x256xf32>
    %c0_5 = arith.constant 0 : index
    %c0_6 = arith.constant 0 : index
    %17 = vector.load %arg1[%c0_5, %c0_6] : memref<32x1xf32, #tpu.memory_space<vmem>>, vector<32x1xf32>
    %18 = vector.broadcast %17 : vector<32x1xf32> to vector<32x256xf32>
    %19 = arith.mulf %16, %18 : vector<32x256xf32>
    %c0_7 = arith.constant 0 : index
    %c0_8 = arith.constant 0 : index
    %20 = vector.load %arg2[%c0_7, %c0_8] : memref<32x1xf32, #tpu.memory_space<vmem>>, vector<32x1xf32>
    %21 = vector.broadcast %20 : vector<32x1xf32> to vector<32x256xf32>
    %22 = arith.addf %19, %21 : vector<32x256xf32>
    %c0_9 = arith.constant 0 : index
    %c0_10 = arith.constant 0 : index
    %23 = vector.load %arg3[%c0_9, %c0_10] : memref<512x32xf32, #tpu.memory_space<vmem>>, vector<512x32xf32>
    %cst_11 = arith.constant dense<0.000000e+00> : vector<512x256xf32>
    %24 = tpu.matmul %23, %22, %cst_11 {dimension_numbers = #tpu.dot_dimension_numbers<[1], [0], [0], [1], [0, 0, 1, 1], [], []>} : vector<512x32xf32>, vector<32x256xf32>, vector<512x256xf32> -> vector<512x256xf32>
    %cst_12 = arith.constant 0.000000e+00 : f32
    %25 = vector.broadcast %cst_12 : f32 to vector<512x256xf32>
    %26 = arith.cmpf ogt, %24, %25 : vector<512x256xf32>
    %cst_13 = arith.constant 2.000000e-01 : f32
    %27 = vector.broadcast %cst_13 : f32 to vector<512x256xf32>
    %28 = arith.mulf %27, %24 : vector<512x256xf32>
    %29 = arith.select %26, %24, %28 : vector<512x256xi1>, vector<512x256xf32>
    %c0_14 = arith.constant 0 : index
    %c0_15 = arith.constant 0 : index
    %30 = vector.load %arg4[%c0_14, %c0_15] : memref<32x512xf32, #tpu.memory_space<vmem>>, vector<32x512xf32>
    %cst_16 = arith.constant dense<0.000000e+00> : vector<32x256xf32>
    %31 = tpu.matmul %30, %29, %cst_16 {dimension_numbers = #tpu.dot_dimension_numbers<[1], [0], [0], [1], [0, 0, 1, 1], [], []>} : vector<32x512xf32>, vector<512x256xf32>, vector<32x256xf32> -> vector<32x256xf32>
    %32 = arith.addf %22, %31 : vector<32x256xf32>
    %cst_17 = arith.constant dense<0.000000e+00> : vector<32xf32>
    %33 = vector.multi_reduction <add>, %32, %cst_17 [1] : vector<32x256xf32> to vector<32xf32>
    %34 = vector.shape_cast %33 : vector<32xf32> to vector<32x1xf32>
    %cst_18 = arith.constant 3.906250e-03 : f32
    %35 = vector.broadcast %cst_18 : f32 to vector<32x1xf32>
    %36 = arith.mulf %34, %35 : vector<32x1xf32>
    %37 = vector.broadcast %36 : vector<32x1xf32> to vector<32x256xf32>
    %38 = arith.subf %32, %37 : vector<32x256xf32>
    %39 = arith.mulf %38, %38 : vector<32x256xf32>
    %cst_19 = arith.constant dense<0.000000e+00> : vector<32xf32>
    %40 = vector.multi_reduction <add>, %39, %cst_19 [1] : vector<32x256xf32> to vector<32xf32>
    %41 = vector.shape_cast %40 : vector<32xf32> to vector<32x1xf32>
    %cst_20 = arith.constant 3.906250e-03 : f32
    %42 = vector.broadcast %cst_20 : f32 to vector<32x1xf32>
    %43 = arith.mulf %41, %42 : vector<32x1xf32>
    %cst_21 = arith.constant 9.99999974E-6 : f32
    %44 = vector.broadcast %cst_21 : f32 to vector<32x1xf32>
    %45 = arith.addf %43, %44 : vector<32x1xf32>
    %46 = math.rsqrt %45 : vector<32x1xf32>
    %47 = vector.broadcast %46 : vector<32x1xf32> to vector<32x256xf32>
    %48 = arith.mulf %38, %47 : vector<32x256xf32>
    %c0_22 = arith.constant 0 : index
    %c0_23 = arith.constant 0 : index
    %49 = vector.load %arg5[%c0_22, %c0_23] : memref<32x1xf32, #tpu.memory_space<vmem>>, vector<32x1xf32>
    %50 = vector.broadcast %49 : vector<32x1xf32> to vector<32x256xf32>
    %51 = arith.mulf %48, %50 : vector<32x256xf32>
    %c0_24 = arith.constant 0 : index
    %c0_25 = arith.constant 0 : index
    %52 = vector.load %arg6[%c0_24, %c0_25] : memref<32x1xf32, #tpu.memory_space<vmem>>, vector<32x1xf32>
    %53 = vector.broadcast %52 : vector<32x1xf32> to vector<32x256xf32>
    %54 = arith.addf %51, %53 : vector<32x256xf32>
    %55 = vector.extract_strided_slice %54 {offsets = [0, 0], sizes = [32, 128], strides = [1, 1]} : vector<32x256xf32> to vector<32x128xf32>
    %c0_26 = arith.constant 0 : index
    %c0_27 = arith.constant 0 : index
    %c0_28 = arith.constant 0 : index
    %56 = vector.load %arg7[%c0_26, %c0_27, %c0_28] : memref<2x32x128xf32, #tpu.memory_space<vmem>>, vector<1x32x128xf32>
    %57 = vector.shape_cast %56 : vector<1x32x128xf32> to vector<32x128xf32>
    %58 = vector.shape_cast %55 : vector<32x128xf32> to vector<1x32x128xf32>
    tpu.vector_store %arg7[%c0_26, %c0_27, %c0_28], %58 {strides = array<i32>} : memref<2x32x128xf32, #tpu.memory_space<vmem>>, vector<1x32x128xf32>,
    %59 = vector.extract_strided_slice %54 {offsets = [0, 128], sizes = [32, 128], strides = [1, 1]} : vector<32x256xf32> to vector<32x128xf32>
    %c1 = arith.constant 1 : index
    %c0_29 = arith.constant 0 : index
    %c0_30 = arith.constant 0 : index
    %60 = vector.load %arg7[%c1, %c0_29, %c0_30] : memref<2x32x128xf32, #tpu.memory_space<vmem>>, vector<1x32x128xf32>
    %61 = vector.shape_cast %60 : vector<1x32x128xf32> to vector<32x128xf32>
    %62 = vector.shape_cast %59 : vector<32x128xf32> to vector<1x32x128xf32>
    tpu.vector_store %arg7[%c1, %c0_29, %c0_30], %62 {strides = array<i32>} : memref<2x32x128xf32, #tpu.memory_space<vmem>>, vector<1x32x128xf32>,
    return
  }
}

</mosaic_0001>

<bundles_post_ra>
// kernel: nr_attention_forward.3
= control target key start
LH: loop header
LB: loop body
LE: loop exit
PB: predicated region body
PF: predicated region fallthrough
CT: control target
= control target key end

     0   :  { %6 = vsyncpa [#allocation3], 0  ;;  %s857_s0 = inlined_call_operand.hbm [shape: f32[2,32,128], index: 0, kind: input, shape index: {}]   ;;  %s858_s1 = inlined_call_operand.vmem [shape: f32[2,128,128], index: 1, kind: output, shape index: {}]  }
   0x1   :  { %8 = vsyncpa [#allocation3 + $0x1], 0  ;;  %s704_s6 = smov 0   ;;  %s706_s7 = smov 0  }
   0x2   :  { %s708_s8 = smov 0   ;;  %s710_s9 = smov 0  }
   0x3 LB: > { %s723_s10 = sadd.s32 4294967295, %s689_s9   ;;  %s726_s11 = sadd.s32 1, %s689_s9   ;;  %s689_s9 = sphi %s710_s9, %s867_s9   ;;  %s685_s8 = sphi %s708_s8, %s866_s8   ;;  %s681_s7 = sphi %s706_s7, %s865_s7   ;;  %s677_s6 = sphi %s704_s6, %s864_s6  }
   0x4   : > { %s18_s12 = ssub.s32 %s689_s9, %s726_s11  ;;  %s21_s13 = sadd.s32 1, %s685_s8 }
   0x5   : > { %p19_p0 = scmp.eq.s32.totalorder %s18_s12, 0  ;;  %p28_p1 = scmp.ne.s32.totalorder %s685_s8, %s681_s7 }
   0x6   : > { %p29_p2 = scmp.eq.s32.totalorder %s689_s9, 0  ;;  %p34_p3 = scmp.ne.s32.totalorder %s681_s7, %s677_s6 }
   0x7   : > { %s736_s14 = scalar_select %p19_p0, %s685_s8, %s21_s13  }
   0x8   : > { %p30_p4 = por %p29_p2, %p28_p1  ;;  %p35_p5 = scmp.eq.s32.totalorder %s723_s10, 0 }
   0x9   : > { %p591_p6 = scmp.lt.s32.totalorder %s689_s9, 2  ;;  %s84_s16 = sand.u32 1, %s685_s8  }
   0xa   : > { %p740_p7 = por %p35_p5, %p34_p3  ;;  %s498_s17 = sshll.u32 %s84_s16, 5 }
   0xb   : > { %s523_s18 = sshll.u32 %s689_s9, 9  ;;  %s88_s22 = scalar_lea.vmem [#allocation2], %s498_s17 }
   0xc   : > { %s860_s15 = scalar_select %p740_p7, 1, 0 }
   0xd   : > { %s749_s21 = scalar_lea.hbm %s857_s0, %s523_s18  ;;  %s95_s23 = sshll.u32 %s88_s22, 4  ;;  %s751_s23 = int_to_ptr.vmem [resolvable:$true] %s95_s23 }
   0xe   : > { %p753_p8 = pnand %p591_p6, %p30_p4  ;;  %s758_s25 = scalar_lea.sflag [#allocation3], %s84_s16 }
   0xf   : > { %s627_s26 = scalar_lea.hbm %s749_s21, 512  ;;  %s632_s29 = scalar_lea.hbm %s857_s0, 1024 }
  0x10   : > { %p628_p10 = scmp.ne.s32.totalorder %s749_s21, %s627_s26  ;;  %p629_p11 = pneg %p753_p8 }
  0x11   : > { %p633_p0 = scmp.lt.s32.totalorder %s749_s21, %s857_s0  ;;  %p634_p1 = scmp.lt.s32.totalorder %s632_s29, %s627_s26 }
  0x12   : > { %p630_p12 = pnand %p629_p11, %p628_p10 }
  0x13   : > { %p635_p2 = por %p634_p1, %p633_p0 }
  0x14   : > { %p631_p13 = pneg %p630_p12 }
  0x16   : > { %p636_p3 = pnand %p635_p2, %p631_p13 }
  0x18   : > { %639 = shalt.err (!%p636_p3)
}
  0x19   : > { %s640_s3 = scalar_lea.vmem %s751_s23, 512  ;;  %s691_s4 = smov [#allocation2]  }
  0x1a   : > { %p641_p4 = scmp.ne.s32.totalorder %s751_s23, %s640_s3  ;;  %s645_s5 = sshll.u32 %s691_s4, 4  ;;  %s646_s5 = int_to_ptr.vmem [resolvable:$false] %s645_s5 }
  0x1b   : > { %s647_s6 = scalar_lea.vmem %s646_s5, 1024  ;;  %p648_p10 = scmp.lt.s32.totalorder %s751_s23, %s646_s5 }
  0x1c   : > { %p643_p5 = pnand %p641_p4, %p629_p11  ;;  %p649_p12 = scmp.lt.s32.totalorder %s647_s6, %s640_s3 }
  0x1e   : > { %p644_p6 = pneg %p643_p5  ;;  %p650_p9 = por %p649_p12, %p648_p10 }
  0x20   : > { %p651_p7 = pnand %p650_p9, %p644_p6 }
  0x22   : > { %654 = shalt.err (!%p651_p7)
}
  0x23   : > { %s692_s12 = smov 128   ;;  %s693_s13 = smov 8  }
  0x24   : > { %590 = dma.hbm_to_vmem [thread:$0]  (!%p753_p8), %s749_s21, 512, %s751_s23, %s758_s25, %s692_s12, %s692_s12, %s693_s13  }
  0x25   : > { %p103_p11 = scmp.lt.s32.totalorder %s689_s9, 3  ;;  %p862_p13 = scmp.ge.s32.totalorder %s689_s9, 1 }
  0x27   : > { %p104_p0 = pnand %p862_p13, %p103_p11 }
  0x28   : > { %s109_s16 = sand.u32 (!%p104_p0), 1, %s681_s7   ;;  %p863_p7 = scmp.ne.s32.totalorder (!%p104_p0), %s860_s15, 0 }
  0x29   : > { %107 = sbr.rel (%p104_p0) target bundleno = 433 (0x1b1), region = 24  ;;  %s502_s17 = sshll.u32 (!%p104_p0), %s109_s16, 5 }
  0x2a   : > { %s110_s18 = scalar_lea.sflag (!%p104_p0), [#allocation3], %s109_s16  ;;  %s113_s19 = scalar_lea.vmem (!%p104_p0), [#allocation2], %s502_s17 }
  0x2e   : > { %672 = dma.done.wait (%p863_p7), %s110_s18, 512  }
  0x2f   : > { %674 = vsyncadd (%p863_p7), %s110_s18, 4294966784  ;;  %v137_v0 = vld [vmem:[%s113_s19] sm:$0xff]  ;;  %v138_v1 = vld [vmem:[%s113_s19 + $0x8] sm:$0xff]  ;;  %vm173_vm0 = vcmask 261120   ;;  %p132_p8 = scmp.lt.s32.totalorder %s723_s10, 1 }
  0x30   : > { %v139_v2 = vld [vmem:[%s113_s19 + $0x10] sm:$0xff]  ;;  %141 = vxpose.xlu0.b32.start [1/4] (short) %v137_v0, 128  ;;  %v367_v3 = vmul.f32 %v137_v0, %v137_v0  ;;  %v368_v4 = vmul.f32 %v138_v1, %v138_v1  ;;  %v140_v6 = vld [vmem:[%s113_s19 + $0x18] sm:$0xff] }
  0x31   : > { %v369_v5 = vmul.f32 %v139_v2, %v139_v2  ;;  %545 = vmatprep.subr.mxu0 %v140_v6  ;;  %577 = vmatprep.subr.mxu1 %v140_v6  ;;  %v370_v8 = vmul.f32 %v140_v6, %v140_v6  ;;  %s869_s10 = smov (!%p132_p8, %s723_s10), 1 }
  0x32   : > { %v371_v7 = vadd.f32 %v368_v4, %v367_v3  ;;  %546 = vmatpush3.msra.mxu0 %v140_v6  ;;  %581 = vmatpush3.msra.mxu1 %v140_v6  ;;  %s524_s9 = sshll.u32 %s869_s10, 7 }
  0x33   : > { %547 = vmatprep.subr.mxu0 %v139_v2  ;;  %578 = vmatprep.subr.mxu1 %v139_v2  ;;  %s810_s21 = scalar_lea.vmem %s858_s1, %s524_s9 }
  0x34   : > { %142 = vxpose.xlu0.b32.cont [2/4] (short) %v138_v1, 128  ;;  %v372_v9 = vadd.f32 %v371_v7, %v369_v5  ;;  %548 = vmatpush3.msra.mxu0 %v139_v2 }
  0x35   : > { %549 = vmatprep.subr.mxu0 %v138_v1  ;;  %582 = vmatpush3.msra.mxu1 %v139_v2 }
  0x36   : > { %v373_v10 = vadd.f32 %v372_v9, %v370_v8  ;;  %550 = vmatpush3.msra.mxu0 %v138_v1  ;;  %579 = vmatprep.subr.mxu1 %v138_v1 }
  0x37   : > { %551 = vmatprep.subr.mxu0 %v137_v0  ;;  %583 = vmatpush3.msra.mxu1 %v138_v1 }
  0x38   : > { %143 = vxpose.xlu0.b32.cont [3/4] (short) %v139_v2, 128  ;;  %552 = vmatpush3.msra.mxu0 %v137_v0  ;;  %v374_v27 = vrot.slane %v373_v10, 4 }
  0x39   : > { %580 = vmatprep.subr.mxu1 %v137_v0 }
  0x3a   : > { %584 = vmatpush3.msra.mxu1 %v137_v0  ;;  %v375_v28 = vadd.f32 %v374_v27, %v373_v10 }
  0x3c   : > { %144 = vxpose.xlu0.b32.end [4/4] (short) %v140_v6, 128  ;;  %v376_v29 = vrot.slane %v375_v28, 2 }
  0x3e   : > { %v377_v30 = vadd.f32 %v376_v29, %v375_v28 }
  0x40   : > { %v378_v31 = vrot.slane %v377_v30, 1 }
  0x42   : > { %v805_v32 = vadd.f32 %v378_v31, %v377_v30 }
  0xac   : > { %v157_v11 = vpop.trf.xlu0 }
  0xad   : > { %553 = vmatprep.mubr.msk.f32.mxu0 %vm173_vm0, %v157_v11 }
  0xb0   : > { %v158_v12 = vpop.trf.xlu0 }
  0xb1   : > { %554 = vmatmul.mubr.msk.f32.vlgmr.msra.gmra.mxu0 %vm173_vm0, %v158_v12 }
  0xb4   : > { %v159_v13 = vpop.trf.xlu0 }
  0xb5   : > { %556 = vmatprep.mubr.msk.f32.mxu0 %vm173_vm0, %v159_v13 }
  0xb8   : > { %v160_v14 = vpop.trf.xlu0 }
  0xb9   : > { %557 = vmatmul.mubr.msk.f32.gmra.mxu0 %vm173_vm0, %v160_v14 }
  0xbc   : > { %v161_v15 = vpop.trf.xlu0 }
  0xbd   : > { %559 = vmatprep.mubr.msk.f32.mxu0 %vm173_vm0, %v161_v15 }
  0xc0   : > { %v162_v16 = vpop.trf.xlu0 }
  0xc1   : > { %560 = vmatmul.mubr.msk.f32.gmra.mxu0 %vm173_vm0, %v162_v16 }
  0xc4   : > { %v163_v17 = vpop.trf.xlu0 }
  0xc5   : > { %562 = vmatprep.mubr.msk.f32.mxu0 %vm173_vm0, %v163_v17 }
  0xc8   : > { %v164_v18 = vpop.trf.xlu0 }
  0xc9   : > { %563 = vmatmul.mubr.msk.f32.gmra.mxu0 %vm173_vm0, %v164_v18 }
  0xcc   : > { %v165_v19 = vpop.trf.xlu0 }
  0xcd   : > { %565 = vmatprep.mubr.msk.f32.mxu1 %vm173_vm0, %v165_v19 }
  0xd0   : > { %v166_v20 = vpop.trf.xlu0 }
  0xd1   : > { %566 = vmatmul.mubr.msk.f32.vlgmr.msra.gmra.mxu1 %vm173_vm0, %v166_v20 }
  0xd4   : > { %v167_v21 = vpop.trf.xlu0 }
  0xd5   : > { %568 = vmatprep.mubr.msk.f32.mxu1 %vm173_vm0, %v167_v21 }
  0xd8   : > { %v168_v22 = vpop.trf.xlu0 }
  0xd9   : > { %569 = vmatmul.mubr.msk.f32.gmra.mxu1 %vm173_vm0, %v168_v22 }
  0xdc   : > { %v169_v23 = vpop.trf.xlu0 }
  0xdd   : > { %571 = vmatprep.mubr.msk.f32.mxu1 %vm173_vm0, %v169_v23 }
  0xe0   : > { %v170_v24 = vpop.trf.xlu0 }
  0xe1   : > { %572 = vmatmul.mubr.msk.f32.gmra.mxu1 %vm173_vm0, %v170_v24 }
  0xe4   : > { %v171_v25 = vpop.trf.xlu0 }
  0xe5   : > { %574 = vmatprep.mubr.msk.f32.mxu1 %vm173_vm0, %v171_v25 }
  0xe8   : > { %v172_v26 = vpop.trf.xlu0 }
  0xe9   : > { %575 = vmatmul.mubr.msk.f32.gmra.mxu1 %vm173_vm0, %v172_v26 }
 0x171   : > { %v555_v33 = vpop.f32.mrf.mxu0 }
 0x172   : > { %v381_v34 = vmul.f32 2.0, %v555_v33 }
 0x173   : > { %v288_v35 = vpop.f32.mrf.mxu0 }
 0x174   : > { %v397_v36 = vsub.f32 %v381_v34, %v805_v32  ;;  %v380_v37 = vmul.f32 2.0, %v288_v35 }
 0x176   : > { %413 = vst [vmem:[%s810_s21 + $0x8] sm:$0xff] %v397_v36  ;;  %v396_v38 = vsub.f32 %v380_v37, %v805_v32 }
 0x178   : > { %412 = vst [vmem:[%s810_s21] sm:$0xff] %v396_v38 }
 0x179   : > { %v558_v39 = vpop.f32.mrf.mxu0 }
 0x17a   : > { %v383_v40 = vmul.f32 2.0, %v558_v39 }
 0x17b   : > { %v298_v41 = vpop.f32.mrf.mxu0 }
 0x17c   : > { %v399_v42 = vsub.f32 %v383_v40, %v805_v32  ;;  %v382_v43 = vmul.f32 2.0, %v298_v41 }
 0x17e   : > { %415 = vst [vmem:[%s810_s21 + $0x18] sm:$0xff] %v399_v42  ;;  %v398_v44 = vsub.f32 %v382_v43, %v805_v32 }
 0x180   : > { %414 = vst [vmem:[%s810_s21 + $0x10] sm:$0xff] %v398_v44 }
 0x181   : > { %v561_v45 = vpop.f32.mrf.mxu0 }
 0x182   : > { %v385_v46 = vmul.f32 2.0, %v561_v45 }
 0x183   : > { %v308_v47 = vpop.f32.mrf.mxu0 }
 0x184   : > { %v401_v48 = vsub.f32 %v385_v46, %v805_v32  ;;  %v384_v49 = vmul.f32 2.0, %v308_v47 }
 0x186   : > { %417 = vst [vmem:[%s810_s21 + $0x28] sm:$0xff] %v401_v48  ;;  %v400_v50 = vsub.f32 %v384_v49, %v805_v32 }
 0x188   : > { %416 = vst [vmem:[%s810_s21 + $0x20] sm:$0xff] %v400_v50 }
 0x189   : > { %v564_v51 = vpop.f32.mrf.mxu0 }
 0x18a   : > { %v387_v52 = vmul.f32 2.0, %v564_v51 }
 0x18b   : > { %v318_v53 = vpop.f32.mrf.mxu0 }
 0x18c   : > { %v403_v54 = vsub.f32 %v387_v52, %v805_v32  ;;  %v386_v55 = vmul.f32 2.0, %v318_v53 }
 0x18e   : > { %419 = vst [vmem:[%s810_s21 + $0x38] sm:$0xff] %v403_v54  ;;  %v402_v56 = vsub.f32 %v386_v55, %v805_v32 }
 0x190   : > { %418 = vst [vmem:[%s810_s21 + $0x30] sm:$0xff] %v402_v56 }
 0x191   : > { %v567_v57 = vpop.f32.mrf.mxu1 }
 0x192   : > { %v389_v58 = vmul.f32 2.0, %v567_v57 }
 0x193   : > { %v328_v59 = vpop.f32.mrf.mxu1 }
 0x194   : > { %v405_v60 = vsub.f32 %v389_v58, %v805_v32  ;;  %v388_v61 = vmul.f32 2.0, %v328_v59 }
 0x196   : > { %421 = vst [vmem:[%s810_s21 + $0x48] sm:$0xff] %v405_v60  ;;  %v404_v62 = vsub.f32 %v388_v61, %v805_v32 }
 0x198   : > { %420 = vst [vmem:[%s810_s21 + $0x40] sm:$0xff] %v404_v62 }
 0x199   : > { %v570_v63 = vpop.f32.mrf.mxu1 }
 0x19a   : > { %v391_v0 = vmul.f32 2.0, %v570_v63 }
 0x19b   : > { %v338_v1 = vpop.f32.mrf.mxu1 }
 0x19c   : > { %v407_v2 = vsub.f32 %v391_v0, %v805_v32  ;;  %v390_v3 = vmul.f32 2.0, %v338_v1 }
 0x19e   : > { %423 = vst [vmem:[%s810_s21 + $0x58] sm:$0xff] %v407_v2  ;;  %v406_v4 = vsub.f32 %v390_v3, %v805_v32 }
 0x1a0   : > { %422 = vst [vmem:[%s810_s21 + $0x50] sm:$0xff] %v406_v4 }
 0x1a1   : > { %v573_v5 = vpop.f32.mrf.mxu1 }
 0x1a2   : > { %v393_v6 = vmul.f32 2.0, %v573_v5 }
 0x1a3   : > { %v348_v7 = vpop.f32.mrf.mxu1 }
 0x1a4   : > { %v409_v8 = vsub.f32 %v393_v6, %v805_v32  ;;  %v392_v9 = vmul.f32 2.0, %v348_v7 }
 0x1a6   : > { %425 = vst [vmem:[%s810_s21 + $0x68] sm:$0xff] %v409_v8  ;;  %v408_v10 = vsub.f32 %v392_v9, %v805_v32 }
 0x1a8   : > { %424 = vst [vmem:[%s810_s21 + $0x60] sm:$0xff] %v408_v10 }
 0x1a9   : > { %v576_v11 = vpop.f32.mrf.mxu1 }
 0x1aa   : > { %v395_v12 = vmul.f32 2.0, %v576_v11 }
 0x1ab   : > { %v358_v13 = vpop.f32.mrf.mxu1 }
 0x1ac   : > { %v411_v14 = vsub.f32 %v395_v12, %v805_v32  ;;  %v394_v15 = vmul.f32 2.0, %v358_v13 }
 0x1ae   : > { %427 = vst [vmem:[%s810_s21 + $0x78] sm:$0xff] %v411_v14  ;;  %v410_v16 = vsub.f32 %v394_v15, %v805_v32 }
 0x1b0   : > { %426 = vst [vmem:[%s810_s21 + $0x70] sm:$0xff] %v410_v16 }
 0x1b1 PF: > { %p11_p9 = scmp.ge.s32.totalorder %s726_s11, 4   ;;  %s864_s6 = smov %s681_s7 }
 0x1b2   : > { %s865_s7 = smov %s685_s8  ;;  %s866_s8 = smov %s736_s14 }
 0x1b3   : > { %s867_s9 = smov %s726_s11  ;;  %13 = sbr.rel (!%p11_p9) target bundleno = 3 (0x3), region = 64 }
 0x1b8   :  { %449 = vsyncpa [#allocation3], 1 }
 0x1b9   :  { %451 = vsyncpa [#allocation3 + $0x1], 1 }

// kernel: nr_attention_forward.5
= control target key start
LH: loop header
LB: loop body
LE: loop exit
PB: predicated region body
PF: predicated region fallthrough
CT: control target
= control target key end

     0   :  { %s2951_s0 = inlined_call_operand.vmem [shape: f32[32,256], index: 0, kind: input, shape index: {}]   ;;  %s2952_s1 = inlined_call_operand.vmem [shape: f32[32,1], index: 1, kind: input, shape index: {}]   ;;  %s2953_s2 = inlined_call_operand.vmem [shape: f32[32,1], index: 2, kind: input, shape index: {}]   ;;  %s2954_s3 = inlined_call_operand.vmem [shape: f32[512,32], index: 3, kind: input, shape index: {}]   ;;  %s2955_s4 = inlined_call_operand.vmem [shape: f32[32,512], index: 4, kind: input, shape index: {}]   ;;  %s2956_s5 = inlined_call_operand.vmem [shape: f32[32,1], index: 5, kind: input, shape index: {}]   ;;  %s2957_s6 = inlined_call_operand.vmem [shape: f32[32,1], index: 6, kind: input, shape index: {}]   ;;  %s2958_s7 = inlined_call_operand.hbm [shape: f32[2,32,128], index: 7, kind: output, shape index: {}]  }
   0x1   :  { %v33_v0 = vld [vmem:[%s2951_s0 + $0x30] sm:$0xff]  ;;  %v34_v1 = vld [vmem:[%s2951_s0 + $0x38] sm:$0xff]  ;;  %v31_v2 = vld [vmem:[%s2951_s0 + $0x20] sm:$0xff] }
   0x2   :  { %v44_v3 = vadd.f32 %v34_v1, %v33_v0  ;;  %v32_v4 = vld [vmem:[%s2951_s0 + $0x28] sm:$0xff]  ;;  %v29_v5 = vld [vmem:[%s2951_s0 + $0x10] sm:$0xff]  ;;  %v30_v6 = vld [vmem:[%s2951_s0 + $0x18] sm:$0xff] }
   0x3   :  { %v38_v7 = vadd.f32 %v30_v6, %v29_v5  ;;  %v27_v8 = vld [vmem:[%s2951_s0] sm:$0xff]  ;;  %v28_v9 = vld [vmem:[%s2951_s0 + $0x8] sm:$0xff] }
   0x4   :  { %12 = vsyncpa [#allocation3], 0  ;;  %45 = vadd.xlane.f32.xlu0 %v44_v3  ;;  %v41_v10 = vadd.f32 %v32_v4, %v31_v2  ;;  %v35_v11 = vadd.f32 %v28_v9, %v27_v8  ;;  %v1725_v12 = vmov 0   ;;  %v101_v34 = vld [vmem:[%s2952_s1 + $0x10] sm:$0xff]  ;;  %v134_v35 = vld [vmem:[%s2953_s2 + $0x18] sm:$0xff]  ;;  %v1726_v49 = vmov 0.0  }
   0x5   :  { %39 = vadd.xlane.f32.xlu1 %v38_v7  ;;  %1685 = vset.pattern.permute.xlu0 %v1725_v12  ;;  %v102_v36 = vld [vmem:[%s2952_s1 + $0x18] sm:$0xff]  ;;  %v100_v37 = vld [vmem:[%s2952_s1 + $0x8] sm:$0xff]  ;;  %v133_v38 = vld [vmem:[%s2953_s2 + $0x10] sm:$0xff]  ;;  %vm227_vm0 = vcmask 261120  }
   0x6   :  { %1686 = vset.pattern.permute.xlu1 %v1725_v12  ;;  %v99_v39 = vld [vmem:[%s2952_s1] sm:$0xff]  ;;  %v132_v40 = vld [vmem:[%s2953_s2 + $0x8] sm:$0xff]  ;;  %484 = vmatprep.mubr.f32.mxu0 %v1726_v49 }
   0x7   :  { %v131_v48 = vld [vmem:[%s2953_s2] sm:$0xff]  ;;  %736 = vmatprep.mubr.f32.mxu1 %v1726_v49 }
   0x8   :  { %42 = vadd.xlane.f32.xlu0 %v41_v10 }
   0x9   :  { %36 = vadd.xlane.f32.xlu1 %v35_v11 }
  0x8d   :  { %v46_v13 = vpop.xlane.xlu0 %45 }
  0x8e   :  { %v50_v14 = vmul.f32 0.00390625, %v46_v13  ;;  %v40_v15 = vpop.xlane.xlu1 %39 }
  0x8f   :  { %v48_v16 = vmul.f32 0.00390625, %v40_v15 }
  0x90   :  { %v1794_v17 = vsub.f32 %v33_v0, %v50_v14  ;;  %v1796_v18 = vsub.f32 %v34_v1, %v50_v14 }
  0x91   :  { %v43_v19 = vpop.xlane.xlu0 %42  ;;  %v1798_v20 = vsub.f32 %v29_v5, %v48_v16  ;;  %v1800_v21 = vsub.f32 %v30_v6, %v48_v16 }
  0x92   :  { %v49_v22 = vmul.f32 0.00390625, %v43_v19  ;;  %v65_v23 = vmul.f32 %v1794_v17, %v1794_v17  ;;  %v66_v24 = vmul.f32 %v1796_v18, %v1796_v18  ;;  %v37_v41 = vpop.xlane.xlu1 %36 }
  0x93   :  { %v61_v25 = vmul.f32 %v1798_v20, %v1798_v20  ;;  %v62_v26 = vmul.f32 %v1800_v21, %v1800_v21  ;;  %v47_v42 = vmul.f32 0.00390625, %v37_v41  ;;  %v208_v41 = vld [vmem:[%s2954_s3 + $0x168] sm:$0xff] }
  0x94   :  { %v1810_v27 = vsub.f32 %v31_v2, %v49_v22  ;;  %v1812_v28 = vsub.f32 %v32_v4, %v49_v22  ;;  %v76_v29 = vadd.f32 %v66_v24, %v65_v23 }
  0x95   :  { %v70_v30 = vadd.f32 %v62_v26, %v61_v25  ;;  %v1839_v43 = vsub.f32 %v27_v8, %v47_v42  ;;  %v1841_v44 = vsub.f32 %v28_v9, %v47_v42  ;;  %v167_v42 = vld [vmem:[%s2954_s3 + $0x20] sm:$0xff] }
  0x96   :  { %77 = vadd.xlane.f32.xlu0 %v76_v29  ;;  %v63_v31 = vmul.f32 %v1810_v27, %v1810_v27  ;;  %v64_v32 = vmul.f32 %v1812_v28, %v1812_v28 }
  0x97   :  { %v59_v45 = vmul.f32 %v1839_v43, %v1839_v43  ;;  %v60_v46 = vmul.f32 %v1841_v44, %v1841_v44 }
  0x98   :  { %v73_v33 = vadd.f32 %v64_v32, %v63_v31 }
  0x99   :  { %v67_v47 = vadd.f32 %v60_v46, %v59_v45  ;;  %v210_v45 = vld [vmem:[%s2954_s3 + $0x178] sm:$0xff]  ;;  %v169_v46 = vld [vmem:[%s2954_s3 + $0x30] sm:$0xff] }
  0x9a   :  { %71 = vadd.xlane.f32.xlu0 %v70_v30  ;;  %74 = vadd.xlane.f32.xlu1 %v73_v33 }
  0xab   :  { %115 = vperm.xlu1 %1686, %v101_v34   ;;  %v163_v34 = vld [vmem:[%s2954_s3] sm:$0xff] }
  0xaf   :  { %152 = vperm.xlu1 %1686, %v134_v35   ;;  %v205_v35 = vld [vmem:[%s2954_s3 + $0x150] sm:$0xff] }
  0xb0   :  { %120 = vperm.xlu0 %1685, %v102_v36   ;;  %v164_v36 = vld [vmem:[%s2954_s3 + $0x8] sm:$0xff] }
  0xb3   :  { %110 = vperm.xlu1 %1686, %v100_v37   ;;  %v206_v37 = vld [vmem:[%s2954_s3 + $0x158] sm:$0xff] }
  0xb7   :  { %147 = vperm.xlu1 %1686, %v133_v38   ;;  %v165_v38 = vld [vmem:[%s2954_s3 + $0x10] sm:$0xff] }
  0xbb   :  { %105 = vperm.xlu1 %1686, %v99_v39   ;;  %v207_v39 = vld [vmem:[%s2954_s3 + $0x160] sm:$0xff] }
  0xbf   :  { %142 = vperm.xlu1 %1686, %v132_v40   ;;  %v166_v40 = vld [vmem:[%s2954_s3 + $0x18] sm:$0xff] }
  0xe3   :  { %68 = vadd.xlane.f32.xlu1 %v67_v47  ;;  %v211_v47 = vld [vmem:[%s2954_s3 + $0x180] sm:$0xff] }
  0xf4   :  { %137 = vperm.xlu1 %1686, %v131_v48   ;;  %v170_v48 = vld [vmem:[%s2954_s3 + $0x38] sm:$0xff] }
 0x11f   :  { %v78_v50 = vpop.xlane.xlu0 %77 }
 0x120   :  { %v82_v51 = vmul.f32 0.00390625, %v78_v50  ;;  %v212_v50 = vld [vmem:[%s2954_s3 + $0x188] sm:$0xff] }
 0x122   :  { %v86_v52 = vadd.f32 1e-05, %v82_v51  ;;  %v171_v51 = vld [vmem:[%s2954_s3 + $0x40] sm:$0xff] }
 0x123   :  { %v72_v53 = vpop.xlane.xlu0 %71  ;;  %v75_v54 = vpop.xlane.xlu1 %74 }
 0x124   :  { %1687 = vrsqrt.f32 %v86_v52  ;;  %v80_v55 = vmul.f32 0.00390625, %v72_v53  ;;  %v81_v56 = vmul.f32 0.00390625, %v75_v54  ;;  %v213_v52 = vld [vmem:[%s2954_s3 + $0x190] sm:$0xff]  ;;  %v172_v53 = vld [vmem:[%s2954_s3 + $0x48] sm:$0xff]  ;;  %v214_v54 = vld [vmem:[%s2954_s3 + $0x198] sm:$0xff] }
 0x126   :  { %v84_v57 = vadd.f32 1e-05, %v80_v55  ;;  %v85_v58 = vadd.f32 1e-05, %v81_v56  ;;  %v173_v55 = vld [vmem:[%s2954_s3 + $0x50] sm:$0xff]  ;;  %v215_v56 = vld [vmem:[%s2954_s3 + $0x1a0] sm:$0xff] }
 0x127   :  { %v116_v59 = vpop.permute.xlu1 %115 }
 0x128   :  { %1689 = vrsqrt.f32 %v84_v57  ;;  %v174_v57 = vld [vmem:[%s2954_s3 + $0x58] sm:$0xff] }
 0x129   :  { %1691 = vrsqrt.f32 %v85_v58  ;;  %v216_v58 = vld [vmem:[%s2954_s3 + $0x1a8] sm:$0xff] }
 0x12b   :  { %v153_v60 = vpop.permute.xlu1 %152  ;;  %v121_v63 = vpop.permute.xlu0 %120 }
 0x12f   :  { %v111_v61 = vpop.permute.xlu1 %110 }
 0x131   :  { %v1688_v62 = vpop.eup %1687 }
 0x132   :  { %v97_v0 = vmul.f32 %v1688_v62, %v1794_v17  ;;  %v98_v1 = vmul.f32 %v1688_v62, %v1796_v18  ;;  %v218_v62 = vld [vmem:[%s2954_s3 + $0x1b8] sm:$0xff] }
 0x133   :  { %v148_v2 = vpop.permute.xlu1 %147 }
 0x134   :  { %v129_v3 = vmul.f32 %v121_v63, %v97_v0  ;;  %v130_v4 = vmul.f32 %v121_v63, %v98_v1  ;;  %v177_v63 = vld [vmem:[%s2954_s3 + $0x70] sm:$0xff]  ;;  %v219_v0 = vld [vmem:[%s2954_s3 + $0x1c0] sm:$0xff]  ;;  %v178_v1 = vld [vmem:[%s2954_s3 + $0x78] sm:$0xff] }
 0x135   :  { %v1690_v5 = vpop.eup %1689 }
 0x136   :  { %v1692_v6 = vpop.eup %1691  ;;  %v93_v7 = vmul.f32 %v1690_v5, %v1798_v20  ;;  %v94_v8 = vmul.f32 %v1690_v5, %v1800_v21  ;;  %v1856_v9 = vadd.f32 %v153_v60, %v129_v3  ;;  %v1858_v10 = vadd.f32 %v153_v60, %v130_v4  ;;  %v217_v60 = vld [vmem:[%s2954_s3 + $0x1b0] sm:$0xff]  ;;  %v179_v3 = vld [vmem:[%s2954_s3 + $0x80] sm:$0xff]  ;;  %v180_v5 = vld [vmem:[%s2954_s3 + $0x88] sm:$0xff] }
 0x137   :  { %v95_v11 = vmul.f32 %v1692_v6, %v1810_v27  ;;  %v96_v12 = vmul.f32 %v1692_v6, %v1812_v28  ;;  %v106_v13 = vpop.permute.xlu1 %105  ;;  %v221_v4 = vld [vmem:[%s2954_s3 + $0x1d0] sm:$0xff]  ;;  %v222_v6 = vld [vmem:[%s2954_s3 + $0x1d8] sm:$0xff] }
 0x138   :  { %2980 = vst [vmem:[#allocation5_spill] sm:$0xff] %v1856_v9  ;;  %2981 = vst [vmem:[#allocation6_spill] sm:$0xff] %v1858_v10  ;;  %444 = vmatprep.subr.mxu0 %v1858_v10  ;;  %1672 = vmatprep.subr.mxu1 %v1858_v10  ;;  %v125_v16 = vmul.f32 %v111_v61, %v93_v7  ;;  %v126_v17 = vmul.f32 %v111_v61, %v94_v8  ;;  %v176_v61 = vld [vmem:[%s2954_s3 + $0x68] sm:$0xff]  ;;  %v181_v7 = vld [vmem:[%s2954_s3 + $0x90] sm:$0xff] }
 0x139   :  { %v127_v14 = vmul.f32 %v116_v59, %v95_v11  ;;  %v128_v15 = vmul.f32 %v116_v59, %v96_v12  ;;  %445 = vmatpush1.msra.mxu0 %v1856_v9  ;;  %1676 = vmatpush1.msra.mxu1 %v1856_v9  ;;  %v175_v59 = vld [vmem:[%s2954_s3 + $0x60] sm:$0xff]  ;;  %v182_v11 = vld [vmem:[%s2954_s3 + $0x98] sm:$0xff]  ;;  %v224_v12 = vld [vmem:[%s2954_s3 + $0x1e8] sm:$0xff] }
 0x13a   :  { %v223_v8 = vld [vmem:[%s2954_s3 + $0x1e0] sm:$0xff] }
 0x13b   :  { %v1866_v18 = vadd.f32 %v148_v2, %v127_v14  ;;  %v1868_v19 = vadd.f32 %v148_v2, %v128_v15  ;;  %v143_v20 = vpop.permute.xlu1 %142  ;;  %v220_v2 = vld [vmem:[%s2954_s3 + $0x1c8] sm:$0xff]  ;;  %v225_v14 = vld [vmem:[%s2954_s3 + $0x1f0] sm:$0xff] }
 0x13c   :  { %v1870_v21 = vadd.f32 %v143_v20, %v125_v16  ;;  %v1872_v22 = vadd.f32 %v143_v20, %v126_v17  ;;  %v184_v15 = vld [vmem:[%s2954_s3 + $0xa8] sm:$0xff]  ;;  %v226_v16 = vld [vmem:[%s2954_s3 + $0x1f8] sm:$0xff]  ;;  %v185_v17 = vld [vmem:[%s2954_s3 + $0xb0] sm:$0xff] }
 0x13d   :  { %2982 = vst [vmem:[#allocation7_spill] sm:$0xff] %v1866_v18  ;;  %2983 = vst [vmem:[#allocation8_spill] sm:$0xff] %v1868_v19  ;;  %446 = vmatprep.subr.mxu0 %v1868_v19  ;;  %1673 = vmatprep.subr.mxu1 %v1868_v19  ;;  %v186_v20 = vld [vmem:[%s2954_s3 + $0xb8] sm:$0xff] }
 0x13e   :  { %2984 = vst [vmem:[#allocation9_spill] sm:$0xff] %v1870_v21  ;;  %2985 = vst [vmem:[#allocation10_spill] sm:$0xff] %v1872_v22  ;;  %447 = vmatpush1.msra.mxu0 %v1866_v18  ;;  %1677 = vmatpush1.msra.mxu1 %v1866_v18 }
 0x13f   :  { %448 = vmatprep.subr.mxu0 %v1872_v22  ;;  %1674 = vmatprep.subr.mxu1 %v1872_v22 }
 0x140   :  { %449 = vmatpush1.msra.mxu0 %v1870_v21  ;;  %1678 = vmatpush1.msra.mxu1 %v1870_v21 }
 0x16c   :  { %v69_v23 = vpop.xlane.xlu1 %68 }
 0x16d   :  { %v79_v24 = vmul.f32 0.00390625, %v69_v23  ;;  %v187_v23 = vld [vmem:[%s2954_s3 + $0xc0] sm:$0xff] }
 0x16f   :  { %v83_v25 = vadd.f32 1e-05, %v79_v24  ;;  %v188_v24 = vld [vmem:[%s2954_s3 + $0xc8] sm:$0xff] }
 0x170   :  { %v138_v31 = vpop.permute.xlu1 %137 }
 0x171   :  { %1693 = vrsqrt.f32 %v83_v25  ;;  %v189_v25 = vld [vmem:[%s2954_s3 + $0xd0] sm:$0xff] }
 0x17e   :  { %v1694_v26 = vpop.eup %1693 }
 0x17f   :  { %v91_v27 = vmul.f32 %v1694_v26, %v1839_v43  ;;  %v92_v28 = vmul.f32 %v1694_v26, %v1841_v44  ;;  %v209_v43 = vld [vmem:[%s2954_s3 + $0x170] sm:$0xff]  ;;  %v168_v44 = vld [vmem:[%s2954_s3 + $0x28] sm:$0xff]  ;;  %v190_v26 = vld [vmem:[%s2954_s3 + $0xd8] sm:$0xff] }
 0x181   :  { %v123_v29 = vmul.f32 %v106_v13, %v91_v27  ;;  %v124_v30 = vmul.f32 %v106_v13, %v92_v28  ;;  %v183_v13 = vld [vmem:[%s2954_s3 + $0xa0] sm:$0xff]  ;;  %v192_v28 = vld [vmem:[%s2954_s3 + $0xe8] sm:$0xff] }
 0x182   :  { %v191_v27 = vld [vmem:[%s2954_s3 + $0xe0] sm:$0xff] }
 0x183   :  { %v1884_v32 = vadd.f32 %v138_v31, %v123_v29  ;;  %v1886_v33 = vadd.f32 %v138_v31, %v124_v30  ;;  %v193_v29 = vld [vmem:[%s2954_s3 + $0xf0] sm:$0xff]  ;;  %v194_v30 = vld [vmem:[%s2954_s3 + $0xf8] sm:$0xff]  ;;  %v195_v31 = vld [vmem:[%s2954_s3 + $0x100] sm:$0xff] }
 0x185   :  { %2986 = vst [vmem:[#allocation11_spill] sm:$0xff] %v1884_v32  ;;  %2987 = vst [vmem:[#allocation12_spill] sm:$0xff] %v1886_v33  ;;  %450 = vmatprep.subr.mxu0 %v1886_v33  ;;  %1675 = vmatprep.subr.mxu1 %v1886_v33 }
 0x186   :  { %451 = vmatpush1.msra.mxu0 %v1884_v32  ;;  %1679 = vmatpush1.msra.mxu1 %v1884_v32 }
 0x187   :  { %1608 = vmatmul.mubr.msk.f32.vlgmr.msra.gmra.mxu0 %vm227_vm0, %v163_v34  ;;  %1650 = vmatmul.mubr.msk.f32.vlgmr.msra.gmra.mxu1 %vm227_vm0, %v205_v35  ;;  %v196_v34 = vld [vmem:[%s2954_s3 + $0x108] sm:$0xff]  ;;  %v197_v35 = vld [vmem:[%s2954_s3 + $0x110] sm:$0xff] }
 0x188   :  { %490 = vmatprep.mubr.f32.mxu0 %v1726_v49  ;;  %742 = vmatprep.mubr.f32.mxu1 %v1726_v49 }
 0x18b   :  { %1609 = vmatmul.mubr.msk.f32.gmra.mxu0 %vm227_vm0, %v164_v36  ;;  %1651 = vmatmul.mubr.msk.f32.gmra.mxu1 %vm227_vm0, %v206_v37  ;;  %v198_v36 = vld [vmem:[%s2954_s3 + $0x118] sm:$0xff]  ;;  %v199_v37 = vld [vmem:[%s2954_s3 + $0x120] sm:$0xff] }
 0x18c   :  { %496 = vmatprep.mubr.f32.mxu0 %v1726_v49  ;;  %748 = vmatprep.mubr.f32.mxu1 %v1726_v49 }
 0x18f   :  { %1610 = vmatmul.mubr.msk.f32.gmra.mxu0 %vm227_vm0, %v165_v38  ;;  %1652 = vmatmul.mubr.msk.f32.gmra.mxu1 %vm227_vm0, %v207_v39  ;;  %v200_v38 = vld [vmem:[%s2954_s3 + $0x128] sm:$0xff]  ;;  %v201_v39 = vld [vmem:[%s2954_s3 + $0x130] sm:$0xff] }
 0x190   :  { %502 = vmatprep.mubr.f32.mxu0 %v1726_v49  ;;  %754 = vmatprep.mubr.f32.mxu1 %v1726_v49 }
 0x193   :  { %1611 = vmatmul.mubr.msk.f32.gmra.mxu0 %vm227_vm0, %v166_v40  ;;  %1653 = vmatmul.mubr.msk.f32.gmra.mxu1 %vm227_vm0, %v208_v41  ;;  %v202_v40 = vld [vmem:[%s2954_s3 + $0x138] sm:$0xff]  ;;  %v203_v41 = vld [vmem:[%s2954_s3 + $0x140] sm:$0xff] }
 0x194   :  { %508 = vmatprep.mubr.f32.mxu0 %v1726_v49  ;;  %760 = vmatprep.mubr.f32.mxu1 %v1726_v49 }
 0x197   :  { %1612 = vmatmul.mubr.msk.f32.gmra.mxu0 %vm227_vm0, %v167_v42  ;;  %1654 = vmatmul.mubr.msk.f32.gmra.mxu1 %vm227_vm0, %v209_v43  ;;  %v204_v42 = vld [vmem:[%s2954_s3 + $0x148] sm:$0xff] }
 0x198   :  { %514 = vmatprep.mubr.f32.mxu0 %v1726_v49  ;;  %766 = vmatprep.mubr.f32.mxu1 %v1726_v49 }
 0x19b   :  { %1613 = vmatmul.mubr.msk.f32.gmra.mxu0 %vm227_vm0, %v168_v44  ;;  %1655 = vmatmul.mubr.msk.f32.gmra.mxu1 %vm227_vm0, %v210_v45 }
 0x19c   :  { %520 = vmatprep.mubr.f32.mxu0 %v1726_v49  ;;  %772 = vmatprep.mubr.f32.mxu1 %v1726_v49 }
 0x19f   :  { %1614 = vmatmul.mubr.msk.f32.gmra.mxu0 %vm227_vm0, %v169_v46  ;;  %1656 = vmatmul.mubr.msk.f32.gmra.mxu1 %vm227_vm0, %v211_v47 }
 0x1a0   :  { %526 = vmatprep.mubr.f32.mxu0 %v1726_v49  ;;  %778 = vmatprep.mubr.f32.mxu1 %v1726_v49 }
 0x1a3   :  { %1615 = vmatmul.mubr.msk.f32.gmra.mxu0 %vm227_vm0, %v170_v48  ;;  %1657 = vmatmul.mubr.msk.f32.gmra.mxu1 %vm227_vm0, %v212_v50 }
 0x1a4   :  { %532 = vmatprep.mubr.f32.mxu0 %v1726_v49  ;;  %784 = vmatprep.mubr.f32.mxu1 %v1726_v49 }
 0x1a7   :  { %1616 = vmatmul.mubr.msk.f32.gmra.mxu0 %vm227_vm0, %v171_v51  ;;  %1658 = vmatmul.mubr.msk.f32.gmra.mxu1 %vm227_vm0, %v213_v52 }
 0x1a8   :  { %538 = vmatprep.mubr.f32.mxu0 %v1726_v49  ;;  %790 = vmatprep.mubr.f32.mxu1 %v1726_v49 }
 0x1ab   :  { %1617 = vmatmul.mubr.msk.f32.gmra.mxu0 %vm227_vm0, %v172_v53  ;;  %1659 = vmatmul.mubr.msk.f32.gmra.mxu1 %vm227_vm0, %v214_v54 }
 0x1ac   :  { %544 = vmatprep.mubr.f32.mxu0 %v1726_v49  ;;  %796 = vmatprep.mubr.f32.mxu1 %v1726_v49 }
 0x1af   :  { %1618 = vmatmul.mubr.msk.f32.gmra.mxu0 %vm227_vm0, %v173_v55  ;;  %1660 = vmatmul.mubr.msk.f32.gmra.mxu1 %vm227_vm0, %v215_v56 }
 0x1b0   :  { %550 = vmatprep.mubr.f32.mxu0 %v1726_v49  ;;  %802 = vmatprep.mubr.f32.mxu1 %v1726_v49 }
 0x1b3   :  { %1619 = vmatmul.mubr.msk.f32.gmra.mxu0 %vm227_vm0, %v174_v57  ;;  %1661 = vmatmul.mubr.msk.f32.gmra.mxu1 %vm227_vm0, %v216_v58 }
 0x1b4   :  { %556 = vmatprep.mubr.f32.mxu0 %v1726_v49  ;;  %808 = vmatprep.mubr.f32.mxu1 %v1726_v49 }
 0x1b7   :  { %1620 = vmatmul.mubr.msk.f32.gmra.mxu0 %vm227_vm0, %v175_v59  ;;  %1662 = vmatmul.mubr.msk.f32.gmra.mxu1 %vm227_vm0, %v217_v60 }
 0x1b8   :  { %562 = vmatprep.mubr.f32.mxu0 %v1726_v49  ;;  %814 = vmatprep.mubr.f32.mxu1 %v1726_v49 }
 0x1bb   :  { %1621 = vmatmul.mubr.msk.f32.gmra.mxu0 %vm227_vm0, %v176_v61  ;;  %1663 = vmatmul.mubr.msk.f32.gmra.mxu1 %vm227_vm0, %v218_v62 }
 0x1bc   :  { %568 = vmatprep.mubr.f32.mxu0 %v1726_v49  ;;  %820 = vmatprep.mubr.f32.mxu1 %v1726_v49 }
 0x1bf   :  { %1622 = vmatmul.mubr.msk.f32.gmra.mxu0 %vm227_vm0, %v177_v63  ;;  %1664 = vmatmul.mubr.msk.f32.gmra.mxu1 %vm227_vm0, %v219_v0 }
 0x1c0   :  { %574 = vmatprep.mubr.f32.mxu0 %v1726_v49  ;;  %826 = vmatprep.mubr.f32.mxu1 %v1726_v49 }
 0x1c3   :  { %1623 = vmatmul.mubr.msk.f32.gmra.mxu0 %vm227_vm0, %v178_v1  ;;  %1665 = vmatmul.mubr.msk.f32.gmra.mxu1 %vm227_vm0, %v220_v2  ;;  %v1254_v1 = vld [vmem:[%s2955_s4 + $0x8] sm:$0xff] }
 0x1c4   :  { %580 = vmatprep.mubr.f32.mxu0 %v1726_v49  ;;  %832 = vmatprep.mubr.f32.mxu1 %v1726_v49 }
 0x1c7   :  { %1624 = vmatmul.mubr.msk.f32.gmra.mxu0 %vm227_vm0, %v179_v3  ;;  %1666 = vmatmul.mubr.msk.f32.gmra.mxu1 %vm227_vm0, %v221_v4 }
 0x1c8   :  { %586 = vmatprep.mubr.f32.mxu0 %v1726_v49  ;;  %838 = vmatprep.mubr.f32.mxu1 %v1726_v49 }
 0x1cb   :  { %1625 = vmatmul.mubr.msk.f32.gmra.mxu0 %vm227_vm0, %v180_v5  ;;  %1667 = vmatmul.mubr.msk.f32.gmra.mxu1 %vm227_vm0, %v222_v6 }
 0x1cc   :  { %592 = vmatprep.mubr.f32.mxu0 %v1726_v49  ;;  %844 = vmatprep.mubr.f32.mxu1 %v1726_v49 }
 0x1cf   :  { %1626 = vmatmul.mubr.msk.f32.gmra.mxu0 %vm227_vm0, %v181_v7  ;;  %1668 = vmatmul.mubr.msk.f32.gmra.mxu1 %vm227_vm0, %v223_v8 }
 0x1d0   :  { %598 = vmatprep.mubr.f32.mxu0 %v1726_v49  ;;  %850 = vmatprep.mubr.f32.mxu1 %v1726_v49 }
 0x1d3   :  { %1627 = vmatmul.mubr.msk.f32.gmra.mxu0 %vm227_vm0, %v182_v11  ;;  %1669 = vmatmul.mubr.msk.f32.gmra.mxu1 %vm227_vm0, %v224_v12 }
 0x1d4   :  { %604 = vmatprep.mubr.f32.mxu0 %v1726_v49  ;;  %856 = vmatprep.mubr.f32.mxu1 %v1726_v49 }
 0x1d7   :  { %1628 = vmatmul.mubr.msk.f32.gmra.mxu0 %vm227_vm0, %v183_v13  ;;  %1670 = vmatmul.mubr.msk.f32.gmra.mxu1 %vm227_vm0, %v225_v14 }
 0x1d8   :  { %610 = vmatprep.mubr.f32.mxu0 %v1726_v49  ;;  %862 = vmatprep.mubr.f32.mxu1 %v1726_v49 }
 0x1db   :  { %1629 = vmatmul.mubr.msk.f32.gmra.mxu0 %vm227_vm0, %v184_v15  ;;  %1671 = vmatmul.mubr.msk.f32.gmra.mxu1 %vm227_vm0, %v226_v16 }
 0x1dc   :  { %616 = vmatprep.mubr.f32.mxu0 %v1726_v49  ;;  %1333 = vmatprep.mubr.f32.mxu1 %v1254_v1 }
 0x1df   :  { %1630 = vmatmul.mubr.msk.f32.gmra.mxu0 %vm227_vm0, %v185_v17 }
 0x1e0   :  { %622 = vmatprep.mubr.f32.mxu0 %v1726_v49 }
 0x1e3   :  { %1631 = vmatmul.mubr.msk.f32.gmra.mxu0 %vm227_vm0, %v186_v20 }
 0x1e4   :  { %628 = vmatprep.mubr.f32.mxu0 %v1726_v49 }
 0x1e7   :  { %1632 = vmatmul.mubr.msk.f32.gmra.mxu0 %vm227_vm0, %v187_v23 }
 0x1e8   :  { %634 = vmatprep.mubr.f32.mxu0 %v1726_v49 }
 0x1eb   :  { %1633 = vmatmul.mubr.msk.f32.gmra.mxu0 %vm227_vm0, %v188_v24 }
 0x1ec   :  { %640 = vmatprep.mubr.f32.mxu0 %v1726_v49 }
 0x1ef   :  { %1634 = vmatmul.mubr.msk.f32.gmra.mxu0 %vm227_vm0, %v189_v25 }
 0x1f0   :  { %646 = vmatprep.mubr.f32.mxu0 %v1726_v49 }
 0x1f3   :  { %1635 = vmatmul.mubr.msk.f32.gmra.mxu0 %vm227_vm0, %v190_v26 }
 0x1f4   :  { %652 = vmatprep.mubr.f32.mxu0 %v1726_v49 }
 0x1f7   :  { %1636 = vmatmul.mubr.msk.f32.gmra.mxu0 %vm227_vm0, %v191_v27 }
 0x1f8   :  { %658 = vmatprep.mubr.f32.mxu0 %v1726_v49 }
 0x1fb   :  { %1637 = vmatmul.mubr.msk.f32.gmra.mxu0 %vm227_vm0, %v192_v28 }
 0x1fc   :  { %664 = vmatprep.mubr.f32.mxu0 %v1726_v49 }
 0x1ff   :  { %1638 = vmatmul.mubr.msk.f32.gmra.mxu0 %vm227_vm0, %v193_v29 }
 0x200   :  { %670 = vmatprep.mubr.f32.mxu0 %v1726_v49 }
 0x203   :  { %1639 = vmatmul.mubr.msk.f32.gmra.mxu0 %vm227_vm0, %v194_v30 }
 0x204   :  { %676 = vmatprep.mubr.f32.mxu0 %v1726_v49 }
 0x207   :  { %1640 = vmatmul.mubr.msk.f32.gmra.mxu0 %vm227_vm0, %v195_v31 }
 0x208   :  { %682 = vmatprep.mubr.f32.mxu0 %v1726_v49 }
 0x20b   :  { %1641 = vmatmul.mubr.msk.f32.gmra.mxu0 %vm227_vm0, %v196_v34 }
 0x20c   :  { %688 = vmatprep.mubr.f32.mxu0 %v1726_v49 }
 0x20f   :  { %1642 = vmatmul.mubr.msk.f32.gmra.mxu0 %vm227_vm0, %v197_v35 }
 0x210   :  { %694 = vmatprep.mubr.f32.mxu0 %v1726_v49 }
 0x213   :  { %1643 = vmatmul.mubr.msk.f32.gmra.mxu0 %vm227_vm0, %v198_v36 }
 0x214   :  { %700 = vmatprep.mubr.f32.mxu0 %v1726_v49 }
 0x217   :  { %1644 = vmatmul.mubr.msk.f32.gmra.mxu0 %vm227_vm0, %v199_v37 }
 0x218   :  { %706 = vmatprep.mubr.f32.mxu0 %v1726_v49 }
 0x21b   :  { %1645 = vmatmul.mubr.msk.f32.gmra.mxu0 %vm227_vm0, %v200_v38 }
 0x21c   :  { %712 = vmatprep.mubr.f32.mxu0 %v1726_v49 }
 0x21f   :  { %1646 = vmatmul.mubr.msk.f32.gmra.mxu0 %vm227_vm0, %v201_v39 }
 0x220   :  { %718 = vmatprep.mubr.f32.mxu0 %v1726_v49 }
 0x223   :  { %1647 = vmatmul.mubr.msk.f32.gmra.mxu0 %vm227_vm0, %v202_v40 }
 0x224   :  { %724 = vmatprep.mubr.f32.mxu0 %v1726_v49 }
 0x227   :  { %1648 = vmatmul.mubr.msk.f32.gmra.mxu0 %vm227_vm0, %v203_v41 }
 0x228   :  { %730 = vmatprep.mubr.f32.mxu0 %v1726_v49 }
 0x22b   :  { %1649 = vmatmul.mubr.msk.f32.gmra.mxu0 %vm227_vm0, %v204_v42 }
 0x247   :  { %v2210_v43 = vpop.f32.mrf.mxu0  ;;  %v2226_v51 = vpop.f32.mrf.mxu1 }
 0x249   :  { %v2212_v44 = vpop.f32.mrf.mxu0  ;;  %v2232_v54 = vpop.f32.mrf.mxu1 }
 0x24b   :  { %v2214_v45 = vpop.f32.mrf.mxu0  ;;  %v2238_v57 = vpop.f32.mrf.mxu1 }
 0x24d   :  { %v2216_v46 = vpop.f32.mrf.mxu0  ;;  %v2244_v60 = vpop.f32.mrf.mxu1 }
 0x24f   :  { %v2218_v47 = vpop.f32.mrf.mxu0  ;;  %v2250_v63 = vpop.f32.mrf.mxu1 }
 0x251   :  { %v2220_v48 = vpop.f32.mrf.mxu0  ;;  %v2259_v3 = vpop.f32.mrf.mxu1 }
 0x253   :  { %v2222_v50 = vpop.f32.mrf.mxu0  ;;  %v2265_v6 = vpop.f32.mrf.mxu1 }
 0x255   :  { %v2224_v49 = vpop.f32.mrf.mxu0  ;;  %v2271_v11 = vpop.f32.mrf.mxu1 }
 0x257   :  { %v2228_v52 = vpop.f32.mrf.mxu0  ;;  %v2277_v14 = vpop.f32.mrf.mxu1 }
 0x259   :  { %v2230_v53 = vpop.f32.mrf.mxu0  ;;  %v2279_v17 = vpop.f32.mrf.mxu1 }
 0x25b   :  { %v2234_v55 = vpop.f32.mrf.mxu0  ;;  %v2281_v24 = vpop.f32.mrf.mxu1 }
 0x25d   :  { %v2236_v56 = vpop.f32.mrf.mxu0  ;;  %v2283_v27 = vpop.f32.mrf.mxu1 }
 0x25f   :  { %v2240_v58 = vpop.f32.mrf.mxu0  ;;  %v2285_v31 = vpop.f32.mrf.mxu1 }
 0x260   :  { %2988 = vst [vmem:[#allocation13_spill] sm:$0xff] %v2285_v31 }
 0x261   :  { %v2242_v59 = vpop.f32.mrf.mxu0  ;;  %v2291_v1 = vpop.f32.mrf.mxu1 }
 0x262   :  { %2989 = vst [vmem:[#allocation14_spill] sm:$0xff] %v2291_v1 }
 0x263   :  { %v2246_v61 = vpop.f32.mrf.mxu0 }
 0x265   :  { %v2248_v62 = vpop.f32.mrf.mxu0 }
 0x267   :  { %v2252_v0 = vpop.f32.mrf.mxu0 }
 0x268   :  { %vm885_vm0 = vcmp.gt.f32.partialorder %v2252_v0, 0.0 }
 0x269   :  { %v2257_v2 = vpop.f32.mrf.mxu0 }
 0x26a   :  { %vm886_vm15 = vcmp.gt.f32.partialorder %v2257_v2, 0.0 }
 0x26b   :  { %v2261_v4 = vpop.f32.mrf.mxu0 }
 0x26c   :  { %vm887_vm14 = vcmp.gt.f32.partialorder %v2261_v4, 0.0 }
 0x26d   :  { %v2263_v5 = vpop.f32.mrf.mxu0 }
 0x26e   :  { %vm888_vm13 = vcmp.gt.f32.partialorder %v2263_v5, 0.0 }
 0x26f   :  { %v2267_v7 = vpop.f32.mrf.mxu0 }
 0x270   :  { %vm889_vm12 = vcmp.gt.f32.partialorder %v2267_v7, 0.0 }
 0x271   :  { %v2269_v8 = vpop.f32.mrf.mxu0 }
 0x272   :  { %vm890_vm11 = vcmp.gt.f32.partialorder %v2269_v8, 0.0 }
 0x273   :  { %v2273_v12 = vpop.f32.mrf.mxu0 }
 0x274   :  { %vm891_vm10 = vcmp.gt.f32.partialorder %v2273_v12, 0.0 }
 0x275   :  { %v2275_v13 = vpop.f32.mrf.mxu0 }
 0x276   :  { %vm892_vm9 = vcmp.gt.f32.partialorder %v2275_v13, 0.0 }
 0x277   :  { %v558_v15 = vpop.f32.mrf.mxu0 }
 0x278   :  { %v1021_v19 = vmul.f32 0.2, %v558_v15  ;;  %vm893_vm8 = vcmp.gt.f32.partialorder %v558_v15, 0.0 }
 0x279   :  { %v560_v16 = vpop.f32.mrf.mxu0 }
 0x27a   :  { %v1022_v10 = vmul.f32 0.2, %v560_v16  ;;  %vm894_vm7 = vcmp.gt.f32.partialorder %v560_v16, 0.0 }
 0x27b   :  { %v564_v20 = vpop.f32.mrf.mxu0 }
 0x27c   :  { %v1023_v40 = vmul.f32 0.2, %v564_v20  ;;  %vm895_vm6 = vcmp.gt.f32.partialorder %v564_v20, 0.0 }
 0x27d   :  { %v566_v23 = vpop.f32.mrf.mxu0 }
 0x27e   :  { %v1024_v38 = vmul.f32 0.2, %v566_v23  ;;  %vm896_vm5 = vcmp.gt.f32.partialorder %v566_v23, 0.0 }
 0x27f   :  { %v570_v25 = vpop.f32.mrf.mxu0 }
 0x280   :  { %v1025_v36 = vmul.f32 0.2, %v570_v25  ;;  %vm897_vm4 = vcmp.gt.f32.partialorder %v570_v25, 0.0 }
 0x281   :  { %v572_v26 = vpop.f32.mrf.mxu0 }
 0x282   :  { %v1026_v34 = vmul.f32 0.2, %v572_v26  ;;  %vm898_vm3 = vcmp.gt.f32.partialorder %v572_v26, 0.0  ;;  %v1153_v22 = vsel %vm897_vm4, %v570_v25, %v1025_v36  ;;  %v1149_v36 = vsel %vm893_vm8, %v558_v15, %v1021_v19 }
 0x283   :  { %v576_v28 = vpop.f32.mrf.mxu0  ;;  %vm881_vm4 = vcmp.gt.f32.partialorder %v2240_v58, 0.0  ;;  %vm877_vm8 = vcmp.gt.f32.partialorder %v2228_v52, 0.0 }
 0x284   :  { %v1027_v29 = vmul.f32 0.2, %v576_v28  ;;  %vm899_vm1 = vcmp.gt.f32.partialorder %v576_v28, 0.0  ;;  %v1154_v9 = vsel %vm898_vm3, %v572_v26, %v1026_v34  ;;  %v1151_v26 = vsel %vm895_vm6, %v564_v20, %v1023_v40  ;;  %v2303_v34 = vpop.f32.mrf.mxu1 }
 0x285   :  { %v578_v30 = vpop.f32.mrf.mxu0  ;;  %2990 = vst [vmem:[#allocation15_spill] sm:$0xff] %v2303_v34  ;;  %v1016_v20 = vmul.f32 0.2, %v2263_v5  ;;  %v1013_v40 = vmul.f32 0.2, %v2252_v0  ;;  %vm882_vm3 = vcmp.gt.f32.partialorder %v2242_v59, 0.0 }
 0x286   :  { %vm900_vm2 = vcmp.gt.f32.partialorder %v578_v30, 0.0  ;;  %v1028_v35 = vmul.f32 0.2, %v578_v30  ;;  %v1155_v42 = vsel %vm899_vm1, %v576_v28, %v1027_v29  ;;  %v1019_v28 = vmul.f32 0.2, %v2273_v12  ;;  %v2325_v15 = vpop.f32.mrf.mxu1 }
 0x287   :  { %v2287_v37 = vpop.f32.mrf.mxu0  ;;  %2991 = vst [vmem:[#allocation16_spill] sm:$0xff] %v2325_v15  ;;  %vm884_vm1 = vcmp.gt.f32.partialorder %v2248_v62, 0.0  ;;  %vm879_vm6 = vcmp.gt.f32.partialorder %v2234_v55, 0.0 }
 0x288   :  { %v1156_v39 = vsel %vm900_vm2, %v578_v30, %v1028_v35  ;;  %v1020_v30 = vmul.f32 0.2, %v2275_v13  ;;  %v1152_v35 = vsel %vm896_vm5, %v566_v23, %v1024_v38  ;;  %v1017_v23 = vmul.f32 0.2, %v2267_v7 }
 0x289   :  { %v2289_v41 = vpop.f32.mrf.mxu0  ;;  %1269 = vmatprep.subr.mxu1 %v1156_v39  ;;  %v1147_v19 = vsel %vm891_vm10, %v2273_v12, %v1019_v28  ;;  %v1014_v39 = vmul.f32 0.2, %v2257_v2  ;;  %vm883_vm2 = vcmp.gt.f32.partialorder %v2246_v61, 0.0  ;;  %vm880_vm5 = vcmp.gt.f32.partialorder %v2236_v56, 0.0 }
 0x28a   :  { %1270 = vmatpush1.msra.mxu1 %v1155_v42  ;;  %v1148_v38 = vsel %vm892_vm9, %v2275_v13, %v1020_v30  ;;  %v1145_v12 = vsel %vm889_vm12, %v2267_v7, %v1017_v23  ;;  %v1012_v30 = vmul.f32 0.2, %v2248_v62  ;;  %vm876_vm9 = vcmp.gt.f32.partialorder %v2224_v49, 0.0 }
 0x28b   :  { %v2293_v18 = vpop.f32.mrf.mxu0  ;;  %1271 = vmatprep.subr.mxu1 %v1154_v9  ;;  %v1018_v9 = vmul.f32 0.2, %v2269_v8  ;;  %vm875_vm10 = vcmp.gt.f32.partialorder %v2222_v50, 0.0  ;;  %vm873_vm12 = vcmp.gt.f32.partialorder %v2218_v47, 0.0 }
 0x28c   :  { %1272 = vmatpush1.msra.mxu1 %v1153_v22  ;;  %v1150_v22 = vsel %vm894_vm7, %v560_v16, %v1022_v10  ;;  %v1015_v10 = vmul.f32 0.2, %v2261_v4  ;;  %vm878_vm7 = vcmp.gt.f32.partialorder %v2230_v53, 0.0 }
 0x28d   :  { %v2300_v29 = vpop.f32.mrf.mxu0  ;;  %1273 = vmatprep.subr.mxu1 %v1152_v35  ;;  %v1146_v13 = vsel %vm890_vm11, %v2269_v8, %v1018_v9  ;;  %v1144_v8 = vsel %vm888_vm13, %v2263_v5, %v1016_v20  ;;  %v1011_v35 = vmul.f32 0.2, %v2246_v61  ;;  %v1010_v9 = vmul.f32 0.2, %v2242_v59 }
 0x28e   :  { %1274 = vmatpush1.msra.mxu1 %v1151_v26  ;;  %v1143_v7 = vsel %vm887_vm14, %v2261_v4, %v1015_v10  ;;  %v2351_v26 = vpop.f32.mrf.mxu1  ;;  %v1142_v5 = vsel %vm886_vm15, %v2257_v2, %v1014_v39  ;;  %v1141_v4 = vsel %vm885_vm0, %v2252_v0, %v1013_v40  ;;  %v1140_v2 = vsel %vm884_vm1, %v2248_v62, %v1012_v30 }
 0x28f   :  { %v2310_v25 = vpop.f32.mrf.mxu0  ;;  %1275 = vmatprep.subr.mxu1 %v1150_v22  ;;  %2992 = vst [vmem:[#allocation17_spill] sm:$0xff] %v2351_v26  ;;  %v1009_v22 = vmul.f32 0.2, %v2240_v58  ;;  %v1007_v20 = vmul.f32 0.2, %v2234_v55  ;;  %v1139_v0 = vsel %vm883_vm2, %v2246_v61, %v1011_v35  ;;  %v1138_v62 = vsel %vm882_vm3, %v2242_v59, %v1010_v9 }
 0x290   :  { %1276 = vmatpush1.msra.mxu1 %v1149_v36  ;;  %v1008_v36 = vmul.f32 0.2, %v2236_v56  ;;  %v2377_v10 = vpop.f32.mrf.mxu1  ;;  %v1005_v39 = vmul.f32 0.2, %v2228_v52  ;;  %v1004_v40 = vmul.f32 0.2, %v2224_v49 }
 0x291   :  { %v2320_v16 = vpop.f32.mrf.mxu0  ;;  %1277 = vmatprep.subr.mxu1 %v1148_v38  ;;  %2993 = vst [vmem:[#allocation18_spill] sm:$0xff] %v2377_v10  ;;  %v1137_v61 = vsel %vm881_vm4, %v2240_v58, %v1009_v22  ;;  %v1135_v58 = vsel %vm879_vm6, %v2234_v55, %v1007_v20  ;;  %v1002_v35 = vmul.f32 0.2, %v2220_v48  ;;  %vm874_vm11 = vcmp.gt.f32.partialorder %v2220_v48, 0.0 }
 0x292   :  { %1278 = vmatpush1.msra.mxu1 %v1147_v19  ;;  %v1006_v19 = vmul.f32 0.2, %v2230_v53  ;;  %v1136_v59 = vsel %vm880_vm5, %v2236_v56, %v1008_v36  ;;  %v1133_v55 = vsel %vm877_vm8, %v2228_v52, %v1005_v39  ;;  %v999_v22 = vmul.f32 0.2, %v2214_v45 }
 0x293   :  { %v2334_v42 = vpop.f32.mrf.mxu0  ;;  %1279 = vmatprep.subr.mxu1 %v1146_v13  ;;  %vm872_vm13 = vcmp.gt.f32.partialorder %v2216_v46, 0.0  ;;  %vm871_vm14 = vcmp.gt.f32.partialorder %v2214_v45, 0.0  ;;  %v997_v20 = vmul.f32 0.2, %v2210_v43  ;;  %vm870_vm15 = vcmp.gt.f32.partialorder %v2212_v44, 0.0 }
 0x294   :  { %1280 = vmatpush1.msra.mxu1 %v1145_v12  ;;  %v1003_v12 = vmul.f32 0.2, %v2222_v50  ;;  %v1134_v56 = vsel %vm878_vm7, %v2230_v53, %v1006_v19  ;;  %v1132_v53 = vsel %vm876_vm9, %v2224_v49, %v1004_v40  ;;  %v1130_v49 = vsel %vm874_vm11, %v2220_v48, %v1002_v35 }
 0x295   :  { %v2346_v28 = vpop.f32.mrf.mxu0  ;;  %1281 = vmatprep.subr.mxu1 %v1144_v8  ;;  %v2403_v8 = vpop.f32.mrf.mxu1  ;;  %vm869_vm0 = vcmp.gt.f32.partialorder %v2210_v43, 0.0  ;;  %v1127_v48 = vsel %vm871_vm14, %v2214_v45, %v999_v22 }
 0x296   :  { %1282 = vmatpush1.msra.mxu1 %v1143_v7  ;;  %2994 = vst [vmem:[#allocation19_spill] sm:$0xff] %v2403_v8  ;;  %v1001_v7 = vmul.f32 0.2, %v2218_v47  ;;  %v1131_v52 = vsel %vm875_vm10, %v2222_v50, %v1003_v12 }
 0x297   :  { %v2360_v23 = vpop.f32.mrf.mxu0  ;;  %1283 = vmatprep.subr.mxu1 %v1142_v5  ;;  %v1000_v5 = vmul.f32 0.2, %v2216_v46  ;;  %v2429_v36 = vpop.f32.mrf.mxu1 }
 0x298   :  { %1284 = vmatpush1.msra.mxu1 %v1141_v4  ;;  %2995 = vst [vmem:[#allocation20_spill] sm:$0xff] %v2429_v36  ;;  %v1129_v50 = vsel %vm873_vm12, %v2218_v47, %v1001_v7  ;;  %v1125_v47 = vsel %vm869_vm0, %v2210_v43, %v997_v20 }
 0x299   :  { %v2372_v38 = vpop.f32.mrf.mxu0  ;;  %1285 = vmatprep.subr.mxu1 %v1140_v2  ;;  %v998_v2 = vmul.f32 0.2, %v2212_v44  ;;  %v1128_v19 = vsel %vm872_vm13, %v2216_v46, %v1000_v5  ;;  %v2450_v39 = vpop.f32.mrf.mxu1 }
 0x29a   :  { %1286 = vmatpush1.msra.mxu1 %v1139_v0  ;;  %2996 = vst [vmem:[#allocation21_spill] sm:$0xff] %v2450_v39 }
 0x29b   :  { %v2386_v13 = vpop.f32.mrf.mxu0  ;;  %1287 = vmatprep.subr.mxu1 %v1138_v62  ;;  %v2458_v12 = vpop.f32.mrf.mxu1 }
 0x29c   :  { %1288 = vmatpush1.msra.mxu1 %v1137_v61  ;;  %v1126_v61 = vsel %vm870_vm15, %v2212_v44, %v998_v2  ;;  %2997 = vst [vmem:[#allocation22_spill] sm:$0xff] %v2458_v12 }
 0x29d   :  { %v2398_v30 = vpop.f32.mrf.mxu0  ;;  %1289 = vmatprep.subr.mxu1 %v1136_v59  ;;  %v2464_v45 = vpop.f32.mrf.mxu1 }
 0x29e   :  { %1290 = vmatpush1.msra.mxu1 %v1135_v58  ;;  %2998 = vst [vmem:[#allocation23_spill] sm:$0xff] %v2464_v45 }
 0x29f   :  { %v2412_v9 = vpop.f32.mrf.mxu0  ;;  %1291 = vmatprep.subr.mxu1 %v1134_v56  ;;  %v2470_v44 = vpop.f32.mrf.mxu1 }
 0x2a0   :  { %1292 = vmatpush1.msra.mxu1 %v1133_v55  ;;  %2999 = vst [vmem:[#allocation24_spill] sm:$0xff] %v2470_v44 }
 0x2a1   :  { %v2424_v4 = vpop.f32.mrf.mxu0  ;;  %1293 = vmatprep.subr.mxu1 %v1132_v53  ;;  %v2476_v55 = vpop.f32.mrf.mxu1 }
 0x2a2   :  { %1294 = vmatpush1.msra.mxu1 %v1131_v52  ;;  %3000 = vst [vmem:[#allocation25_spill] sm:$0xff] %v2476_v55 }
 0x2a3   :  { %v2438_v0 = vpop.f32.mrf.mxu0  ;;  %1295 = vmatprep.subr.mxu1 %v1130_v49  ;;  %v2478_v22 = vpop.f32.mrf.mxu1 }
 0x2a4   :  { %1296 = vmatpush1.msra.mxu1 %v1129_v50 }
 0x2a5   :  { %v2447_v62 = vpop.f32.mrf.mxu0  ;;  %1297 = vmatprep.subr.mxu1 %v1128_v19  ;;  %v2480_v49 = vpop.f32.mrf.mxu1 }
 0x2a6   :  { %1298 = vmatpush1.msra.mxu1 %v1127_v48 }
 0x2a7   :  { %v2453_v40 = vpop.f32.mrf.mxu0  ;;  %1299 = vmatprep.subr.mxu1 %v1126_v61  ;;  %v2482_v19 = vpop.f32.mrf.mxu1 }
 0x2a8   :  { %1300 = vmatpush1.msra.mxu1 %v1125_v47  ;;  %vm917_vm0 = vcmp.gt.f32.partialorder %v2453_v40, 0.0 }
 0x2a9   :  { %v2456_v59 = vpop.f32.mrf.mxu0  ;;  %v2484_v21 = vpop.f32.mrf.mxu1 }
 0x2aa   :  { %vm918_vm15 = vcmp.gt.f32.partialorder %v2456_v59, 0.0 }
 0x2ab   :  { %v2460_v46 = vpop.f32.mrf.mxu0  ;;  %v2490_v36 = vpop.f32.mrf.mxu1 }
 0x2ac   :  { %vm919_vm14 = vcmp.gt.f32.partialorder %v2460_v46, 0.0 }
 0x2ad   :  { %v2462_v58 = vpop.f32.mrf.mxu0 }
 0x2ae   :  { %vm920_vm13 = vcmp.gt.f32.partialorder %v2462_v58, 0.0 }
 0x2af   :  { %v2466_v35 = vpop.f32.mrf.mxu0 }
 0x2b0   :  { %vm921_vm12 = vcmp.gt.f32.partialorder %v2466_v35, 0.0 }
 0x2b1   :  { %v2468_v56 = vpop.f32.mrf.mxu0 }
 0x2b2   :  { %vm922_vm11 = vcmp.gt.f32.partialorder %v2468_v56, 0.0 }
 0x2b3   :  { %v2472_v7 = vpop.f32.mrf.mxu0 }
 0x2b4   :  { %vm923_vm10 = vcmp.gt.f32.partialorder %v2472_v7, 0.0 }
 0x2b5   :  { %v2474_v43 = vpop.f32.mrf.mxu0 }
 0x2b6   :  { %vm924_vm9 = vcmp.gt.f32.partialorder %v2474_v43, 0.0 }
 0x2b7   :  { %v654_v5 = vpop.f32.mrf.mxu0 }
 0x2b8   :  { %v1053_v45 = vmul.f32 0.2, %v654_v5  ;;  %vm925_vm8 = vcmp.gt.f32.partialorder %v654_v5, 0.0 }
 0x2b9   :  { %v656_v53 = vpop.f32.mrf.mxu0 }
 0x2ba   :  { %v1054_v39 = vmul.f32 0.2, %v656_v53  ;;  %vm926_vm7 = vcmp.gt.f32.partialorder %v656_v53, 0.0 }
 0x2bb   :  { %v660_v52 = vpop.f32.mrf.mxu0 }
 0x2bc   :  { %v1055_v26 = vmul.f32 0.2, %v660_v52  ;;  %vm927_vm6 = vcmp.gt.f32.partialorder %v660_v52, 0.0 }
 0x2bd   :  { %v662_v2 = vpop.f32.mrf.mxu0 }
 0x2be   :  { %v1056_v34 = vmul.f32 0.2, %v662_v2  ;;  %vm928_vm5 = vcmp.gt.f32.partialorder %v662_v2, 0.0 }
 0x2bf   :  { %v666_v20 = vpop.f32.mrf.mxu0 }
 0x2c0   :  { %v1057_v31 = vmul.f32 0.2, %v666_v20  ;;  %vm929_vm4 = vcmp.gt.f32.partialorder %v666_v20, 0.0 }
 0x2c1   :  { %v668_v50 = vpop.f32.mrf.mxu0 }
 0x2c2   :  { %v1058_v33 = vmul.f32 0.2, %v668_v50  ;;  %vm930_vm3 = vcmp.gt.f32.partialorder %v668_v50, 0.0  ;;  %v1185_v44 = vsel %vm929_vm4, %v666_v20, %v1057_v31  ;;  %v1050_v31 = vmul.f32 0.2, %v2468_v56 }
 0x2c3   :  { %v672_v48 = vpop.f32.mrf.mxu0  ;;  %vm913_vm4 = vcmp.gt.f32.partialorder %v2412_v9, 0.0 }
 0x2c4   :  { %v1059_v61 = vmul.f32 0.2, %v672_v48  ;;  %vm931_vm1 = vcmp.gt.f32.partialorder %v672_v48, 0.0  ;;  %v1186_v12 = vsel %vm930_vm3, %v668_v50, %v1058_v33  ;;  %v2500_v33 = vpop.f32.mrf.mxu1  ;;  %v1045_v50 = vmul.f32 0.2, %v2453_v40 }
 0x2c5   :  { %v674_v47 = vpop.f32.mrf.mxu0  ;;  %vm914_vm3 = vcmp.gt.f32.partialorder %v2424_v4, 0.0 }
 0x2c6   :  { %vm932_vm2 = vcmp.gt.f32.partialorder %v674_v47, 0.0  ;;  %v1060_v32 = vmul.f32 0.2, %v674_v47  ;;  %v1187_v10 = vsel %vm931_vm1, %v672_v48, %v1059_v61  ;;  %v1051_v48 = vmul.f32 0.2, %v2472_v7 }
 0x2c7   :  { %v2486_v1 = vpop.f32.mrf.mxu0  ;;  %v1183_v61 = vsel %vm927_vm6, %v660_v52, %v1055_v26  ;;  %v1048_v26 = vmul.f32 0.2, %v2462_v58  ;;  %vm916_vm1 = vcmp.gt.f32.partialorder %v2447_v62, 0.0  ;;  %vm911_vm6 = vcmp.gt.f32.partialorder %v2386_v13, 0.0 }
 0x2c8   :  { %v1188_v15 = vsel %vm932_vm2, %v674_v47, %v1060_v32  ;;  %v1052_v32 = vmul.f32 0.2, %v2474_v43  ;;  %vm915_vm2 = vcmp.gt.f32.partialorder %v2438_v0, 0.0 }
 0x2c9   :  { %1301 = vmatprep.subr.mxu1 %v1188_v15  ;;  %v2488_v8 = vpop.f32.mrf.mxu0  ;;  %v1184_v15 = vsel %vm928_vm5, %v662_v2, %v1056_v34  ;;  %v1181_v34 = vsel %vm925_vm8, %v654_v5, %v1053_v45  ;;  %v2520_v45 = vpop.f32.mrf.mxu1  ;;  %v1046_v5 = vmul.f32 0.2, %v2456_v59  ;;  %vm912_vm5 = vcmp.gt.f32.partialorder %v2398_v30, 0.0 }
 0x2ca   :  { %1302 = vmatpush2.msra.mxu1 %v1187_v10  ;;  %v1180_v52 = vsel %vm924_vm9, %v2474_v43, %v1052_v32  ;;  %v1178_v43 = vsel %vm922_vm11, %v2468_v56, %v1050_v31  ;;  %v1044_v32 = vmul.f32 0.2, %v2447_v62  ;;  %v1176_v56 = vsel %vm920_vm13, %v2462_v58, %v1048_v26 }
 0x2cb   :  { %1303 = vmatprep.subr.mxu1 %v1186_v12  ;;  %v2492_v55 = vpop.f32.mrf.mxu0  ;;  %v1182_v12 = vsel %vm926_vm7, %v656_v53, %v1054_v39  ;;  %v1047_v39 = vmul.f32 0.2, %v2460_v46  ;;  %v1179_v53 = vsel %vm923_vm10, %v2472_v7, %v1051_v48  ;;  %v1042_v31 = vmul.f32 0.2, %v2424_v4 }
 0x2cc   :  { %1304 = vmatpush2.msra.mxu1 %v1185_v44  ;;  %v1049_v44 = vmul.f32 0.2, %v2466_v35  ;;  %v1174_v58 = vsel %vm918_vm15, %v2456_v59, %v1046_v5  ;;  %v1172_v59 = vsel %vm916_vm1, %v2447_v62, %v1044_v32  ;;  %v1039_v26 = vmul.f32 0.2, %v2386_v13 }
 0x2cd   :  { %1305 = vmatprep.subr.mxu1 %v1184_v15  ;;  %v2498_v10 = vpop.f32.mrf.mxu0  ;;  %v1043_v15 = vmul.f32 0.2, %v2438_v0  ;;  %v1175_v48 = vsel %vm919_vm14, %v2460_v46, %v1047_v39  ;;  %v1173_v46 = vsel %vm917_vm0, %v2453_v40, %v1045_v50  ;;  %v1170_v62 = vsel %vm914_vm3, %v2424_v4, %v1042_v31 }
 0x2ce   :  { %1306 = vmatpush2.msra.mxu1 %v1183_v61  ;;  %v1177_v7 = vsel %vm921_vm12, %v2466_v35, %v1049_v44  ;;  %v2544_v35 = vpop.f32.mrf.mxu1  ;;  %v1037_v5 = vmul.f32 0.2, %v2360_v23  ;;  %vm910_vm7 = vcmp.gt.f32.partialorder %v2372_v38, 0.0  ;;  %v1036_v50 = vmul.f32 0.2, %v2346_v28 }
 0x2cf   :  { %1307 = vmatprep.subr.mxu1 %v1182_v12  ;;  %v2508_v2 = vpop.f32.mrf.mxu0  ;;  %v1041_v12 = vmul.f32 0.2, %v2412_v9  ;;  %vm909_vm8 = vcmp.gt.f32.partialorder %v2360_v23, 0.0  ;;  %vm908_vm9 = vcmp.gt.f32.partialorder %v2346_v28, 0.0  ;;  %v1167_v32 = vsel %vm911_vm6, %v2386_v13, %v1039_v26 }
 0x2d0   :  { %1308 = vmatpush2.msra.mxu1 %v1181_v34  ;;  %v1040_v34 = vmul.f32 0.2, %v2398_v30  ;;  %v2568_v40 = vpop.f32.mrf.mxu1  ;;  %vm907_vm10 = vcmp.gt.f32.partialorder %v2334_v42, 0.0  ;;  %vm906_vm11 = vcmp.gt.f32.partialorder %v2320_v16, 0.0  ;;  %v1165_v13 = vsel %vm909_vm8, %v2360_v23, %v1037_v5 }
 0x2d1   :  { %1309 = vmatprep.subr.mxu1 %v1180_v52  ;;  %v2518_v20 = vpop.f32.mrf.mxu0  ;;  %v1171_v52 = vsel %vm915_vm2, %v2438_v0, %v1043_v15  ;;  %v1169_v0 = vsel %vm913_vm4, %v2412_v9, %v1041_v12  ;;  %v1034_v15 = vmul.f32 0.2, %v2320_v16  ;;  %vm905_vm12 = vcmp.gt.f32.partialorder %v2310_v25, 0.0 }
 0x2d2   :  { %1310 = vmatpush2.msra.mxu1 %v1179_v53  ;;  %v1038_v53 = vmul.f32 0.2, %v2372_v38  ;;  %v1168_v4 = vsel %vm912_vm5, %v2398_v30, %v1040_v34  ;;  %v2592_v9 = vpop.f32.mrf.mxu1  ;;  %v1031_v12 = vmul.f32 0.2, %v2293_v18  ;;  %vm904_vm13 = vcmp.gt.f32.partialorder %v2300_v29, 0.0 }
 0x2d3   :  { %1311 = vmatprep.subr.mxu1 %v1178_v43  ;;  %v2532_v47 = vpop.f32.mrf.mxu0  ;;  %vm903_vm14 = vcmp.gt.f32.partialorder %v2293_v18, 0.0  ;;  %v1029_v26 = vmul.f32 0.2, %v2287_v37  ;;  %vm902_vm15 = vcmp.gt.f32.partialorder %v2289_v41, 0.0  ;;  %vm901_vm0 = vcmp.gt.f32.partialorder %v2287_v37, 0.0 }
 0x2d4   :  { %1312 = vmatpush2.msra.mxu1 %v1177_v7  ;;  %v1035_v7 = vmul.f32 0.2, %v2334_v42  ;;  %v1166_v30 = vsel %vm910_vm7, %v2372_v38, %v1038_v53  ;;  %v1164_v38 = vsel %vm908_vm9, %v2346_v28, %v1036_v50  ;;  %v2616_v23 = vpop.f32.mrf.mxu1  ;;  %v1162_v28 = vsel %vm906_vm11, %v2320_v16, %v1034_v15  ;;  %v1258_v15 = vld [vmem:[%s2955_s4 + $0x28] sm:$0xff] }
 0x2d5   :  { %1313 = vmatprep.subr.mxu1 %v1176_v56  ;;  %v2542_v61 = vpop.f32.mrf.mxu0  ;;  %v1092_v53 = vmul.f32 0.2, %v2283_v27  ;;  %vm964_vm1 = vcmp.gt.f32.partialorder %v2283_v27, 0.0  ;;  %v1159_v5 = vsel %vm903_vm14, %v2293_v18, %v1031_v12  ;;  %v1090_v50 = vmul.f32 0.2, %v2279_v17  ;;  %v1257_v12 = vld [vmem:[%s2955_s4 + $0x20] sm:$0xff] }
 0x2d6   :  { %1314 = vmatpush2.msra.mxu1 %v1175_v48  ;;  %v1033_v48 = vmul.f32 0.2, %v2310_v25  ;;  %vm963_vm2 = vcmp.gt.f32.partialorder %v2281_v24, 0.0  ;;  %vm962_vm3 = vcmp.gt.f32.partialorder %v2279_v17, 0.0  ;;  %v1157_v18 = vsel %vm901_vm0, %v2287_v37, %v1029_v26 }
 0x2d7   :  { %1315 = vmatprep.subr.mxu1 %v1174_v58  ;;  %v2556_v44 = vpop.f32.mrf.mxu0  ;;  %v1032_v58 = vmul.f32 0.2, %v2300_v29  ;;  %vm961_vm4 = vcmp.gt.f32.partialorder %v2277_v14, 0.0  ;;  %vm960_vm5 = vcmp.gt.f32.partialorder %v2271_v11, 0.0  ;;  %vm959_vm6 = vcmp.gt.f32.partialorder %v2265_v6, 0.0 }
 0x2d8   :  { %1316 = vmatpush2.msra.mxu1 %v1173_v46  ;;  %v1163_v46 = vsel %vm907_vm10, %v2334_v42, %v1035_v7  ;;  %v1161_v42 = vsel %vm905_vm12, %v2310_v25, %v1033_v48  ;;  %v2640_v25 = vpop.f32.mrf.mxu1  ;;  %v1089_v7 = vmul.f32 0.2, %v2277_v14  ;;  %v1087_v48 = vmul.f32 0.2, %v2265_v6 }
 0x2d9   :  { %1317 = vmatprep.subr.mxu1 %v1172_v59  ;;  %v2566_v39 = vpop.f32.mrf.mxu0  ;;  %v1030_v59 = vmul.f32 0.2, %v2289_v41  ;;  %v1160_v16 = vsel %vm904_vm13, %v2300_v29, %v1032_v58  ;;  %vm958_vm7 = vcmp.gt.f32.partialorder %v2259_v3, 0.0  ;;  %vm957_vm8 = vcmp.gt.f32.partialorder %v2250_v63, 0.0 }
 0x2da   :  { %1318 = vmatpush2.msra.mxu1 %v1171_v52  ;;  %v2672_v58 = vpop.f32.mrf.mxu1  ;;  %vm956_vm9 = vcmp.gt.f32.partialorder %v2244_v60, 0.0  ;;  %vm955_vm10 = vcmp.gt.f32.partialorder %v2238_v57, 0.0  ;;  %vm954_vm11 = vcmp.gt.f32.partialorder %v2232_v54, 0.0  ;;  %vm953_vm12 = vcmp.gt.f32.partialorder %v2226_v51, 0.0 }
 0x2db   :  { %1319 = vmatprep.subr.mxu1 %v1170_v62  ;;  %v2580_v43 = vpop.f32.mrf.mxu0  ;;  %v1091_v62 = vmul.f32 0.2, %v2281_v24  ;;  %v1158_v29 = vsel %vm902_vm15, %v2289_v41, %v1030_v59  ;;  %v1088_v41 = vmul.f32 0.2, %v2271_v11 }
 0x2dc   :  { %1320 = vmatpush2.msra.mxu1 %v1169_v0 }
 0x2dd   :  { %1321 = vmatprep.subr.mxu1 %v1168_v4  ;;  %v2590_v56 = vpop.f32.mrf.mxu0  ;;  %v1253_v4 = vld [vmem:[%s2955_s4] sm:$0xff]  ;;  %v1219_v37 = vsel %vm963_vm2, %v2281_v24, %v1091_v62  ;;  %v1085_v24 = vmul.f32 0.2, %v2250_v63  ;;  %v1216_v26 = vsel %vm960_vm5, %v2271_v11, %v1088_v41  ;;  %v1082_v62 = vmul.f32 0.2, %v2232_v54 }
 0x2de   :  { %1322 = vmatpush2.msra.mxu1 %v1167_v32  ;;  %vm944_vm5 = vcmp.gt.f32.partialorder %v2590_v56, 0.0 }
 0x2df   :  { %1323 = vmatprep.subr.mxu1 %v1166_v30  ;;  %v2604_v31 = vpop.f32.mrf.mxu0  ;;  %v1220_v30 = vsel %vm964_vm1, %v2283_v27, %v1092_v53  ;;  %v1218_v27 = vsel %vm962_vm3, %v2279_v17, %v1090_v50  ;;  %v1084_v17 = vmul.f32 0.2, %v2244_v60  ;;  %v1213_v50 = vsel %vm957_vm8, %v2250_v63, %v1085_v24 }
 0x2e0   :  { %1324 = vmatpush2.msra.mxu1 %v1165_v13  ;;  %v1210_v41 = vsel %vm954_vm11, %v2232_v54, %v1082_v62  ;;  %v1068_v62 = vmul.f32 0.2, %v2542_v61  ;;  %vm941_vm8 = vcmp.gt.f32.partialorder %v2556_v44, 0.0  ;;  %vm938_vm11 = vcmp.gt.f32.partialorder %v2518_v20, 0.0 }
 0x2e1   :  { %1325 = vmatprep.subr.mxu1 %v1164_v38  ;;  %v2614_v34 = vpop.f32.mrf.mxu0  ;;  %v1086_v38 = vmul.f32 0.2, %v2259_v3 }
 0x2e2   :  { %1326 = vmatpush2.msra.mxu1 %v1163_v46  ;;  %v1217_v46 = vsel %vm961_vm4, %v2277_v14, %v1089_v7  ;;  %v1215_v14 = vsel %vm959_vm6, %v2265_v6, %v1087_v48  ;;  %v1081_v6 = vmul.f32 0.2, %v2226_v51  ;;  %v1256_v48 = vld [vmem:[%s2955_s4 + $0x18] sm:$0xff]  ;;  %vm946_vm3 = vcmp.gt.f32.partialorder %v2614_v34, 0.0 }
 0x2e3   :  { %1327 = vmatprep.subr.mxu1 %v1162_v28  ;;  %v2628_v52 = vpop.f32.mrf.mxu0  ;;  %v1262_v28 = vld [vmem:[%s2955_s4 + $0x48] sm:$0xff]  ;;  %v1214_v11 = vsel %vm958_vm7, %v2259_v3, %v1086_v38  ;;  %vm945_vm4 = vcmp.gt.f32.partialorder %v2604_v31, 0.0  ;;  %vm943_vm6 = vcmp.gt.f32.partialorder %v2580_v43, 0.0  ;;  %vm942_vm7 = vcmp.gt.f32.partialorder %v2566_v39, 0.0 }
 0x2e4   :  { %1328 = vmatpush2.msra.mxu1 %v1161_v42  ;;  %v1083_v42 = vmul.f32 0.2, %v2238_v57  ;;  %v1075_v38 = vmul.f32 0.2, %v2628_v52  ;;  %vm947_vm2 = vcmp.gt.f32.partialorder %v2628_v52, 0.0 }
 0x2e5   :  { %1329 = vmatprep.subr.mxu1 %v1160_v16  ;;  %v2638_v0 = vpop.f32.mrf.mxu0  ;;  %v2700_v16 = vpop.f32.mrf.mxu1 }
 0x2e6   :  { %1330 = vmatpush2.msra.mxu1 %v1159_v5  ;;  %v1261_v5 = vld [vmem:[%s2955_s4 + $0x40] sm:$0xff]  ;;  %v1076_v54 = vmul.f32 0.2, %v2638_v0  ;;  %vm948_vm1 = vcmp.gt.f32.partialorder %v2638_v0, 0.0 }
 0x2e7   :  { %1331 = vmatprep.subr.mxu1 %v1158_v29  ;;  %v2655_v32 = vpop.f32.mrf.mxu0  ;;  %v1266_v29 = vld [vmem:[%s2955_s4 + $0x68] sm:$0xff]  ;;  %v2725_v63 = vpop.f32.mrf.mxu1 }
 0x2e8   :  { %1332 = vmatpush2.msra.mxu1 %v1157_v18  ;;  %v1211_v18 = vsel %vm955_vm10, %v2238_v57, %v1083_v42  ;;  %v1209_v57 = vsel %vm953_vm12, %v2226_v51, %v1081_v6  ;;  %vm949_vm0 = vcmp.gt.f32.partialorder %v2655_v32, 0.0  ;;  %v1074_v51 = vmul.f32 0.2, %v2614_v34 }
 0x2e9   :  { %1358 = vmatprep.subr.mxu1 %v1220_v30  ;;  %1334 = vmatmul.mubr.f32.vlgmr.msra.gmra.mxu1 %v1253_v4  ;;  %v2670_v13 = vpop.f32.mrf.mxu0  ;;  %v1212_v4 = vsel %vm956_vm9, %v2244_v60, %v1084_v17  ;;  %v1265_v60 = vld [vmem:[%s2955_s4 + $0x60] sm:$0xff]  ;;  %v1077_v30 = vmul.f32 0.2, %v2655_v32  ;;  %v1204_v17 = vsel %vm948_vm1, %v2638_v0, %v1076_v54  ;;  %vm940_vm9 = vcmp.gt.f32.partialorder %v2542_v61, 0.0 }
 0x2ea   :  { %1359 = vmatpush1.msra.mxu1 %v1219_v37  ;;  %1339 = vmatprep.mubr.f32.mxu1 %v1258_v15  ;;  %v1078_v15 = vmul.f32 0.2, %v2670_v13  ;;  %vm950_vm15 = vcmp.gt.f32.partialorder %v2670_v13, 0.0  ;;  %v1066_v6 = vmul.f32 0.2, %v2518_v20  ;;  %vm939_vm10 = vcmp.gt.f32.partialorder %v2532_v47, 0.0 }
 0x2eb   :  { %1360 = vmatprep.subr.mxu1 %v1218_v27  ;;  %v732_v59 = vpop.f32.mrf.mxu0  ;;  %vm937_vm12 = vcmp.gt.f32.partialorder %v2508_v2, 0.0 }
 0x2ec   :  { %1361 = vmatpush1.msra.mxu1 %v1217_v46  ;;  %v1079_v7 = vmul.f32 0.2, %v732_v59  ;;  %vm951_vm14 = vcmp.gt.f32.partialorder %v732_v59, 0.0  ;;  %v1206_v24 = vsel %vm950_vm15, %v2670_v13, %v1078_v15  ;;  %v1073_v46 = vmul.f32 0.2, %v2604_v31 }
 0x2ed   :  { %1362 = vmatprep.subr.mxu1 %v1216_v26  ;;  %v734_v53 = vpop.f32.mrf.mxu0  ;;  %1340 = vmatmul.mubr.f32.gmra.mxu1 %v1257_v12  ;;  %v2748_v12 = vpop.f32.mrf.mxu1  ;;  %v1071_v13 = vmul.f32 0.2, %v2580_v43  ;;  %v1203_v26 = vsel %vm947_vm2, %v2628_v52, %v1075_v38  ;;  %vm934_vm15 = vcmp.gt.f32.partialorder %v2488_v8, 0.0 }
 0x2ee   :  { %1363 = vmatpush1.msra.mxu1 %v1215_v14  ;;  %1345 = vmatprep.mubr.f32.mxu1 %v1262_v28  ;;  %v1080_v3 = vmul.f32 0.2, %v734_v53  ;;  %vm952_vm13 = vcmp.gt.f32.partialorder %v734_v53, 0.0  ;;  %v1207_v27 = vsel %vm951_vm14, %v732_v59, %v1079_v7  ;;  %v1205_v59 = vsel %vm949_vm0, %v2655_v32, %v1077_v30 }
 0x2ef   :  { %1364 = vmatprep.subr.mxu1 %v1214_v11  ;;  %v1072_v28 = vmul.f32 0.2, %v2590_v56  ;;  %v2768_v42 = vpop.f32.mrf.mxu1  ;;  %v1070_v32 = vmul.f32 0.2, %v2566_v39  ;;  %v1202_v14 = vsel %vm946_vm3, %v2614_v34, %v1074_v51  ;;  %v1201_v0 = vsel %vm945_vm4, %v2604_v31, %v1073_v46 }
 0x2f0   :  { %1365 = vmatpush1.msra.mxu1 %v1213_v50  ;;  %v1208_v37 = vsel %vm952_vm13, %v734_v53, %v1080_v3  ;;  %v1069_v53 = vmul.f32 0.2, %v2556_v44  ;;  %v1067_v11 = vmul.f32 0.2, %v2532_v47  ;;  %v1199_v34 = vsel %vm943_vm6, %v2580_v43, %v1071_v13 }
 0x2f1   :  { %1366 = vmatprep.subr.mxu1 %v1212_v4  ;;  %1346 = vmatmul.mubr.f32.gmra.mxu1 %v1261_v5  ;;  %v1200_v52 = vsel %vm944_vm5, %v2590_v56, %v1072_v28  ;;  %v864_v5 = vpop.f32.mrf.mxu1  ;;  %v1198_v31 = vsel %vm942_vm7, %v2566_v39, %v1070_v32  ;;  %v1065_v50 = vmul.f32 0.2, %v2508_v2  ;;  %v1196_v43 = vsel %vm940_vm9, %v2542_v61, %v1068_v62 }
 0x2f2   :  { %1367 = vmatpush1.msra.mxu1 %v1211_v18  ;;  %1351 = vmatprep.mubr.f32.mxu1 %v1266_v29  ;;  %v1197_v56 = vsel %vm941_vm8, %v2556_v44, %v1069_v53  ;;  %v1064_v29 = vmul.f32 0.2, %v2498_v10  ;;  %v1063_v3 = vmul.f32 0.2, %v2492_v55  ;;  %vm936_vm13 = vcmp.gt.f32.partialorder %v2498_v10, 0.0 }
 0x2f3   :  { %1368 = vmatprep.subr.mxu1 %v1210_v41  ;;  %v1195_v39 = vsel %vm939_vm10, %v2532_v47, %v1067_v11  ;;  %v866_v4 = vpop.f32.mrf.mxu1  ;;  %v1062_v7 = vmul.f32 0.2, %v2488_v8  ;;  %vm935_vm14 = vcmp.gt.f32.partialorder %v2492_v55, 0.0  ;;  %v1194_v44 = vsel %vm938_vm11, %v2518_v20, %v1066_v6  ;;  %v3004_v6 = vld [vmem:[#allocation22_spill] sm:$0xff] }
 0x2f4   :  { %1369 = vmatpush1.msra.mxu1 %v1209_v57  ;;  %v1061_v18 = vmul.f32 0.2, %v2486_v1  ;;  %v1193_v61 = vsel %vm937_vm12, %v2508_v2, %v1065_v50  ;;  %vm933_vm0 = vcmp.gt.f32.partialorder %v2486_v1, 0.0  ;;  %v1124_v15 = vmul.f32 0.2, %v866_v4  ;;  %v3005_v50 = vld [vmem:[#allocation21_spill] sm:$0xff] }
 0x2f5   :  { %1370 = vmatprep.subr.mxu1 %v1208_v37  ;;  %1352 = vmatmul.mubr.f32.gmra.mxu1 %v1265_v60  ;;  %v1192_v47 = vsel %vm936_vm13, %v2498_v10, %v1064_v29  ;;  %v1123_v41 = vmul.f32 0.2, %v864_v5  ;;  %vm996_vm1 = vcmp.gt.f32.partialorder %v866_v4, 0.0  ;;  %v1191_v60 = vsel %vm935_vm14, %v2492_v55, %v1063_v3  ;;  %v3006_v29 = vld [vmem:[#allocation20_spill] sm:$0xff]  ;;  %v3007_v3 = vld [vmem:[#allocation19_spill] sm:$0xff] }
 0x2f6   :  { %1371 = vmatpush1.msra.mxu1 %v1207_v27  ;;  %1422 = vmatprep.mubr.f32.mxu1 %v1256_v48  ;;  %v1122_v20 = vmul.f32 0.2, %v2768_v42  ;;  %vm995_vm2 = vcmp.gt.f32.partialorder %v864_v5, 0.0  ;;  %v1190_v30 = vsel %vm934_vm15, %v2488_v8, %v1062_v7  ;;  %v1121_v57 = vmul.f32 0.2, %v2748_v12 }
 0x2f7   :  { %1372 = vmatprep.subr.mxu1 %v1206_v24  ;;  %vm994_vm3 = vcmp.gt.f32.partialorder %v2768_v42, 0.0  ;;  %v1189_v2 = vsel %vm933_vm0, %v2486_v1, %v1061_v18  ;;  %v1120_v10 = vmul.f32 0.2, %v2725_v63  ;;  %vm993_vm4 = vcmp.gt.f32.partialorder %v2748_v12, 0.0  ;;  %v3009_v18 = vld [vmem:[#allocation17_spill] sm:$0xff] }
 0x2f8   :  { %1373 = vmatpush1.msra.mxu1 %v1205_v59  ;;  %v1252_v48 = vsel %vm996_vm1, %v866_v4, %v1124_v15  ;;  %v1119_v55 = vmul.f32 0.2, %v2700_v16  ;;  %vm992_vm5 = vcmp.gt.f32.partialorder %v2725_v63, 0.0  ;;  %v1251_v54 = vsel %vm995_vm2, %v864_v5, %v1123_v41  ;;  %v3008_v4 = vld [vmem:[#allocation18_spill] sm:$0xff] }
 0x2f9   :  { %1374 = vmatprep.subr.mxu1 %v1204_v17  ;;  %v1118_v8 = vmul.f32 0.2, %v2672_v58  ;;  %vm991_vm6 = vcmp.gt.f32.partialorder %v2700_v16, 0.0  ;;  %v1250_v37 = vsel %vm994_vm3, %v2768_v42, %v1122_v20  ;;  %v1117_v1 = vmul.f32 0.2, %v2640_v25  ;;  %v3011_v20 = vld [vmem:[#allocation15_spill] sm:$0xff] }
 0x2fa   :  { %1375 = vmatpush1.msra.mxu1 %v1203_v26  ;;  %vm990_vm7 = vcmp.gt.f32.partialorder %v2672_v58, 0.0  ;;  %v1249_v38 = vsel %vm993_vm4, %v2748_v12, %v1121_v57  ;;  %v1116_v27 = vmul.f32 0.2, %v2616_v23  ;;  %vm989_vm8 = vcmp.gt.f32.partialorder %v2640_v25, 0.0 }
 0x2fb   :  { %1376 = vmatprep.subr.mxu1 %v1202_v14  ;;  %v1248_v51 = vsel %vm992_vm5, %v2725_v63, %v1120_v10  ;;  %v1115_v24 = vmul.f32 0.2, %v2592_v9  ;;  %vm988_vm9 = vcmp.gt.f32.partialorder %v2616_v23, 0.0  ;;  %v1247_v46 = vsel %vm991_vm6, %v2700_v16, %v1119_v55  ;;  %v3013_v55 = vld [vmem:[#allocation13_spill] sm:$0xff] }
 0x2fc   :  { %1377 = vmatpush1.msra.mxu1 %v1201_v0  ;;  %v1114_v59 = vmul.f32 0.2, %v2568_v40  ;;  %vm987_vm10 = vcmp.gt.f32.partialorder %v2592_v9, 0.0  ;;  %v1246_v12 = vsel %vm990_vm7, %v2672_v58, %v1118_v8  ;;  %v1113_v28 = vmul.f32 0.2, %v2544_v35  ;;  %v3001_v0 = vld [vmem:[#allocation25_spill] sm:$0xff] }
 0x2fd   :  { %1378 = vmatprep.subr.mxu1 %v1200_v52  ;;  %vm986_vm11 = vcmp.gt.f32.partialorder %v2568_v40, 0.0  ;;  %v1245_v63 = vsel %vm989_vm8, %v2640_v25, %v1117_v1  ;;  %v1112_v17 = vmul.f32 0.2, %v2520_v45  ;;  %vm985_vm12 = vcmp.gt.f32.partialorder %v2544_v35, 0.0  ;;  %v3002_v52 = vld [vmem:[#allocation24_spill] sm:$0xff] }
 0x2fe   :  { %1379 = vmatpush1.msra.mxu1 %v1199_v34  ;;  %v1244_v16 = vsel %vm988_vm9, %v2616_v23, %v1116_v27  ;;  %v1111_v13 = vmul.f32 0.2, %v2500_v33  ;;  %vm984_vm13 = vcmp.gt.f32.partialorder %v2520_v45, 0.0  ;;  %v1243_v58 = vsel %vm987_vm10, %v2592_v9, %v1115_v24  ;;  %v3003_v34 = vld [vmem:[#allocation23_spill] sm:$0xff]  ;;  %v1260_v24 = vld [vmem:[%s2955_s4 + $0x38] sm:$0xff] }
 0x2ff   :  { %1380 = vmatprep.subr.mxu1 %v1198_v31  ;;  %v1110_v26 = vmul.f32 0.2, %v2490_v36  ;;  %vm983_vm14 = vcmp.gt.f32.partialorder %v2500_v33, 0.0  ;;  %v1242_v25 = vsel %vm986_vm11, %v2568_v40, %v1114_v59  ;;  %v1109_v42 = vmul.f32 0.2, %v2484_v21  ;;  %v1255_v27 = vld [vmem:[%s2955_s4 + $0x10] sm:$0xff] }
 0x300   :  { %1381 = vmatpush1.msra.mxu1 %v1197_v56  ;;  %vm982_vm15 = vcmp.gt.f32.partialorder %v2490_v36, 0.0  ;;  %v1241_v23 = vsel %vm985_vm12, %v2544_v35, %v1113_v28  ;;  %v1108_v32 = vmul.f32 0.2, %v2482_v19  ;;  %vm981_vm0 = vcmp.gt.f32.partialorder %v2484_v21, 0.0  ;;  %v1264_v59 = vld [vmem:[%s2955_s4 + $0x58] sm:$0xff] }
 0x301   :  { %1382 = vmatprep.subr.mxu1 %v1196_v43  ;;  %v1240_v9 = vsel %vm984_vm13, %v2520_v45, %v1112_v17  ;;  %v1107_v14 = vmul.f32 0.2, %v2480_v49  ;;  %vm980_vm1 = vcmp.gt.f32.partialorder %v2482_v19, 0.0  ;;  %v1239_v40 = vsel %vm983_vm14, %v2500_v33, %v1111_v13  ;;  %v1268_v28 = vld [vmem:[%s2955_s4 + $0x78] sm:$0xff] }
 0x302   :  { %1383 = vmatpush1.msra.mxu1 %v1195_v39  ;;  %v1106_v53 = vmul.f32 0.2, %v2478_v22  ;;  %vm979_vm2 = vcmp.gt.f32.partialorder %v2480_v49, 0.0  ;;  %v1238_v35 = vsel %vm982_vm15, %v2490_v36, %v1110_v26  ;;  %v1105_v62 = vmul.f32 0.2, %v3001_v0 }
 0x303   :  { %1384 = vmatprep.subr.mxu1 %v1194_v44  ;;  %vm978_vm3 = vcmp.gt.f32.partialorder %v2478_v22, 0.0  ;;  %v1237_v45 = vsel %vm981_vm0, %v2484_v21, %v1109_v42  ;;  %v1104_v11 = vmul.f32 0.2, %v3002_v52  ;;  %vm977_vm4 = vcmp.gt.f32.partialorder %v3001_v0, 0.0 }
 0x304   :  { %1385 = vmatpush1.msra.mxu1 %v1193_v61  ;;  %v1236_v33 = vsel %vm980_vm1, %v2482_v19, %v1108_v32  ;;  %v1103_v5 = vmul.f32 0.2, %v3003_v34  ;;  %vm976_vm5 = vcmp.gt.f32.partialorder %v3002_v52, 0.0  ;;  %v1235_v36 = vsel %vm979_vm2, %v2480_v49, %v1107_v14 }
 0x305   :  { %1386 = vmatprep.subr.mxu1 %v1192_v47  ;;  %v1102_v31 = vmul.f32 0.2, %v3004_v6  ;;  %vm975_vm6 = vcmp.gt.f32.partialorder %v3003_v34, 0.0  ;;  %v1234_v21 = vsel %vm978_vm3, %v2478_v22, %v1106_v53  ;;  %v1101_v56 = vmul.f32 0.2, %v3005_v50  ;;  %v3010_v47 = vld [vmem:[#allocation16_spill] sm:$0xff] }
 0x306   :  { %1387 = vmatpush1.msra.mxu1 %v1191_v60  ;;  %vm974_vm7 = vcmp.gt.f32.partialorder %v3004_v6, 0.0  ;;  %v1233_v19 = vsel %vm977_vm4, %v3001_v0, %v1105_v62  ;;  %v1100_v43 = vmul.f32 0.2, %v3006_v29  ;;  %vm973_vm8 = vcmp.gt.f32.partialorder %v3005_v50, 0.0  ;;  %v3015_v62 = vld [vmem:[#allocation12_spill] sm:$0xff] }
 0x307   :  { %1388 = vmatprep.subr.mxu1 %v1190_v30  ;;  %v1232_v49 = vsel %vm976_vm5, %v3002_v52, %v1104_v11  ;;  %v1099_v39 = vmul.f32 0.2, %v3007_v3  ;;  %vm972_vm9 = vcmp.gt.f32.partialorder %v3006_v29, 0.0  ;;  %v1231_v22 = vsel %vm975_vm6, %v3003_v34, %v1103_v5 }
 0x308   :  { %1389 = vmatpush1.msra.mxu1 %v1189_v2  ;;  %v1098_v7 = vmul.f32 0.2, %v3008_v4  ;;  %vm971_vm10 = vcmp.gt.f32.partialorder %v3007_v3, 0.0  ;;  %v1230_v44 = vsel %vm974_vm7, %v3004_v6, %v1102_v31  ;;  %v1097_v61 = vmul.f32 0.2, %v3009_v18  ;;  %v3012_v2 = vld [vmem:[#allocation14_spill] sm:$0xff] }
 0x309   :  { %1390 = vmatprep.subr.mxu1 %v1252_v48  ;;  %vm970_vm11 = vcmp.gt.f32.partialorder %v3008_v4, 0.0  ;;  %v1229_v15 = vsel %vm973_vm8, %v3005_v50, %v1101_v56  ;;  %v1096_v41 = vmul.f32 0.2, %v3010_v47  ;;  %vm969_vm12 = vcmp.gt.f32.partialorder %v3009_v18, 0.0  ;;  %v3017_v31 = vld [vmem:[#allocation10_spill] sm:$0xff] }
 0x30a   :  { %1391 = vmatpush2.msra.mxu1 %v1251_v54  ;;  %v1228_v60 = vsel %vm972_vm9, %v3006_v29, %v1100_v43  ;;  %v1095_v30 = vmul.f32 0.2, %v3011_v20  ;;  %vm968_vm13 = vcmp.gt.f32.partialorder %v3010_v47, 0.0  ;;  %v1227_v57 = vsel %vm971_vm10, %v3007_v3, %v1099_v39  ;;  %v3019_v39 = vld [vmem:[#allocation8_spill] sm:$0xff] }
 0x30b   :  { %1392 = vmatprep.subr.mxu1 %v1250_v37  ;;  %v1094_v10 = vmul.f32 0.2, %v3012_v2  ;;  %vm967_vm14 = vcmp.gt.f32.partialorder %v3011_v20, 0.0  ;;  %v1226_v48 = vsel %vm970_vm11, %v3008_v4, %v1098_v7  ;;  %v1093_v54 = vmul.f32 0.2, %v3013_v55 }
 0x30c   :  { %1393 = vmatpush2.msra.mxu1 %v1249_v38  ;;  %vm966_vm15 = vcmp.gt.f32.partialorder %v3012_v2, 0.0  ;;  %v1225_v8 = vsel %vm969_vm12, %v3009_v18, %v1097_v61  ;;  %vm965_vm0 = vcmp.gt.f32.partialorder %v3013_v55, 0.0  ;;  %v1224_v37 = vsel %vm968_vm13, %v3010_v47, %v1096_v41  ;;  %v3020_v61 = vld [vmem:[#allocation5_spill] sm:$0xff]  ;;  %v3021_v47 = vld [vmem:[#allocation6_spill] sm:$0xff] }
 0x30d   :  { %1394 = vmatprep.subr.mxu1 %v1248_v51  ;;  %v1223_v1 = vsel %vm967_vm14, %v3011_v20, %v1095_v30  ;;  %v1222_v38 = vsel %vm966_vm15, %v3012_v2, %v1094_v10  ;;  %v1221_v51 = vsel %vm965_vm0, %v3013_v55, %v1093_v54  ;;  %v1520_v20 = vld [vmem:[%s2956_s5 + $0x8] sm:$0xff]  ;;  %v1519_v30 = vld [vmem:[%s2956_s5] sm:$0xff]  ;;  %v1522_v2 = vld [vmem:[%s2956_s5 + $0x18] sm:$0xff] }
 0x30e   :  { %1395 = vmatpush2.msra.mxu1 %v1247_v46  ;;  %v1259_v46 = vld [vmem:[%s2955_s4 + $0x30] sm:$0xff]  ;;  %v1551_v10 = vld [vmem:[%s2957_s6] sm:$0xff] }
 0x30f   :  { %1396 = vmatprep.subr.mxu1 %v1246_v12  ;;  %v1263_v12 = vld [vmem:[%s2955_s4 + $0x50] sm:$0xff] }
 0x310   :  { %1397 = vmatpush2.msra.mxu1 %v1245_v63  ;;  %v1267_v63 = vld [vmem:[%s2955_s4 + $0x70] sm:$0xff] }
 0x311   :  { %1398 = vmatprep.subr.mxu1 %v1244_v16 }
 0x312   :  { %1399 = vmatpush2.msra.mxu1 %v1243_v58 }
 0x313   :  { %1400 = vmatprep.subr.mxu1 %v1242_v25 }
 0x314   :  { %1401 = vmatpush2.msra.mxu1 %v1241_v23 }
 0x315   :  { %1402 = vmatprep.subr.mxu1 %v1240_v9 }
 0x316   :  { %1403 = vmatpush2.msra.mxu1 %v1239_v40 }
 0x317   :  { %1404 = vmatprep.subr.mxu1 %v1238_v35  ;;  %v3014_v35 = vld [vmem:[#allocation11_spill] sm:$0xff] }
 0x318   :  { %1405 = vmatpush2.msra.mxu1 %v1237_v45 }
 0x319   :  { %1406 = vmatprep.subr.mxu1 %v1236_v33 }
 0x31a   :  { %1407 = vmatpush2.msra.mxu1 %v1235_v36  ;;  %v3016_v36 = vld [vmem:[#allocation9_spill] sm:$0xff] }
 0x31b   :  { %1408 = vmatprep.subr.mxu1 %v1234_v21 }
 0x31c   :  { %1409 = vmatpush2.msra.mxu1 %v1233_v19 }
 0x31d   :  { %1410 = vmatprep.subr.mxu1 %v1232_v49  ;;  %v3018_v49 = vld [vmem:[#allocation7_spill] sm:$0xff] }
 0x31e   :  { %1411 = vmatpush2.msra.mxu1 %v1231_v22 }
 0x31f   :  { %1412 = vmatprep.subr.mxu1 %v1230_v44 }
 0x320   :  { %1413 = vmatpush2.msra.mxu1 %v1229_v15 }
 0x321   :  { %1414 = vmatprep.subr.mxu1 %v1228_v60 }
 0x322   :  { %1415 = vmatpush2.msra.mxu1 %v1227_v57  ;;  %v1521_v57 = vld [vmem:[%s2956_s5 + $0x10] sm:$0xff] }
 0x323   :  { %1416 = vmatprep.subr.mxu1 %v1226_v48  ;;  %v1552_v48 = vld [vmem:[%s2957_s6 + $0x8] sm:$0xff] }
 0x324   :  { %1417 = vmatpush2.msra.mxu1 %v1225_v8 }
 0x325   :  { %1418 = vmatprep.subr.mxu1 %v1224_v37 }
 0x326   :  { %1419 = vmatpush2.msra.mxu1 %v1223_v1 }
 0x327   :  { %1420 = vmatprep.subr.mxu1 %v1222_v38 }
 0x328   :  { %1421 = vmatpush2.msra.mxu1 %v1221_v51 }
 0x329   :  { %1423 = vmatmul.mubr.f32.vlgmr.msra.gmra.mxu1 %v1255_v27 }
 0x32a   :  { %1428 = vmatprep.mubr.f32.mxu1 %v1260_v24 }
 0x32d   :  { %1429 = vmatmul.mubr.f32.gmra.mxu1 %v1259_v46 }
 0x32e   :  { %1434 = vmatprep.mubr.f32.mxu1 %v1264_v59 }
 0x331   :  { %1435 = vmatmul.mubr.f32.gmra.mxu1 %v1263_v12 }
 0x332   :  { %1440 = vmatprep.mubr.f32.mxu1 %v1268_v28 }
 0x335   :  { %1441 = vmatmul.mubr.f32.gmra.mxu1 %v1267_v63 }
 0x3a9   :  { %v1335_v17 = vpop.f32.mrf.mxu1 }
 0x3ab   :  { %v1337_v16 = vpop.f32.mrf.mxu1 }
 0x3ad   :  { %v1341_v13 = vpop.f32.mrf.mxu1 }
 0x3af   :  { %v1343_v58 = vpop.f32.mrf.mxu1 }
 0x3b1   :  { %v1347_v26 = vpop.f32.mrf.mxu1 }
 0x3b3   :  { %v1349_v25 = vpop.f32.mrf.mxu1 }
 0x3b5   :  { %v1353_v42 = vpop.f32.mrf.mxu1 }
 0x3b7   :  { %v1355_v23 = vpop.f32.mrf.mxu1 }
 0x3e9   :  { %v1424_v32 = vpop.f32.mrf.mxu1 }
 0x3ea   :  { %v1425_v9 = vadd.f32 %v1424_v32, %v1335_v17 }
 0x3eb   :  { %v1426_v14 = vpop.f32.mrf.mxu1 }
 0x3ec   :  { %v1427_v40 = vadd.f32 %v1426_v14, %v1337_v16  ;;  %v1447_v0 = vadd.f32 %v1425_v9, %v3014_v35 }
 0x3ed   :  { %v1430_v53 = vpop.f32.mrf.mxu1 }
 0x3ee   :  { %v1448_v45 = vadd.f32 %v1427_v40, %v3015_v62  ;;  %v1431_v52 = vadd.f32 %v1430_v53, %v1341_v13  ;;  %v1554_v62 = vld [vmem:[%s2957_s6 + $0x18] sm:$0xff] }
 0x3ef   :  { %v1432_v11 = vpop.f32.mrf.mxu1 }
 0x3f0   :  { %v1433_v33 = vadd.f32 %v1432_v11, %v1343_v58  ;;  %v1455_v34 = vadd.f32 %v1448_v45, %v1447_v0  ;;  %v1449_v6 = vadd.f32 %v1431_v52, %v3016_v36 }
 0x3f1   :  { %v1436_v5 = vpop.f32.mrf.mxu1 }
 0x3f2   :  { %v1450_v21 = vadd.f32 %v1433_v33, %v3017_v31  ;;  %v1437_v50 = vadd.f32 %v1436_v5, %v1347_v26  ;;  %1456 = vadd.xlane.f32.xlu1 %v1455_v34 }
 0x3f3   :  { %v1438_v56 = vpop.f32.mrf.mxu1 }
 0x3f4   :  { %v1439_v19 = vadd.f32 %v1438_v56, %v1349_v25  ;;  %v1458_v29 = vadd.f32 %v1450_v21, %v1449_v6  ;;  %v1451_v3 = vadd.f32 %v1437_v50, %v3018_v49 }
 0x3f5   :  { %v1442_v43 = vpop.f32.mrf.mxu1 }
 0x3f6   :  { %v1452_v22 = vadd.f32 %v1439_v19, %v3019_v39  ;;  %v1443_v4 = vadd.f32 %v1442_v43, %v1353_v42  ;;  %1459 = vadd.xlane.f32.xlu0 %v1458_v29 }
 0x3f7   :  { %v1444_v7 = vpop.f32.mrf.mxu1 }
 0x3f8   :  { %v1445_v44 = vadd.f32 %v1444_v7, %v1355_v23  ;;  %v1461_v18 = vadd.f32 %v1452_v22, %v1451_v3  ;;  %v1453_v15 = vadd.f32 %v1443_v4, %v3020_v61 }
 0x3fa   :  { %v1454_v41 = vadd.f32 %v1445_v44, %v3021_v47  ;;  %1462 = vadd.xlane.f32.xlu0 %v1461_v18 }
 0x3fc   :  { %v1464_v60 = vadd.f32 %v1454_v41, %v1453_v15 }
 0x3fe   :  { %1465 = vadd.xlane.f32.xlu1 %v1464_v60 }
 0x40f   :  { %1530 = vperm.xlu1 %1686, %v1520_v20  }
 0x410   :  { %1525 = vperm.xlu0 %1685, %v1519_v30  }
 0x413   :  { %1535 = vperm.xlu1 %1686, %v1521_v57  }
 0x414   :  { %1540 = vperm.xlu0 %1685, %v1522_v2  }
 0x417   :  { %1557 = vperm.xlu1 %1686, %v1551_v10  }
 0x418   :  { %1562 = vperm.xlu0 %1685, %v1552_v48  }
 0x47b   :  { %v1457_v55 = vpop.xlane.xlu1 %1456 }
 0x47c   :  { %v1467_v54 = vmul.f32 0.00390625, %v1457_v55 }
 0x47e   :  { %v1471_v8 = vsub.f32 %v1447_v0, %v1467_v54  ;;  %v1472_v37 = vsub.f32 %v1448_v45, %v1467_v54  ;;  %v1553_v0 = vld [vmem:[%s2957_s6 + $0x10] sm:$0xff]  ;;  %s1727_s6 = smov [#allocation2]  }
 0x47f   :  { %v1460_v1 = vpop.xlane.xlu0 %1459  ;;  %s1597_s22 = sshll.u32 %s1727_s6, 4  ;;  %s1598_s22 = int_to_ptr.vmem [resolvable:$true] %s1597_s22 }
 0x480   :  { %v1468_v38 = vmul.f32 0.00390625, %v1460_v1  ;;  %v1479_v27 = vmul.f32 %v1471_v8, %v1471_v8  ;;  %v1480_v51 = vmul.f32 %v1472_v37, %v1472_v37  ;;  %s1703_s23 = scalar_lea.vmem %s1598_s22, 1024  ;;  %p1708_p1 = scmp.lt.s32.totalorder %s1598_s22, %s1598_s22 }
 0x481   :  { %p1704_p0 = scmp.ne.s32.totalorder %s1598_s22, %s1703_s23  ;;  %p1709_p2 = scmp.lt.s32.totalorder %s1703_s23, %s1703_s23 }
 0x482   :  { %v1473_v24 = vsub.f32 %v1449_v6, %v1468_v38  ;;  %v1474_v46 = vsub.f32 %v1450_v21, %v1468_v38  ;;  %v1487_v59 = vadd.f32 %v1480_v51, %v1479_v27 }
 0x483   :  { %v1463_v12 = vpop.xlane.xlu0 %1462  ;;  %p1710_p3 = por %p1709_p2, %p1708_p1 }
 0x484   :  { %v1469_v28 = vmul.f32 0.00390625, %v1463_v12  ;;  %1488 = vadd.xlane.f32.xlu0 %v1487_v59  ;;  %v1481_v63 = vmul.f32 %v1473_v24, %v1473_v24  ;;  %v1482_v17 = vmul.f32 %v1474_v46, %v1474_v46 }
 0x485   :  { %p1711_p4 = pnand %p1710_p3, %p1704_p0 }
 0x486   :  { %v1475_v16 = vsub.f32 %v1451_v3, %v1469_v28  ;;  %v1476_v13 = vsub.f32 %v1452_v22, %v1469_v28  ;;  %v1490_v58 = vadd.f32 %v1482_v17, %v1481_v63 }
 0x487   :  { %v1466_v26 = vpop.xlane.xlu1 %1465 }
 0x488   :  { %v1470_v25 = vmul.f32 0.00390625, %v1466_v26  ;;  %1491 = vadd.xlane.f32.xlu1 %v1490_v58  ;;  %v1483_v42 = vmul.f32 %v1475_v16, %v1475_v16  ;;  %v1484_v23 = vmul.f32 %v1476_v13, %v1476_v13 }
 0x48a   :  { %v1477_v32 = vsub.f32 %v1453_v15, %v1470_v25  ;;  %v1478_v9 = vsub.f32 %v1454_v41, %v1470_v25  ;;  %v1493_v14 = vadd.f32 %v1484_v23, %v1483_v42 }
 0x48b   :  { %v1526_v45 = vpop.permute.xlu0 %1525  ;;  %v1531_v52 = vpop.permute.xlu1 %1530 }
 0x48c   :  { %1494 = vadd.xlane.f32.xlu0 %v1493_v14  ;;  %v1485_v40 = vmul.f32 %v1477_v32, %v1477_v32  ;;  %v1486_v53 = vmul.f32 %v1478_v9, %v1478_v9 }
 0x48e   :  { %v1496_v35 = vadd.f32 %v1486_v53, %v1485_v40 }
 0x48f   :  { %v1541_v11 = vpop.permute.xlu0 %1540  ;;  %v1536_v33 = vpop.permute.xlu1 %1535 }
 0x490   :  { %1497 = vadd.xlane.f32.xlu1 %v1496_v35 }
 0x493   :  { %v1563_v34 = vpop.permute.xlu0 %1562  ;;  %v1558_v5 = vpop.permute.xlu1 %1557 }
 0x4a1   :  { %1567 = vperm.xlu1 %1686, %v1553_v0  }
 0x4a2   :  { %1572 = vperm.xlu0 %1685, %v1554_v62  }
 0x50d   :  { %v1489_v36 = vpop.xlane.xlu0 %1488 }
 0x50e   :  { %v1499_v6 = vmul.f32 0.00390625, %v1489_v36 }
 0x510   :  { %v1503_v31 = vadd.f32 1e-05, %v1499_v6 }
 0x511   :  { %v1492_v21 = vpop.xlane.xlu1 %1491 }
 0x512   :  { %1695 = vrsqrt.f32 %v1503_v31  ;;  %v1500_v50 = vmul.f32 0.00390625, %v1492_v21 }
 0x514   :  { %v1504_v56 = vadd.f32 1e-05, %v1500_v50 }
 0x515   :  { %v1495_v19 = vpop.xlane.xlu0 %1494 }
 0x516   :  { %1697 = vrsqrt.f32 %v1504_v56  ;;  %v1501_v29 = vmul.f32 0.00390625, %v1495_v19 }
 0x518   :  { %v1505_v43 = vadd.f32 1e-05, %v1501_v29 }
 0x519   :  { %v1498_v49 = vpop.xlane.xlu1 %1497 }
 0x51a   :  { %1699 = vrsqrt.f32 %v1505_v43  ;;  %v1502_v3 = vmul.f32 0.00390625, %v1498_v49 }
 0x51c   :  { %v1506_v39 = vadd.f32 1e-05, %v1502_v3 }
 0x51d   :  { %v1568_v1 = vpop.permute.xlu1 %1567  ;;  %v1573_v12 = vpop.permute.xlu0 %1572 }
 0x51e   :  { %1701 = vrsqrt.f32 %v1506_v39 }
 0x51f   :  { %v1696_v22 = vpop.eup %1695 }
 0x520   :  { %v1511_v4 = vmul.f32 %v1696_v22, %v1471_v8  ;;  %v1512_v7 = vmul.f32 %v1696_v22, %v1472_v37 }
 0x522   :  { %v1543_v44 = vmul.f32 %v1526_v45, %v1511_v4  ;;  %v1544_v18 = vmul.f32 %v1526_v45, %v1512_v7 }
 0x523   :  { %v1698_v61 = vpop.eup %1697 }
 0x524   :  { %v1575_v15 = vadd.f32 %v1558_v5, %v1543_v44  ;;  %v1576_v47 = vadd.f32 %v1558_v5, %v1544_v18  ;;  %v1513_v41 = vmul.f32 %v1698_v61, %v1473_v24  ;;  %v1514_v60 = vmul.f32 %v1698_v61, %v1474_v46 }
 0x526   :  { %1583 = vst [vmem:[#allocation2] sm:$0xff] %v1575_v15  ;;  %1588 = vst [vmem:[#allocation2 + $0x20] sm:$0xff] %v1576_v47  ;;  %v1545_v20 = vmul.f32 %v1531_v52, %v1513_v41  ;;  %v1546_v30 = vmul.f32 %v1531_v52, %v1514_v60 }
 0x527   :  { %v1700_v57 = vpop.eup %1699 }
 0x528   :  { %v1577_v2 = vadd.f32 %v1563_v34, %v1545_v20  ;;  %v1578_v10 = vadd.f32 %v1563_v34, %v1546_v30  ;;  %v1515_v48 = vmul.f32 %v1700_v57, %v1475_v16  ;;  %v1516_v55 = vmul.f32 %v1700_v57, %v1476_v13 }
 0x52a   :  { %1584 = vst [vmem:[#allocation2 + $0x8] sm:$0xff] %v1577_v2  ;;  %1589 = vst [vmem:[#allocation2 + $0x28] sm:$0xff] %v1578_v10  ;;  %v1547_v54 = vmul.f32 %v1536_v33, %v1515_v48  ;;  %v1548_v8 = vmul.f32 %v1536_v33, %v1516_v55 }
 0x52b   :  { %v1702_v37 = vpop.eup %1701 }
 0x52c   :  { %v1517_v38 = vmul.f32 %v1702_v37, %v1477_v32  ;;  %v1518_v27 = vmul.f32 %v1702_v37, %v1478_v9  ;;  %v1579_v51 = vadd.f32 %v1568_v1, %v1547_v54  ;;  %v1580_v24 = vadd.f32 %v1568_v1, %v1548_v8 }
 0x52e   :  { %v1549_v46 = vmul.f32 %v1541_v11, %v1517_v38  ;;  %v1550_v59 = vmul.f32 %v1541_v11, %v1518_v27  ;;  %1585 = vst [vmem:[#allocation2 + $0x10] sm:$0xff] %v1579_v51  ;;  %1590 = vst [vmem:[#allocation2 + $0x30] sm:$0xff] %v1580_v24 }
 0x530   :  { %v1581_v28 = vadd.f32 %v1573_v12, %v1549_v46  ;;  %v1582_v63 = vadd.f32 %v1573_v12, %v1550_v59 }
 0x532   :  { %1586 = vst [vmem:[#allocation2 + $0x18] sm:$0xff] %v1581_v28  ;;  %1591 = vst [vmem:[#allocation2 + $0x38] sm:$0xff] %v1582_v63 }
 0x533   :  { %1714 = shalt.err (!%p1711_p4)
}
 0x534   :  { %s1728_s24 = smov 128   ;;  %s1729_s25 = smov 8  }
 0x535   :  { %1603 = dma.vmem_to_hbm [thread:$0]  %s1598_s22, 1024, %s2958_s7, [#allocation3], %s1728_s24, %s1728_s24, %s1729_s25  }
 0x536   :  { %1723 = dma.done.wait [#allocation3], 1024  }
 0x537   :  { %1724 = vsyncadd [#allocation3], 4294966272 }
 0x538   :  { %1607 = vsyncpa [#allocation3], 1 }

// kernel: nr_attention_forward.4
= control target key start
LH: loop header
LB: loop body
LE: loop exit
PB: predicated region body
PF: predicated region fallthrough
CT: control target
= control target key end

     0   :  { %s5621_s15 = smov 0   ;;  %s5623_s16 = smov 0   ;;  %s8296_s0 = inlined_call_operand.vmem [shape: f32[2,32,128], index: 0, kind: input, shape index: {}]   ;;  %s8297_s1 = inlined_call_operand.vmem [shape: f32[2,32,4096], index: 1, kind: input, shape index: {}]   ;;  %s8298_s2 = inlined_call_operand.vmem [shape: f32[64,32], index: 2, kind: input, shape index: {}]   ;;  %s8299_s3 = inlined_call_operand.vmem [shape: f32[64,32], index: 3, kind: input, shape index: {}]   ;;  %s8300_s4 = inlined_call_operand.vmem [shape: f32[32,256], index: 4, kind: output, shape index: {}]  }
   0x1   :  { %s5625_s17 = smov 0  }
   0x2 LB: > { %s5634_s18 = sadd.s32 4294967295, %s5593_s17   ;;  %s5636_s19 = sadd.s32 1, %s5593_s17   ;;  %s5593_s17 = sphi %s5625_s17, %s8340_s17   ;;  %s5589_s16 = sphi %s5623_s16, %s8339_s16   ;;  %s5585_s15 = sphi %s5621_s15, %s8338_s15  }
   0x3   : > { %s112_s20 = ssub.s32 %s5593_s17, %s5636_s19  ;;  %s115_s21 = sadd.s32 1, %s5589_s16 }
   0x4   : > { %p113_p0 = scmp.eq.s32.totalorder %s112_s20, 0  ;;  %p125_p1 = scmp.ne.s32.totalorder %s5589_s16, %s5585_s15 }
   0x5   : > { %p126_p2 = scmp.eq.s32.totalorder %s5634_s18, 1  ;;  %p4842_p3 = scmp.ge.s32.totalorder %s5593_s17, 1 }
   0x6   : > { %s5644_s22 = scalar_select %p113_p0, %s5589_s16, %s115_s21  }
   0x7   : > { %p5646_p4 = por %p126_p2, %p125_p1  ;;  %p172_p5 = scmp.lt.s32.totalorder %s5593_s17, 3 }
   0x9   : > { %p173_p6 = pnand %p4842_p3, %p172_p5 }
   0xb   : > { %176 = sbr.rel (%p173_p6) target bundleno = 873 (0x369), region = 36 }
  0x10   : > { %p202_p7 = scmp.lt.s32.totalorder %s5634_s18, 1  ;;  %v216_v0 = vld [vmem:[%s8298_s2] sm:$0xff]  ;;  %vm224_vm0 = vcmask 261120   ;;  %v217_v6 = vld [vmem:[%s8298_s2 + $0x8] sm:$0xff]  ;;  %v218_v14 = vld [vmem:[%s8298_s2 + $0x10] sm:$0xff]  ;;  %v5595_v29 = vmov 0.0  }
  0x11   : > { %v220_v1 = vld [vmem:[%s8298_s2 + $0x20] sm:$0xff]  ;;  %5010 = vmatprep.mubr.msk.f32.mxu0 %vm224_vm0, %v216_v0  ;;  %v221_v7 = vld [vmem:[%s8298_s2 + $0x28] sm:$0xff]  ;;  %v222_v15 = vld [vmem:[%s8298_s2 + $0x30] sm:$0xff]  ;;  %s199_s24 = sand.u32 1, %s5585_s15   ;;  %s4985_s26 = sshll.u32 (%p5646_p4), %s5634_s18, 3 }
  0x12   : > { %5016 = vmatprep.mubr.msk.f32.mxu1 %vm224_vm0, %v220_v1  ;;  %s203_s28 = scalar_select %p202_p7, %s5634_s18, 1  ;;  %v219_v18 = vld [vmem:[%s8298_s2 + $0x18] sm:$0xff]  ;;  %v5717_v28 = vld [vmem:[%s8299_s3] sm:$0xff]  ;;  %v5733_v34 = vld [vmem:[%s8299_s3 + $0x8] sm:$0xff] }
  0x13   : > { %v223_v19 = vld [vmem:[%s8298_s2 + $0x38] sm:$0xff]  ;;  %v5749_v39 = vld [vmem:[%s8299_s3 + $0x10] sm:$0xff]  ;;  %v5779_v49 = vld [vmem:[%s8299_s3 + $0x20] sm:$0xff]  ;;  %s4843_s25 = sshll.u32 %s199_s24, 5 }
  0x14   : > { %s4988_s29 = sshll.u32 %s203_s28, 5  ;;  %s4989_s7 = sshll.u32 %s203_s28, 10  ;;  %v5764_v44 = vld [vmem:[%s8299_s3 + $0x18] sm:$0xff]  ;;  %v5792_v52 = vld [vmem:[%s8299_s3 + $0x28] sm:$0xff]  ;;  %v5803_v53 = vld [vmem:[%s8299_s3 + $0x30] sm:$0xff] }
  0x15   : > { %s5663_s6 = scalar_lea.vmem %s8296_s0, %s4988_s29  ;;  %s5671_s10 = scalar_lea.vmem %s8297_s1, %s4989_s7  ;;  %v5814_v54 = vld [vmem:[%s8299_s3 + $0x38] sm:$0xff] }
  0x16   : > { %v215_v2 = vld [vmem:[%s5663_s6 + $0x18] sm:$0xff]  ;;  %v214_v3 = vld [vmem:[%s5663_s6 + $0x10] sm:$0xff]  ;;  %v213_v4 = vld [vmem:[%s5663_s6 + $0x8] sm:$0xff]  ;;  %s201_s15 = scalar_lea.vmem [#allocation2], %s4843_s25  ;;  %s4730_s28 = scalar_lea.vmem (%p5646_p4), %s8300_s4, %s4985_s26 }
  0x17   : > { %5002 = vmatprep.subr.mxu0 %v215_v2  ;;  %5022 = vmatprep.subr.mxu1 %v215_v2  ;;  %v212_v5 = vld [vmem:[%s5663_s6] sm:$0xff]  ;;  %v459_v8 = vld [vmem:[%s5671_s10 + $0x308] sm:$0xff]  ;;  %v461_v9 = vld [vmem:[%s5671_s10 + $0x318] sm:$0xff] }
  0x18   : > { %5003 = vmatpush3.msra.mxu0 %v215_v2  ;;  %5026 = vmatpush3.msra.mxu1 %v215_v2  ;;  %v458_v10 = vld [vmem:[%s5671_s10 + $0x300] sm:$0xff]  ;;  %v460_v11 = vld [vmem:[%s5671_s10 + $0x310] sm:$0xff]  ;;  %v427_v12 = vld [vmem:[%s5671_s10 + $0x208] sm:$0xff] }
  0x19   : > { %5004 = vmatprep.subr.mxu0 %v214_v3  ;;  %5023 = vmatprep.subr.mxu1 %v214_v3  ;;  %v429_v13 = vld [vmem:[%s5671_s10 + $0x218] sm:$0xff]  ;;  %v426_v16 = vld [vmem:[%s5671_s10 + $0x200] sm:$0xff]  ;;  %v428_v17 = vld [vmem:[%s5671_s10 + $0x210] sm:$0xff] }
  0x1a   : > { %5005 = vmatpush3.msra.mxu0 %v214_v3  ;;  %5027 = vmatpush3.msra.mxu1 %v214_v3  ;;  %v395_v20 = vld [vmem:[%s5671_s10 + $0x108] sm:$0xff]  ;;  %v397_v21 = vld [vmem:[%s5671_s10 + $0x118] sm:$0xff]  ;;  %v394_v22 = vld [vmem:[%s5671_s10 + $0x100] sm:$0xff] }
  0x1b   : > { %5006 = vmatprep.subr.mxu0 %v213_v4  ;;  %5024 = vmatprep.subr.mxu1 %v213_v4  ;;  %v396_v23 = vld [vmem:[%s5671_s10 + $0x110] sm:$0xff]  ;;  %v363_v24 = vld [vmem:[%s5671_s10 + $0x8] sm:$0xff]  ;;  %v365_v25 = vld [vmem:[%s5671_s10 + $0x18] sm:$0xff] }
  0x1c   : > { %5007 = vmatpush3.msra.mxu0 %v213_v4  ;;  %5028 = vmatpush3.msra.mxu1 %v213_v4  ;;  %v362_v26 = vld [vmem:[%s5671_s10] sm:$0xff]  ;;  %v364_v27 = vld [vmem:[%s5671_s10 + $0x10] sm:$0xff]  ;;  %v463_v30 = vld [vmem:[%s5671_s10 + $0x328] sm:$0xff] }
  0x1d   : > { %5008 = vmatprep.subr.mxu0 %v212_v5  ;;  %5025 = vmatprep.subr.mxu1 %v212_v5  ;;  %v462_v31 = vld [vmem:[%s5671_s10 + $0x320] sm:$0xff]  ;;  %v431_v32 = vld [vmem:[%s5671_s10 + $0x228] sm:$0xff]  ;;  %v465_v33 = vld [vmem:[%s5671_s10 + $0x338] sm:$0xff] }
  0x1e   : > { %5009 = vmatpush3.msra.mxu0 %v212_v5  ;;  %5029 = vmatpush3.msra.mxu1 %v212_v5  ;;  %v430_v35 = vld [vmem:[%s5671_s10 + $0x220] sm:$0xff]  ;;  %v464_v36 = vld [vmem:[%s5671_s10 + $0x330] sm:$0xff]  ;;  %v399_v37 = vld [vmem:[%s5671_s10 + $0x128] sm:$0xff] }
  0x1f   : > { %5011 = vmatmul.mubr.msk.f32.vlgmr.msra.gmra.mxu0 %vm224_vm0, %v217_v6  ;;  %5017 = vmatmul.mubr.msk.f32.vlgmr.msra.gmra.mxu1 %vm224_vm0, %v221_v7  ;;  %v433_v38 = vld [vmem:[%s5671_s10 + $0x238] sm:$0xff]  ;;  %v398_v40 = vld [vmem:[%s5671_s10 + $0x120] sm:$0xff]  ;;  %v432_v41 = vld [vmem:[%s5671_s10 + $0x230] sm:$0xff] }
  0x20   : > { %538 = vmatprep.subr.mxu1 %v459_v8  ;;  %651 = vmatprep.subr.mxu0 %v461_v9  ;;  %v367_v42 = vld [vmem:[%s5671_s10 + $0x28] sm:$0xff]  ;;  %v401_v43 = vld [vmem:[%s5671_s10 + $0x138] sm:$0xff]  ;;  %v366_v45 = vld [vmem:[%s5671_s10 + $0x20] sm:$0xff] }
  0x21   : > { %539 = vmatpush1.msra.mxu1 %v458_v10  ;;  %652 = vmatpush1.msra.mxu0 %v460_v11  ;;  %v400_v46 = vld [vmem:[%s5671_s10 + $0x130] sm:$0xff]  ;;  %v369_v47 = vld [vmem:[%s5671_s10 + $0x38] sm:$0xff]  ;;  %v467_v48 = vld [vmem:[%s5671_s10 + $0x348] sm:$0xff] }
  0x22   : > { %540 = vmatprep.subr.mxu1 %v427_v12  ;;  %653 = vmatprep.subr.mxu0 %v429_v13  ;;  %v368_v50 = vld [vmem:[%s5671_s10 + $0x30] sm:$0xff]  ;;  %v469_v51 = vld [vmem:[%s5671_s10 + $0x358] sm:$0xff]  ;;  %v466_v55 = vld [vmem:[%s5671_s10 + $0x340] sm:$0xff] }
  0x23   : > { %5013 = vmatprep.mubr.msk.f32.mxu0 %vm224_vm0, %v218_v14  ;;  %5019 = vmatprep.mubr.msk.f32.mxu1 %vm224_vm0, %v222_v15  ;;  %v435_v56 = vld [vmem:[%s5671_s10 + $0x248] sm:$0xff]  ;;  %v434_v57 = vld [vmem:[%s5671_s10 + $0x240] sm:$0xff]  ;;  %v468_v58 = vld [vmem:[%s5671_s10 + $0x350] sm:$0xff] }
  0x24   : > { %541 = vmatpush1.msra.mxu1 %v426_v16  ;;  %654 = vmatpush1.msra.mxu0 %v428_v17  ;;  %v403_v59 = vld [vmem:[%s5671_s10 + $0x148] sm:$0xff]  ;;  %v437_v60 = vld [vmem:[%s5671_s10 + $0x258] sm:$0xff]  ;;  %v402_v61 = vld [vmem:[%s5671_s10 + $0x140] sm:$0xff] }
  0x25   : > { %5014 = vmatmul.mubr.msk.f32.gmra.mxu0 %vm224_vm0, %v219_v18  ;;  %5020 = vmatmul.mubr.msk.f32.gmra.mxu1 %vm224_vm0, %v223_v19  ;;  %v436_v62 = vld [vmem:[%s5671_s10 + $0x250] sm:$0xff]  ;;  %v371_v63 = vld [vmem:[%s5671_s10 + $0x48] sm:$0xff]  ;;  %v405_v0 = vld [vmem:[%s5671_s10 + $0x158] sm:$0xff] }
  0x26   : > { %542 = vmatprep.subr.mxu1 %v395_v20  ;;  %655 = vmatprep.subr.mxu0 %v397_v21  ;;  %v370_v1 = vld [vmem:[%s5671_s10 + $0x40] sm:$0xff]  ;;  %v404_v2 = vld [vmem:[%s5671_s10 + $0x150] sm:$0xff]  ;;  %v373_v3 = vld [vmem:[%s5671_s10 + $0x58] sm:$0xff] }
  0x27   : > { %543 = vmatpush1.msra.mxu1 %v394_v22  ;;  %656 = vmatpush1.msra.mxu0 %v396_v23  ;;  %v471_v4 = vld [vmem:[%s5671_s10 + $0x368] sm:$0xff]  ;;  %v372_v5 = vld [vmem:[%s5671_s10 + $0x50] sm:$0xff]  ;;  %v473_v6 = vld [vmem:[%s5671_s10 + $0x378] sm:$0xff] }
  0x28   : > { %544 = vmatprep.subr.mxu1 %v363_v24  ;;  %657 = vmatprep.subr.mxu0 %v365_v25  ;;  %v470_v7 = vld [vmem:[%s5671_s10 + $0x360] sm:$0xff]  ;;  %v439_v8 = vld [vmem:[%s5671_s10 + $0x268] sm:$0xff]  ;;  %v472_v10 = vld [vmem:[%s5671_s10 + $0x370] sm:$0xff] }
  0x29   : > { %545 = vmatpush1.msra.mxu1 %v362_v26  ;;  %578 = vmatprep.mubr.f32.mxu1 %v5595_v29  ;;  %v438_v9 = vld [vmem:[%s5671_s10 + $0x260] sm:$0xff]  ;;  %v407_v11 = vld [vmem:[%s5671_s10 + $0x168] sm:$0xff]  ;;  %v441_v12 = vld [vmem:[%s5671_s10 + $0x278] sm:$0xff] }
  0x2a   : > { %658 = vmatpush1.msra.mxu0 %v364_v27  ;;  %691 = vmatprep.mubr.f32.mxu0 %v5595_v29  ;;  %v406_v13 = vld [vmem:[%s5671_s10 + $0x160] sm:$0xff]  ;;  %v440_v14 = vld [vmem:[%s5671_s10 + $0x270] sm:$0xff]  ;;  %v375_v15 = vld [vmem:[%s5671_s10 + $0x68] sm:$0xff] }
  0x2b   : > { %4856 = vmatmul.mubr.msk.f32.vlgmr.msra.gmra.mxu1 %vm224_vm0, %v5717_v28  ;;  %4864 = vmatmul.mubr.msk.f32.vlgmr.msra.gmra.mxu0 %vm224_vm0, %v5717_v28  ;;  %v409_v16 = vld [vmem:[%s5671_s10 + $0x178] sm:$0xff]  ;;  %v374_v17 = vld [vmem:[%s5671_s10 + $0x60] sm:$0xff]  ;;  %v408_v18 = vld [vmem:[%s5671_s10 + $0x170] sm:$0xff] }
  0x2c   : > { %764 = vmatprep.subr.mxu1 %v463_v30  ;;  %584 = vmatprep.mubr.f32.mxu1 %v5595_v29  ;;  %v377_v19 = vld [vmem:[%s5671_s10 + $0x78] sm:$0xff]  ;;  %v475_v20 = vld [vmem:[%s5671_s10 + $0x388] sm:$0xff]  ;;  %v376_v21 = vld [vmem:[%s5671_s10 + $0x70] sm:$0xff] }
  0x2d   : > { %765 = vmatpush1.msra.mxu1 %v462_v31  ;;  %697 = vmatprep.mubr.f32.mxu0 %v5595_v29  ;;  %v477_v22 = vld [vmem:[%s5671_s10 + $0x398] sm:$0xff]  ;;  %v474_v23 = vld [vmem:[%s5671_s10 + $0x380] sm:$0xff]  ;;  %v443_v24 = vld [vmem:[%s5671_s10 + $0x288] sm:$0xff] }
  0x2e   : > { %766 = vmatprep.subr.mxu1 %v431_v32  ;;  %877 = vmatprep.subr.mxu0 %v465_v33  ;;  %v442_v25 = vld [vmem:[%s5671_s10 + $0x280] sm:$0xff]  ;;  %v476_v26 = vld [vmem:[%s5671_s10 + $0x390] sm:$0xff]  ;;  %v411_v27 = vld [vmem:[%s5671_s10 + $0x188] sm:$0xff] }
  0x2f   : > { %4857 = vmatmul.mubr.msk.f32.gmra.mxu1 %vm224_vm0, %v5733_v34  ;;  %4865 = vmatmul.mubr.msk.f32.gmra.mxu0 %vm224_vm0, %v5733_v34  ;;  %v445_v30 = vld [vmem:[%s5671_s10 + $0x298] sm:$0xff]  ;;  %v410_v31 = vld [vmem:[%s5671_s10 + $0x180] sm:$0xff]  ;;  %v444_v32 = vld [vmem:[%s5671_s10 + $0x290] sm:$0xff] }
  0x30   : > { %590 = vmatprep.mubr.f32.mxu1 %v5595_v29  ;;  %703 = vmatprep.mubr.f32.mxu0 %v5595_v29  ;;  %v379_v33 = vld [vmem:[%s5671_s10 + $0x88] sm:$0xff] }
  0x31   : > { %767 = vmatpush1.msra.mxu1 %v430_v35  ;;  %878 = vmatpush1.msra.mxu0 %v464_v36  ;;  %v413_v35 = vld [vmem:[%s5671_s10 + $0x198] sm:$0xff]  ;;  %v378_v36 = vld [vmem:[%s5671_s10 + $0x80] sm:$0xff] }
  0x32   : > { %768 = vmatprep.subr.mxu1 %v399_v37  ;;  %879 = vmatprep.subr.mxu0 %v433_v38  ;;  %v412_v37 = vld [vmem:[%s5671_s10 + $0x190] sm:$0xff]  ;;  %v381_v38 = vld [vmem:[%s5671_s10 + $0x98] sm:$0xff] }
  0x33   : > { %4858 = vmatmul.mubr.msk.f32.gmra.mxu1 %vm224_vm0, %v5749_v39  ;;  %4866 = vmatmul.mubr.msk.f32.gmra.mxu0 %vm224_vm0, %v5749_v39 }
  0x34   : > { %596 = vmatprep.mubr.f32.mxu1 %v5595_v29  ;;  %709 = vmatprep.mubr.f32.mxu0 %v5595_v29 }
  0x35   : > { %769 = vmatpush1.msra.mxu1 %v398_v40  ;;  %880 = vmatpush1.msra.mxu0 %v432_v41  ;;  %v479_v40 = vld [vmem:[%s5671_s10 + $0x3a8] sm:$0xff]  ;;  %v380_v41 = vld [vmem:[%s5671_s10 + $0x90] sm:$0xff] }
  0x36   : > { %770 = vmatprep.subr.mxu1 %v367_v42  ;;  %881 = vmatprep.subr.mxu0 %v401_v43  ;;  %v481_v42 = vld [vmem:[%s5671_s10 + $0x3b8] sm:$0xff]  ;;  %v478_v43 = vld [vmem:[%s5671_s10 + $0x3a0] sm:$0xff] }
  0x37   : > { %4859 = vmatmul.mubr.msk.f32.gmra.mxu1 %vm224_vm0, %v5764_v44  ;;  %4867 = vmatmul.mubr.msk.f32.gmra.mxu0 %vm224_vm0, %v5764_v44 }
  0x38   : > { %602 = vmatprep.mubr.f32.mxu1 %v5595_v29  ;;  %715 = vmatprep.mubr.f32.mxu0 %v5595_v29 }
  0x39   : > { %771 = vmatpush1.msra.mxu1 %v366_v45  ;;  %882 = vmatpush1.msra.mxu0 %v400_v46  ;;  %v447_v45 = vld [vmem:[%s5671_s10 + $0x2a8] sm:$0xff]  ;;  %v446_v46 = vld [vmem:[%s5671_s10 + $0x2a0] sm:$0xff] }
  0x3a   : > { %883 = vmatprep.subr.mxu0 %v369_v47  ;;  %990 = vmatprep.subr.mxu1 %v467_v48  ;;  %v480_v47 = vld [vmem:[%s5671_s10 + $0x3b0] sm:$0xff]  ;;  %v415_v48 = vld [vmem:[%s5671_s10 + $0x1a8] sm:$0xff] }
  0x3b   : > { %4860 = vmatmul.mubr.msk.f32.gmra.mxu1 %vm224_vm0, %v5779_v49  ;;  %4868 = vmatmul.mubr.msk.f32.gmra.mxu0 %vm224_vm0, %v5779_v49 }
  0x3c   : > { %608 = vmatprep.mubr.f32.mxu1 %v5595_v29  ;;  %721 = vmatprep.mubr.f32.mxu0 %v5595_v29 }
  0x3d   : > { %884 = vmatpush1.msra.mxu0 %v368_v50  ;;  %v449_v50 = vld [vmem:[%s5671_s10 + $0x2b8] sm:$0xff] }
  0x3e   : > { %1103 = vmatprep.subr.mxu0 %v469_v51  ;;  %v414_v51 = vld [vmem:[%s5671_s10 + $0x1a0] sm:$0xff] }
  0x3f   : > { %4861 = vmatmul.mubr.msk.f32.gmra.mxu1 %vm224_vm0, %v5792_v52  ;;  %4869 = vmatmul.mubr.msk.f32.gmra.mxu0 %vm224_vm0, %v5792_v52 }
  0x40   : > { %614 = vmatprep.mubr.f32.mxu1 %v5595_v29  ;;  %727 = vmatprep.mubr.f32.mxu0 %v5595_v29 }
  0x43   : > { %4862 = vmatmul.mubr.msk.f32.gmra.mxu1 %vm224_vm0, %v5803_v53  ;;  %4870 = vmatmul.mubr.msk.f32.gmra.mxu0 %vm224_vm0, %v5803_v53 }
  0x44   : > { %620 = vmatprep.mubr.f32.mxu1 %v5595_v29  ;;  %733 = vmatprep.mubr.f32.mxu0 %v5595_v29 }
  0x47   : > { %4863 = vmatmul.mubr.msk.f32.gmra.mxu1 %vm224_vm0, %v5814_v54  ;;  %4871 = vmatmul.mubr.msk.f32.gmra.mxu0 %vm224_vm0, %v5814_v54 }
  0x48   : > { %804 = vmatprep.mubr.f32.mxu1 %v5595_v29  ;;  %917 = vmatprep.mubr.f32.mxu0 %v5595_v29 }
  0x4b   : > { %4872 = vmatmul.mubr.msk.f32.vlgmr.msra.gmra.mxu1 %vm224_vm0, %v5717_v28  ;;  %4880 = vmatmul.mubr.msk.f32.vlgmr.msra.gmra.mxu0 %vm224_vm0, %v5717_v28 }
  0x4c   : > { %991 = vmatpush1.msra.mxu1 %v466_v55  ;;  %810 = vmatprep.mubr.f32.mxu1 %v5595_v29  ;;  %v448_v55 = vld [vmem:[%s5671_s10 + $0x2b0] sm:$0xff] }
  0x4d   : > { %923 = vmatprep.mubr.f32.mxu0 %v5595_v29  ;;  %992 = vmatprep.subr.mxu1 %v435_v56  ;;  %v383_v56 = vld [vmem:[%s5671_s10 + $0xa8] sm:$0xff] }
  0x4e   : > { %993 = vmatpush1.msra.mxu1 %v434_v57  ;;  %1104 = vmatpush1.msra.mxu0 %v468_v58  ;;  %v417_v57 = vld [vmem:[%s5671_s10 + $0x1b8] sm:$0xff]  ;;  %v382_v58 = vld [vmem:[%s5671_s10 + $0xa0] sm:$0xff] }
  0x4f   : > { %4873 = vmatmul.mubr.msk.f32.gmra.mxu1 %vm224_vm0, %v5733_v34  ;;  %4881 = vmatmul.mubr.msk.f32.gmra.mxu0 %vm224_vm0, %v5733_v34 }
  0x50   : > { %816 = vmatprep.mubr.f32.mxu1 %v5595_v29  ;;  %929 = vmatprep.mubr.f32.mxu0 %v5595_v29 }
  0x51   : > { %994 = vmatprep.subr.mxu1 %v403_v59  ;;  %1105 = vmatprep.subr.mxu0 %v437_v60  ;;  %v416_v59 = vld [vmem:[%s5671_s10 + $0x1b0] sm:$0xff]  ;;  %v385_v60 = vld [vmem:[%s5671_s10 + $0xb8] sm:$0xff] }
  0x52   : > { %995 = vmatpush1.msra.mxu1 %v402_v61  ;;  %1106 = vmatpush1.msra.mxu0 %v436_v62  ;;  %v483_v61 = vld [vmem:[%s5671_s10 + $0x3c8] sm:$0xff]  ;;  %v384_v62 = vld [vmem:[%s5671_s10 + $0xb0] sm:$0xff] }
  0x53   : > { %4874 = vmatmul.mubr.msk.f32.gmra.mxu1 %vm224_vm0, %v5749_v39  ;;  %4882 = vmatmul.mubr.msk.f32.gmra.mxu0 %vm224_vm0, %v5749_v39 }
  0x54   : > { %822 = vmatprep.mubr.f32.mxu1 %v5595_v29  ;;  %935 = vmatprep.mubr.f32.mxu0 %v5595_v29 }
  0x55   : > { %996 = vmatprep.subr.mxu1 %v371_v63  ;;  %1107 = vmatprep.subr.mxu0 %v405_v0  ;;  %v485_v63 = vld [vmem:[%s5671_s10 + $0x3d8] sm:$0xff]  ;;  %v482_v0 = vld [vmem:[%s5671_s10 + $0x3c0] sm:$0xff] }
  0x56   : > { %997 = vmatpush1.msra.mxu1 %v370_v1  ;;  %1108 = vmatpush1.msra.mxu0 %v404_v2  ;;  %v451_v1 = vld [vmem:[%s5671_s10 + $0x2c8] sm:$0xff]  ;;  %v450_v2 = vld [vmem:[%s5671_s10 + $0x2c0] sm:$0xff] }
  0x57   : > { %4875 = vmatmul.mubr.msk.f32.gmra.mxu1 %vm224_vm0, %v5764_v44  ;;  %4883 = vmatmul.mubr.msk.f32.gmra.mxu0 %vm224_vm0, %v5764_v44 }
  0x58   : > { %828 = vmatprep.mubr.f32.mxu1 %v5595_v29  ;;  %941 = vmatprep.mubr.f32.mxu0 %v5595_v29 }
  0x59   : > { %1109 = vmatprep.subr.mxu0 %v373_v3  ;;  %1216 = vmatprep.subr.mxu1 %v471_v4  ;;  %v484_v3 = vld [vmem:[%s5671_s10 + $0x3d0] sm:$0xff]  ;;  %v419_v4 = vld [vmem:[%s5671_s10 + $0x1c8] sm:$0xff] }
  0x5a   : > { %1110 = vmatpush1.msra.mxu0 %v372_v5  ;;  %v453_v5 = vld [vmem:[%s5671_s10 + $0x2d8] sm:$0xff] }
  0x5b   : > { %4876 = vmatmul.mubr.msk.f32.gmra.mxu1 %vm224_vm0, %v5779_v49  ;;  %4884 = vmatmul.mubr.msk.f32.gmra.mxu0 %vm224_vm0, %v5779_v49 }
  0x5c   : > { %834 = vmatprep.mubr.f32.mxu1 %v5595_v29  ;;  %947 = vmatprep.mubr.f32.mxu0 %v5595_v29 }
  0x5d   : > { %1329 = vmatprep.subr.mxu0 %v473_v6  ;;  %v418_v6 = vld [vmem:[%s5671_s10 + $0x1c0] sm:$0xff] }
  0x5f   : > { %4877 = vmatmul.mubr.msk.f32.gmra.mxu1 %vm224_vm0, %v5792_v52  ;;  %4885 = vmatmul.mubr.msk.f32.gmra.mxu0 %vm224_vm0, %v5792_v52 }
  0x60   : > { %840 = vmatprep.mubr.f32.mxu1 %v5595_v29  ;;  %953 = vmatprep.mubr.f32.mxu0 %v5595_v29 }
  0x63   : > { %4878 = vmatmul.mubr.msk.f32.gmra.mxu1 %vm224_vm0, %v5803_v53  ;;  %4886 = vmatmul.mubr.msk.f32.gmra.mxu0 %vm224_vm0, %v5803_v53 }
  0x64   : > { %846 = vmatprep.mubr.f32.mxu1 %v5595_v29  ;;  %959 = vmatprep.mubr.f32.mxu0 %v5595_v29 }
  0x67   : > { %4879 = vmatmul.mubr.msk.f32.gmra.mxu1 %vm224_vm0, %v5814_v54  ;;  %4887 = vmatmul.mubr.msk.f32.gmra.mxu0 %vm224_vm0, %v5814_v54 }
  0x68   : > { %1030 = vmatprep.mubr.f32.mxu1 %v5595_v29  ;;  %1143 = vmatprep.mubr.f32.mxu0 %v5595_v29 }
  0x6b   : > { %4888 = vmatmul.mubr.msk.f32.vlgmr.msra.gmra.mxu1 %vm224_vm0, %v5717_v28  ;;  %4896 = vmatmul.mubr.msk.f32.vlgmr.msra.gmra.mxu0 %vm224_vm0, %v5717_v28 }
  0x6c   : > { %1217 = vmatpush1.msra.mxu1 %v470_v7  ;;  %1036 = vmatprep.mubr.f32.mxu1 %v5595_v29  ;;  %v452_v7 = vld [vmem:[%s5671_s10 + $0x2d0] sm:$0xff] }
  0x6d   : > { %1149 = vmatprep.mubr.f32.mxu0 %v5595_v29  ;;  %1218 = vmatprep.subr.mxu1 %v439_v8  ;;  %v387_v8 = vld [vmem:[%s5671_s10 + $0xc8] sm:$0xff] }
  0x6e   : > { %1219 = vmatpush1.msra.mxu1 %v438_v9  ;;  %1330 = vmatpush1.msra.mxu0 %v472_v10  ;;  %v421_v9 = vld [vmem:[%s5671_s10 + $0x1d8] sm:$0xff]  ;;  %v386_v10 = vld [vmem:[%s5671_s10 + $0xc0] sm:$0xff] }
  0x6f   : > { %4889 = vmatmul.mubr.msk.f32.gmra.mxu1 %vm224_vm0, %v5733_v34  ;;  %4897 = vmatmul.mubr.msk.f32.gmra.mxu0 %vm224_vm0, %v5733_v34 }
  0x70   : > { %1042 = vmatprep.mubr.f32.mxu1 %v5595_v29  ;;  %1155 = vmatprep.mubr.f32.mxu0 %v5595_v29 }
  0x71   : > { %1220 = vmatprep.subr.mxu1 %v407_v11  ;;  %1331 = vmatprep.subr.mxu0 %v441_v12  ;;  %v420_v11 = vld [vmem:[%s5671_s10 + $0x1d0] sm:$0xff]  ;;  %v389_v12 = vld [vmem:[%s5671_s10 + $0xd8] sm:$0xff] }
  0x72   : > { %1221 = vmatpush1.msra.mxu1 %v406_v13  ;;  %1332 = vmatpush1.msra.mxu0 %v440_v14  ;;  %v487_v13 = vld [vmem:[%s5671_s10 + $0x3e8] sm:$0xff]  ;;  %v388_v14 = vld [vmem:[%s5671_s10 + $0xd0] sm:$0xff] }
  0x73   : > { %4890 = vmatmul.mubr.msk.f32.gmra.mxu1 %vm224_vm0, %v5749_v39  ;;  %4898 = vmatmul.mubr.msk.f32.gmra.mxu0 %vm224_vm0, %v5749_v39 }
  0x74   : > { %1048 = vmatprep.mubr.f32.mxu1 %v5595_v29  ;;  %1161 = vmatprep.mubr.f32.mxu0 %v5595_v29 }
  0x75   : > { %1222 = vmatprep.subr.mxu1 %v375_v15  ;;  %1333 = vmatprep.subr.mxu0 %v409_v16  ;;  %v489_v15 = vld [vmem:[%s5671_s10 + $0x3f8] sm:$0xff] }
  0x76   : > { %1223 = vmatpush1.msra.mxu1 %v374_v17  ;;  %1334 = vmatpush1.msra.mxu0 %v408_v18 }
  0x77   : > { %4891 = vmatmul.mubr.msk.f32.gmra.mxu1 %vm224_vm0, %v5764_v44  ;;  %4899 = vmatmul.mubr.msk.f32.gmra.mxu0 %vm224_vm0, %v5764_v44 }
  0x78   : > { %1054 = vmatprep.mubr.f32.mxu1 %v5595_v29  ;;  %1167 = vmatprep.mubr.f32.mxu0 %v5595_v29 }
  0x79   : > { %1335 = vmatprep.subr.mxu0 %v377_v19  ;;  %1442 = vmatprep.subr.mxu1 %v475_v20 }
  0x7a   : > { %1336 = vmatpush1.msra.mxu0 %v376_v21 }
  0x7b   : > { %4892 = vmatmul.mubr.msk.f32.gmra.mxu1 %vm224_vm0, %v5779_v49  ;;  %4900 = vmatmul.mubr.msk.f32.gmra.mxu0 %vm224_vm0, %v5779_v49 }
  0x7c   : > { %1060 = vmatprep.mubr.f32.mxu1 %v5595_v29  ;;  %1173 = vmatprep.mubr.f32.mxu0 %v5595_v29 }
  0x7d   : > { %1555 = vmatprep.subr.mxu0 %v477_v22 }
  0x7f   : > { %4893 = vmatmul.mubr.msk.f32.gmra.mxu1 %vm224_vm0, %v5792_v52  ;;  %4901 = vmatmul.mubr.msk.f32.gmra.mxu0 %vm224_vm0, %v5792_v52 }
  0x80   : > { %1066 = vmatprep.mubr.f32.mxu1 %v5595_v29  ;;  %1179 = vmatprep.mubr.f32.mxu0 %v5595_v29 }
  0x83   : > { %4894 = vmatmul.mubr.msk.f32.gmra.mxu1 %vm224_vm0, %v5803_v53  ;;  %4902 = vmatmul.mubr.msk.f32.gmra.mxu0 %vm224_vm0, %v5803_v53 }
  0x84   : > { %1072 = vmatprep.mubr.f32.mxu1 %v5595_v29  ;;  %1185 = vmatprep.mubr.f32.mxu0 %v5595_v29 }
  0x87   : > { %4895 = vmatmul.mubr.msk.f32.gmra.mxu1 %vm224_vm0, %v5814_v54  ;;  %4903 = vmatmul.mubr.msk.f32.gmra.mxu0 %vm224_vm0, %v5814_v54 }
  0x88   : > { %1256 = vmatprep.mubr.f32.mxu1 %v5595_v29  ;;  %1369 = vmatprep.mubr.f32.mxu0 %v5595_v29 }
  0x8b   : > { %4904 = vmatmul.mubr.msk.f32.vlgmr.msra.gmra.mxu1 %vm224_vm0, %v5717_v28  ;;  %4912 = vmatmul.mubr.msk.f32.vlgmr.msra.gmra.mxu0 %vm224_vm0, %v5717_v28 }
  0x8c   : > { %1443 = vmatpush1.msra.mxu1 %v474_v23  ;;  %1262 = vmatprep.mubr.f32.mxu1 %v5595_v29 }
  0x8d   : > { %1375 = vmatprep.mubr.f32.mxu0 %v5595_v29  ;;  %1444 = vmatprep.subr.mxu1 %v443_v24  ;;  %v486_v24 = vld [vmem:[%s5671_s10 + $0x3e0] sm:$0xff] }
  0x8e   : > { %1445 = vmatpush1.msra.mxu1 %v442_v25  ;;  %1556 = vmatpush1.msra.mxu0 %v476_v26  ;;  %v455_v25 = vld [vmem:[%s5671_s10 + $0x2e8] sm:$0xff] }
  0x8f   : > { %4905 = vmatmul.mubr.msk.f32.gmra.mxu1 %vm224_vm0, %v5733_v34  ;;  %4913 = vmatmul.mubr.msk.f32.gmra.mxu0 %vm224_vm0, %v5733_v34 }
  0x90   : > { %1268 = vmatprep.mubr.f32.mxu1 %v5595_v29  ;;  %1381 = vmatprep.mubr.f32.mxu0 %v5595_v29 }
  0x91   : > { %1446 = vmatprep.subr.mxu1 %v411_v27  ;;  %1557 = vmatprep.subr.mxu0 %v445_v30  ;;  %v454_v30 = vld [vmem:[%s5671_s10 + $0x2e0] sm:$0xff] }
  0x92   : > { %1447 = vmatpush1.msra.mxu1 %v410_v31  ;;  %1558 = vmatpush1.msra.mxu0 %v444_v32 }
  0x93   : > { %4906 = vmatmul.mubr.msk.f32.gmra.mxu1 %vm224_vm0, %v5749_v39  ;;  %4914 = vmatmul.mubr.msk.f32.gmra.mxu0 %vm224_vm0, %v5749_v39 }
  0x94   : > { %1274 = vmatprep.mubr.f32.mxu1 %v5595_v29  ;;  %1387 = vmatprep.mubr.f32.mxu0 %v5595_v29 }
  0x95   : > { %1448 = vmatprep.subr.mxu1 %v379_v33  ;;  %1559 = vmatprep.subr.mxu0 %v413_v35 }
  0x96   : > { %1449 = vmatpush1.msra.mxu1 %v378_v36  ;;  %1560 = vmatpush1.msra.mxu0 %v412_v37 }
  0x97   : > { %4907 = vmatmul.mubr.msk.f32.gmra.mxu1 %vm224_vm0, %v5764_v44  ;;  %4915 = vmatmul.mubr.msk.f32.gmra.mxu0 %vm224_vm0, %v5764_v44 }
  0x98   : > { %1280 = vmatprep.mubr.f32.mxu1 %v5595_v29  ;;  %1393 = vmatprep.mubr.f32.mxu0 %v5595_v29 }
  0x99   : > { %1561 = vmatprep.subr.mxu0 %v381_v38  ;;  %1668 = vmatprep.subr.mxu1 %v479_v40  ;;  %v423_v40 = vld [vmem:[%s5671_s10 + $0x1e8] sm:$0xff] }
  0x9a   : > { %1562 = vmatpush1.msra.mxu0 %v380_v41  ;;  %v457_v41 = vld [vmem:[%s5671_s10 + $0x2f8] sm:$0xff] }
  0x9b   : > { %4908 = vmatmul.mubr.msk.f32.gmra.mxu1 %vm224_vm0, %v5779_v49  ;;  %4916 = vmatmul.mubr.msk.f32.gmra.mxu0 %vm224_vm0, %v5779_v49 }
  0x9c   : > { %1286 = vmatprep.mubr.f32.mxu1 %v5595_v29  ;;  %1399 = vmatprep.mubr.f32.mxu0 %v5595_v29 }
  0x9d   : > { %1781 = vmatprep.subr.mxu0 %v481_v42 }
  0x9f   : > { %4909 = vmatmul.mubr.msk.f32.gmra.mxu1 %vm224_vm0, %v5792_v52  ;;  %4917 = vmatmul.mubr.msk.f32.gmra.mxu0 %vm224_vm0, %v5792_v52 }
  0xa0   : > { %1292 = vmatprep.mubr.f32.mxu1 %v5595_v29  ;;  %1405 = vmatprep.mubr.f32.mxu0 %v5595_v29 }
  0xa3   : > { %4910 = vmatmul.mubr.msk.f32.gmra.mxu1 %vm224_vm0, %v5803_v53  ;;  %4918 = vmatmul.mubr.msk.f32.gmra.mxu0 %vm224_vm0, %v5803_v53 }
  0xa4   : > { %1298 = vmatprep.mubr.f32.mxu1 %v5595_v29  ;;  %1411 = vmatprep.mubr.f32.mxu0 %v5595_v29 }
  0xa7   : > { %4911 = vmatmul.mubr.msk.f32.gmra.mxu1 %vm224_vm0, %v5814_v54  ;;  %4919 = vmatmul.mubr.msk.f32.gmra.mxu0 %vm224_vm0, %v5814_v54 }
  0xa8   : > { %1482 = vmatprep.mubr.f32.mxu1 %v5595_v29  ;;  %1595 = vmatprep.mubr.f32.mxu0 %v5595_v29 }
  0xab   : > { %4920 = vmatmul.mubr.msk.f32.vlgmr.msra.gmra.mxu1 %vm224_vm0, %v5717_v28  ;;  %4928 = vmatmul.mubr.msk.f32.vlgmr.msra.gmra.mxu0 %vm224_vm0, %v5717_v28 }
  0xac   : > { %1669 = vmatpush1.msra.mxu1 %v478_v43  ;;  %1488 = vmatprep.mubr.f32.mxu1 %v5595_v29 }
  0xad   : > { %1601 = vmatprep.mubr.f32.mxu0 %v5595_v29  ;;  %1670 = vmatprep.subr.mxu1 %v447_v45  ;;  %v422_v45 = vld [vmem:[%s5671_s10 + $0x1e0] sm:$0xff] }
  0xae   : > { %1671 = vmatpush1.msra.mxu1 %v446_v46  ;;  %1782 = vmatpush1.msra.mxu0 %v480_v47  ;;  %v456_v46 = vld [vmem:[%s5671_s10 + $0x2f0] sm:$0xff] }
  0xaf   : > { %4921 = vmatmul.mubr.msk.f32.gmra.mxu1 %vm224_vm0, %v5733_v34  ;;  %4929 = vmatmul.mubr.msk.f32.gmra.mxu0 %vm224_vm0, %v5733_v34 }
  0xb0   : > { %1494 = vmatprep.mubr.f32.mxu1 %v5595_v29  ;;  %1607 = vmatprep.mubr.f32.mxu0 %v5595_v29 }
  0xb1   : > { %1672 = vmatprep.subr.mxu1 %v415_v48  ;;  %1783 = vmatprep.subr.mxu0 %v449_v50 }
  0xb2   : > { %1673 = vmatpush1.msra.mxu1 %v414_v51  ;;  %1784 = vmatpush1.msra.mxu0 %v448_v55 }
  0xb3   : > { %4922 = vmatmul.mubr.msk.f32.gmra.mxu1 %vm224_vm0, %v5749_v39  ;;  %4930 = vmatmul.mubr.msk.f32.gmra.mxu0 %vm224_vm0, %v5749_v39 }
  0xb4   : > { %1500 = vmatprep.mubr.f32.mxu1 %v5595_v29  ;;  %1613 = vmatprep.mubr.f32.mxu0 %v5595_v29 }
  0xb5   : > { %1674 = vmatprep.subr.mxu1 %v383_v56  ;;  %1785 = vmatprep.subr.mxu0 %v417_v57 }
  0xb6   : > { %1675 = vmatpush1.msra.mxu1 %v382_v58  ;;  %1786 = vmatpush1.msra.mxu0 %v416_v59 }
  0xb7   : > { %4923 = vmatmul.mubr.msk.f32.gmra.mxu1 %vm224_vm0, %v5764_v44  ;;  %4931 = vmatmul.mubr.msk.f32.gmra.mxu0 %vm224_vm0, %v5764_v44 }
  0xb8   : > { %1506 = vmatprep.mubr.f32.mxu1 %v5595_v29  ;;  %1619 = vmatprep.mubr.f32.mxu0 %v5595_v29 }
  0xb9   : > { %1787 = vmatprep.subr.mxu0 %v385_v60  ;;  %1894 = vmatprep.subr.mxu1 %v483_v61 }
  0xba   : > { %1788 = vmatpush1.msra.mxu0 %v384_v62  ;;  %v391_v62 = vld [vmem:[%s5671_s10 + $0xe8] sm:$0xff] }
  0xbb   : > { %4924 = vmatmul.mubr.msk.f32.gmra.mxu1 %vm224_vm0, %v5779_v49  ;;  %4932 = vmatmul.mubr.msk.f32.gmra.mxu0 %vm224_vm0, %v5779_v49 }
  0xbc   : > { %1512 = vmatprep.mubr.f32.mxu1 %v5595_v29  ;;  %1625 = vmatprep.mubr.f32.mxu0 %v5595_v29 }
  0xbd   : > { %2007 = vmatprep.subr.mxu0 %v485_v63  ;;  %v425_v63 = vld [vmem:[%s5671_s10 + $0x1f8] sm:$0xff] }
  0xbf   : > { %4925 = vmatmul.mubr.msk.f32.gmra.mxu1 %vm224_vm0, %v5792_v52  ;;  %4933 = vmatmul.mubr.msk.f32.gmra.mxu0 %vm224_vm0, %v5792_v52 }
  0xc0   : > { %1518 = vmatprep.mubr.f32.mxu1 %v5595_v29  ;;  %1631 = vmatprep.mubr.f32.mxu0 %v5595_v29 }
  0xc3   : > { %4926 = vmatmul.mubr.msk.f32.gmra.mxu1 %vm224_vm0, %v5803_v53  ;;  %4934 = vmatmul.mubr.msk.f32.gmra.mxu0 %vm224_vm0, %v5803_v53 }
  0xc4   : > { %1524 = vmatprep.mubr.f32.mxu1 %v5595_v29  ;;  %1637 = vmatprep.mubr.f32.mxu0 %v5595_v29 }
  0xc7   : > { %4927 = vmatmul.mubr.msk.f32.gmra.mxu1 %vm224_vm0, %v5814_v54  ;;  %4935 = vmatmul.mubr.msk.f32.gmra.mxu0 %vm224_vm0, %v5814_v54 }
  0xc8   : > { %1708 = vmatprep.mubr.f32.mxu1 %v5595_v29  ;;  %1821 = vmatprep.mubr.f32.mxu0 %v5595_v29 }
  0xcb   : > { %4936 = vmatmul.mubr.msk.f32.vlgmr.msra.gmra.mxu1 %vm224_vm0, %v5717_v28  ;;  %4944 = vmatmul.mubr.msk.f32.vlgmr.msra.gmra.mxu0 %vm224_vm0, %v5717_v28 }
  0xcc   : > { %1895 = vmatpush1.msra.mxu1 %v482_v0  ;;  %1714 = vmatprep.mubr.f32.mxu1 %v5595_v29 }
  0xcd   : > { %1827 = vmatprep.mubr.f32.mxu0 %v5595_v29  ;;  %1896 = vmatprep.subr.mxu1 %v451_v1 }
  0xce   : > { %1897 = vmatpush1.msra.mxu1 %v450_v2  ;;  %2008 = vmatpush1.msra.mxu0 %v484_v3 }
  0xcf   : > { %4937 = vmatmul.mubr.msk.f32.gmra.mxu1 %vm224_vm0, %v5733_v34  ;;  %4945 = vmatmul.mubr.msk.f32.gmra.mxu0 %vm224_vm0, %v5733_v34 }
  0xd0   : > { %1720 = vmatprep.mubr.f32.mxu1 %v5595_v29  ;;  %1833 = vmatprep.mubr.f32.mxu0 %v5595_v29 }
  0xd1   : > { %1898 = vmatprep.subr.mxu1 %v419_v4  ;;  %2009 = vmatprep.subr.mxu0 %v453_v5 }
  0xd2   : > { %1899 = vmatpush1.msra.mxu1 %v418_v6  ;;  %2010 = vmatpush1.msra.mxu0 %v452_v7  ;;  %v390_v6 = vld [vmem:[%s5671_s10 + $0xe0] sm:$0xff]  ;;  %v424_v7 = vld [vmem:[%s5671_s10 + $0x1f0] sm:$0xff] }
  0xd3   : > { %4938 = vmatmul.mubr.msk.f32.gmra.mxu1 %vm224_vm0, %v5749_v39  ;;  %4946 = vmatmul.mubr.msk.f32.gmra.mxu0 %vm224_vm0, %v5749_v39 }
  0xd4   : > { %1726 = vmatprep.mubr.f32.mxu1 %v5595_v29  ;;  %1839 = vmatprep.mubr.f32.mxu0 %v5595_v29 }
  0xd5   : > { %1900 = vmatprep.subr.mxu1 %v387_v8  ;;  %2011 = vmatprep.subr.mxu0 %v421_v9 }
  0xd6   : > { %1901 = vmatpush1.msra.mxu1 %v386_v10  ;;  %2012 = vmatpush1.msra.mxu0 %v420_v11 }
  0xd7   : > { %4939 = vmatmul.mubr.msk.f32.gmra.mxu1 %vm224_vm0, %v5764_v44  ;;  %4947 = vmatmul.mubr.msk.f32.gmra.mxu0 %vm224_vm0, %v5764_v44 }
  0xd8   : > { %1732 = vmatprep.mubr.f32.mxu1 %v5595_v29  ;;  %1845 = vmatprep.mubr.f32.mxu0 %v5595_v29 }
  0xd9   : > { %2013 = vmatprep.subr.mxu0 %v389_v12  ;;  %2120 = vmatprep.subr.mxu1 %v487_v13 }
  0xda   : > { %2014 = vmatpush1.msra.mxu0 %v388_v14 }
  0xdb   : > { %4940 = vmatmul.mubr.msk.f32.gmra.mxu1 %vm224_vm0, %v5779_v49  ;;  %4948 = vmatmul.mubr.msk.f32.gmra.mxu0 %vm224_vm0, %v5779_v49 }
  0xdc   : > { %1738 = vmatprep.mubr.f32.mxu1 %v5595_v29  ;;  %1851 = vmatprep.mubr.f32.mxu0 %v5595_v29 }
  0xdd   : > { %2233 = vmatprep.subr.mxu0 %v489_v15 }
  0xdf   : > { %4941 = vmatmul.mubr.msk.f32.gmra.mxu1 %vm224_vm0, %v5792_v52  ;;  %4949 = vmatmul.mubr.msk.f32.gmra.mxu0 %vm224_vm0, %v5792_v52  ;;  %v6128_v16 = vpop.f32.mrf.mxu0  ;;  %v6130_v17 = vpop.f32.mrf.mxu1 }
  0xe0   : > { %8316 = vst [vmem:[#allocation3_spill] sm:$0xff] %v6130_v17  ;;  %1744 = vmatprep.mubr.f32.mxu1 %v5595_v29  ;;  %1857 = vmatprep.mubr.f32.mxu0 %v5595_v29 }
  0xe1   : > { %v6134_v18 = vpop.f32.mrf.mxu0  ;;  %v6136_v19 = vpop.f32.mrf.mxu1 }
  0xe2   : > { %8317 = vst [vmem:[#allocation4_spill] sm:$0xff] %v6136_v19 }
  0xe3   : > { %4942 = vmatmul.mubr.msk.f32.gmra.mxu1 %vm224_vm0, %v5803_v53  ;;  %4950 = vmatmul.mubr.msk.f32.gmra.mxu0 %vm224_vm0, %v5803_v53 }
  0xe4   : > { %1750 = vmatprep.mubr.f32.mxu1 %v5595_v29  ;;  %1863 = vmatprep.mubr.f32.mxu0 %v5595_v29 }
  0xe5   : > { %v6144_v20 = vpop.f32.mrf.mxu0  ;;  %v6146_v21 = vpop.f32.mrf.mxu1 }
  0xe6   : > { %8318 = vst [vmem:[#allocation5_spill] sm:$0xff] %v6144_v20  ;;  %8319 = vst [vmem:[#allocation6_spill] sm:$0xff] %v6146_v21 }
  0xe7   : > { %4943 = vmatmul.mubr.msk.f32.gmra.mxu1 %vm224_vm0, %v5814_v54  ;;  %4951 = vmatmul.mubr.msk.f32.gmra.mxu0 %vm224_vm0, %v5814_v54  ;;  %v6152_v22 = vpop.f32.mrf.mxu0  ;;  %v6154_v23 = vpop.f32.mrf.mxu1  ;;  %v488_v54 = vld [vmem:[%s5671_s10 + $0x3f0] sm:$0xff] }
  0xe8   : > { %8320 = vst [vmem:[#allocation7_spill] sm:$0xff] %v6152_v22  ;;  %8321 = vst [vmem:[#allocation8_spill] sm:$0xff] %v6154_v23  ;;  %1934 = vmatprep.mubr.f32.mxu1 %v5595_v29  ;;  %2047 = vmatprep.mubr.f32.mxu0 %v5595_v29 }
  0xeb   : > { %v580_v26 = vpop.f32.mrf.mxu1  ;;  %v693_v27 = vpop.f32.mrf.mxu0  ;;  %4952 = vmatmul.mubr.msk.f32.vlgmr.msra.gmra.mxu1 %vm224_vm0, %v5717_v28  ;;  %4960 = vmatmul.mubr.msk.f32.vlgmr.msra.gmra.mxu0 %vm224_vm0, %v5717_v28 }
  0xec   : > { %v2322_v31 = vmul.f32 %v580_v26, %v6134_v18  ;;  %v2422_v32 = vmul.f32 %v693_v27, %v6134_v18  ;;  %2121 = vmatpush1.msra.mxu1 %v486_v24  ;;  %1940 = vmatprep.mubr.f32.mxu1 %v5595_v29 }
  0xed   : > { %v582_v33 = vpop.f32.mrf.mxu1  ;;  %v695_v35 = vpop.f32.mrf.mxu0  ;;  %2053 = vmatprep.mubr.f32.mxu0 %v5595_v29  ;;  %2122 = vmatprep.subr.mxu1 %v455_v25 }
  0xee   : > { %v2326_v36 = vrot.slane %v2322_v31, 4  ;;  %v2426_v28 = vrot.slane %v2422_v32, 4  ;;  %v2350_v37 = vmul.f32 %v582_v33, %v6134_v18  ;;  %v2498_v38 = vmul.f32 %v695_v35, %v6134_v18  ;;  %2123 = vmatpush1.msra.mxu1 %v454_v30  ;;  %2234 = vmatpush1.msra.mxu0 %v488_v54  ;;  %v393_v54 = vld [vmem:[%s5671_s10 + $0xf8] sm:$0xff] }
  0xef   : > { %v586_v42 = vpop.f32.mrf.mxu1  ;;  %v699_v43 = vpop.f32.mrf.mxu0  ;;  %4953 = vmatmul.mubr.msk.f32.gmra.mxu1 %vm224_vm0, %v5733_v34  ;;  %4961 = vmatmul.mubr.msk.f32.gmra.mxu0 %vm224_vm0, %v5733_v34 }
  0xf0   : > { %v2327_v47 = vadd.f32 %v2326_v36, %v2322_v31  ;;  %v2427_v48 = vadd.f32 %v2426_v28, %v2422_v32  ;;  %v2354_v50 = vrot.slane %v2350_v37, 4  ;;  %v2502_v51 = vrot.slane %v2498_v38, 4  ;;  %1946 = vmatprep.mubr.f32.mxu1 %v5595_v29  ;;  %2059 = vmatprep.mubr.f32.mxu0 %v5595_v29 }
  0xf1   : > { %v2323_v55 = vmul.f32 %v6128_v16, %v586_v42  ;;  %v2423_v56 = vmul.f32 %v6128_v16, %v699_v43  ;;  %v588_v57 = vpop.f32.mrf.mxu1  ;;  %v701_v58 = vpop.f32.mrf.mxu0  ;;  %2124 = vmatprep.subr.mxu1 %v423_v40  ;;  %2235 = vmatprep.subr.mxu0 %v457_v41 }
  0xf2   : > { %v2328_v34 = vrot.slane %v2327_v47, 2  ;;  %v2428_v59 = vrot.slane %v2427_v48, 2  ;;  %v2355_v60 = vadd.f32 %v2354_v50, %v2350_v37  ;;  %v2503_v61 = vadd.f32 %v2502_v51, %v2498_v38  ;;  %2125 = vmatpush1.msra.mxu1 %v422_v45  ;;  %2236 = vmatpush1.msra.mxu0 %v456_v46  ;;  %v392_v37 = vld [vmem:[%s5671_s10 + $0xf0] sm:$0xff] }
  0xf3   : > { %v2332_v0 = vrot.slane %v2323_v55, 4  ;;  %v2432_v1 = vrot.slane %v2423_v56, 4  ;;  %v2351_v2 = vmul.f32 %v6128_v16, %v588_v57  ;;  %v2499_v3 = vmul.f32 %v6128_v16, %v701_v58  ;;  %v592_v4 = vpop.f32.mrf.mxu1  ;;  %v705_v5 = vpop.f32.mrf.mxu0  ;;  %4954 = vmatmul.mubr.msk.f32.gmra.mxu1 %vm224_vm0, %v5749_v39  ;;  %4962 = vmatmul.mubr.msk.f32.gmra.mxu0 %vm224_vm0, %v5749_v39 }
  0xf4   : > { %v2329_v8 = vadd.f32 %v2328_v34, %v2327_v47  ;;  %v2429_v9 = vadd.f32 %v2428_v59, %v2427_v48  ;;  %v2356_v10 = vrot.slane %v2355_v60, 2  ;;  %v2504_v11 = vrot.slane %v2503_v61, 2  ;;  %1952 = vmatprep.mubr.f32.mxu1 %v5595_v29  ;;  %2065 = vmatprep.mubr.f32.mxu0 %v5595_v29 }
  0xf5   : > { %v2333_v12 = vadd.f32 %v2332_v0, %v2323_v55  ;;  %v2433_v13 = vadd.f32 %v2432_v1, %v2423_v56  ;;  %v2360_v14 = vrot.slane %v2351_v2, 4  ;;  %v2508_v15 = vrot.slane %v2499_v3, 4  ;;  %v594_v24 = vpop.f32.mrf.mxu1  ;;  %v6196_v25 = vpop.f32.mrf.mxu0  ;;  %2126 = vmatprep.subr.mxu1 %v391_v62  ;;  %2237 = vmatprep.subr.mxu0 %v425_v63 }
  0xf6   : > { %v2330_v39 = vrot.slane %v2329_v8, 1  ;;  %v2430_v26 = vrot.slane %v2429_v9, 1  ;;  %v2357_v27 = vadd.f32 %v2356_v10, %v2355_v60  ;;  %v2505_v30 = vadd.f32 %v2504_v11, %v2503_v61  ;;  %2127 = vmatpush1.msra.mxu1 %v390_v6  ;;  %2238 = vmatpush1.msra.mxu0 %v424_v7 }
  0xf7   : > { %v2334_v31 = vrot.slane %v2333_v12, 2  ;;  %v2434_v32 = vrot.slane %v2433_v13, 2  ;;  %v2361_v33 = vadd.f32 %v2360_v14, %v2351_v2  ;;  %v2509_v35 = vadd.f32 %v2508_v15, %v2499_v3  ;;  %v6199_v36 = vpop.f32.mrf.mxu1  ;;  %v6201_v28 = vpop.f32.mrf.mxu0  ;;  %4955 = vmatmul.mubr.msk.f32.gmra.mxu1 %vm224_vm0, %v5764_v44  ;;  %4963 = vmatmul.mubr.msk.f32.gmra.mxu0 %vm224_vm0, %v5764_v44 }
  0xf8   : > { %v6208_v38 = vadd.f32 %v2330_v39, %v2329_v8  ;;  %v6210_v40 = vadd.f32 %v2430_v26, %v2429_v9  ;;  %v2358_v41 = vrot.slane %v2357_v27, 1  ;;  %v2506_v42 = vrot.slane %v2505_v30, 1  ;;  %1958 = vmatprep.mubr.f32.mxu1 %v5595_v29  ;;  %2071 = vmatprep.mubr.f32.mxu0 %v5595_v29 }
  0xf9   : > { %v2335_v43 = vadd.f32 %v2334_v31, %v2333_v12  ;;  %v2435_v45 = vadd.f32 %v2434_v32, %v2433_v13  ;;  %v2362_v46 = vrot.slane %v2361_v33, 2  ;;  %v2510_v47 = vrot.slane %v2509_v35, 2  ;;  %v6214_v48 = vpop.f32.mrf.mxu1  ;;  %v6216_v50 = vpop.f32.mrf.mxu0  ;;  %2239 = vmatprep.subr.mxu0 %v393_v54 }
  0xfa   : > { %v2359_v44 = vadd.f32 %v2358_v41, %v2357_v27  ;;  %v2507_v51 = vadd.f32 %v2506_v42, %v2505_v30  ;;  %v2324_v55 = vmul.f32 %v592_v4, %v6152_v22  ;;  %v2424_v56 = vmul.f32 %v705_v5, %v6152_v22  ;;  %2240 = vmatpush1.msra.mxu0 %v392_v37 }
  0xfb   : > { %v2336_v57 = vrot.slane %v2335_v43, 1  ;;  %v2436_v58 = vrot.slane %v2435_v45, 1  ;;  %v2363_v34 = vadd.f32 %v2362_v46, %v2361_v33  ;;  %v2511_v59 = vadd.f32 %v2510_v47, %v2509_v35  ;;  %v6220_v60 = vpop.f32.mrf.mxu1  ;;  %v6222_v61 = vpop.f32.mrf.mxu0  ;;  %4956 = vmatmul.mubr.msk.f32.gmra.mxu1 %vm224_vm0, %v5779_v49  ;;  %4964 = vmatmul.mubr.msk.f32.gmra.mxu0 %vm224_vm0, %v5779_v49 }
  0xfc   : > { %v6229_v62 = vmax.f32 %v6208_v38, %v2359_v44  ;;  %v2338_v63 = vrot.slane %v2324_v55, 4  ;;  %v2438_v0 = vrot.slane %v2424_v56, 4  ;;  %v2352_v1 = vmul.f32 %v594_v24, %v6152_v22  ;;  %1964 = vmatprep.mubr.f32.mxu1 %v5595_v29  ;;  %2077 = vmatprep.mubr.f32.mxu0 %v5595_v29 }
  0xfd   : > { %v6234_v2 = vadd.f32 %v2336_v57, %v2335_v43  ;;  %v6236_v3 = vadd.f32 %v2436_v58, %v2435_v45  ;;  %v2364_v4 = vrot.slane %v2363_v34, 1  ;;  %v2512_v5 = vrot.slane %v2511_v59, 1  ;;  %v6238_v6 = vpop.f32.mrf.mxu1  ;;  %v6240_v49 = vpop.f32.mrf.mxu0 }
  0xfe   : > { %v2394_v7 = vsub.f32 %v2359_v44, %v6229_v62  ;;  %v6245_v8 = vmax.f32 %v6229_v62, %v6210_v40  ;;  %v2339_v9 = vadd.f32 %v2338_v63, %v2324_v55  ;;  %v2439_v10 = vadd.f32 %v2438_v0, %v2424_v56 }
  0xff   : > { %v2365_v11 = vadd.f32 %v2364_v4, %v2363_v34  ;;  %v2513_v12 = vadd.f32 %v2512_v5, %v2511_v59  ;;  %v2366_v13 = vrot.slane %v2352_v1, 4  ;;  %v2500_v14 = vmul.f32 %v6196_v25, %v6152_v22  ;;  %v6249_v15 = vpop.f32.mrf.mxu1  ;;  %v6251_v24 = vpop.f32.mrf.mxu0  ;;  %4957 = vmatmul.mubr.msk.f32.gmra.mxu1 %vm224_vm0, %v5792_v52  ;;  %4965 = vmatmul.mubr.msk.f32.gmra.mxu0 %vm224_vm0, %v5792_v52 }
 0x100   : > { %v2398_v39 = vmul.f32 1.442695, %v2394_v7  ;;  %v2454_v26 = vsub.f32 %v6229_v62, %v6245_v8  ;;  %v6260_v27 = vmax.f32 %v6245_v8, %v2507_v51  ;;  %v2340_v30 = vrot.slane %v2339_v9, 2  ;;  %1970 = vmatprep.mubr.f32.mxu1 %v5595_v29  ;;  %2083 = vmatprep.mubr.f32.mxu0 %v5595_v29  ;;  %v6300_v7 = vld [vmem:[%s8299_s3 + $0x38] sm:$0xff] }
 0x101   : > { %v6265_v25 = vmax.f32 %v6234_v2, %v2365_v11  ;;  %v2440_v54 = vrot.slane %v2439_v10, 2  ;;  %v2367_v31 = vadd.f32 %v2366_v13, %v2352_v1  ;;  %v2514_v32 = vrot.slane %v2500_v14, 4  ;;  %v6270_v37 = vpop.f32.mrf.mxu1  ;;  %v6277_v46 = vpop.f32.mrf.mxu0 }
 0x102   : > { %5055 = vpow2.f32 %v2398_v39  ;;  %v2458_v52 = vmul.f32 1.442695, %v2454_v26  ;;  %v2530_v33 = vsub.f32 %v6245_v8, %v6260_v27  ;;  %v2542_v35 = vsub.f32 %v2507_v51, %v6260_v27 }
 0x103   : > { %v2395_v41 = vsub.f32 %v2365_v11, %v6265_v25  ;;  %v6275_v42 = vmax.f32 %v6265_v25, %v6236_v3  ;;  %v2341_v43 = vadd.f32 %v2340_v30, %v2339_v9  ;;  %v2441_v45 = vadd.f32 %v2440_v54, %v2439_v10  ;;  %4958 = vmatmul.mubr.msk.f32.gmra.mxu1 %vm224_vm0, %v5803_v53  ;;  %v6290_v0 = vpop.f32.mrf.mxu1  ;;  %v6295_v5 = vpop.f32.mrf.mxu0 }
 0x104   : > { %5057 = vpow2.f32 %v2458_v52  ;;  %v2534_v47 = vmul.f32 1.442695, %v2530_v33  ;;  %v2546_v44 = vmul.f32 1.442695, %v2542_v35  ;;  %v2368_v55 = vrot.slane %v2367_v31, 2  ;;  %4966 = vmatmul.mubr.msk.f32.gmra.mxu0 %vm224_vm0, %v5803_v53  ;;  %1976 = vmatprep.mubr.f32.mxu1 %v5595_v29 }
 0x105   : > { %v2400_v51 = vmul.f32 1.442695, %v2395_v41  ;;  %v2455_v56 = vsub.f32 %v6265_v25, %v6275_v42  ;;  %v6287_v57 = vmax.f32 %v6275_v42, %v2513_v12  ;;  %v2342_v58 = vrot.slane %v2341_v43, 1  ;;  %2089 = vmatprep.mubr.f32.mxu0 %v5595_v29  ;;  %v6324_v35 = vpop.f32.mrf.mxu0 }
 0x106   : > { %5059 = vpow2.f32 %v2534_v47  ;;  %v2442_v34 = vrot.slane %v2441_v45, 1  ;;  %v2369_v59 = vadd.f32 %v2368_v55, %v2367_v31  ;;  %v2515_v63 = vadd.f32 %v2514_v32, %v2500_v14  ;;  %v6318_v31 = vpop.f32.mrf.mxu1 }
 0x107   : > { %5061 = vpow2.f32 %v2546_v44  ;;  %v2460_v53 = vmul.f32 1.442695, %v2455_v56  ;;  %v2531_v1 = vsub.f32 %v6275_v42, %v6287_v57  ;;  %v2543_v4 = vsub.f32 %v2513_v12, %v6287_v57  ;;  %4959 = vmatmul.mubr.msk.f32.gmra.mxu1 %vm224_vm0, %v6300_v7 }
 0x108   : > { %5063 = vpow2.f32 %v2400_v51  ;;  %v6304_v9 = vadd.f32 %v2342_v58, %v2341_v43  ;;  %v6306_v10 = vadd.f32 %v2442_v34, %v2441_v45  ;;  %v2370_v11 = vrot.slane %v2369_v59, 1  ;;  %4967 = vmatmul.mubr.msk.f32.gmra.mxu0 %vm224_vm0, %v6300_v7  ;;  %2160 = vmatprep.mubr.f32.mxu1 %v5595_v29  ;;  %v6341_v51 = vpop.f32.mrf.mxu1 }
 0x109   : > { %5065 = vpow2.f32 %v2460_v53  ;;  %v2536_v12 = vmul.f32 1.442695, %v2531_v1  ;;  %v2548_v13 = vmul.f32 1.442695, %v2543_v4  ;;  %v2516_v14 = vrot.slane %v2515_v63, 2  ;;  %2273 = vmatprep.mubr.f32.mxu0 %v5595_v29  ;;  %v5561_v53 = vld [vmem:[%s8299_s3 + $0x8] sm:$0xff] }
 0x10a   : > { %v2371_v39 = vadd.f32 %v2370_v11, %v2369_v59  ;;  %v2325_v26 = vmul.f32 %v6144_v20, %v6199_v36  ;;  %v2425_v30 = vmul.f32 %v6144_v20, %v6201_v28  ;;  %v2353_v54 = vmul.f32 %v6144_v20, %v6214_v48  ;;  %v5560_v36 = vld [vmem:[%s8299_s3] sm:$0xff] }
 0x10b   : > { %5067 = vpow2.f32 %v2536_v12  ;;  %v2517_v32 = vadd.f32 %v2516_v14, %v2515_v63  ;;  %v2501_v52 = vmul.f32 %v6144_v20, %v6216_v50  ;;  %v2382_v33 = vsub.f32 %v6208_v38, %v6229_v62  ;;  %4968 = vmatmul.mubr.msk.f32.vlgmr.msra.gmra.mxu1 %vm224_vm0, %v5560_v36  ;;  %v6345_v63 = vpop.f32.mrf.mxu0 }
 0x10c   : > { %5069 = vpow2.f32 %v2548_v13  ;;  %v6331_v28 = vmax.f32 %v6304_v9, %v2371_v39  ;;  %v2344_v48 = vrot.slane %v2325_v26, 4  ;;  %v2444_v41 = vrot.slane %v2425_v30, 4  ;;  %4976 = vmatmul.mubr.msk.f32.vlgmr.msra.gmra.mxu0 %vm224_vm0, %v5560_v36  ;;  %2166 = vmatprep.mubr.f32.mxu1 %v5595_v29 }
 0x10d   : > { %v2518_v50 = vrot.slane %v2517_v32, 1  ;;  %v2372_v38 = vrot.slane %v2353_v54, 4  ;;  %v2520_v62 = vrot.slane %v2501_v52, 4  ;;  %v2386_v43 = vmul.f32 1.442695, %v2382_v33  ;;  %2279 = vmatprep.mubr.f32.mxu0 %v5595_v29  ;;  %v6363_v33 = vpop.f32.mrf.mxu1 }
 0x10e   : > { %v2396_v45 = vsub.f32 %v2371_v39, %v6331_v28  ;;  %v6339_v47 = vmax.f32 %v6331_v28, %v6306_v10  ;;  %v2345_v44 = vadd.f32 %v2344_v48, %v2325_v26  ;;  %v2445_v55 = vadd.f32 %v2444_v41, %v2425_v30 }
 0x10f   : > { %v6343_v56 = vpop.eup %5055  ;;  %v2519_v58 = vadd.f32 %v2518_v50, %v2517_v32  ;;  %v2373_v34 = vadd.f32 %v2372_v38, %v2353_v54  ;;  %v2521_v59 = vadd.f32 %v2520_v62, %v2501_v52  ;;  %5071 = vpow2.f32 %v2386_v43  ;;  %4969 = vmatmul.mubr.msk.f32.gmra.mxu1 %vm224_vm0, %v5561_v53  ;;  %v6370_v62 = vpop.f32.mrf.mxu0 }
 0x110   : > { %v2402_v1 = vmul.f32 1.442695, %v2396_v45  ;;  %v2456_v4 = vsub.f32 %v6331_v28, %v6339_v47  ;;  %v2346_v11 = vrot.slane %v2345_v44, 2  ;;  %v2446_v12 = vrot.slane %v2445_v55, 2  ;;  %4977 = vmatmul.mubr.msk.f32.gmra.mxu0 %vm224_vm0, %v5561_v53  ;;  %2172 = vmatprep.mubr.f32.mxu1 %v5595_v29 }
 0x111   : > { %v6355_v13 = vpop.eup %5057  ;;  %v6358_v14 = vmax.f32 %v6339_v47, %v2519_v58  ;;  %v2374_v39 = vrot.slane %v2373_v34, 2  ;;  %v2522_v26 = vrot.slane %v2521_v59, 2  ;;  %v2466_v30 = vsub.f32 %v6210_v40, %v6245_v8  ;;  %2285 = vmatprep.mubr.f32.mxu0 %v5595_v29  ;;  %v5562_v40 = vld [vmem:[%s8299_s3 + $0x10] sm:$0xff] }
 0x112   : > { %5073 = vpow2.f32 %v2402_v1  ;;  %v2462_v54 = vmul.f32 1.442695, %v2456_v4  ;;  %v2347_v32 = vadd.f32 %v2346_v11, %v2345_v44  ;;  %v2447_v52 = vadd.f32 %v2446_v12, %v2445_v55 }
 0x113   : > { %v6365_v36 = vpop.eup %5059  ;;  %v2532_v48 = vsub.f32 %v6339_v47, %v6358_v14  ;;  %v2544_v41 = vsub.f32 %v2519_v58, %v6358_v14  ;;  %v2375_v50 = vadd.f32 %v2374_v39, %v2373_v34  ;;  %v2523_v38 = vadd.f32 %v2522_v26, %v2521_v59  ;;  %4970 = vmatmul.mubr.msk.f32.gmra.mxu1 %vm224_vm0, %v5562_v40  ;;  %v806_v39 = vpop.f32.mrf.mxu1 }
 0x114   : > { %v6376_v8 = vpop.eup %5061  ;;  %5075 = vpow2.f32 %v2462_v54  ;;  %v2348_v43 = vrot.slane %v2347_v32, 1  ;;  %v2448_v45 = vrot.slane %v2447_v52, 1  ;;  %v2470_v44 = vmul.f32 1.442695, %v2466_v30  ;;  %4978 = vmatmul.mubr.msk.f32.gmra.mxu0 %vm224_vm0, %v5562_v40  ;;  %2178 = vmatprep.mubr.f32.mxu1 %v5595_v29 }
 0x115   : > { %v6380_v55 = vpop.eup %5063  ;;  %v2538_v58 = vmul.f32 1.442695, %v2532_v48  ;;  %v2550_v34 = vmul.f32 1.442695, %v2544_v41  ;;  %v2376_v59 = vrot.slane %v2375_v50, 1  ;;  %v2524_v53 = vrot.slane %v2523_v38, 1  ;;  %2291 = vmatprep.mubr.f32.mxu0 %v5595_v29  ;;  %v919_v48 = vpop.f32.mrf.mxu0 }
 0x116   : > { %v6383_v1 = vpop.eup %5065  ;;  %v2349_v4 = vadd.f32 %v2348_v43, %v2347_v32  ;;  %v6385_v11 = vadd.f32 %v2448_v45, %v2447_v52  ;;  %5077 = vpow2.f32 %v2470_v44  ;;  %v2414_v12 = vmul.f32 %v6343_v56, %v6238_v6  ;;  %v5563_v32 = vld [vmem:[%s8299_s3 + $0x18] sm:$0xff] }
 0x117   : > { %5079 = vpow2.f32 %v2538_v58  ;;  %v2377_v26 = vadd.f32 %v2376_v59, %v2375_v50  ;;  %v6389_v30 = vadd.f32 %v2524_v53, %v2523_v38  ;;  %v6393_v54 = vmul.f32 %v6376_v8, %v6240_v49  ;;  %4971 = vmatmul.mubr.msk.f32.gmra.mxu1 %vm224_vm0, %v5563_v32 }
 0x118   : > { %v6399_v52 = vpop.eup %5067  ;;  %5081 = vpow2.f32 %v2550_v34  ;;  %v2383_v6 = vsub.f32 %v6234_v2, %v6265_v25  ;;  %v2467_v41 = vsub.f32 %v6236_v3, %v6275_v42  ;;  %v6407_v49 = vmul.f32 %v6380_v55, %v6270_v37  ;;  %4979 = vmatmul.mubr.msk.f32.gmra.mxu0 %vm224_vm0, %v5563_v32  ;;  %2184 = vmatprep.mubr.f32.mxu1 %v5595_v29 }
 0x119   : > { %v6411_v50 = vpop.eup %5069  ;;  %v2381_v38 = vmax.f32 %v2349_v4, %v2377_v26  ;;  %v2384_v40 = vsub.f32 %v6304_v9, %v6331_v28  ;;  %v2468_v2 = vsub.f32 %v6306_v10, %v6339_v47  ;;  %v2574_v25 = vmul.f32 %v806_v39, %v6134_v18  ;;  %2297 = vmatprep.mubr.f32.mxu0 %v5595_v29  ;;  %v5564_v10 = vld [vmem:[%s8299_s3 + $0x20] sm:$0xff] }
 0x11a   : > { %v2388_v3 = vmul.f32 1.442695, %v2383_v6  ;;  %v2472_v37 = vmul.f32 1.442695, %v2467_v41  ;;  %v6421_v42 = vmul.f32 %v6411_v50, %v6277_v46  ;;  %v2726_v43 = vmul.f32 %v919_v48, %v6134_v18  ;;  %v808_v46 = vpop.f32.mrf.mxu1 }
 0x11b   : > { %v2397_v45 = vsub.f32 %v2377_v26, %v2381_v38  ;;  %v2453_v44 = vmax.f32 %v2381_v38, %v6385_v11  ;;  %v2390_v58 = vmul.f32 1.442695, %v2384_v40  ;;  %v2474_v9 = vmul.f32 1.442695, %v2468_v2  ;;  %4972 = vmatmul.mubr.msk.f32.gmra.mxu1 %vm224_vm0, %v5564_v10 }
 0x11c   : > { %v5072_v28 = vpop.eup %5071  ;;  %5083 = vpow2.f32 %v2388_v3  ;;  %v2385_v47 = vsub.f32 %v2349_v4, %v2381_v38  ;;  %v2578_v34 = vrot.slane %v2574_v25, 4  ;;  %v2730_v59 = vrot.slane %v2726_v43, 4  ;;  %2190 = vmatprep.mubr.f32.mxu1 %v5595_v29  ;;  %4980 = vmatmul.mubr.msk.f32.gmra.mxu0 %vm224_vm0, %v5564_v10 }
 0x11d   : > { %v2404_v53 = vmul.f32 1.442695, %v2397_v45  ;;  %v2457_v39 = vsub.f32 %v2381_v38, %v2453_v44  ;;  %v6432_v26 = vmax.f32 %v2453_v44, %v6389_v30  ;;  %v2406_v48 = vadd.f32 %v5072_v28, %v6343_v56  ;;  %2303 = vmatprep.mubr.f32.mxu0 %v5595_v29  ;;  %v5565_v56 = vld [vmem:[%s8299_s3 + $0x28] sm:$0xff]  ;;  %v812_v45 = vpop.f32.mrf.mxu1 }
 0x11e   : > { %v2410_v32 = vmul.f32 %v5072_v28, %v6220_v60  ;;  %5085 = vpow2.f32 %v2472_v37  ;;  %v2392_v4 = vmul.f32 1.442695, %v2385_v47  ;;  %v2469_v6 = vsub.f32 %v6385_v11, %v2453_v44  ;;  %v921_v37 = vpop.f32.mrf.mxu0 }
 0x11f   : > { %v6438_v41 = vpop.eup %5073  ;;  %5087 = vpow2.f32 %v2404_v53  ;;  %v2464_v40 = vmul.f32 1.442695, %v2457_v39  ;;  %v2533_v2 = vsub.f32 %v2453_v44, %v6432_v26  ;;  %v2545_v38 = vsub.f32 %v6389_v30, %v6432_v26  ;;  %4973 = vmatmul.mubr.msk.f32.gmra.mxu1 %vm224_vm0, %v5565_v56 }
 0x120   : > { %v2478_v60 = vmul.f32 %v6355_v13, %v2406_v48  ;;  %v2418_v3 = vadd.f32 %v2414_v12, %v2410_v32  ;;  %5089 = vpow2.f32 %v2390_v58  ;;  %v6450_v11 = vmul.f32 %v6438_v41, %v6318_v31  ;;  %2196 = vmatprep.mubr.f32.mxu1 %v5595_v29  ;;  %4981 = vmatmul.mubr.msk.f32.gmra.mxu0 %vm224_vm0, %v5565_v56  ;;  %v5566_v32 = vld [vmem:[%s8299_s3 + $0x30] sm:$0xff] }
 0x121   : > { %v6454_v30 = vpop.eup %5075  ;;  %5091 = vpow2.f32 %v2464_v40  ;;  %v2540_v44 = vmul.f32 1.442695, %v2533_v2  ;;  %v2552_v10 = vmul.f32 1.442695, %v2545_v38  ;;  %v2476_v28 = vmul.f32 1.442695, %v2469_v6  ;;  %2309 = vmatprep.mubr.f32.mxu0 %v5595_v29  ;;  %v925_v40 = vpop.f32.mrf.mxu0 }
 0x122   : > { %v2486_v12 = vmul.f32 %v6355_v13, %v2418_v3  ;;  %5093 = vpow2.f32 %v2474_v9  ;;  %v2579_v58 = vadd.f32 %v2578_v34, %v2574_v25  ;;  %v2731_v31 = vadd.f32 %v2730_v59, %v2726_v43 }
 0x123   : > { %v5078_v47 = vpop.eup %5077  ;;  %5095 = vpow2.f32 %v2540_v44  ;;  %v2650_v53 = vmul.f32 %v808_v46, %v6134_v18  ;;  %v2802_v39 = vmul.f32 %v921_v37, %v6134_v18  ;;  %v2575_v48 = vmul.f32 %v6128_v16, %v812_v45  ;;  %4974 = vmatmul.mubr.msk.f32.gmra.mxu1 %vm224_vm0, %v5566_v32 }
 0x124   : > { %v6465_v6 = vpop.eup %5079  ;;  %5097 = vpow2.f32 %v2552_v10  ;;  %v2482_v13 = vadd.f32 %v5078_v47, %v2478_v60  ;;  %v2490_v25 = vmul.f32 %v5078_v47, %v6222_v61  ;;  %v2580_v43 = vrot.slane %v2579_v58, 2  ;;  %2202 = vmatprep.mubr.f32.mxu1 %v5595_v29  ;;  %4982 = vmatmul.mubr.msk.f32.gmra.mxu0 %vm224_vm0, %v5566_v32 }
 0x125   : > { %v6470_v9 = vpop.eup %5081  ;;  %5099 = vpow2.f32 %v2392_v4  ;;  %v2732_v34 = vrot.slane %v2731_v31, 2  ;;  %v2654_v59 = vrot.slane %v2650_v53, 4  ;;  %v2806_v46 = vrot.slane %v2802_v39, 4  ;;  %2315 = vmatprep.mubr.f32.mxu0 %v5595_v29 }
 0x126   : > { %v2494_v2 = vadd.f32 %v2490_v25, %v2486_v12  ;;  %v6475_v38 = vmul.f32 %v6470_v9, %v6324_v35  ;;  %5101 = vpow2.f32 %v2476_v28  ;;  %v2554_v61 = vmul.f32 %v6365_v36, %v2482_v13 }
 0x127   : > { %v2581_v56 = vadd.f32 %v2580_v43, %v2579_v58  ;;  %v2733_v60 = vadd.f32 %v2732_v34, %v2731_v31  ;;  %v2655_v3 = vadd.f32 %v2654_v59, %v2650_v53  ;;  %v2807_v37 = vadd.f32 %v2806_v46, %v2802_v39  ;;  %4975 = vmatmul.mubr.msk.f32.gmra.mxu1 %vm224_vm0, %v6300_v7 }
 0x128   : > { %v2562_v4 = vmul.f32 %v6365_v36, %v2494_v2  ;;  %v6482_v45 = vadd.f32 %v6376_v8, %v2554_v61  ;;  %v2584_v29 = vrot.slane %v2575_v48, 4  ;;  %v6485_v44 = vmul.f32 %v6128_v16, %v925_v40  ;;  %4983 = vmatmul.mubr.msk.f32.gmra.mxu0 %vm224_vm0, %v6300_v7 }
 0x129   : > { %v5084_v35 = vpop.eup %5083  ;;  %v2582_v10 = vrot.slane %v2581_v56, 1  ;;  %v2734_v28 = vrot.slane %v2733_v60, 1  ;;  %v2656_v12 = vrot.slane %v2655_v3, 2  ;;  %v2808_v58 = vrot.slane %v2807_v37, 2 }
 0x12a   : > { %v6490_v31 = vadd.f32 %v6393_v54, %v2562_v4  ;;  %v2407_v36 = vadd.f32 %v5084_v35, %v6380_v55  ;;  %v2411_v8 = vmul.f32 %v5084_v35, %v6249_v15  ;;  %v2585_v47 = vadd.f32 %v2584_v29, %v2575_v48 }
 0x12b   : > { %v5086_v53 = vpop.eup %5085  ;;  %v2583_v39 = vadd.f32 %v2582_v10, %v2581_v56  ;;  %v6494_v32 = vadd.f32 %v2734_v28, %v2733_v60  ;;  %v2657_v13 = vadd.f32 %v2656_v12, %v2655_v3  ;;  %v2809_v25 = vadd.f32 %v2808_v58, %v2807_v37 }
 0x12c   : > { %v5088_v7 = vpop.eup %5087  ;;  %v2479_v43 = vmul.f32 %v6383_v1, %v2407_v36  ;;  %v2491_v34 = vmul.f32 %v5086_v53, %v6251_v24  ;;  %v2419_v59 = vadd.f32 %v6407_v49, %v2411_v8  ;;  %v2586_v54 = vrot.slane %v2585_v47, 2 }
 0x12d   : > { %v5090_v46 = vpop.eup %5089  ;;  %v2417_v55 = vmul.f32 %v5088_v7, %v6363_v33  ;;  %v2602_v15 = vmax.f32 %v6260_v27, %v2583_v39  ;;  %v2658_v48 = vrot.slane %v2657_v13, 1  ;;  %v2810_v40 = vrot.slane %v2809_v25, 1 }
 0x12e   : > { %v5092_v2 = vpop.eup %5091  ;;  %v2483_v61 = vadd.f32 %v5086_v53, %v2479_v43  ;;  %v2487_v56 = vmul.f32 %v6383_v1, %v2419_v59  ;;  %v2408_v60 = vadd.f32 %v5090_v46, %v6438_v41  ;;  %v2412_v3 = vmul.f32 %v5090_v46, %v6290_v0 }
 0x12f   : > { %v5094_v37 = vpop.eup %5093  ;;  %v2606_v24 = vsub.f32 %v6260_v27, %v2602_v15  ;;  %v2618_v49 = vsub.f32 %v2583_v39, %v2602_v15  ;;  %v2659_v4 = vadd.f32 %v2658_v48, %v2657_v13  ;;  %v2811_v29 = vadd.f32 %v2810_v40, %v2809_v25 }
 0x130   : > { %v6505_v35 = vpop.eup %5095  ;;  %v2495_v33 = vadd.f32 %v2491_v34, %v2487_v56  ;;  %v2480_v10 = vmul.f32 %v6454_v30, %v2408_v60  ;;  %v2492_v28 = vmul.f32 %v5094_v37, %v6295_v5  ;;  %v2420_v12 = vadd.f32 %v6450_v11, %v2412_v3  ;;  %v927_v60 = vpop.f32.mrf.mxu0 }
 0x131   : > { %v6510_v1 = vpop.eup %5097  ;;  %v2610_v41 = vmul.f32 1.442695, %v2606_v24  ;;  %v2622_v58 = vmul.f32 1.442695, %v2618_v49  ;;  %v2678_v0 = vmax.f32 %v2602_v15, %v2659_v4  ;;  %v2555_v36 = vmul.f32 %v6399_v52, %v2483_v61 }
 0x132   : > { %v5100_v27 = vpop.eup %5099  ;;  %v2563_v8 = vmul.f32 %v6399_v52, %v2495_v33  ;;  %v2484_v53 = vadd.f32 %v5094_v37, %v2480_v10  ;;  %v2488_v39 = vmul.f32 %v6454_v30, %v2420_v12  ;;  %v2569_v13 = vmul.f32 %v6510_v1, %v6370_v62  ;;  %v814_v52 = vpop.f32.mrf.mxu1 }
 0x133   : > { %v5102_v25 = vpop.eup %5101  ;;  %v2409_v5 = vadd.f32 %v5100_v27, %v5088_v7  ;;  %v2413_v11 = vmul.f32 %v5100_v27, %v6341_v51  ;;  %5103 = vpow2.f32 %v2610_v41  ;;  %v2682_v43 = vsub.f32 %v2602_v15, %v2678_v0 }
 0x134   : > { %v6519_v34 = vadd.f32 %v6421_v42, %v2563_v8  ;;  %v2496_v59 = vadd.f32 %v2492_v28, %v2488_v39  ;;  %v2493_v46 = vmul.f32 %v5102_v25, %v6345_v63  ;;  %5105 = vpow2.f32 %v2622_v58  ;;  %v818_v49 = vpop.f32.mrf.mxu1  ;;  %v931_v58 = vpop.f32.mrf.mxu0 }
 0x135   : > { %v2481_v48 = vmul.f32 %v5092_v2, %v2409_v5  ;;  %v2421_v40 = vadd.f32 %v2417_v55, %v2413_v11  ;;  %v2686_v30 = vmul.f32 1.442695, %v2682_v43  ;;  %v2694_v61 = vsub.f32 %v2659_v4, %v2678_v0 }
 0x136   : > { %v2564_v62 = vmul.f32 %v6465_v6, %v2496_v59  ;;  %v6524_v7 = vmax.f32 %v2678_v0, %v6494_v32  ;;  %v6527_v51 = vadd.f32 %v6411_v50, %v2555_v36  ;;  %v2587_v15 = vadd.f32 %v2586_v54, %v2585_v47  ;;  %v820_v8 = vpop.f32.mrf.mxu1 }
 0x137   : > { %v6529_v42 = vadd.f32 %v5102_v25, %v2481_v48  ;;  %v2489_v56 = vmul.f32 %v5092_v2, %v2421_v40  ;;  %5107 = vpow2.f32 %v2686_v30  ;;  %v2698_v63 = vmul.f32 1.442695, %v2694_v61  ;;  %v933_v48 = vpop.f32.mrf.mxu0 }
 0x138   : > { %v6532_v3 = vadd.f32 %v6475_v38, %v2564_v62  ;;  %v2758_v55 = vsub.f32 %v2678_v0, %v6524_v7  ;;  %v6536_v37 = vmax.f32 %v6524_v7, %v2811_v29  ;;  %v2588_v24 = vrot.slane %v2587_v15, 1 }
 0x139   : > { %v2497_v4 = vadd.f32 %v2493_v46, %v2489_v56  ;;  %5109 = vpow2.f32 %v2698_v63  ;;  %v2736_v50 = vrot.slane %v6485_v44, 4  ;;  %v2651_v47 = vmul.f32 %v6128_v16, %v814_v52 }
 0x13a   : > { %v2762_v54 = vmul.f32 1.442695, %v2758_v55  ;;  %v2834_v2 = vsub.f32 %v6524_v7, %v6536_v37  ;;  %v2846_v38 = vsub.f32 %v2811_v29, %v6536_v37  ;;  %v2589_v33 = vadd.f32 %v2588_v24, %v2587_v15  ;;  %v6561_v15 = vpop.f32.mrf.mxu1 }
 0x13b   : > { %v2565_v10 = vmul.f32 %v6505_v35, %v2497_v4  ;;  %v2737_v28 = vadd.f32 %v2736_v50, %v6485_v44  ;;  %v2660_v12 = vrot.slane %v2651_v47, 4  ;;  %v2803_v41 = vmul.f32 %v6128_v16, %v927_v60  ;;  %v6572_v50 = vpop.f32.mrf.mxu0 }
 0x13c   : > { %5111 = vpow2.f32 %v2762_v54  ;;  %v2838_v0 = vmul.f32 1.442695, %v2834_v2  ;;  %v2850_v36 = vmul.f32 1.442695, %v2846_v38  ;;  %v6547_v27 = vmax.f32 %v6287_v57, %v2589_v33 }
 0x13d   : > { %v6549_v39 = vadd.f32 %v2569_v13, %v2565_v10  ;;  %v2738_v25 = vrot.slane %v2737_v28, 2  ;;  %v2661_v29 = vadd.f32 %v2660_v12, %v2651_v47  ;;  %v2812_v5 = vrot.slane %v2803_v41, 4 }
 0x13e   : > { %5113 = vpow2.f32 %v2838_v0  ;;  %v2607_v44 = vsub.f32 %v6287_v57, %v6547_v27  ;;  %v2619_v11 = vsub.f32 %v2589_v33, %v6547_v27  ;;  %v2556_v43 = vmul.f32 %v6465_v6, %v2484_v53  ;;  %v6576_v33 = vpop.f32.mrf.mxu1 }
 0x13f   : > { %5115 = vpow2.f32 %v2850_v36  ;;  %v2739_v59 = vadd.f32 %v2738_v25, %v2737_v28  ;;  %v2662_v46 = vrot.slane %v2661_v29, 2  ;;  %v2813_v52 = vadd.f32 %v2812_v5, %v2803_v41 }
 0x140   : > { %v6555_v40 = vpop.eup %5103  ;;  %v2612_v13 = vmul.f32 1.442695, %v2607_v44  ;;  %v2624_v30 = vmul.f32 1.442695, %v2619_v11  ;;  %v6558_v61 = vadd.f32 %v6470_v9, %v2556_v43  ;;  %v2576_v62 = vmul.f32 %v818_v49, %v6152_v22  ;;  %v6589_v43 = vpop.f32.mrf.mxu0 }
 0x141   : > { %v6563_v57 = vpop.eup %5105  ;;  %v2630_v6 = vmul.f32 %v6555_v40, %v6482_v45  ;;  %v2740_v53 = vrot.slane %v2739_v59, 1  ;;  %v2663_v56 = vadd.f32 %v2662_v46, %v2661_v29  ;;  %v2814_v63 = vrot.slane %v2813_v52, 2 }
 0x142   : > { %5117 = vpow2.f32 %v2612_v13  ;;  %v2590_v60 = vrot.slane %v2576_v62, 4  ;;  %v2728_v55 = vmul.f32 %v931_v58, %v6152_v22  ;;  %v2652_v24 = vmul.f32 %v820_v8, %v6152_v22 }
 0x143   : > { %v2634_v9 = vadd.f32 %v6563_v57, %v2630_v6  ;;  %5119 = vpow2.f32 %v2624_v30  ;;  %v6570_v49 = vadd.f32 %v2740_v53, %v2739_v59  ;;  %v2664_v4 = vrot.slane %v2663_v56, 1 }
 0x144   : > { %v6574_v47 = vpop.eup %5107  ;;  %v2815_v45 = vadd.f32 %v2814_v63, %v2813_v52  ;;  %v2591_v54 = vadd.f32 %v2590_v60, %v2576_v62  ;;  %v2742_v2 = vrot.slane %v2728_v55, 4  ;;  %v2666_v38 = vrot.slane %v2652_v24, 4 }
 0x145   : > { %v2706_v10 = vmul.f32 %v6574_v47, %v2634_v9  ;;  %v2665_v28 = vadd.f32 %v2664_v4, %v2663_v56  ;;  %v2804_v12 = vmul.f32 %v933_v48, %v6152_v22  ;;  %v2557_v41 = vmul.f32 %v6505_v35, %v6529_v42  ;;  %v6591_v42 = vpop.f32.mrf.mxu1 }
 0x146   : > { %v6582_v58 = vpop.eup %5109  ;;  %v2816_v0 = vrot.slane %v2815_v45, 1  ;;  %v2592_v36 = vrot.slane %v2591_v54, 2  ;;  %v2743_v8 = vadd.f32 %v2742_v2, %v2728_v55  ;;  %v2667_v25 = vadd.f32 %v2666_v38, %v2652_v24 }
 0x147   : > { %v2710_v29 = vadd.f32 %v6582_v58, %v2706_v10  ;;  %v2679_v5 = vmax.f32 %v6547_v27, %v2665_v28  ;;  %v2818_v44 = vrot.slane %v2804_v12, 4  ;;  %v6587_v11 = vadd.f32 %v6510_v1, %v2557_v41 }
 0x148   : > { %v2817_v59 = vadd.f32 %v2816_v0, %v2815_v45  ;;  %v2593_v46 = vadd.f32 %v2592_v36, %v2591_v54  ;;  %v2744_v52 = vrot.slane %v2743_v8, 2  ;;  %v2668_v35 = vrot.slane %v2667_v25, 2 }
 0x149   : > { %v6593_v48 = vpop.eup %5111  ;;  %v2683_v13 = vsub.f32 %v6547_v27, %v2679_v5  ;;  %v2695_v30 = vsub.f32 %v2665_v28, %v2679_v5  ;;  %v6597_v62 = vmax.f32 %v2679_v5, %v6570_v49  ;;  %v2819_v6 = vadd.f32 %v2818_v44, %v2804_v12  ;;  %v6608_v27 = vpop.f32.mrf.mxu0 }
 0x14a   : > { %v6600_v1 = vmul.f32 %v6593_v48, %v2710_v29  ;;  %v2594_v53 = vrot.slane %v2593_v46, 1  ;;  %v2745_v56 = vadd.f32 %v2744_v52, %v2743_v8  ;;  %v2669_v63 = vadd.f32 %v2668_v35, %v2667_v25  ;;  %v6612_v28 = vpop.f32.mrf.mxu1 }
 0x14b   : > { %v6602_v60 = vpop.eup %5113  ;;  %v2688_v55 = vmul.f32 1.442695, %v2683_v13  ;;  %v2700_v24 = vmul.f32 1.442695, %v2695_v30  ;;  %v2759_v9 = vsub.f32 %v2679_v5, %v6597_v62  ;;  %v6606_v4 = vmax.f32 %v6597_v62, %v2817_v59  ;;  %v6622_v52 = vpop.f32.mrf.mxu0 }
 0x14c   : > { %v6610_v45 = vpop.eup %5115  ;;  %v2595_v54 = vadd.f32 %v2594_v53, %v2593_v46  ;;  %v2746_v2 = vrot.slane %v2745_v56, 1  ;;  %v2670_v38 = vrot.slane %v2669_v63, 1  ;;  %v2820_v10 = vrot.slane %v2819_v6, 2 }
 0x14d   : > { %5121 = vpow2.f32 %v2688_v55  ;;  %v2764_v12 = vmul.f32 1.442695, %v2759_v9  ;;  %v2835_v41 = vsub.f32 %v6597_v62, %v6606_v4  ;;  %v2847_v0 = vsub.f32 %v2817_v59, %v6606_v4 }
 0x14e   : > { %5123 = vpow2.f32 %v2700_v24  ;;  %v2604_v36 = vmax.f32 %v6358_v14, %v2595_v54  ;;  %v6618_v8 = vadd.f32 %v2746_v2, %v2745_v56  ;;  %v2671_v25 = vadd.f32 %v2670_v38, %v2669_v63  ;;  %v6629_v56 = vpop.f32.mrf.mxu1 }
 0x14f   : > { %v6620_v29 = vpop.eup %5117  ;;  %5125 = vpow2.f32 %v2764_v12  ;;  %v2840_v5 = vmul.f32 1.442695, %v2835_v41  ;;  %v2852_v44 = vmul.f32 1.442695, %v2847_v0  ;;  %v2821_v46 = vadd.f32 %v2820_v10, %v2819_v6  ;;  %v6639_v10 = vpop.f32.mrf.mxu0 }
 0x150   : > { %v6624_v35 = vpop.eup %5119  ;;  %v2631_v13 = vmul.f32 %v6620_v29, %v6527_v51  ;;  %v2608_v59 = vsub.f32 %v6358_v14, %v2604_v36  ;;  %v2620_v30 = vsub.f32 %v2595_v54, %v2604_v36  ;;  %v2680_v53 = vmax.f32 %v2604_v36, %v2671_v25 }
 0x151   : > { %5127 = vpow2.f32 %v2840_v5  ;;  %v2822_v63 = vrot.slane %v2821_v46, 1  ;;  %v2577_v55 = vmul.f32 %v6144_v20, %v6561_v15  ;;  %v2729_v6 = vmul.f32 %v6144_v20, %v6572_v50  ;;  %v6643_v50 = vpop.f32.mrf.mxu1 }
 0x152   : > { %v2635_v24 = vadd.f32 %v6624_v35, %v2631_v13  ;;  %5129 = vpow2.f32 %v2852_v44  ;;  %v2614_v9 = vmul.f32 1.442695, %v2608_v59  ;;  %v2626_v2 = vmul.f32 1.442695, %v2620_v30 }
 0x153   : > { %v2684_v51 = vsub.f32 %v2604_v36, %v2680_v53  ;;  %v2696_v38 = vsub.f32 %v2671_v25, %v2680_v53  ;;  %v6637_v14 = vmax.f32 %v2680_v53, %v6618_v8  ;;  %v2823_v54 = vadd.f32 %v2822_v63, %v2821_v46  ;;  %v6653_v63 = vpop.f32.mrf.mxu0 }
 0x154   : > { %5131 = vpow2.f32 %v2614_v9  ;;  %v2596_v12 = vrot.slane %v2577_v55, 4  ;;  %v2748_v41 = vrot.slane %v2729_v6, 4  ;;  %v2653_v15 = vmul.f32 %v6144_v20, %v6576_v33 }
 0x155   : > { %5133 = vpow2.f32 %v2626_v2  ;;  %v2690_v0 = vmul.f32 1.442695, %v2684_v51  ;;  %v2702_v5 = vmul.f32 1.442695, %v2696_v38  ;;  %v2760_v36 = vsub.f32 %v2680_v53, %v6637_v14  ;;  %v6665_v23 = vpop.f32.mrf.mxu0 }
 0x156   : > { %v6647_v25 = vmax.f32 %v6637_v14, %v2823_v54  ;;  %v2597_v44 = vadd.f32 %v2596_v12, %v2577_v55  ;;  %v2749_v46 = vadd.f32 %v2748_v41, %v2729_v6  ;;  %v2672_v13 = vrot.slane %v2653_v15, 4  ;;  %v6658_v55 = vpop.f32.mrf.mxu1 }
 0x157   : > { %5135 = vpow2.f32 %v2690_v0  ;;  %v2766_v59 = vmul.f32 1.442695, %v2760_v36  ;;  %v2805_v30 = vmul.f32 %v6144_v20, %v6589_v43  ;;  %v2638_v33 = vmul.f32 %v6555_v40, %v6490_v31 }
 0x158   : > { %5137 = vpow2.f32 %v2702_v5  ;;  %v2836_v53 = vsub.f32 %v6637_v14, %v6647_v25  ;;  %v2848_v9 = vsub.f32 %v2823_v54, %v6647_v25  ;;  %v2598_v2 = vrot.slane %v2597_v44, 2 }
 0x159   : > { %5139 = vpow2.f32 %v2766_v59  ;;  %v2750_v6 = vrot.slane %v2749_v46, 2  ;;  %v2673_v51 = vadd.f32 %v2672_v13, %v2653_v15  ;;  %v2824_v38 = vrot.slane %v2805_v30, 4 }
 0x15a   : > { %v6660_v12 = vpop.eup %5121  ;;  %v2842_v43 = vmul.f32 1.442695, %v2836_v53  ;;  %v2854_v41 = vmul.f32 1.442695, %v2848_v9  ;;  %v2599_v31 = vadd.f32 %v2598_v2, %v2597_v44  ;;  %v2642_v40 = vmul.f32 %v6563_v57, %v6591_v42  ;;  %v6671_v44 = vpop.f32.mrf.mxu1 }
 0x15b   : > { %v5124_v0 = vpop.eup %5123  ;;  %v2707_v5 = vmul.f32 %v6660_v12, %v2635_v24  ;;  %v2751_v36 = vadd.f32 %v2750_v6, %v2749_v46  ;;  %v2674_v54 = vrot.slane %v2673_v51, 2  ;;  %v2825_v21 = vadd.f32 %v2824_v38, %v2805_v30 }
 0x15c   : > { %v6667_v59 = vpop.eup %5125  ;;  %5141 = vpow2.f32 %v2842_v43  ;;  %v2600_v15 = vrot.slane %v2599_v31, 1  ;;  %v2646_v13 = vadd.f32 %v2642_v40, %v2638_v33  ;;  %v2770_v53 = vsub.f32 %v6494_v32, %v6524_v7  ;;  %v6692_v40 = vpop.f32.mrf.mxu1 }
 0x15d   : > { %v2711_v9 = vadd.f32 %v5124_v0, %v2707_v5  ;;  %5143 = vpow2.f32 %v2854_v41  ;;  %v2752_v57 = vrot.slane %v2751_v36, 1  ;;  %v2675_v42 = vadd.f32 %v2674_v54, %v2673_v51  ;;  %v6685_v41 = vpop.f32.mrf.mxu0 }
 0x15e   : > { %v6673_v24 = vpop.eup %5127  ;;  %v2601_v46 = vadd.f32 %v2600_v15, %v2599_v31  ;;  %v2826_v30 = vrot.slane %v2825_v21, 2  ;;  %v2774_v2 = vmul.f32 1.442695, %v2770_v53  ;;  %v2714_v6 = vmul.f32 %v6574_v47, %v2646_v13 }
 0x15f   : > { %v6676_v38 = vpop.eup %5129  ;;  %v6679_v33 = vmul.f32 %v6667_v59, %v2711_v9  ;;  %v6681_v43 = vadd.f32 %v2752_v57, %v2751_v36  ;;  %v2676_v32 = vrot.slane %v2675_v42, 1  ;;  %v2718_v7 = vmul.f32 %v6582_v58, %v6612_v28 }
 0x160   : > { %v2605_v51 = vmax.f32 %v6432_v26, %v2601_v46  ;;  %v2827_v31 = vadd.f32 %v2826_v30, %v2825_v21  ;;  %5145 = vpow2.f32 %v2774_v2  ;;  %v6690_v47 = vmul.f32 %v6610_v45, %v6622_v52  ;;  %v6705_v2 = vpop.f32.mrf.mxu0 }
 0x161   : > { %v5132_v5 = vpop.eup %5131  ;;  %v2677_v54 = vadd.f32 %v2676_v32, %v2675_v42  ;;  %v2722_v36 = vadd.f32 %v2718_v7, %v2714_v6  ;;  %v2639_v15 = vmul.f32 %v6620_v29, %v6519_v34  ;;  %v2643_v58 = vmul.f32 %v6624_v35, %v6629_v56 }
 0x162   : > { %v5134_v28 = vpop.eup %5133  ;;  %v2632_v13 = vmul.f32 %v5132_v5, %v6558_v61  ;;  %v2609_v21 = vsub.f32 %v6432_v26, %v2605_v51  ;;  %v2621_v53 = vsub.f32 %v2601_v46, %v2605_v51  ;;  %v2828_v9 = vrot.slane %v2827_v31, 1  ;;  %v6707_v61 = vpop.f32.mrf.mxu1 }
 0x163   : > { %v2681_v52 = vmax.f32 %v2605_v51, %v2677_v54  ;;  %v6701_v57 = vmul.f32 %v6593_v48, %v2722_v36  ;;  %v2647_v30 = vadd.f32 %v2643_v58, %v2639_v15  ;;  %v2771_v42 = vsub.f32 %v6570_v49, %v6597_v62 }
 0x164   : > { %v5136_v34 = vpop.eup %5135  ;;  %v2636_v29 = vadd.f32 %v5134_v28, %v2632_v13  ;;  %v2616_v35 = vmul.f32 1.442695, %v2609_v21  ;;  %v2628_v56 = vmul.f32 1.442695, %v2621_v53  ;;  %v2829_v6 = vadd.f32 %v2828_v9, %v2827_v31  ;;  %v6714_v21 = vpop.f32.mrf.mxu0 }
 0x165   : > { %v5138_v26 = vpop.eup %5137  ;;  %v2685_v46 = vsub.f32 %v2605_v51, %v2681_v52  ;;  %v2697_v32 = vsub.f32 %v2677_v54, %v2681_v52  ;;  %v2757_v7 = vmax.f32 %v2681_v52, %v6681_v43  ;;  %v2776_v48 = vmul.f32 1.442695, %v2771_v42  ;;  %v1032_v9 = vpop.f32.mrf.mxu1 }
 0x166   : > { %v6710_v36 = vpop.eup %5139  ;;  %v2708_v15 = vmul.f32 %v5136_v34, %v2636_v29  ;;  %5147 = vpow2.f32 %v2616_v35  ;;  %v2715_v49 = vmul.f32 %v6660_v12, %v2647_v30  ;;  %v2719_v62 = vmul.f32 %v5124_v0, %v6643_v50 }
 0x167   : > { %5149 = vpow2.f32 %v2628_v56  ;;  %v2692_v58 = vmul.f32 1.442695, %v2685_v46  ;;  %v2704_v13 = vmul.f32 1.442695, %v2697_v32  ;;  %v2761_v31 = vsub.f32 %v2681_v52, %v2757_v7 }
 0x168   : > { %v2712_v53 = vadd.f32 %v5138_v26, %v2708_v15  ;;  %v6716_v51 = vmax.f32 %v2757_v7, %v2829_v6  ;;  %5151 = vpow2.f32 %v2776_v48  ;;  %v2723_v54 = vadd.f32 %v2719_v62, %v2715_v49  ;;  %v1034_v49 = vpop.f32.mrf.mxu1 }
 0x169   : > { %v6718_v42 = vpop.eup %5141  ;;  %5153 = vpow2.f32 %v2692_v58  ;;  %v2768_v29 = vmul.f32 1.442695, %v2761_v31  ;;  %v6722_v12 = vmul.f32 %v6676_v38, %v6653_v63  ;;  %v2640_v50 = vmul.f32 %v5132_v5, %v6532_v3  ;;  %v1145_v3 = vpop.f32.mrf.mxu0 }
 0x16a   : > { %v6725_v0 = vpop.eup %5143  ;;  %v6728_v52 = vmul.f32 %v6710_v36, %v2712_v53  ;;  %5155 = vpow2.f32 %v2704_v13  ;;  %v2837_v30 = vsub.f32 %v2757_v7, %v6716_v51  ;;  %v2849_v35 = vsub.f32 %v2829_v6, %v6716_v51 }
 0x16b   : > { %5157 = vpow2.f32 %v2768_v29  ;;  %v6733_v56 = vmul.f32 %v6667_v59, %v2723_v54  ;;  %v2644_v46 = vmul.f32 %v5134_v28, %v6658_v55  ;;  %v2772_v63 = vsub.f32 %v6618_v8, %v6637_v14  ;;  %v1147_v13 = vpop.f32.mrf.mxu0 }
 0x16c   : > { %v2844_v5 = vmul.f32 1.442695, %v2837_v30  ;;  %v2856_v32 = vmul.f32 1.442695, %v2849_v35  ;;  %v2720_v48 = vmul.f32 %v5138_v26, %v6671_v44  ;;  %v6741_v15 = vmul.f32 %v6725_v0, %v6685_v41 }
 0x16d   : > { %v5146_v6 = vpop.eup %5145  ;;  %v2648_v62 = vadd.f32 %v2644_v46, %v2640_v50  ;;  %v2778_v58 = vmul.f32 1.442695, %v2772_v63  ;;  %v2773_v59 = vsub.f32 %v6681_v43, %v2757_v7  ;;  %v2878_v55 = vmul.f32 %v1032_v9, %v6134_v18  ;;  %v1038_v7 = vpop.f32.mrf.mxu1 }
 0x16e   : > { %5159 = vpow2.f32 %v2844_v5  ;;  %v2786_v8 = vadd.f32 %v5146_v6, %v6600_v1  ;;  %v2794_v14 = vmul.f32 %v5146_v6, %v6608_v27  ;;  %v3030_v28 = vmul.f32 %v1145_v3, %v6134_v18 }
 0x16f   : > { %5161 = vpow2.f32 %v2856_v32  ;;  %v2716_v44 = vmul.f32 %v5136_v34, %v2648_v62  ;;  %v2780_v26 = vmul.f32 1.442695, %v2773_v59  ;;  %v2882_v41 = vrot.slane %v2878_v55, 4 }
 0x170   : > { %v2798_v31 = vadd.f32 %v2794_v14, %v6701_v57  ;;  %5163 = vpow2.f32 %v2778_v58  ;;  %v2858_v53 = vmul.f32 %v6602_v60, %v2786_v8  ;;  %v3034_v43 = vrot.slane %v3030_v28, 4 }
 0x171   : > { %v2724_v54 = vadd.f32 %v2720_v48, %v2716_v44  ;;  %5165 = vpow2.f32 %v2780_v26  ;;  %v2883_v9 = vadd.f32 %v2882_v41, %v2878_v55  ;;  %v2954_v1 = vmul.f32 %v1034_v49, %v6134_v18 }
 0x172   : > { %v2866_v27 = vmul.f32 %v6602_v60, %v2798_v31  ;;  %v6753_v29 = vadd.f32 %v6610_v45, %v2858_v53  ;;  %v3035_v34 = vadd.f32 %v3034_v43, %v3030_v28  ;;  %v3106_v50 = vmul.f32 %v1147_v13, %v6134_v18 }
 0x173   : > { %v5148_v30 = vpop.eup %5147  ;;  %v6757_v57 = vmul.f32 %v6710_v36, %v2724_v54  ;;  %v2884_v35 = vrot.slane %v2883_v9, 2  ;;  %v2958_v46 = vrot.slane %v2954_v1, 4  ;;  %v6760_v63 = vmul.f32 %v6128_v16, %v1038_v7 }
 0x174   : > { %v5150_v3 = vpop.eup %5149  ;;  %v2633_v5 = vmul.f32 %v5148_v30, %v6587_v11  ;;  %v6764_v60 = vadd.f32 %v6690_v47, %v2866_v27  ;;  %v2641_v45 = vmul.f32 %v5148_v30, %v6549_v39  ;;  %v3036_v32 = vrot.slane %v3035_v34, 2 }
 0x175   : > { %v5152_v48 = vpop.eup %5151  ;;  %v2645_v49 = vmul.f32 %v5150_v3, %v6692_v40  ;;  %v2885_v6 = vadd.f32 %v2884_v35, %v2883_v9  ;;  %v2959_v36 = vadd.f32 %v2958_v46, %v2954_v1  ;;  %v3110_v62 = vrot.slane %v3106_v50, 4 }
 0x176   : > { %v5154_v58 = vpop.eup %5153  ;;  %v2637_v59 = vadd.f32 %v5150_v3, %v2633_v5  ;;  %v2787_v55 = vadd.f32 %v5152_v48, %v6679_v33  ;;  %v2795_v8 = vmul.f32 %v5152_v48, %v6639_v10  ;;  %v3037_v14 = vadd.f32 %v3036_v32, %v3035_v34 }
 0x177   : > { %v5156_v11 = vpop.eup %5155  ;;  %v2649_v28 = vadd.f32 %v2645_v49, %v2641_v45  ;;  %v2886_v47 = vrot.slane %v2885_v6, 1  ;;  %v2960_v44 = vrot.slane %v2959_v36, 2  ;;  %v3111_v26 = vadd.f32 %v3110_v62, %v3106_v50  ;;  %v1151_v45 = vpop.f32.mrf.mxu0 }
 0x178   : > { %v5158_v39 = vpop.eup %5157  ;;  %v2709_v41 = vmul.f32 %v5154_v58, %v2637_v59  ;;  %v2799_v13 = vadd.f32 %v2795_v8, %v6733_v56  ;;  %v2721_v40 = vmul.f32 %v5156_v11, %v6707_v61  ;;  %v3038_v31 = vrot.slane %v3037_v14, 1 }
 0x179   : > { %v2717_v53 = vmul.f32 %v5154_v58, %v2649_v28  ;;  %v2887_v43 = vadd.f32 %v2886_v47, %v2885_v6  ;;  %v2961_v7 = vadd.f32 %v2960_v44, %v2959_v36  ;;  %v3112_v54 = vrot.slane %v3111_v26, 2  ;;  %v1153_v44 = vpop.f32.mrf.mxu0 }
 0x17a   : > { %v2713_v33 = vadd.f32 %v5156_v11, %v2709_v41  ;;  %v2867_v10 = vmul.f32 %v6673_v24, %v2799_v13  ;;  %v6773_v9 = vadd.f32 %v3038_v31, %v3037_v14  ;;  %v2859_v1 = vmul.f32 %v6673_v24, %v2787_v55 }
 0x17b   : > { %v6776_v27 = vpop.eup %5159  ;;  %v2725_v34 = vadd.f32 %v2721_v40, %v2717_v53  ;;  %v2906_v50 = vmax.f32 %v6536_v37, %v2887_v43  ;;  %v2962_v56 = vrot.slane %v2961_v7, 1  ;;  %v3113_v30 = vadd.f32 %v3112_v54, %v3111_v26 }
 0x17c   : > { %v6779_v61 = vpop.eup %5161  ;;  %v2785_v35 = vmul.f32 %v5158_v39, %v2713_v33  ;;  %v6782_v46 = vadd.f32 %v6722_v12, %v2867_v10  ;;  %v6785_v3 = vadd.f32 %v6676_v38, %v2859_v1  ;;  %v2888_v5 = vrot.slane %v6760_v63, 4  ;;  %v1040_v38 = vpop.f32.mrf.mxu1 }
 0x17d   : > { %v5164_v24 = vpop.eup %5163  ;;  %v2793_v32 = vmul.f32 %v5158_v39, %v2725_v34  ;;  %v2873_v48 = vmul.f32 %v6779_v61, %v6714_v21  ;;  %v2910_v49 = vsub.f32 %v6536_v37, %v2906_v50  ;;  %v2922_v6 = vsub.f32 %v2887_v43, %v2906_v50  ;;  %v1157_v33 = vpop.f32.mrf.mxu0 }
 0x17e   : > { %v5166_v36 = vpop.eup %5165  ;;  %v2788_v62 = vadd.f32 %v5164_v24, %v6728_v52  ;;  %v2796_v12 = vmul.f32 %v5164_v24, %v6665_v23  ;;  %v2963_v58 = vadd.f32 %v2962_v56, %v2961_v7  ;;  %v3114_v59 = vrot.slane %v3113_v30, 1  ;;  %v1044_v54 = vpop.f32.mrf.mxu1 }
 0x17f   : > { %v6793_v55 = vadd.f32 %v5166_v36, %v2785_v35  ;;  %v2797_v8 = vmul.f32 %v5166_v36, %v6705_v2  ;;  %v2914_v14 = vmul.f32 1.442695, %v2910_v49  ;;  %v2926_v11 = vmul.f32 1.442695, %v2922_v6  ;;  %v6818_v36 = vpop.f32.mrf.mxu0 }
 0x180   : > { %v2800_v28 = vadd.f32 %v2796_v12, %v6757_v57  ;;  %v2982_v21 = vmax.f32 %v2906_v50, %v2963_v58  ;;  %v3115_v47 = vadd.f32 %v3114_v59, %v3113_v30  ;;  %v2889_v37 = vadd.f32 %v2888_v5, %v6760_v63  ;;  %v1046_v6 = vpop.f32.mrf.mxu1 }
 0x181   : > { %v2801_v26 = vadd.f32 %v2797_v8, %v2793_v32  ;;  %5167 = vpow2.f32 %v2914_v14  ;;  %v3031_v23 = vmul.f32 %v6128_v16, %v1151_v45  ;;  %v2955_v52 = vmul.f32 %v6128_v16, %v1040_v38 }
 0x182   : > { %v2868_v39 = vmul.f32 %v6718_v42, %v2800_v28  ;;  %5169 = vpow2.f32 %v2926_v11  ;;  %v2986_v41 = vsub.f32 %v2906_v50, %v2982_v21  ;;  %v2998_v2 = vsub.f32 %v2963_v58, %v2982_v21 }
 0x183   : > { %v2869_v13 = vmul.f32 %v6776_v27, %v2801_v26  ;;  %v6803_v57 = vmax.f32 %v2982_v21, %v6773_v9  ;;  %v2890_v40 = vrot.slane %v2889_v37, 2  ;;  %v3040_v31 = vrot.slane %v3031_v23, 4 }
 0x184   : > { %v6806_v63 = vadd.f32 %v6741_v15, %v2868_v39  ;;  %v2990_v53 = vmul.f32 1.442695, %v2986_v41  ;;  %v3002_v43 = vmul.f32 1.442695, %v2998_v2  ;;  %v2964_v7 = vrot.slane %v2955_v52, 4 }
 0x185   : > { %v6808_v10 = vadd.f32 %v2873_v48, %v2869_v13  ;;  %v3062_v1 = vsub.f32 %v2982_v21, %v6803_v57  ;;  %v6812_v34 = vmax.f32 %v6803_v57, %v3115_v47  ;;  %v2891_v50 = vadd.f32 %v2890_v40, %v2889_v37 }
 0x186   : > { %5171 = vpow2.f32 %v2990_v53  ;;  %v3041_v56 = vadd.f32 %v3040_v31, %v3031_v23  ;;  %v2965_v30 = vadd.f32 %v2964_v7, %v2955_v52  ;;  %v3107_v35 = vmul.f32 %v6128_v16, %v1153_v44  ;;  %v6827_v23 = vpop.f32.mrf.mxu1 }
 0x187   : > { %5173 = vpow2.f32 %v3002_v43  ;;  %v3066_v15 = vmul.f32 1.442695, %v3062_v1  ;;  %v3138_v5 = vsub.f32 %v6803_v57, %v6812_v34  ;;  %v3150_v45 = vsub.f32 %v3115_v47, %v6812_v34 }
 0x188   : > { %v2892_v24 = vrot.slane %v2891_v50, 1  ;;  %v3042_v32 = vrot.slane %v3041_v56, 2  ;;  %v2966_v48 = vrot.slane %v2965_v30, 2  ;;  %v3116_v49 = vrot.slane %v3107_v35, 4 }
 0x189   : > { %5175 = vpow2.f32 %v3066_v15  ;;  %v3142_v12 = vmul.f32 1.442695, %v3138_v5  ;;  %v3154_v58 = vmul.f32 1.442695, %v3150_v45  ;;  %v2860_v59 = vmul.f32 %v6718_v42, %v2788_v62  ;;  %v6829_v42 = vpop.f32.mrf.mxu0 }
 0x18a   : > { %v2893_v38 = vadd.f32 %v2892_v24, %v2891_v50  ;;  %v3043_v8 = vadd.f32 %v3042_v32, %v3041_v56  ;;  %v2967_v14 = vadd.f32 %v2966_v48, %v2965_v30  ;;  %v3117_v11 = vadd.f32 %v3116_v49, %v3107_v35  ;;  %v6841_v35 = vpop.f32.mrf.mxu1 }
 0x18b   : > { %5177 = vpow2.f32 %v3142_v12  ;;  %v6822_v28 = vadd.f32 %v6725_v0, %v2860_v59  ;;  %v2880_v21 = vmul.f32 %v1044_v54, %v6152_v22  ;;  %v3032_v47 = vmul.f32 %v1157_v33, %v6152_v22  ;;  %v6843_v15 = vpop.f32.mrf.mxu0 }
 0x18c   : > { %5179 = vpow2.f32 %v3154_v58  ;;  %v2907_v37 = vmax.f32 %v6606_v4, %v2893_v38  ;;  %v3044_v44 = vrot.slane %v3043_v8, 1  ;;  %v2968_v26 = vrot.slane %v2967_v14, 1 }
 0x18d   : > { %v3118_v62 = vrot.slane %v3117_v11, 2  ;;  %v2894_v52 = vrot.slane %v2880_v21, 4  ;;  %v3046_v39 = vrot.slane %v3032_v47, 4  ;;  %v2956_v41 = vmul.f32 %v1046_v6, %v6152_v22 }
 0x18e   : > { %v6832_v0 = vpop.eup %5167  ;;  %v2911_v2 = vsub.f32 %v6606_v4, %v2907_v37  ;;  %v2923_v13 = vsub.f32 %v2893_v38, %v2907_v37  ;;  %v6835_v40 = vadd.f32 %v3044_v44, %v3043_v8  ;;  %v2969_v31 = vadd.f32 %v2968_v26, %v2967_v14 }
 0x18f   : > { %v6837_v53 = vpop.eup %5169  ;;  %v2934_v43 = vmul.f32 %v6832_v0, %v6753_v29  ;;  %v3119_v7 = vadd.f32 %v3118_v62, %v3117_v11  ;;  %v2895_v54 = vadd.f32 %v2894_v52, %v2880_v21  ;;  %v3047_v33 = vadd.f32 %v3046_v39, %v3032_v47  ;;  %v6855_v21 = vpop.f32.mrf.mxu1 }
 0x190   : > { %v2916_v1 = vmul.f32 1.442695, %v2911_v2  ;;  %v2928_v50 = vmul.f32 1.442695, %v2923_v13  ;;  %v2983_v56 = vmax.f32 %v2907_v37, %v2969_v31  ;;  %v2970_v30 = vrot.slane %v2956_v41, 4  ;;  %v6857_v47 = vpop.f32.mrf.mxu0 }
 0x191   : > { %v2938_v4 = vadd.f32 %v6837_v53, %v2934_v43  ;;  %v3120_v5 = vrot.slane %v3119_v7, 1  ;;  %v2896_v45 = vrot.slane %v2895_v54, 2  ;;  %v3048_v24 = vrot.slane %v3047_v33, 2 }
 0x192   : > { %5181 = vpow2.f32 %v2916_v1  ;;  %v2987_v32 = vsub.f32 %v2907_v37, %v2983_v56  ;;  %v2999_v48 = vsub.f32 %v2969_v31, %v2983_v56  ;;  %v6847_v29 = vmax.f32 %v2983_v56, %v6835_v40 }
 0x193   : > { %v6849_v49 = vpop.eup %5171  ;;  %5183 = vpow2.f32 %v2928_v50  ;;  %v3121_v6 = vadd.f32 %v3120_v5, %v3119_v7  ;;  %v2897_v12 = vadd.f32 %v2896_v45, %v2895_v54  ;;  %v3049_v58 = vadd.f32 %v3048_v24, %v3047_v33  ;;  %v6877_v50 = vpop.f32.mrf.mxu1 }
 0x194   : > { %v6851_v59 = vpop.eup %5173  ;;  %v3010_v38 = vmul.f32 %v6849_v49, %v2938_v4  ;;  %v2992_v8 = vmul.f32 1.442695, %v2987_v32  ;;  %v3004_v14 = vmul.f32 1.442695, %v2999_v48  ;;  %v3063_v11 = vsub.f32 %v2983_v56, %v6847_v29  ;;  %v6879_v56 = vpop.f32.mrf.mxu0 }
 0x195   : > { %v6860_v37 = vmax.f32 %v6847_v29, %v3121_v6  ;;  %v2898_v44 = vrot.slane %v2897_v12, 1  ;;  %v3050_v26 = vrot.slane %v3049_v58, 1  ;;  %v2971_v62 = vadd.f32 %v2970_v30, %v2956_v41 }
 0x196   : > { %v6862_v52 = vpop.eup %5175  ;;  %v3014_v39 = vadd.f32 %v6851_v59, %v3010_v38  ;;  %5185 = vpow2.f32 %v2992_v8  ;;  %v3068_v2 = vmul.f32 1.442695, %v3063_v11  ;;  %v3108_v13 = vmul.f32 %v6818_v36, %v6152_v22 }
 0x197   : > { %5187 = vpow2.f32 %v3004_v14  ;;  %v3139_v31 = vsub.f32 %v6847_v29, %v6860_v37  ;;  %v3151_v43 = vsub.f32 %v3121_v6, %v6860_v37  ;;  %v2899_v7 = vadd.f32 %v2898_v44, %v2897_v12  ;;  %v6894_v44 = vpop.f32.mrf.mxu1 }
 0x198   : > { %v6870_v54 = vpop.eup %5177  ;;  %v6873_v41 = vmul.f32 %v6862_v52, %v3014_v39  ;;  %5189 = vpow2.f32 %v3068_v2  ;;  %v6875_v33 = vadd.f32 %v3050_v26, %v3049_v58  ;;  %v2972_v1 = vrot.slane %v2971_v62, 2 }
 0x199   : > { %v6881_v36 = vpop.eup %5179  ;;  %v3144_v30 = vmul.f32 1.442695, %v3139_v31  ;;  %v3156_v4 = vmul.f32 1.442695, %v3151_v43  ;;  %v2908_v5 = vmax.f32 %v6647_v25, %v2899_v7  ;;  %v3122_v45 = vrot.slane %v3108_v13, 4 }
 0x19a   : > { %v2973_v24 = vadd.f32 %v2972_v1, %v2971_v62  ;;  %v2861_v32 = vmul.f32 %v6776_v27, %v6793_v55  ;;  %v2881_v48 = vmul.f32 %v6144_v20, %v6827_v23  ;;  %v3033_v6 = vmul.f32 %v6144_v20, %v6829_v42  ;;  %v6896_v27 = vpop.f32.mrf.mxu0 }
 0x19b   : > { %5191 = vpow2.f32 %v3144_v30  ;;  %v2912_v12 = vsub.f32 %v6647_v25, %v2908_v5  ;;  %v2924_v58 = vsub.f32 %v2899_v7, %v2908_v5  ;;  %v3123_v38 = vadd.f32 %v3122_v45, %v3108_v13 }
 0x19c   : > { %5193 = vpow2.f32 %v3156_v4  ;;  %v2974_v8 = vrot.slane %v2973_v24, 1  ;;  %v6892_v14 = vadd.f32 %v6779_v61, %v2861_v32  ;;  %v2900_v11 = vrot.slane %v2881_v48, 4  ;;  %v6912_v4 = vpop.f32.mrf.mxu1 }
 0x19d   : > { %v2918_v55 = vmul.f32 1.442695, %v2912_v12  ;;  %v2930_v23 = vmul.f32 1.442695, %v2924_v58  ;;  %v3124_v26 = vrot.slane %v3123_v38, 2  ;;  %v3052_v62 = vrot.slane %v3033_v6, 4 }
 0x19e   : > { %v2975_v42 = vadd.f32 %v2974_v8, %v2973_v24  ;;  %v2901_v39 = vadd.f32 %v2900_v11, %v2881_v48  ;;  %v2957_v25 = vmul.f32 %v6144_v20, %v6841_v35  ;;  %v3109_v2 = vmul.f32 %v6144_v20, %v6843_v15  ;;  %v6914_v15 = vpop.f32.mrf.mxu0 }
 0x19f   : > { %v6902_v13 = vpop.eup %5181  ;;  %5195 = vpow2.f32 %v2918_v55  ;;  %v3125_v61 = vadd.f32 %v3124_v26, %v3123_v38  ;;  %v3053_v31 = vadd.f32 %v3052_v62, %v3033_v6  ;;  %v6906_v43 = vmul.f32 %v6832_v0, %v6764_v60 }
 0x1a0   : > { %v6908_v7 = vpop.eup %5183  ;;  %v2935_v1 = vmul.f32 %v6902_v13, %v6785_v3  ;;  %5197 = vpow2.f32 %v2930_v23  ;;  %v2984_v30 = vmax.f32 %v2908_v5, %v2975_v42  ;;  %v2902_v35 = vrot.slane %v2901_v39, 2 }
 0x1a1   : > { %v3126_v45 = vrot.slane %v3125_v61, 1  ;;  %v3054_v24 = vrot.slane %v3053_v31, 2  ;;  %v2976_v32 = vrot.slane %v2957_v25, 4  ;;  %v3128_v48 = vrot.slane %v3109_v2, 4 }
 0x1a2   : > { %v2939_v6 = vadd.f32 %v6908_v7, %v2935_v1  ;;  %v2988_v60 = vsub.f32 %v2908_v5, %v2984_v30  ;;  %v3000_v0 = vsub.f32 %v2975_v42, %v2984_v30  ;;  %v6918_v12 = vmax.f32 %v2984_v30, %v6875_v33  ;;  %v6926_v1 = vpop.f32.mrf.mxu1  ;;  %v6928_v5 = vpop.f32.mrf.mxu0 }
 0x1a3   : > { %v6920_v58 = vpop.eup %5185  ;;  %v3127_v3 = vadd.f32 %v3126_v45, %v3125_v61  ;;  %v2903_v38 = vadd.f32 %v2902_v35, %v2901_v39  ;;  %v3055_v8 = vadd.f32 %v3054_v24, %v3053_v31  ;;  %v2977_v11 = vadd.f32 %v2976_v32, %v2957_v25 }
 0x1a4   : > { %v6922_v55 = vpop.eup %5187  ;;  %v3011_v23 = vmul.f32 %v6920_v58, %v2939_v6  ;;  %v2994_v26 = vmul.f32 1.442695, %v2988_v60  ;;  %v3006_v62 = vmul.f32 1.442695, %v3000_v0  ;;  %v3064_v17 = vsub.f32 %v2984_v30, %v6918_v12 }
 0x1a5   : > { %v6930_v42 = vpop.eup %5189  ;;  %v6933_v19 = vmax.f32 %v6918_v12, %v3127_v3  ;;  %v2904_v39 = vrot.slane %v2903_v38, 1  ;;  %v3056_v61 = vrot.slane %v3055_v8, 1  ;;  %v2978_v25 = vrot.slane %v2977_v11, 2 }
 0x1a6   : > { %v3015_v31 = vadd.f32 %v6922_v55, %v3011_v23  ;;  %5199 = vpow2.f32 %v2994_v26  ;;  %v3070_v35 = vmul.f32 1.442695, %v3064_v17  ;;  %v3129_v45 = vadd.f32 %v3128_v48, %v3109_v2  ;;  %v6946_v23 = vpop.f32.mrf.mxu1  ;;  %v6948_v17 = vpop.f32.mrf.mxu0 }
 0x1a7   : > { %8322 = vst [vmem:[#allocation9_spill] sm:$0xff] %v6933_v19  ;;  %5201 = vpow2.f32 %v3006_v62  ;;  %v3140_v30 = vsub.f32 %v6918_v12, %v6933_v19  ;;  %v3152_v24 = vsub.f32 %v3127_v3, %v6933_v19  ;;  %v2905_v32 = vadd.f32 %v2904_v39, %v2903_v38 }
 0x1a8   : > { %v6939_v6 = vpop.eup %5191  ;;  %v6942_v60 = vmul.f32 %v6930_v42, %v3015_v31  ;;  %5203 = vpow2.f32 %v3070_v35  ;;  %v6944_v0 = vadd.f32 %v3056_v61, %v3055_v8  ;;  %v2979_v20 = vadd.f32 %v2978_v25, %v2977_v11  ;;  %v6961_v22 = vpop.f32.mrf.mxu1 }
 0x1a9   : > { %v6950_v2 = vpop.eup %5193  ;;  %v3146_v48 = vmul.f32 1.442695, %v3140_v30  ;;  %v3158_v26 = vmul.f32 1.442695, %v3152_v24  ;;  %v2909_v3 = vmax.f32 %v6716_v51, %v2905_v32  ;;  %v3130_v38 = vrot.slane %v3129_v45, 2 }
 0x1aa   : > { %v2980_v62 = vrot.slane %v2979_v20, 1  ;;  %v2946_v39 = vmul.f32 %v6837_v53, %v6855_v21  ;;  %v3074_v8 = vsub.f32 %v6773_v9, %v6803_v57  ;;  %v3022_v11 = vmul.f32 %v6851_v59, %v6877_v50  ;;  %v6963_v53 = vpop.f32.mrf.mxu0 }
 0x1ab   : > { %5205 = vpow2.f32 %v3146_v48  ;;  %v2913_v61 = vsub.f32 %v6716_v51, %v2909_v3  ;;  %v2925_v25 = vsub.f32 %v2905_v32, %v2909_v3  ;;  %v3131_v31 = vadd.f32 %v3130_v38, %v3129_v45 }
 0x1ac   : > { %v5196_v35 = vpop.eup %5195  ;;  %5207 = vpow2.f32 %v3158_v26  ;;  %v2981_v30 = vadd.f32 %v2980_v62, %v2979_v20  ;;  %v2950_v24 = vadd.f32 %v2946_v39, %v6906_v43  ;;  %v3078_v19 = vmul.f32 1.442695, %v3074_v8  ;;  %v6974_v62 = vpop.f32.mrf.mxu1 }
 0x1ad   : > { %v5198_v21 = vpop.eup %5197  ;;  %v2936_v9 = vmul.f32 %v5196_v35, %v6822_v28  ;;  %v2920_v57 = vmul.f32 1.442695, %v2913_v61  ;;  %v2932_v59 = vmul.f32 1.442695, %v2925_v25  ;;  %v3132_v50 = vrot.slane %v3131_v31, 1 }
 0x1ae   : > { %v2985_v48 = vmax.f32 %v2909_v3, %v2981_v30  ;;  %5209 = vpow2.f32 %v3078_v19  ;;  %v3018_v51 = vmul.f32 %v6849_v49, %v2950_v24  ;;  %v6969_v20 = vmul.f32 %v6881_v36, %v6879_v56  ;;  %v6976_v19 = vpop.f32.mrf.mxu0 }
 0x1af   : > { %v2940_v43 = vadd.f32 %v5198_v21, %v2936_v9  ;;  %5211 = vpow2.f32 %v2920_v57  ;;  %v3133_v45 = vadd.f32 %v3132_v50, %v3131_v31  ;;  %v2943_v32 = vmul.f32 %v6902_v13, %v6782_v46 }
 0x1b0   : > { %5213 = vpow2.f32 %v2932_v59  ;;  %v2989_v26 = vsub.f32 %v2909_v3, %v2985_v48  ;;  %v3001_v28 = vsub.f32 %v2981_v30, %v2985_v48  ;;  %v3061_v38 = vmax.f32 %v2985_v48, %v6944_v0 }
 0x1b1   : > { %v3026_v49 = vadd.f32 %v3022_v11, %v3018_v51  ;;  %v2947_v56 = vmul.f32 %v6908_v7, %v6894_v44  ;;  %v3075_v39 = vsub.f32 %v6835_v40, %v6847_v29  ;;  %v3023_v8 = vmul.f32 %v6922_v55, %v6912_v4  ;;  %v1258_v4 = vpop.f32.mrf.mxu1  ;;  %v1371_v55 = vpop.f32.mrf.mxu0 }
 0x1b2   : > { %v2996_v46 = vmul.f32 1.442695, %v2989_v26  ;;  %v3008_v13 = vmul.f32 1.442695, %v3001_v28  ;;  %v3065_v3 = vsub.f32 %v2985_v48, %v3061_v38  ;;  %v6984_v61 = vmax.f32 %v3061_v38, %v3133_v45 }
 0x1b3   : > { %v5200_v25 = vpop.eup %5199  ;;  %v3094_v31 = vmul.f32 %v6862_v52, %v3026_v49  ;;  %v2951_v30 = vadd.f32 %v2947_v56, %v2943_v32  ;;  %v3080_v24 = vmul.f32 1.442695, %v3075_v39  ;;  %v6989_v11 = vmul.f32 %v6950_v2, %v6914_v15 }
 0x1b4   : > { %v5202_v44 = vpop.eup %5201  ;;  %v3012_v7 = vmul.f32 %v5200_v25, %v2940_v43  ;;  %5215 = vpow2.f32 %v2996_v46  ;;  %v3072_v40 = vmul.f32 1.442695, %v3065_v3  ;;  %v3141_v29 = vsub.f32 %v3061_v38, %v6984_v61 }
 0x1b5   : > { %v5204_v9 = vpop.eup %5203  ;;  %5217 = vpow2.f32 %v3008_v13  ;;  %v3153_v57 = vsub.f32 %v3133_v45, %v6984_v61  ;;  %v3019_v52 = vmul.f32 %v6920_v58, %v2951_v30  ;;  %v2944_v59 = vmul.f32 %v5196_v35, %v6806_v63  ;;  %v1260_v63 = vpop.f32.mrf.mxu1 }
 0x1b6   : > { %v3016_v50 = vadd.f32 %v5202_v44, %v3012_v7  ;;  %5219 = vpow2.f32 %v3072_v40  ;;  %v3148_v15 = vmul.f32 1.442695, %v3141_v29  ;;  %v2948_v48 = vmul.f32 %v5198_v21, %v6926_v1  ;;  %v1373_v35 = vpop.f32.mrf.mxu0 }
 0x1b7   : > { %v3160_v51 = vmul.f32 1.442695, %v3153_v57  ;;  %5221 = vpow2.f32 %v3080_v24  ;;  %v3027_v43 = vadd.f32 %v3023_v8, %v3019_v52  ;;  %v3076_v32 = vsub.f32 %v6875_v33, %v6918_v12  ;;  %v1264_v57 = vpop.f32.mrf.mxu1 }
 0x1b8   : > { %v6998_v26 = vpop.eup %5205  ;;  %v7000_v28 = vmul.f32 %v5204_v9, %v3016_v50  ;;  %5223 = vpow2.f32 %v3148_v15  ;;  %v2952_v45 = vadd.f32 %v2948_v48, %v2944_v59  ;;  %v3024_v58 = vmul.f32 %v5202_v44, %v6946_v23 }
 0x1b9   : > { %v7003_v49 = vpop.eup %5207  ;;  %5225 = vpow2.f32 %v3160_v51  ;;  %v7006_v1 = vmul.f32 %v6930_v42, %v3027_v43  ;;  %v3082_v21 = vmul.f32 1.442695, %v3076_v32  ;;  %v3077_v56 = vsub.f32 %v6944_v0, %v3061_v38  ;;  %v1377_v43 = vpop.f32.mrf.mxu0 }
 0x1ba   : > { %v3020_v33 = vmul.f32 %v5200_v25, %v2952_v45  ;;  %v7011_v12 = vmul.f32 %v7003_v49, %v6948_v17  ;;  %v3182_v39 = vmul.f32 %v1258_v4, %v6134_v18  ;;  %v3334_v23 = vmul.f32 %v1371_v55, %v6134_v18 }
 0x1bb   : > { %v5210_v8 = vpop.eup %5209  ;;  %5227 = vpow2.f32 %v3082_v21  ;;  %v3084_v46 = vmul.f32 1.442695, %v3077_v56  ;;  %v3258_v13 = vmul.f32 %v1260_v63, %v6134_v18  ;;  %v3410_v42 = vmul.f32 %v1373_v35, %v6134_v18 }
 0x1bc   : > { %v5212_v3 = vpop.eup %5211  ;;  %v3090_v30 = vadd.f32 %v5210_v8, %v6873_v41  ;;  %v3098_v0 = vmul.f32 %v5210_v8, %v6857_v47  ;;  %v3028_v38 = vadd.f32 %v3024_v58, %v3020_v33  ;;  %v3186_v25 = vrot.slane %v3182_v39, 4 }
 0x1bd   : > { %v5214_v17 = vpop.eup %5213  ;;  %v2937_v24 = vmul.f32 %v5212_v3, %v6892_v14  ;;  %v2945_v44 = vmul.f32 %v5212_v3, %v6808_v10  ;;  %5229 = vpow2.f32 %v3084_v46  ;;  %v3338_v7 = vrot.slane %v3334_v23, 4 }
 0x1be   : > { %v3102_v40 = vadd.f32 %v3098_v0, %v3094_v31  ;;  %v7021_v29 = vmul.f32 %v5204_v9, %v3028_v38  ;;  %v2949_v4 = vmul.f32 %v5214_v17, %v6961_v22  ;;  %v3162_v55 = vmul.f32 %v6870_v54, %v3090_v30 }
 0x1bf   : > { %v2941_v41 = vadd.f32 %v5214_v17, %v2937_v24  ;;  %v3187_v52 = vadd.f32 %v3186_v25, %v3182_v39  ;;  %v3339_v47 = vadd.f32 %v3338_v7, %v3334_v23  ;;  %v3262_v59 = vrot.slane %v3258_v13, 4 }
 0x1c0   : > { %v3170_v50 = vmul.f32 %v6870_v54, %v3102_v40  ;;  %v2953_v15 = vadd.f32 %v2949_v4, %v2945_v44  ;;  %v7027_v14 = vadd.f32 %v6881_v36, %v3162_v55  ;;  %v3414_v10 = vrot.slane %v3410_v42, 4 }
 0x1c1   : > { %v5216_v48 = vpop.eup %5215  ;;  %v3188_v31 = vrot.slane %v3187_v52, 2  ;;  %v3340_v9 = vrot.slane %v3339_v47, 2  ;;  %v3263_v51 = vadd.f32 %v3262_v59, %v3258_v13  ;;  %v3183_v22 = vmul.f32 %v6128_v16, %v1264_v57 }
 0x1c2   : > { %v5218_v32 = vpop.eup %5217  ;;  %v3013_v45 = vmul.f32 %v5216_v48, %v2941_v41  ;;  %v7031_v58 = vadd.f32 %v6969_v20, %v3170_v50  ;;  %v3021_v63 = vmul.f32 %v5216_v48, %v2953_v15  ;;  %v3415_v35 = vadd.f32 %v3414_v10, %v3410_v42 }
 0x1c3   : > { %v5220_v54 = vpop.eup %5219  ;;  %v3025_v21 = vmul.f32 %v5218_v32, %v6974_v62  ;;  %v3189_v36 = vadd.f32 %v3188_v31, %v3187_v52  ;;  %v3341_v56 = vadd.f32 %v3340_v9, %v3339_v47  ;;  %v3264_v33 = vrot.slane %v3263_v51, 2  ;;  %v1266_v31 = vpop.f32.mrf.mxu1 }
 0x1c4   : > { %v5222_v39 = vpop.eup %5221  ;;  %v3017_v23 = vadd.f32 %v5218_v32, %v3013_v45  ;;  %v3416_v8 = vrot.slane %v3415_v35, 2  ;;  %v3192_v46 = vrot.slane %v3183_v22, 4  ;;  %v3335_v13 = vmul.f32 %v6128_v16, %v1377_v43 }
 0x1c5   : > { %v7035_v3 = vpop.eup %5223  ;;  %v3091_v30 = vadd.f32 %v5222_v39, %v6942_v60  ;;  %v3099_v20 = vmul.f32 %v5222_v39, %v6896_v27  ;;  %v3029_v0 = vadd.f32 %v3025_v21, %v3021_v63  ;;  %v3190_v42 = vrot.slane %v3189_v36, 1 }
 0x1c6   : > { %v7039_v38 = vpop.eup %5225  ;;  %v3089_v62 = vmul.f32 %v5220_v54, %v3017_v23  ;;  %v3342_v25 = vrot.slane %v3341_v56, 1  ;;  %v3265_v17 = vadd.f32 %v3264_v33, %v3263_v51  ;;  %v3417_v24 = vadd.f32 %v3416_v8, %v3415_v35  ;;  %v1379_v33 = vpop.f32.mrf.mxu0 }
 0x1c7   : > { %v3103_v44 = vadd.f32 %v3099_v20, %v7006_v1  ;;  %v3097_v7 = vmul.f32 %v5220_v54, %v3029_v0  ;;  %v3177_v40 = vmul.f32 %v7039_v38, %v6976_v19  ;;  %v3191_v4 = vadd.f32 %v3190_v42, %v3189_v36 }
 0x1c8   : > { %v5228_v55 = vpop.eup %5227  ;;  %v7044_v57 = vadd.f32 %v3342_v25, %v3341_v56  ;;  %v3266_v60 = vrot.slane %v3265_v17, 1  ;;  %v3418_v27 = vrot.slane %v3417_v24, 1  ;;  %v3163_v41 = vmul.f32 %v6939_v6, %v3091_v30 }
 0x1c9   : > { %v3171_v52 = vmul.f32 %v6939_v6, %v3103_v44  ;;  %v3092_v47 = vadd.f32 %v5228_v55, %v7000_v28  ;;  %v3100_v59 = vmul.f32 %v5228_v55, %v6928_v5  ;;  %v3210_v1 = vmax.f32 %v6812_v34, %v3191_v4 }
 0x1ca   : > { %v5230_v50 = vpop.eup %5229  ;;  %v3267_v15 = vadd.f32 %v3266_v60, %v3265_v17  ;;  %v3419_v10 = vadd.f32 %v3418_v27, %v3417_v24  ;;  %v7052_v19 = vadd.f32 %v6950_v2, %v3163_v41  ;;  %v3193_v48 = vadd.f32 %v3192_v46, %v3183_v22  ;;  %v1270_v46 = vpop.f32.mrf.mxu1 }
 0x1cb   : > { %v7055_v9 = vadd.f32 %v6989_v11, %v3171_v52  ;;  %v3104_v51 = vadd.f32 %v3100_v59, %v7021_v29  ;;  %v7058_v6 = vadd.f32 %v5230_v50, %v3089_v62  ;;  %v3101_v28 = vmul.f32 %v5230_v50, %v6963_v53  ;;  %v1383_v24 = vpop.f32.mrf.mxu0 }
 0x1cc   : > { %v3214_v5 = vsub.f32 %v6812_v34, %v3210_v1  ;;  %v3226_v43 = vsub.f32 %v3191_v4, %v3210_v1  ;;  %v3286_v32 = vmax.f32 %v3210_v1, %v3267_v15  ;;  %v3194_v45 = vrot.slane %v3193_v48, 2  ;;  %v1272_v55 = vpop.f32.mrf.mxu1 }
 0x1cd   : > { %v3172_v63 = vmul.f32 %v6998_v26, %v3104_v51  ;;  %v3105_v2 = vadd.f32 %v3101_v28, %v3097_v7  ;;  %v3344_v35 = vrot.slane %v3335_v13, 4  ;;  %v3259_v22 = vmul.f32 %v6128_v16, %v1266_v31  ;;  %v1385_v51 = vpop.f32.mrf.mxu0 }
 0x1ce   : > { %v3218_v54 = vmul.f32 1.442695, %v3214_v5  ;;  %v3230_v11 = vmul.f32 1.442695, %v3226_v43  ;;  %v3290_v21 = vsub.f32 %v3210_v1, %v3286_v32  ;;  %v3302_v36 = vsub.f32 %v3267_v15, %v3286_v32  ;;  %v7095_v5 = vpop.f32.mrf.mxu1 }
 0x1cf   : > { %v7065_v29 = vadd.f32 %v7011_v12, %v3172_v63  ;;  %v3173_v53 = vmul.f32 %v7035_v3, %v3105_v2  ;;  %v7069_v34 = vmax.f32 %v3286_v32, %v7044_v57  ;;  %v3195_v56 = vadd.f32 %v3194_v45, %v3193_v48 }
 0x1d0   : > { %5231 = vpow2.f32 %v3218_v54  ;;  %v3294_v39 = vmul.f32 1.442695, %v3290_v21  ;;  %v3306_v23 = vmul.f32 1.442695, %v3302_v36  ;;  %v3345_v8 = vadd.f32 %v3344_v35, %v3335_v13  ;;  %v7099_v36 = vpop.f32.mrf.mxu0 }
 0x1d1   : > { %v7071_v30 = vadd.f32 %v3177_v40, %v3173_v53  ;;  %5233 = vpow2.f32 %v3230_v11  ;;  %v3366_v20 = vsub.f32 %v3286_v32, %v7069_v34  ;;  %v7075_v12 = vmax.f32 %v7069_v34, %v3419_v10 }
 0x1d2   : > { %5235 = vpow2.f32 %v3294_v39  ;;  %v3196_v0 = vrot.slane %v3195_v56, 1  ;;  %v3346_v42 = vrot.slane %v3345_v8, 2  ;;  %v3268_v62 = vrot.slane %v3259_v22, 4  ;;  %v7103_v39 = vpop.f32.mrf.mxu1 }
 0x1d3   : > { %5237 = vpow2.f32 %v3306_v23  ;;  %v3370_v25 = vmul.f32 1.442695, %v3366_v20  ;;  %v3442_v17 = vsub.f32 %v7069_v34, %v7075_v12  ;;  %v3454_v13 = vsub.f32 %v3419_v10, %v7075_v12  ;;  %v8323_v10 = vld [vmem:[#allocation7_spill] sm:$0xff] }
 0x1d4   : > { %v3197_v44 = vadd.f32 %v3196_v0, %v3195_v56  ;;  %v3347_v7 = vadd.f32 %v3346_v42, %v3345_v8  ;;  %v3269_v40 = vadd.f32 %v3268_v62, %v3259_v22  ;;  %v3411_v4 = vmul.f32 %v6128_v16, %v1379_v33 }
 0x1d5   : > { %5239 = vpow2.f32 %v3370_v25  ;;  %v3446_v60 = vmul.f32 1.442695, %v3442_v17  ;;  %v3458_v27 = vmul.f32 1.442695, %v3454_v13  ;;  %v3164_v41 = vmul.f32 %v6998_v26, %v3092_v47 }
 0x1d6   : > { %v7083_v52 = vmax.f32 %v6860_v37, %v3197_v44  ;;  %v3348_v59 = vrot.slane %v3347_v7, 1  ;;  %v3270_v1 = vrot.slane %v3269_v40, 2  ;;  %v3420_v50 = vrot.slane %v3411_v4, 4 }
 0x1d7   : > { %5241 = vpow2.f32 %v3446_v60  ;;  %v7086_v15 = vadd.f32 %v7003_v49, %v3164_v41  ;;  %v3184_v48 = vmul.f32 %v1270_v46, %v8323_v10  ;;  %v3336_v31 = vmul.f32 %v1383_v24, %v8323_v10 }
 0x1d8   : > { %5243 = vpow2.f32 %v3458_v27  ;;  %v3215_v28 = vsub.f32 %v6860_v37, %v7083_v52  ;;  %v3227_v26 = vsub.f32 %v3197_v44, %v7083_v52  ;;  %v7093_v47 = vadd.f32 %v3348_v59, %v3347_v7  ;;  %v7117_v7 = vpop.f32.mrf.mxu0  ;;  %v7122_v27 = vpop.f32.mrf.mxu1 }
 0x1d9   : > { %v3271_v43 = vadd.f32 %v3270_v1, %v3269_v40  ;;  %v3421_v32 = vadd.f32 %v3420_v50, %v3411_v4  ;;  %v3198_v45 = vrot.slane %v3184_v48, 4  ;;  %v3350_v49 = vrot.slane %v3336_v31, 4 }
 0x1da   : > { %v3220_v63 = vmul.f32 1.442695, %v3215_v28  ;;  %v3232_v2 = vmul.f32 1.442695, %v3227_v26  ;;  %v3260_v35 = vmul.f32 %v1272_v55, %v8323_v10  ;;  %v3412_v22 = vmul.f32 %v1385_v51, %v8323_v10 }
 0x1db   : > { %v3272_v54 = vrot.slane %v3271_v43, 1  ;;  %v3422_v11 = vrot.slane %v3421_v32, 2  ;;  %v3199_v21 = vadd.f32 %v3198_v45, %v3184_v48  ;;  %v3351_v37 = vadd.f32 %v3350_v49, %v3336_v31 }
 0x1dc   : > { %5245 = vpow2.f32 %v3220_v63  ;;  %v3274_v53 = vrot.slane %v3260_v35, 4  ;;  %v3426_v56 = vrot.slane %v3412_v22, 4  ;;  %v3165_v33 = vmul.f32 %v7035_v3, %v7058_v6 }
 0x1dd   : > { %v7105_v23 = vpop.eup %5231  ;;  %5247 = vpow2.f32 %v3232_v2  ;;  %v3273_v8 = vadd.f32 %v3272_v54, %v3271_v43  ;;  %v3423_v46 = vadd.f32 %v3422_v11, %v3421_v32  ;;  %v3200_v20 = vrot.slane %v3199_v21, 2  ;;  %v7142_v54 = vpop.f32.mrf.mxu1 }
 0x1de   : > { %v7107_v0 = vpop.eup %5233  ;;  %v3238_v42 = vmul.f32 %v7105_v23, %v7027_v14  ;;  %v3352_v62 = vrot.slane %v3351_v37, 2  ;;  %v3275_v25 = vadd.f32 %v3274_v53, %v3260_v35  ;;  %v3427_v17 = vadd.f32 %v3426_v56, %v3412_v22 }
 0x1df   : > { %v7111_v13 = vpop.eup %5235  ;;  %v3287_v3 = vmax.f32 %v7083_v52, %v3273_v8  ;;  %v3424_v6 = vrot.slane %v3423_v46, 1  ;;  %v3201_v24 = vadd.f32 %v3200_v20, %v3199_v21  ;;  %v7115_v44 = vadd.f32 %v7039_v38, %v3165_v33  ;;  %v8324_v33 = vld [vmem:[#allocation9_spill] sm:$0xff] }
 0x1e0   : > { %v7119_v40 = vpop.eup %5237  ;;  %v3242_v4 = vadd.f32 %v7107_v0, %v3238_v42  ;;  %v3353_v55 = vadd.f32 %v3352_v62, %v3351_v37  ;;  %v3276_v14 = vrot.slane %v3275_v25, 2  ;;  %v3428_v60 = vrot.slane %v3427_v17, 2 }
 0x1e1   : > { %v3291_v41 = vsub.f32 %v7083_v52, %v3287_v3  ;;  %v3303_v59 = vsub.f32 %v3273_v8, %v3287_v3  ;;  %v7126_v1 = vmax.f32 %v3287_v3, %v7093_v47  ;;  %v3425_v50 = vadd.f32 %v3424_v6, %v3423_v46  ;;  %v7135_v52 = vpop.f32.mrf.mxu0 }
 0x1e2   : > { %v7128_v38 = vpop.eup %5239  ;;  %v3314_v48 = vmul.f32 %v7111_v13, %v3242_v4  ;;  %v3202_v31 = vrot.slane %v3201_v24, 1  ;;  %v3354_v51 = vrot.slane %v3353_v55, 1  ;;  %v3277_v28 = vadd.f32 %v3276_v14, %v3275_v25  ;;  %v8325_v4 = vld [vmem:[#allocation5_spill] sm:$0xff]  ;;  %v7158_v14 = vpop.f32.mrf.mxu1 }
 0x1e3   : > { %v3296_v26 = vmul.f32 1.442695, %v3291_v41  ;;  %v3308_v43 = vmul.f32 1.442695, %v3303_v59  ;;  %v3367_v32 = vsub.f32 %v3287_v3, %v7126_v1  ;;  %v7133_v45 = vmax.f32 %v7126_v1, %v3425_v50  ;;  %v7153_v25 = vpop.f32.mrf.mxu0 }
 0x1e4   : > { %v7137_v49 = vpop.eup %5241  ;;  %v3318_v63 = vadd.f32 %v7119_v40, %v3314_v48  ;;  %v3203_v2 = vadd.f32 %v3202_v31, %v3201_v24  ;;  %v7140_v35 = vadd.f32 %v3354_v51, %v3353_v55  ;;  %v3278_v22 = vrot.slane %v3277_v28, 1 }
 0x1e5   : > { %v7144_v11 = vpop.eup %5243  ;;  %5249 = vpow2.f32 %v3296_v26  ;;  %v3372_v21 = vmul.f32 1.442695, %v3367_v32  ;;  %v3443_v37 = vsub.f32 %v7126_v1, %v7133_v45  ;;  %v3455_v53 = vsub.f32 %v3425_v50, %v7133_v45  ;;  %v7173_v32 = vpop.f32.mrf.mxu0 }
 0x1e6   : > { %v7150_v56 = vmul.f32 %v7128_v38, %v3318_v63  ;;  %5251 = vpow2.f32 %v3308_v43  ;;  %v3212_v8 = vmax.f32 %v8324_v33, %v3203_v2  ;;  %v3279_v46 = vadd.f32 %v3278_v22, %v3277_v28 }
 0x1e7   : > { %5253 = vpow2.f32 %v3372_v21  ;;  %v3448_v20 = vmul.f32 1.442695, %v3443_v37  ;;  %v3460_v42 = vmul.f32 1.442695, %v3455_v53  ;;  %v3429_v62 = vadd.f32 %v3428_v60, %v3427_v17 }
 0x1e8   : > { %v3216_v3 = vsub.f32 %v8324_v33, %v3212_v8  ;;  %v3228_v6 = vsub.f32 %v3203_v2, %v3212_v8  ;;  %v3288_v24 = vmax.f32 %v3212_v8, %v3279_v46  ;;  %v3185_v55 = vmul.f32 %v8325_v4, %v7095_v5  ;;  %v7176_v2 = vpop.f32.mrf.mxu1 }
 0x1e9   : > { %v7160_v41 = vpop.eup %5245  ;;  %5255 = vpow2.f32 %v3448_v20  ;;  %v3430_v59 = vrot.slane %v3429_v62, 1  ;;  %v3337_v50 = vmul.f32 %v8325_v4, %v7099_v36  ;;  %v3261_v17 = vmul.f32 %v8325_v4, %v7103_v39 }
 0x1ea   : > { %v7166_v60 = vpop.eup %5247  ;;  %v3239_v48 = vmul.f32 %v7160_v41, %v7052_v19  ;;  %5257 = vpow2.f32 %v3460_v42  ;;  %v3222_v31 = vmul.f32 1.442695, %v3216_v3  ;;  %v3234_v5 = vmul.f32 1.442695, %v3228_v6 }
 0x1eb   : > { %v3292_v51 = vsub.f32 %v3212_v8, %v3288_v24  ;;  %v3304_v28 = vsub.f32 %v3279_v46, %v3288_v24  ;;  %v7171_v26 = vmax.f32 %v3288_v24, %v7140_v35  ;;  %v3431_v43 = vadd.f32 %v3430_v59, %v3429_v62  ;;  %v7186_v62 = vpop.f32.mrf.mxu0 }
 0x1ec   : > { %v3243_v36 = vadd.f32 %v7166_v60, %v3239_v48  ;;  %5259 = vpow2.f32 %v3222_v31  ;;  %v3204_v39 = vrot.slane %v3185_v55, 4  ;;  %v3356_v63 = vrot.slane %v3337_v50, 4 }
 0x1ed   : > { %5261 = vpow2.f32 %v3234_v5  ;;  %v3298_v19 = vmul.f32 1.442695, %v3292_v51  ;;  %v3310_v22 = vmul.f32 1.442695, %v3304_v28  ;;  %v3368_v21 = vsub.f32 %v3288_v24, %v7171_v26 }
 0x1ee   : > { %v7180_v37 = vmax.f32 %v7171_v26, %v3431_v43  ;;  %v3205_v53 = vadd.f32 %v3204_v39, %v3185_v55  ;;  %v3357_v33 = vadd.f32 %v3356_v63, %v3337_v50  ;;  %v3280_v8 = vrot.slane %v3261_v17, 4  ;;  %v7191_v55 = vpop.f32.mrf.mxu1 }
 0x1ef   : > { %5263 = vpow2.f32 %v3298_v19  ;;  %v3374_v46 = vmul.f32 1.442695, %v3368_v21  ;;  %v3413_v20 = vmul.f32 %v8325_v4, %v7117_v7  ;;  %v3246_v42 = vmul.f32 %v7105_v23, %v7031_v58  ;;  %v7198_v19 = vpop.f32.mrf.mxu0 }
 0x1f0   : > { %5265 = vpow2.f32 %v3310_v22  ;;  %v3444_v3 = vsub.f32 %v7171_v26, %v7180_v37  ;;  %v3456_v6 = vsub.f32 %v3431_v43, %v7180_v37  ;;  %v3206_v24 = vrot.slane %v3205_v53, 2 }
 0x1f1   : > { %5267 = vpow2.f32 %v3374_v46  ;;  %v3358_v59 = vrot.slane %v3357_v33, 2  ;;  %v3281_v50 = vadd.f32 %v3280_v8, %v3261_v17  ;;  %v3432_v48 = vrot.slane %v3413_v20, 4 }
 0x1f2   : > { %v7193_v31 = vpop.eup %5249  ;;  %v3450_v7 = vmul.f32 1.442695, %v3444_v3  ;;  %v3462_v5 = vmul.f32 1.442695, %v3456_v6  ;;  %v3207_v58 = vadd.f32 %v3206_v24, %v3205_v53  ;;  %v3250_v23 = vmul.f32 %v7107_v0, %v7122_v27  ;;  %v7204_v53 = vpop.f32.mrf.mxu1 }
 0x1f3   : > { %v5252_v51 = vpop.eup %5251  ;;  %v3315_v28 = vmul.f32 %v7193_v31, %v3243_v36  ;;  %v3359_v39 = vadd.f32 %v3358_v59, %v3357_v33  ;;  %v3282_v43 = vrot.slane %v3281_v50, 2  ;;  %v3433_v63 = vadd.f32 %v3432_v48, %v3413_v20  ;;  %v7218_v48 = vpop.f32.mrf.mxu0 }
 0x1f4   : > { %v7200_v22 = vpop.eup %5253  ;;  %5269 = vpow2.f32 %v3450_v7  ;;  %v3208_v17 = vrot.slane %v3207_v58, 1  ;;  %v3254_v21 = vadd.f32 %v3250_v23, %v3246_v42  ;;  %v3378_v8 = vsub.f32 %v7044_v57, %v7069_v34 }
 0x1f5   : > { %v3319_v46 = vadd.f32 %v5252_v51, %v3315_v28  ;;  %5271 = vpow2.f32 %v3462_v5  ;;  %v3360_v0 = vrot.slane %v3359_v39, 1  ;;  %v3283_v27 = vadd.f32 %v3282_v43, %v3281_v50  ;;  %v7225_v5 = vpop.f32.mrf.mxu1 }
 0x1f6   : > { %v7206_v36 = vpop.eup %5255  ;;  %v3209_v33 = vadd.f32 %v3208_v17, %v3207_v58  ;;  %v3434_v20 = vrot.slane %v3433_v63, 2  ;;  %v3382_v3 = vmul.f32 1.442695, %v3378_v8  ;;  %v3322_v6 = vmul.f32 %v7111_v13, %v3254_v21 }
 0x1f7   : > { %v7209_v24 = vpop.eup %5257  ;;  %v7212_v42 = vmul.f32 %v7200_v22, %v3319_v46  ;;  %v7214_v59 = vadd.f32 %v3360_v0, %v3359_v39  ;;  %v3284_v57 = vrot.slane %v3283_v27, 1  ;;  %v3326_v34 = vmul.f32 %v7119_v40, %v7142_v54 }
 0x1f8   : > { %v3213_v50 = vmax.f32 %v6984_v61, %v3209_v33  ;;  %v3435_v7 = vadd.f32 %v3434_v20, %v3433_v63  ;;  %5273 = vpow2.f32 %v3382_v3  ;;  %v7223_v13 = vmul.f32 %v7144_v11, %v7153_v25 }
 0x1f9   : > { %v5260_v58 = vpop.eup %5259  ;;  %v3285_v23 = vadd.f32 %v3284_v57, %v3283_v27  ;;  %v3330_v28 = vadd.f32 %v3326_v34, %v3322_v6  ;;  %v3247_v39 = vmul.f32 %v7160_v41, %v7055_v9  ;;  %v3251_v40 = vmul.f32 %v7166_v60, %v7158_v14  ;;  %v7238_v27 = vpop.f32.mrf.mxu0 }
 0x1fa   : > { %v5262_v54 = vpop.eup %5261  ;;  %v3240_v43 = vmul.f32 %v5260_v58, %v7086_v15  ;;  %v3217_v63 = vsub.f32 %v6984_v61, %v3213_v50  ;;  %v3229_v17 = vsub.f32 %v3209_v33, %v3213_v50  ;;  %v3436_v21 = vrot.slane %v3435_v7, 1  ;;  %v7240_v15 = vpop.f32.mrf.mxu1 }
 0x1fb   : > { %v3289_v25 = vmax.f32 %v3213_v50, %v3285_v23  ;;  %v7234_v8 = vmul.f32 %v7128_v38, %v3330_v28  ;;  %v3255_v46 = vadd.f32 %v3251_v40, %v3247_v39  ;;  %v3379_v0 = vsub.f32 %v7093_v47, %v7126_v1  ;;  %v7247_v40 = vpop.f32.mrf.mxu0 }
 0x1fc   : > { %v5264_v9 = vpop.eup %5263  ;;  %v3244_v41 = vadd.f32 %v5262_v54, %v3240_v43  ;;  %v3224_v14 = vmul.f32 1.442695, %v3217_v63  ;;  %v3236_v60 = vmul.f32 1.442695, %v3229_v17  ;;  %v3437_v20 = vadd.f32 %v3436_v21, %v3435_v7  ;;  %v1484_v63 = vpop.f32.mrf.mxu1 }
 0x1fd   : > { %v5266_v61 = vpop.eup %5265  ;;  %v3293_v33 = vsub.f32 %v3213_v50, %v3289_v25  ;;  %v3305_v3 = vsub.f32 %v3285_v23, %v3289_v25  ;;  %v3365_v6 = vmax.f32 %v3289_v25, %v7214_v59  ;;  %v3384_v38 = vmul.f32 1.442695, %v3379_v0 }
 0x1fe   : > { %v7243_v57 = vpop.eup %5267  ;;  %v3316_v34 = vmul.f32 %v5264_v9, %v3244_v41  ;;  %5275 = vpow2.f32 %v3224_v14  ;;  %v3323_v47 = vmul.f32 %v7193_v31, %v3255_v46  ;;  %v3327_v1 = vmul.f32 %v5252_v51, %v7176_v2 }
 0x1ff   : > { %5277 = vpow2.f32 %v3236_v60  ;;  %v3300_v28 = vmul.f32 1.442695, %v3293_v33  ;;  %v3312_v39 = vmul.f32 1.442695, %v3305_v3  ;;  %v3369_v7 = vsub.f32 %v3289_v25, %v3365_v6 }
 0x200   : > { %v3320_v43 = vadd.f32 %v5266_v61, %v3316_v34  ;;  %v7249_v50 = vmax.f32 %v3365_v6, %v3437_v20  ;;  %5279 = vpow2.f32 %v3384_v38  ;;  %v3331_v23 = vadd.f32 %v3327_v1, %v3323_v47  ;;  %v1486_v38 = vpop.f32.mrf.mxu1 }
 0x201   : > { %v7251_v17 = vpop.eup %5269  ;;  %5281 = vpow2.f32 %v3300_v28  ;;  %v3376_v21 = vmul.f32 1.442695, %v3369_v7  ;;  %v7255_v31 = vmul.f32 %v7209_v24, %v7186_v62  ;;  %v3248_v2 = vmul.f32 %v5260_v58, %v7065_v29  ;;  %v1597_v29 = vpop.f32.mrf.mxu0 }
 0x202   : > { %v7258_v51 = vpop.eup %5271  ;;  %v7261_v25 = vmul.f32 %v7243_v57, %v3320_v43  ;;  %5283 = vpow2.f32 %v3312_v39  ;;  %v3445_v46 = vsub.f32 %v3365_v6, %v7249_v50  ;;  %v3457_v0 = vsub.f32 %v3437_v20, %v7249_v50 }
 0x203   : > { %5285 = vpow2.f32 %v3376_v21  ;;  %v7266_v41 = vmul.f32 %v7200_v22, %v3331_v23  ;;  %v3252_v14 = vmul.f32 %v5262_v54, %v7191_v55  ;;  %v3380_v62 = vsub.f32 %v7140_v35, %v7171_v26  ;;  %v1599_v1 = vpop.f32.mrf.mxu0 }
 0x204   : > { %v3452_v58 = vmul.f32 1.442695, %v3445_v46  ;;  %v3464_v60 = vmul.f32 1.442695, %v3457_v0  ;;  %v3328_v33 = vmul.f32 %v5266_v61, %v7204_v53  ;;  %v7274_v3 = vmul.f32 %v7258_v51, %v7218_v48 }
 0x205   : > { %v5274_v20 = vpop.eup %5273  ;;  %v3256_v34 = vadd.f32 %v3252_v14, %v3248_v2  ;;  %v3386_v47 = vmul.f32 1.442695, %v3380_v62  ;;  %v3381_v22 = vsub.f32 %v7214_v59, %v3365_v6  ;;  %v3486_v55 = vmul.f32 %v1484_v63, %v6134_v18  ;;  %v1490_v6 = vpop.f32.mrf.mxu1 }
 0x206   : > { %5287 = vpow2.f32 %v3452_v58  ;;  %v3394_v35 = vadd.f32 %v5274_v20, %v7150_v56  ;;  %v3402_v26 = vmul.f32 %v5274_v20, %v7135_v52  ;;  %v3638_v54 = vmul.f32 %v1597_v29, %v6134_v18 }
 0x207   : > { %5289 = vpow2.f32 %v3464_v60  ;;  %v3324_v53 = vmul.f32 %v5264_v9, %v3256_v34  ;;  %v3388_v61 = vmul.f32 1.442695, %v3381_v22  ;;  %v3490_v48 = vrot.slane %v3486_v55, 4 }
 0x208   : > { %v3406_v28 = vadd.f32 %v3402_v26, %v7234_v8  ;;  %5291 = vpow2.f32 %v3386_v47  ;;  %v3466_v39 = vmul.f32 %v7137_v49, %v3394_v35  ;;  %v3642_v59 = vrot.slane %v3638_v54, 4 }
 0x209   : > { %v3332_v7 = vadd.f32 %v3328_v33, %v3324_v53  ;;  %5293 = vpow2.f32 %v3388_v61  ;;  %v3491_v43 = vadd.f32 %v3490_v48, %v3486_v55  ;;  %v3562_v56 = vmul.f32 %v1486_v38, %v6134_v18 }
 0x20a   : > { %v3474_v52 = vmul.f32 %v7137_v49, %v3406_v28  ;;  %v7286_v23 = vadd.f32 %v7144_v11, %v3466_v39  ;;  %v3643_v9 = vadd.f32 %v3642_v59, %v3638_v54  ;;  %v3714_v63 = vmul.f32 %v1599_v1, %v6134_v18 }
 0x20b   : > { %v5276_v21 = vpop.eup %5275  ;;  %v7290_v8 = vmul.f32 %v7243_v57, %v3332_v7  ;;  %v3492_v2 = vrot.slane %v3491_v43, 2  ;;  %v3566_v46 = vrot.slane %v3562_v56, 4  ;;  %v7293_v0 = vmul.f32 %v6128_v16, %v1490_v6 }
 0x20c   : > { %v5278_v14 = vpop.eup %5277  ;;  %v3241_v62 = vmul.f32 %v5276_v21, %v7115_v44  ;;  %v7297_v49 = vadd.f32 %v7223_v13, %v3474_v52  ;;  %v3249_v11 = vmul.f32 %v5276_v21, %v7071_v30  ;;  %v3644_v29 = vrot.slane %v3643_v9, 2 }
 0x20d   : > { %v5280_v58 = vpop.eup %5279  ;;  %v3253_v60 = vmul.f32 %v5278_v14, %v7225_v5  ;;  %v3493_v33 = vadd.f32 %v3492_v2, %v3491_v43  ;;  %v3567_v57 = vadd.f32 %v3566_v46, %v3562_v56  ;;  %v3718_v38 = vrot.slane %v3714_v63, 4 }
 0x20e   : > { %v5282_v20 = vpop.eup %5281  ;;  %v3245_v34 = vadd.f32 %v5278_v14, %v3241_v62  ;;  %v3395_v47 = vadd.f32 %v5280_v58, %v7212_v42  ;;  %v3403_v22 = vmul.f32 %v5280_v58, %v7173_v32  ;;  %v3645_v55 = vadd.f32 %v3644_v29, %v3643_v9  ;;  %v1603_v14 = vpop.f32.mrf.mxu0 }
 0x20f   : > { %v5284_v44 = vpop.eup %5283  ;;  %v3257_v35 = vadd.f32 %v3253_v60, %v3249_v11  ;;  %v3494_v13 = vrot.slane %v3493_v33, 1  ;;  %v3568_v26 = vrot.slane %v3567_v57, 2  ;;  %v3719_v54 = vadd.f32 %v3718_v38, %v3714_v63 }
 0x210   : > { %v5286_v30 = vpop.eup %5285  ;;  %v3317_v53 = vmul.f32 %v5282_v20, %v3245_v34  ;;  %v3407_v61 = vadd.f32 %v3403_v22, %v7266_v41  ;;  %v3329_v5 = vmul.f32 %v5284_v44, %v7240_v15  ;;  %v3646_v48 = vrot.slane %v3645_v55, 1 }
 0x211   : > { %v3325_v1 = vmul.f32 %v5282_v20, %v3257_v35  ;;  %v3495_v28 = vadd.f32 %v3494_v13, %v3493_v33  ;;  %v3569_v39 = vadd.f32 %v3568_v26, %v3567_v57  ;;  %v3720_v59 = vrot.slane %v3719_v54, 2  ;;  %v1605_v35 = vpop.f32.mrf.mxu0 }
 0x212   : > { %v3321_v42 = vadd.f32 %v5284_v44, %v3317_v53  ;;  %v3475_v32 = vmul.f32 %v7206_v36, %v3407_v61  ;;  %v7306_v6 = vadd.f32 %v3646_v48, %v3645_v55  ;;  %v3467_v7 = vmul.f32 %v7206_v36, %v3395_v47 }
 0x213   : > { %v7309_v43 = vpop.eup %5287  ;;  %v3333_v56 = vadd.f32 %v3329_v5, %v3325_v1  ;;  %v3514_v52 = vmax.f32 %v7075_v12, %v3495_v28  ;;  %v3570_v41 = vrot.slane %v3569_v39, 1  ;;  %v3721_v9 = vadd.f32 %v3720_v59, %v3719_v54 }
 0x214   : > { %v7312_v15 = vpop.eup %5289  ;;  %v3393_v63 = vmul.f32 %v5286_v30, %v3321_v42  ;;  %v7315_v21 = vadd.f32 %v7255_v31, %v3475_v32  ;;  %v7318_v2 = vadd.f32 %v7209_v24, %v3467_v7  ;;  %v3496_v46 = vrot.slane %v7293_v0, 4  ;;  %v1492_v24 = vpop.f32.mrf.mxu1 }
 0x215   : > { %v5292_v36 = vpop.eup %5291  ;;  %v3401_v62 = vmul.f32 %v5286_v30, %v3333_v56  ;;  %v3481_v11 = vmul.f32 %v7312_v15, %v7247_v40  ;;  %v3518_v29 = vsub.f32 %v7075_v12, %v3514_v52  ;;  %v3530_v58 = vsub.f32 %v3495_v28, %v3514_v52 }
 0x216   : > { %v5294_v60 = vpop.eup %5293  ;;  %v3396_v33 = vadd.f32 %v5292_v36, %v7261_v25  ;;  %v3404_v31 = vmul.f32 %v5292_v36, %v7198_v19  ;;  %v3571_v57 = vadd.f32 %v3570_v41, %v3569_v39  ;;  %v3722_v38 = vrot.slane %v3721_v9, 1  ;;  %v1496_v28 = vpop.f32.mrf.mxu1 }
 0x217   : > { %v7326_v20 = vadd.f32 %v5294_v60, %v3393_v63  ;;  %v3405_v34 = vmul.f32 %v5294_v60, %v7238_v27  ;;  %v3522_v47 = vmul.f32 1.442695, %v3518_v29  ;;  %v3534_v22 = vmul.f32 1.442695, %v3530_v58  ;;  %v1609_v39 = vpop.f32.mrf.mxu0 }
 0x218   : > { %v3408_v55 = vadd.f32 %v3404_v31, %v7290_v8  ;;  %v3590_v40 = vmax.f32 %v3514_v52, %v3571_v57  ;;  %v3723_v44 = vadd.f32 %v3722_v38, %v3721_v9  ;;  %v3497_v12 = vadd.f32 %v3496_v46, %v7293_v0 }
 0x219   : > { %v3409_v13 = vadd.f32 %v3405_v34, %v3401_v62  ;;  %5295 = vpow2.f32 %v3522_v47  ;;  %v3639_v19 = vmul.f32 %v6128_v16, %v1603_v14  ;;  %v3563_v25 = vmul.f32 %v6128_v16, %v1492_v24  ;;  %v7351_v29 = vpop.f32.mrf.mxu0 }
 0x21a   : > { %v3476_v26 = vmul.f32 %v7251_v17, %v3408_v55  ;;  %5297 = vpow2.f32 %v3534_v22  ;;  %v3594_v54 = vsub.f32 %v3514_v52, %v3590_v40  ;;  %v3606_v27 = vsub.f32 %v3571_v57, %v3590_v40 }
 0x21b   : > { %v3477_v30 = vmul.f32 %v7309_v43, %v3409_v13  ;;  %v7336_v8 = vmax.f32 %v3590_v40, %v7306_v6  ;;  %v3498_v53 = vrot.slane %v3497_v12, 2  ;;  %v3648_v61 = vrot.slane %v3639_v19, 4 }
 0x21c   : > { %v7339_v0 = vadd.f32 %v7274_v3, %v3476_v26  ;;  %v3598_v5 = vmul.f32 1.442695, %v3594_v54  ;;  %v3610_v48 = vmul.f32 1.442695, %v3606_v27  ;;  %v3572_v1 = vrot.slane %v3563_v25, 4 }
 0x21d   : > { %v7341_v59 = vadd.f32 %v3481_v11, %v3477_v30  ;;  %v3670_v42 = vsub.f32 %v3590_v40, %v7336_v8  ;;  %v7345_v32 = vmax.f32 %v7336_v8, %v3723_v44  ;;  %v3499_v7 = vadd.f32 %v3498_v53, %v3497_v12  ;;  %v1498_v11 = vpop.f32.mrf.mxu1 }
 0x21e   : > { %5299 = vpow2.f32 %v3598_v5  ;;  %v3649_v56 = vadd.f32 %v3648_v61, %v3639_v19  ;;  %v3573_v52 = vadd.f32 %v3572_v1, %v3563_v25  ;;  %v3715_v41 = vmul.f32 %v6128_v16, %v1605_v35 }
 0x21f   : > { %5301 = vpow2.f32 %v3610_v48  ;;  %v3674_v3 = vmul.f32 1.442695, %v3670_v42  ;;  %v3746_v9 = vsub.f32 %v7336_v8, %v7345_v32  ;;  %v3758_v63 = vsub.f32 %v3723_v44, %v7345_v32  ;;  %v7360_v35 = vpop.f32.mrf.mxu1 }
 0x220   : > { %v3500_v46 = vrot.slane %v3499_v7, 1  ;;  %v3650_v14 = vrot.slane %v3649_v56, 2  ;;  %v3574_v36 = vrot.slane %v3573_v52, 2  ;;  %v3724_v62 = vrot.slane %v3715_v41, 4 }
 0x221   : > { %5303 = vpow2.f32 %v3674_v3  ;;  %v3750_v58 = vmul.f32 1.442695, %v3746_v9  ;;  %v3762_v60 = vmul.f32 1.442695, %v3758_v63  ;;  %v3468_v31 = vmul.f32 %v7251_v17, %v3396_v33  ;;  %v7362_v17 = vpop.f32.mrf.mxu0 }
 0x222   : > { %v3501_v57 = vadd.f32 %v3500_v46, %v3499_v7  ;;  %v3651_v38 = vadd.f32 %v3650_v14, %v3649_v56  ;;  %v3575_v24 = vadd.f32 %v3574_v36, %v3573_v52  ;;  %v3725_v34 = vadd.f32 %v3724_v62, %v3715_v41  ;;  %v7374_v56 = vpop.f32.mrf.mxu1 }
 0x223   : > { %5305 = vpow2.f32 %v3750_v58  ;;  %v7355_v47 = vadd.f32 %v7258_v51, %v3468_v31  ;;  %v3488_v22 = vmul.f32 %v1496_v28, %v8323_v10  ;;  %v3640_v55 = vmul.f32 %v1609_v39, %v8323_v10  ;;  %v7376_v52 = vpop.f32.mrf.mxu0 }
 0x224   : > { %5307 = vpow2.f32 %v3762_v60  ;;  %v3515_v40 = vmax.f32 %v7133_v45, %v3501_v57  ;;  %v3652_v44 = vrot.slane %v3651_v38, 1  ;;  %v3576_v12 = vrot.slane %v3575_v24, 1 }
 0x225   : > { %v3726_v33 = vrot.slane %v3725_v34, 2  ;;  %v3502_v13 = vrot.slane %v3488_v22, 4  ;;  %v3654_v19 = vrot.slane %v3640_v55, 4  ;;  %v3564_v25 = vmul.f32 %v1498_v11, %v8323_v10 }
 0x226   : > { %v7365_v51 = vpop.eup %5295  ;;  %v3519_v26 = vsub.f32 %v7133_v45, %v3515_v40  ;;  %v3531_v54 = vsub.f32 %v3501_v57, %v3515_v40  ;;  %v7368_v27 = vadd.f32 %v3652_v44, %v3651_v38  ;;  %v3577_v30 = vadd.f32 %v3576_v12, %v3575_v24  ;;  %v7388_v24 = vpop.f32.mrf.mxu1 }
 0x227   : > { %v7370_v53 = vpop.eup %5297  ;;  %v3542_v61 = vmul.f32 %v7365_v51, %v7286_v23  ;;  %v3727_v5 = vadd.f32 %v3726_v33, %v3725_v34  ;;  %v3503_v48 = vadd.f32 %v3502_v13, %v3488_v22  ;;  %v3655_v1 = vadd.f32 %v3654_v19, %v3640_v55  ;;  %v7390_v34 = vpop.f32.mrf.mxu0 }
 0x228   : > { %v3524_v28 = vmul.f32 1.442695, %v3519_v26  ;;  %v3536_v39 = vmul.f32 1.442695, %v3531_v54  ;;  %v3591_v42 = vmax.f32 %v3515_v40, %v3577_v30  ;;  %v3578_v7 = vrot.slane %v3564_v25, 4 }
 0x229   : > { %v3546_v45 = vadd.f32 %v7370_v53, %v3542_v61  ;;  %v3728_v41 = vrot.slane %v3727_v5, 1  ;;  %v3504_v3 = vrot.slane %v3503_v48, 2  ;;  %v3656_v9 = vrot.slane %v3655_v1, 2 }
 0x22a   : > { %5309 = vpow2.f32 %v3524_v28  ;;  %v3595_v63 = vsub.f32 %v3515_v40, %v3591_v42  ;;  %v3607_v46 = vsub.f32 %v3577_v30, %v3591_v42  ;;  %v7380_v23 = vmax.f32 %v3591_v42, %v7368_v27  ;;  %v7412_v28 = vpop.f32.mrf.mxu0 }
 0x22b   : > { %v7382_v14 = vpop.eup %5299  ;;  %5311 = vpow2.f32 %v3536_v39  ;;  %v3729_v36 = vadd.f32 %v3728_v41, %v3727_v5  ;;  %v3505_v62 = vadd.f32 %v3504_v3, %v3503_v48  ;;  %v3657_v11 = vadd.f32 %v3656_v9, %v3655_v1  ;;  %v7410_v1 = vpop.f32.mrf.mxu1 }
 0x22c   : > { %v7384_v58 = vpop.eup %5301  ;;  %v3618_v60 = vmul.f32 %v7382_v14, %v3546_v45  ;;  %v3600_v31 = vmul.f32 1.442695, %v3595_v63  ;;  %v3612_v57 = vmul.f32 1.442695, %v3607_v46  ;;  %v3671_v38 = vsub.f32 %v3591_v42, %v7380_v23 }
 0x22d   : > { %v7393_v22 = vmax.f32 %v7380_v23, %v3729_v36  ;;  %v3506_v55 = vrot.slane %v3505_v62, 1  ;;  %v3658_v40 = vrot.slane %v3657_v11, 1  ;;  %v3579_v44 = vadd.f32 %v3578_v7, %v3564_v25 }
 0x22e   : > { %v7395_v12 = vpop.eup %5303  ;;  %v3622_v33 = vadd.f32 %v7384_v58, %v3618_v60  ;;  %5313 = vpow2.f32 %v3600_v31  ;;  %v3676_v13 = vmul.f32 1.442695, %v3671_v38  ;;  %v3716_v19 = vmul.f32 %v7351_v29, %v8323_v10 }
 0x22f   : > { %5315 = vpow2.f32 %v3612_v57  ;;  %v3747_v26 = vsub.f32 %v7380_v23, %v7393_v22  ;;  %v3759_v54 = vsub.f32 %v3729_v36, %v7393_v22  ;;  %v3507_v30 = vadd.f32 %v3506_v55, %v3505_v62  ;;  %v7427_v57 = vpop.f32.mrf.mxu1 }
 0x230   : > { %v7403_v61 = vpop.eup %5305  ;;  %v7406_v25 = vmul.f32 %v7395_v12, %v3622_v33  ;;  %5317 = vpow2.f32 %v3676_v13  ;;  %v7408_v5 = vadd.f32 %v3658_v40, %v3657_v11  ;;  %v3580_v48 = vrot.slane %v3579_v44, 2 }
 0x231   : > { %v7414_v29 = vpop.eup %5307  ;;  %v3752_v39 = vmul.f32 1.442695, %v3747_v26  ;;  %v3764_v42 = vmul.f32 1.442695, %v3759_v54  ;;  %v3516_v7 = vmax.f32 %v7180_v37, %v3507_v30  ;;  %v3730_v45 = vrot.slane %v3716_v19, 4 }
 0x232   : > { %v3581_v41 = vadd.f32 %v3580_v48, %v3579_v44  ;;  %v3469_v3 = vmul.f32 %v7309_v43, %v7326_v20  ;;  %v3489_v9 = vmul.f32 %v8325_v4, %v7360_v35  ;;  %v3641_v63 = vmul.f32 %v8325_v4, %v7362_v17  ;;  %v7429_v43 = vpop.f32.mrf.mxu0  ;;  %v7445_v48 = vpop.f32.mrf.mxu1 }
 0x233   : > { %5319 = vpow2.f32 %v3752_v39  ;;  %v3520_v46 = vsub.f32 %v7180_v37, %v3516_v7  ;;  %v3532_v36 = vsub.f32 %v3507_v30, %v3516_v7  ;;  %v3731_v62 = vadd.f32 %v3730_v45, %v3716_v19 }
 0x234   : > { %5321 = vpow2.f32 %v3764_v42  ;;  %v3582_v11 = vrot.slane %v3581_v41, 1  ;;  %v7425_v60 = vadd.f32 %v7312_v15, %v3469_v3  ;;  %v3508_v31 = vrot.slane %v3489_v9, 4 }
 0x235   : > { %v3526_v20 = vmul.f32 1.442695, %v3520_v46  ;;  %v3538_v35 = vmul.f32 1.442695, %v3532_v36  ;;  %v3732_v38 = vrot.slane %v3731_v62, 2  ;;  %v3660_v55 = vrot.slane %v3641_v63, 4 }
 0x236   : > { %v3583_v17 = vadd.f32 %v3582_v11, %v3581_v41  ;;  %v3509_v40 = vadd.f32 %v3508_v31, %v3489_v9  ;;  %v3565_v37 = vmul.f32 %v8325_v4, %v7374_v56  ;;  %v3717_v44 = vmul.f32 %v8325_v4, %v7376_v52  ;;  %v7447_v52 = vpop.f32.mrf.mxu0 }
 0x237   : > { %v7435_v33 = vpop.eup %5309  ;;  %5323 = vpow2.f32 %v3526_v20  ;;  %v3733_v15 = vadd.f32 %v3732_v38, %v3731_v62  ;;  %v3661_v13 = vadd.f32 %v3660_v55, %v3641_v63  ;;  %v7439_v19 = vmul.f32 %v7365_v51, %v7297_v49  ;;  %v7459_v55 = vpop.f32.mrf.mxu1 }
 0x238   : > { %v7441_v26 = vpop.eup %5311  ;;  %v3543_v54 = vmul.f32 %v7435_v33, %v7318_v2  ;;  %5325 = vpow2.f32 %v3538_v35  ;;  %v3592_v30 = vmax.f32 %v3516_v7, %v3583_v17  ;;  %v3510_v56 = vrot.slane %v3509_v40, 2 }
 0x239   : > { %v3734_v39 = vrot.slane %v3733_v15, 1  ;;  %v3662_v42 = vrot.slane %v3661_v13, 2  ;;  %v3584_v45 = vrot.slane %v3565_v37, 4  ;;  %v3736_v41 = vrot.slane %v3717_v44, 4 }
 0x23a   : > { %v3547_v3 = vadd.f32 %v7441_v26, %v3543_v54  ;;  %v3596_v49 = vsub.f32 %v3516_v7, %v3592_v30  ;;  %v3608_v51 = vsub.f32 %v3583_v17, %v3592_v30  ;;  %v7451_v9 = vmax.f32 %v3592_v30, %v7408_v5  ;;  %v7461_v7 = vpop.f32.mrf.mxu0 }
 0x23b   : > { %v7453_v63 = vpop.eup %5313  ;;  %v3735_v2 = vadd.f32 %v3734_v39, %v3733_v15  ;;  %v3511_v46 = vadd.f32 %v3510_v56, %v3509_v40  ;;  %v3663_v36 = vadd.f32 %v3662_v42, %v3661_v13  ;;  %v3585_v62 = vadd.f32 %v3584_v45, %v3565_v37 }
 0x23c   : > { %v7455_v11 = vpop.eup %5315  ;;  %v3619_v31 = vmul.f32 %v7453_v63, %v3547_v3  ;;  %v3602_v20 = vmul.f32 1.442695, %v3596_v49  ;;  %v3614_v35 = vmul.f32 1.442695, %v3608_v51  ;;  %v3672_v38 = vsub.f32 %v3592_v30, %v7451_v9 }
 0x23d   : > { %v7463_v17 = vpop.eup %5317  ;;  %v7466_v54 = vmax.f32 %v7451_v9, %v3735_v2  ;;  %v3512_v40 = vrot.slane %v3511_v46, 1  ;;  %v3664_v15 = vrot.slane %v3663_v36, 1  ;;  %v3586_v37 = vrot.slane %v3585_v62, 2 }
 0x23e   : > { %v3623_v13 = vadd.f32 %v7455_v11, %v3619_v31  ;;  %5327 = vpow2.f32 %v3602_v20  ;;  %v3678_v56 = vmul.f32 1.442695, %v3672_v38  ;;  %v3737_v39 = vadd.f32 %v3736_v41, %v3717_v44  ;;  %v7479_v31 = vpop.f32.mrf.mxu1  ;;  %v7481_v20 = vpop.f32.mrf.mxu0 }
 0x23f   : > { %8326 = vst [vmem:[#allocation9_spill] sm:$0xff] %v7466_v54  ;;  %5329 = vpow2.f32 %v3614_v35  ;;  %v3748_v30 = vsub.f32 %v7451_v9, %v7466_v54  ;;  %v3760_v42 = vsub.f32 %v3735_v2, %v7466_v54  ;;  %v3513_v45 = vadd.f32 %v3512_v40, %v3511_v46 }
 0x240   : > { %v7472_v3 = vpop.eup %5319  ;;  %v7475_v49 = vmul.f32 %v7463_v17, %v3623_v13  ;;  %5331 = vpow2.f32 %v3678_v56  ;;  %v7477_v51 = vadd.f32 %v3664_v15, %v3663_v36  ;;  %v3587_v4 = vadd.f32 %v3586_v37, %v3585_v62  ;;  %v7494_v10 = vpop.f32.mrf.mxu1 }
 0x241   : > { %v7483_v44 = vpop.eup %5321  ;;  %v3754_v41 = vmul.f32 1.442695, %v3748_v30  ;;  %v3766_v35 = vmul.f32 1.442695, %v3760_v42  ;;  %v3517_v2 = vmax.f32 %v7249_v50, %v3513_v45  ;;  %v3738_v46 = vrot.slane %v3737_v39, 2 }
 0x242   : > { %v3588_v38 = vrot.slane %v3587_v4, 1  ;;  %v3554_v40 = vmul.f32 %v7370_v53, %v7388_v24  ;;  %v3682_v36 = vsub.f32 %v7306_v6, %v7336_v8  ;;  %v3630_v62 = vmul.f32 %v7384_v58, %v7410_v1  ;;  %v7496_v53 = vpop.f32.mrf.mxu0 }
 0x243   : > { %5333 = vpow2.f32 %v3754_v41  ;;  %v3521_v15 = vsub.f32 %v7249_v50, %v3517_v2  ;;  %v3533_v37 = vsub.f32 %v3513_v45, %v3517_v2  ;;  %v3739_v13 = vadd.f32 %v3738_v46, %v3737_v39 }
 0x244   : > { %v5324_v56 = vpop.eup %5323  ;;  %5335 = vpow2.f32 %v3766_v35  ;;  %v3589_v30 = vadd.f32 %v3588_v38, %v3587_v4  ;;  %v3558_v42 = vadd.f32 %v3554_v40, %v7439_v19  ;;  %v3686_v54 = vmul.f32 1.442695, %v3682_v36  ;;  %v7507_v38 = vpop.f32.mrf.mxu1 }
 0x245   : > { %v5326_v24 = vpop.eup %5325  ;;  %v3544_v6 = vmul.f32 %v5324_v56, %v7355_v47  ;;  %v3528_v8 = vmul.f32 1.442695, %v3521_v15  ;;  %v3540_v58 = vmul.f32 1.442695, %v3533_v37  ;;  %v3740_v1 = vrot.slane %v3739_v13, 1 }
 0x246   : > { %v3593_v41 = vmax.f32 %v3517_v2, %v3589_v30  ;;  %5337 = vpow2.f32 %v3686_v54  ;;  %v3626_v50 = vmul.f32 %v7382_v14, %v3558_v42  ;;  %v7502_v4 = vmul.f32 %v7414_v29, %v7412_v28  ;;  %v7509_v54 = vpop.f32.mrf.mxu0 }
 0x247   : > { %v3548_v19 = vadd.f32 %v5326_v24, %v3544_v6  ;;  %5339 = vpow2.f32 %v3528_v8  ;;  %v3741_v39 = vadd.f32 %v3740_v1, %v3739_v13  ;;  %v3551_v45 = vmul.f32 %v7435_v33, %v7315_v21 }
 0x248   : > { %5341 = vpow2.f32 %v3540_v58  ;;  %v3597_v35 = vsub.f32 %v3517_v2, %v3593_v41  ;;  %v3609_v47 = vsub.f32 %v3589_v30, %v3593_v41  ;;  %v3669_v46 = vmax.f32 %v3593_v41, %v7477_v51 }
 0x249   : > { %v3634_v14 = vadd.f32 %v3630_v62, %v3626_v50  ;;  %v3555_v28 = vmul.f32 %v7441_v26, %v7427_v57  ;;  %v3683_v40 = vsub.f32 %v7368_v27, %v7380_v23  ;;  %v3631_v36 = vmul.f32 %v7455_v11, %v7445_v48  ;;  %v1710_v48 = vpop.f32.mrf.mxu1  ;;  %v1823_v11 = vpop.f32.mrf.mxu0 }
 0x24a   : > { %v3604_v21 = vmul.f32 1.442695, %v3597_v35  ;;  %v3616_v33 = vmul.f32 1.442695, %v3609_v47  ;;  %v3673_v2 = vsub.f32 %v3593_v41, %v3669_v46  ;;  %v7517_v15 = vmax.f32 %v3669_v46, %v3741_v39 }
 0x24b   : > { %v5328_v37 = vpop.eup %5327  ;;  %v3702_v13 = vmul.f32 %v7395_v12, %v3634_v14  ;;  %v3559_v30 = vadd.f32 %v3555_v28, %v3551_v45  ;;  %v3688_v42 = vmul.f32 1.442695, %v3683_v40  ;;  %v7522_v62 = vmul.f32 %v7483_v44, %v7447_v52 }
 0x24c   : > { %v5330_v57 = vpop.eup %5329  ;;  %v3620_v26 = vmul.f32 %v5328_v37, %v3548_v19  ;;  %5343 = vpow2.f32 %v3604_v21  ;;  %v3680_v27 = vmul.f32 1.442695, %v3673_v2  ;;  %v3749_v23 = vsub.f32 %v3669_v46, %v7517_v15 }
 0x24d   : > { %v5332_v6 = vpop.eup %5331  ;;  %5345 = vpow2.f32 %v3616_v33  ;;  %v3761_v8 = vsub.f32 %v3741_v39, %v7517_v15  ;;  %v3627_v12 = vmul.f32 %v7453_v63, %v3559_v30  ;;  %v3552_v58 = vmul.f32 %v5324_v56, %v7339_v0  ;;  %v1712_v0 = vpop.f32.mrf.mxu1 }
 0x24e   : > { %v3624_v1 = vadd.f32 %v5330_v57, %v3620_v26  ;;  %5347 = vpow2.f32 %v3680_v27  ;;  %v3756_v52 = vmul.f32 1.442695, %v3749_v23  ;;  %v3556_v41 = vmul.f32 %v5326_v24, %v7459_v55  ;;  %v1825_v56 = vpop.f32.mrf.mxu0 }
 0x24f   : > { %v3768_v50 = vmul.f32 1.442695, %v3761_v8  ;;  %5349 = vpow2.f32 %v3688_v42  ;;  %v3635_v19 = vadd.f32 %v3631_v36, %v3627_v12  ;;  %v3684_v45 = vsub.f32 %v7408_v5, %v7451_v9  ;;  %v1716_v8 = vpop.f32.mrf.mxu1 }
 0x250   : > { %v7531_v35 = vpop.eup %5333  ;;  %v7533_v47 = vmul.f32 %v5332_v6, %v3624_v1  ;;  %5351 = vpow2.f32 %v3756_v52  ;;  %v3560_v39 = vadd.f32 %v3556_v41, %v3552_v58  ;;  %v3632_v63 = vmul.f32 %v5330_v57, %v7479_v31 }
 0x251   : > { %v7536_v14 = vpop.eup %5335  ;;  %5353 = vpow2.f32 %v3768_v50  ;;  %v7539_v55 = vmul.f32 %v7463_v17, %v3635_v19  ;;  %v3690_v24 = vmul.f32 1.442695, %v3684_v45  ;;  %v3685_v28 = vsub.f32 %v7477_v51, %v3669_v46  ;;  %v1829_v19 = vpop.f32.mrf.mxu0 }
 0x252   : > { %v3628_v5 = vmul.f32 %v5328_v37, %v3560_v39  ;;  %v7544_v9 = vmul.f32 %v7536_v14, %v7481_v20  ;;  %v3790_v40 = vmul.f32 %v1710_v48, %v6134_v18  ;;  %v3942_v31 = vmul.f32 %v1823_v11, %v6134_v18 }
 0x253   : > { %v5338_v36 = vpop.eup %5337  ;;  %5355 = vpow2.f32 %v3690_v24  ;;  %v3692_v21 = vmul.f32 1.442695, %v3685_v28  ;;  %v3866_v33 = vmul.f32 %v1712_v0, %v6134_v18  ;;  %v4018_v17 = vmul.f32 %v1825_v56, %v6134_v18 }
 0x254   : > { %v5340_v2 = vpop.eup %5339  ;;  %v3698_v30 = vadd.f32 %v5338_v36, %v7406_v25  ;;  %v3706_v51 = vmul.f32 %v5338_v36, %v7390_v34  ;;  %v3636_v46 = vadd.f32 %v3632_v63, %v3628_v5  ;;  %v3794_v37 = vrot.slane %v3790_v40, 4 }
 0x255   : > { %v5342_v20 = vpop.eup %5341  ;;  %v3545_v42 = vmul.f32 %v5340_v2, %v7425_v60  ;;  %v3553_v57 = vmul.f32 %v5340_v2, %v7341_v59  ;;  %5357 = vpow2.f32 %v3692_v21  ;;  %v3946_v26 = vrot.slane %v3942_v31, 4 }
 0x256   : > { %v3710_v27 = vadd.f32 %v3706_v51, %v3702_v13  ;;  %v7554_v23 = vmul.f32 %v5332_v6, %v3636_v46  ;;  %v3557_v48 = vmul.f32 %v5342_v20, %v7494_v10  ;;  %v3770_v11 = vmul.f32 %v7403_v61, %v3698_v30 }
 0x257   : > { %v3549_v25 = vadd.f32 %v5342_v20, %v3545_v42  ;;  %v3795_v12 = vadd.f32 %v3794_v37, %v3790_v40  ;;  %v3947_v34 = vadd.f32 %v3946_v26, %v3942_v31  ;;  %v3870_v58 = vrot.slane %v3866_v33, 4 }
 0x258   : > { %v3778_v1 = vmul.f32 %v7403_v61, %v3710_v27  ;;  %v3561_v52 = vadd.f32 %v3557_v48, %v3553_v57  ;;  %v7560_v60 = vadd.f32 %v7414_v29, %v3770_v11  ;;  %v4022_v59 = vrot.slane %v4018_v17, 4 }
 0x259   : > { %v5344_v41 = vpop.eup %5343  ;;  %v3796_v13 = vrot.slane %v3795_v12, 2  ;;  %v3948_v6 = vrot.slane %v3947_v34, 2  ;;  %v3871_v50 = vadd.f32 %v3870_v58, %v3866_v33  ;;  %v3791_v10 = vmul.f32 %v6128_v16, %v1716_v8 }
 0x25a   : > { %v5346_v45 = vpop.eup %5345  ;;  %v3621_v39 = vmul.f32 %v5344_v41, %v3549_v25  ;;  %v7564_v63 = vadd.f32 %v7502_v4, %v3778_v1  ;;  %v3629_v0 = vmul.f32 %v5344_v41, %v3561_v52  ;;  %v4023_v56 = vadd.f32 %v4022_v59, %v4018_v17 }
 0x25b   : > { %v5348_v61 = vpop.eup %5347  ;;  %v3633_v24 = vmul.f32 %v5346_v45, %v7507_v38  ;;  %v3797_v29 = vadd.f32 %v3796_v13, %v3795_v12  ;;  %v3949_v28 = vadd.f32 %v3948_v6, %v3947_v34  ;;  %v3872_v5 = vrot.slane %v3871_v50, 2  ;;  %v1718_v13 = vpop.f32.mrf.mxu1 }
 0x25c   : > { %v5350_v40 = vpop.eup %5349  ;;  %v3625_v31 = vadd.f32 %v5346_v45, %v3621_v39  ;;  %v4024_v36 = vrot.slane %v4023_v56, 2  ;;  %v3800_v21 = vrot.slane %v3791_v10, 4  ;;  %v3943_v33 = vmul.f32 %v6128_v16, %v1829_v19 }
 0x25d   : > { %v7568_v2 = vpop.eup %5351  ;;  %v3699_v30 = vadd.f32 %v5350_v40, %v7475_v49  ;;  %v3707_v4 = vmul.f32 %v5350_v40, %v7429_v43  ;;  %v3637_v51 = vadd.f32 %v3633_v24, %v3629_v0  ;;  %v3798_v17 = vrot.slane %v3797_v29, 1 }
 0x25e   : > { %v7572_v46 = vpop.eup %5353  ;;  %v3697_v38 = vmul.f32 %v5348_v61, %v3625_v31  ;;  %v3950_v37 = vrot.slane %v3949_v28, 1  ;;  %v3873_v20 = vadd.f32 %v3872_v5, %v3871_v50  ;;  %v4025_v42 = vadd.f32 %v4024_v36, %v4023_v56  ;;  %v1831_v5 = vpop.f32.mrf.mxu0 }
 0x25f   : > { %v3711_v57 = vadd.f32 %v3707_v4, %v7539_v55  ;;  %v3705_v26 = vmul.f32 %v5348_v61, %v3637_v51  ;;  %v3785_v27 = vmul.f32 %v7572_v46, %v7509_v54  ;;  %v3799_v48 = vadd.f32 %v3798_v17, %v3797_v29 }
 0x260   : > { %v5356_v11 = vpop.eup %5355  ;;  %v7577_v8 = vadd.f32 %v3950_v37, %v3949_v28  ;;  %v3874_v49 = vrot.slane %v3873_v20, 1  ;;  %v4026_v43 = vrot.slane %v4025_v42, 1  ;;  %v3771_v25 = vmul.f32 %v7472_v3, %v3699_v30 }
 0x261   : > { %v3779_v12 = vmul.f32 %v7472_v3, %v3711_v57  ;;  %v3700_v34 = vadd.f32 %v5356_v11, %v7533_v47  ;;  %v3708_v58 = vmul.f32 %v5356_v11, %v7461_v7  ;;  %v3818_v55 = vmax.f32 %v7345_v32, %v3799_v48 }
 0x262   : > { %v5358_v1 = vpop.eup %5357  ;;  %v3875_v52 = vadd.f32 %v3874_v49, %v3873_v20  ;;  %v4027_v59 = vadd.f32 %v4026_v43, %v4025_v42  ;;  %v7585_v54 = vadd.f32 %v7483_v44, %v3771_v25  ;;  %v3801_v41 = vadd.f32 %v3800_v21, %v3791_v10  ;;  %v1722_v21 = vpop.f32.mrf.mxu1 }
 0x263   : > { %v7588_v6 = vadd.f32 %v7522_v62, %v3779_v12  ;;  %v3712_v50 = vadd.f32 %v3708_v58, %v7554_v23  ;;  %v7591_v3 = vadd.f32 %v5358_v1, %v3697_v38  ;;  %v3709_v47 = vmul.f32 %v5358_v1, %v7496_v53  ;;  %v1835_v42 = vpop.f32.mrf.mxu0 }
 0x264   : > { %v3822_v7 = vsub.f32 %v7345_v32, %v3818_v55  ;;  %v3834_v19 = vsub.f32 %v3799_v48, %v3818_v55  ;;  %v3894_v45 = vmax.f32 %v3818_v55, %v3875_v52  ;;  %v3802_v39 = vrot.slane %v3801_v41, 2  ;;  %v1724_v11 = vpop.f32.mrf.mxu1 }
 0x265   : > { %v3780_v0 = vmul.f32 %v7531_v35, %v3712_v50  ;;  %v3713_v44 = vadd.f32 %v3709_v47, %v3705_v26  ;;  %v3952_v56 = vrot.slane %v3943_v33, 4  ;;  %v3867_v10 = vmul.f32 %v6128_v16, %v1718_v13  ;;  %v1837_v50 = vpop.f32.mrf.mxu0 }
 0x266   : > { %v3826_v61 = vmul.f32 1.442695, %v3822_v7  ;;  %v3838_v62 = vmul.f32 1.442695, %v3834_v19  ;;  %v3898_v24 = vsub.f32 %v3818_v55, %v3894_v45  ;;  %v3910_v29 = vsub.f32 %v3875_v52, %v3894_v45  ;;  %v7628_v7 = vpop.f32.mrf.mxu1 }
 0x267   : > { %v7598_v23 = vadd.f32 %v7544_v9, %v3780_v0  ;;  %v3781_v53 = vmul.f32 %v7568_v2, %v3713_v44  ;;  %v7602_v32 = vmax.f32 %v3894_v45, %v7577_v8  ;;  %v3803_v28 = vadd.f32 %v3802_v39, %v3801_v41 }
 0x268   : > { %5359 = vpow2.f32 %v3826_v61  ;;  %v3902_v40 = vmul.f32 1.442695, %v3898_v24  ;;  %v3914_v31 = vmul.f32 1.442695, %v3910_v29  ;;  %v3953_v36 = vadd.f32 %v3952_v56, %v3943_v33  ;;  %v7632_v29 = vpop.f32.mrf.mxu0 }
 0x269   : > { %v7604_v30 = vadd.f32 %v3785_v27, %v3781_v53  ;;  %5361 = vpow2.f32 %v3838_v62  ;;  %v3974_v4 = vsub.f32 %v3894_v45, %v7602_v32  ;;  %v7608_v9 = vmax.f32 %v7602_v32, %v4027_v59 }
 0x26a   : > { %5363 = vpow2.f32 %v3902_v40  ;;  %v3804_v51 = vrot.slane %v3803_v28, 1  ;;  %v3954_v17 = vrot.slane %v3953_v36, 2  ;;  %v3876_v38 = vrot.slane %v3867_v10, 4  ;;  %v7636_v40 = vpop.f32.mrf.mxu1 }
 0x26b   : > { %5365 = vpow2.f32 %v3914_v31  ;;  %v3978_v37 = vmul.f32 1.442695, %v3974_v4  ;;  %v4050_v20 = vsub.f32 %v7602_v32, %v7608_v9  ;;  %v4062_v33 = vsub.f32 %v4027_v59, %v7608_v9  ;;  %v8327_v59 = vld [vmem:[#allocation7_spill] sm:$0xff] }
 0x26c   : > { %v3805_v57 = vadd.f32 %v3804_v51, %v3803_v28  ;;  %v3955_v26 = vadd.f32 %v3954_v17, %v3953_v36  ;;  %v3877_v27 = vadd.f32 %v3876_v38, %v3867_v10  ;;  %v4019_v48 = vmul.f32 %v6128_v16, %v1831_v5 }
 0x26d   : > { %5367 = vpow2.f32 %v3978_v37  ;;  %v4054_v49 = vmul.f32 1.442695, %v4050_v20  ;;  %v4066_v43 = vmul.f32 1.442695, %v4062_v33  ;;  %v3772_v25 = vmul.f32 %v7531_v35, %v3700_v34 }
 0x26e   : > { %v7616_v12 = vmax.f32 %v7393_v22, %v3805_v57  ;;  %v3956_v58 = vrot.slane %v3955_v26, 1  ;;  %v3878_v55 = vrot.slane %v3877_v27, 2  ;;  %v4028_v1 = vrot.slane %v4019_v48, 4 }
 0x26f   : > { %5369 = vpow2.f32 %v4054_v49  ;;  %v7619_v52 = vadd.f32 %v7536_v14, %v3772_v25  ;;  %v3792_v41 = vmul.f32 %v1722_v21, %v8327_v59  ;;  %v3944_v13 = vmul.f32 %v1835_v42, %v8327_v59 }
 0x270   : > { %5371 = vpow2.f32 %v4066_v43  ;;  %v3823_v47 = vsub.f32 %v7393_v22, %v7616_v12  ;;  %v3835_v35 = vsub.f32 %v3805_v57, %v7616_v12  ;;  %v7626_v34 = vadd.f32 %v3956_v58, %v3955_v26  ;;  %v7650_v26 = vpop.f32.mrf.mxu0  ;;  %v7655_v43 = vpop.f32.mrf.mxu1 }
 0x271   : > { %v3879_v19 = vadd.f32 %v3878_v55, %v3877_v27  ;;  %v4029_v45 = vadd.f32 %v4028_v1, %v4019_v48  ;;  %v3806_v39 = vrot.slane %v3792_v41, 4  ;;  %v3958_v14 = vrot.slane %v3944_v13, 4 }
 0x272   : > { %v3828_v0 = vmul.f32 1.442695, %v3823_v47  ;;  %v3840_v44 = vmul.f32 1.442695, %v3835_v35  ;;  %v3868_v56 = vmul.f32 %v1724_v11, %v8327_v59  ;;  %v4020_v10 = vmul.f32 %v1837_v50, %v8327_v59 }
 0x273   : > { %v3880_v61 = vrot.slane %v3879_v19, 1  ;;  %v4030_v62 = vrot.slane %v4029_v45, 2  ;;  %v3807_v24 = vadd.f32 %v3806_v39, %v3792_v41  ;;  %v3959_v22 = vadd.f32 %v3958_v14, %v3944_v13 }
 0x274   : > { %5373 = vpow2.f32 %v3828_v0  ;;  %v3882_v53 = vrot.slane %v3868_v56, 4  ;;  %v4034_v28 = vrot.slane %v4020_v10, 4  ;;  %v3773_v5 = vmul.f32 %v7568_v2, %v7591_v3 }
 0x275   : > { %v7638_v31 = vpop.eup %5359  ;;  %5375 = vpow2.f32 %v3840_v44  ;;  %v3881_v36 = vadd.f32 %v3880_v61, %v3879_v19  ;;  %v4031_v21 = vadd.f32 %v4030_v62, %v4029_v45  ;;  %v3808_v4 = vrot.slane %v3807_v24, 2  ;;  %v7675_v61 = vpop.f32.mrf.mxu1 }
 0x276   : > { %v7640_v51 = vpop.eup %5361  ;;  %v3846_v17 = vmul.f32 %v7638_v31, %v7560_v60  ;;  %v3960_v38 = vrot.slane %v3959_v22, 2  ;;  %v3883_v37 = vadd.f32 %v3882_v53, %v3868_v56  ;;  %v4035_v20 = vadd.f32 %v4034_v28, %v4020_v10 }
 0x277   : > { %v7644_v33 = vpop.eup %5363  ;;  %v3895_v2 = vmax.f32 %v7616_v12, %v3881_v36  ;;  %v4032_v3 = vrot.slane %v4031_v21, 1  ;;  %v3809_v42 = vadd.f32 %v3808_v4, %v3807_v24  ;;  %v7648_v57 = vadd.f32 %v7572_v46, %v3773_v5  ;;  %v8328_v5 = vld [vmem:[#allocation9_spill] sm:$0xff] }
 0x278   : > { %v7652_v27 = vpop.eup %5365  ;;  %v3850_v48 = vadd.f32 %v7640_v51, %v3846_v17  ;;  %v3961_v11 = vadd.f32 %v3960_v38, %v3959_v22  ;;  %v3884_v60 = vrot.slane %v3883_v37, 2  ;;  %v4036_v49 = vrot.slane %v4035_v20, 2 }
 0x279   : > { %v3899_v25 = vsub.f32 %v7616_v12, %v3895_v2  ;;  %v3911_v58 = vsub.f32 %v3881_v36, %v3895_v2  ;;  %v7659_v55 = vmax.f32 %v3895_v2, %v7626_v34  ;;  %v4033_v1 = vadd.f32 %v4032_v3, %v4031_v21  ;;  %v7668_v12 = vpop.f32.mrf.mxu0 }
 0x27a   : > { %v7661_v46 = vpop.eup %5367  ;;  %v3922_v41 = vmul.f32 %v7644_v33, %v3850_v48  ;;  %v3810_v13 = vrot.slane %v3809_v42, 1  ;;  %v3962_v50 = vrot.slane %v3961_v11, 1  ;;  %v3885_v47 = vadd.f32 %v3884_v60, %v3883_v37  ;;  %v8329_v48 = vld [vmem:[#allocation5_spill] sm:$0xff]  ;;  %v7691_v60 = vpop.f32.mrf.mxu1 }
 0x27b   : > { %v3904_v35 = vmul.f32 1.442695, %v3899_v25  ;;  %v3916_v19 = vmul.f32 1.442695, %v3911_v58  ;;  %v3975_v45 = vsub.f32 %v3895_v2, %v7659_v55  ;;  %v7666_v39 = vmax.f32 %v7659_v55, %v4033_v1  ;;  %v7686_v37 = vpop.f32.mrf.mxu0 }
 0x27c   : > { %v7670_v14 = vpop.eup %5369  ;;  %v3926_v0 = vadd.f32 %v7652_v27, %v3922_v41  ;;  %v3811_v44 = vadd.f32 %v3810_v13, %v3809_v42  ;;  %v7673_v56 = vadd.f32 %v3962_v50, %v3961_v11  ;;  %v3886_v10 = vrot.slane %v3885_v47, 1 }
 0x27d   : > { %v7677_v62 = vpop.eup %5371  ;;  %5377 = vpow2.f32 %v3904_v35  ;;  %v3980_v24 = vmul.f32 1.442695, %v3975_v45  ;;  %v4051_v22 = vsub.f32 %v7659_v55, %v7666_v39  ;;  %v4063_v53 = vsub.f32 %v4033_v1, %v7666_v39  ;;  %v7706_v45 = vpop.f32.mrf.mxu0 }
 0x27e   : > { %v7683_v28 = vmul.f32 %v7661_v46, %v3926_v0  ;;  %5379 = vpow2.f32 %v3916_v19  ;;  %v3820_v36 = vmax.f32 %v8328_v5, %v3811_v44  ;;  %v3887_v21 = vadd.f32 %v3886_v10, %v3885_v47 }
 0x27f   : > { %5381 = vpow2.f32 %v3980_v24  ;;  %v4056_v4 = vmul.f32 1.442695, %v4051_v22  ;;  %v4068_v17 = vmul.f32 1.442695, %v4063_v53  ;;  %v4037_v38 = vadd.f32 %v4036_v49, %v4035_v20 }
 0x280   : > { %v3824_v2 = vsub.f32 %v8328_v5, %v3820_v36  ;;  %v3836_v3 = vsub.f32 %v3811_v44, %v3820_v36  ;;  %v3896_v42 = vmax.f32 %v3820_v36, %v3887_v21  ;;  %v3793_v11 = vmul.f32 %v8329_v48, %v7628_v7  ;;  %v7709_v44 = vpop.f32.mrf.mxu1 }
 0x281   : > { %v7693_v25 = vpop.eup %5373  ;;  %5383 = vpow2.f32 %v4056_v4  ;;  %v4038_v58 = vrot.slane %v4037_v38, 1  ;;  %v3945_v1 = vmul.f32 %v8329_v48, %v7632_v29  ;;  %v3869_v20 = vmul.f32 %v8329_v48, %v7636_v40 }
 0x282   : > { %v7699_v49 = vpop.eup %5375  ;;  %v3847_v41 = vmul.f32 %v7693_v25, %v7585_v54  ;;  %5385 = vpow2.f32 %v4068_v17  ;;  %v3830_v13 = vmul.f32 1.442695, %v3824_v2  ;;  %v3842_v7 = vmul.f32 1.442695, %v3836_v3 }
 0x283   : > { %v3900_v50 = vsub.f32 %v3820_v36, %v3896_v42  ;;  %v3912_v47 = vsub.f32 %v3887_v21, %v3896_v42  ;;  %v7704_v35 = vmax.f32 %v3896_v42, %v7673_v56  ;;  %v4039_v19 = vadd.f32 %v4038_v58, %v4037_v38  ;;  %v7719_v38 = vpop.f32.mrf.mxu0 }
 0x284   : > { %v3851_v29 = vadd.f32 %v7699_v49, %v3847_v41  ;;  %5387 = vpow2.f32 %v3830_v13  ;;  %v3812_v40 = vrot.slane %v3793_v11, 4  ;;  %v3964_v0 = vrot.slane %v3945_v1, 4 }
 0x285   : > { %5389 = vpow2.f32 %v3842_v7  ;;  %v3906_v54 = vmul.f32 1.442695, %v3900_v50  ;;  %v3918_v10 = vmul.f32 1.442695, %v3912_v47  ;;  %v3976_v24 = vsub.f32 %v3896_v42, %v7704_v35 }
 0x286   : > { %v7713_v22 = vmax.f32 %v7704_v35, %v4039_v19  ;;  %v3813_v53 = vadd.f32 %v3812_v40, %v3793_v11  ;;  %v3965_v5 = vadd.f32 %v3964_v0, %v3945_v1  ;;  %v3888_v36 = vrot.slane %v3869_v20, 4  ;;  %v7724_v11 = vpop.f32.mrf.mxu1 }
 0x287   : > { %5391 = vpow2.f32 %v3906_v54  ;;  %v3982_v21 = vmul.f32 1.442695, %v3976_v24  ;;  %v4021_v4 = vmul.f32 %v8329_v48, %v7650_v26  ;;  %v3854_v17 = vmul.f32 %v7638_v31, %v7564_v63  ;;  %v7731_v54 = vpop.f32.mrf.mxu0 }
 0x288   : > { %5393 = vpow2.f32 %v3918_v10  ;;  %v4052_v2 = vsub.f32 %v7704_v35, %v7713_v22  ;;  %v4064_v3 = vsub.f32 %v4039_v19, %v7713_v22  ;;  %v3814_v42 = vrot.slane %v3813_v53, 2 }
 0x289   : > { %5395 = vpow2.f32 %v3982_v21  ;;  %v3966_v58 = vrot.slane %v3965_v5, 2  ;;  %v3889_v1 = vadd.f32 %v3888_v36, %v3869_v20  ;;  %v4040_v41 = vrot.slane %v4021_v4, 4 }
 0x28a   : > { %v7726_v13 = vpop.eup %5377  ;;  %v4058_v26 = vmul.f32 1.442695, %v4052_v2  ;;  %v4070_v7 = vmul.f32 1.442695, %v4064_v3  ;;  %v3815_v63 = vadd.f32 %v3814_v42, %v3813_v53  ;;  %v3858_v31 = vmul.f32 %v7640_v51, %v7655_v43  ;;  %v7737_v53 = vpop.f32.mrf.mxu1 }
 0x28b   : > { %v5380_v50 = vpop.eup %5379  ;;  %v3923_v47 = vmul.f32 %v7726_v13, %v3851_v29  ;;  %v3967_v40 = vadd.f32 %v3966_v58, %v3965_v5  ;;  %v3890_v19 = vrot.slane %v3889_v1, 2  ;;  %v4041_v0 = vadd.f32 %v4040_v41, %v4021_v4  ;;  %v7751_v41 = vpop.f32.mrf.mxu0 }
 0x28c   : > { %v7733_v10 = vpop.eup %5381  ;;  %5397 = vpow2.f32 %v4058_v26  ;;  %v3816_v20 = vrot.slane %v3815_v63, 1  ;;  %v3862_v24 = vadd.f32 %v3858_v31, %v3854_v17  ;;  %v3986_v36 = vsub.f32 %v7577_v8, %v7602_v32 }
 0x28d   : > { %v3927_v21 = vadd.f32 %v5380_v50, %v3923_v47  ;;  %5399 = vpow2.f32 %v4070_v7  ;;  %v3968_v51 = vrot.slane %v3967_v40, 1  ;;  %v3891_v43 = vadd.f32 %v3890_v19, %v3889_v1  ;;  %v7758_v7 = vpop.f32.mrf.mxu1 }
 0x28e   : > { %v7739_v29 = vpop.eup %5383  ;;  %v3817_v5 = vadd.f32 %v3816_v20, %v3815_v63  ;;  %v4042_v4 = vrot.slane %v4041_v0, 2  ;;  %v3990_v2 = vmul.f32 1.442695, %v3986_v36  ;;  %v3930_v3 = vmul.f32 %v7644_v33, %v3862_v24 }
 0x28f   : > { %v7742_v42 = vpop.eup %5385  ;;  %v7745_v17 = vmul.f32 %v7733_v10, %v3927_v21  ;;  %v7747_v58 = vadd.f32 %v3968_v51, %v3967_v40  ;;  %v3892_v8 = vrot.slane %v3891_v43, 1  ;;  %v3934_v32 = vmul.f32 %v7652_v27, %v7675_v61 }
 0x290   : > { %v3821_v1 = vmax.f32 %v7517_v15, %v3817_v5  ;;  %v4043_v26 = vadd.f32 %v4042_v4, %v4041_v0  ;;  %5401 = vpow2.f32 %v3990_v2  ;;  %v7756_v33 = vmul.f32 %v7677_v62, %v7686_v37 }
 0x291   : > { %v5388_v63 = vpop.eup %5387  ;;  %v3893_v31 = vadd.f32 %v3892_v8, %v3891_v43  ;;  %v3938_v47 = vadd.f32 %v3934_v32, %v3930_v3  ;;  %v3855_v40 = vmul.f32 %v7693_v25, %v7588_v6  ;;  %v3859_v27 = vmul.f32 %v7699_v49, %v7691_v60  ;;  %v7771_v43 = vpop.f32.mrf.mxu0 }
 0x292   : > { %v5390_v61 = vpop.eup %5389  ;;  %v3848_v19 = vmul.f32 %v5388_v63, %v7619_v52  ;;  %v3825_v0 = vsub.f32 %v7517_v15, %v3821_v1  ;;  %v3837_v20 = vsub.f32 %v3817_v5, %v3821_v1  ;;  %v4044_v24 = vrot.slane %v4043_v26, 1  ;;  %v7773_v52 = vpop.f32.mrf.mxu1 }
 0x293   : > { %v3897_v37 = vmax.f32 %v3821_v1, %v3893_v31  ;;  %v7767_v36 = vmul.f32 %v7661_v46, %v3938_v47  ;;  %v3863_v21 = vadd.f32 %v3859_v27, %v3855_v40  ;;  %v3987_v51 = vsub.f32 %v7626_v34, %v7659_v55  ;;  %v7780_v27 = vpop.f32.mrf.mxu0 }
 0x294   : > { %v5392_v6 = vpop.eup %5391  ;;  %v3852_v25 = vadd.f32 %v5390_v61, %v3848_v19  ;;  %v3832_v60 = vmul.f32 1.442695, %v3825_v0  ;;  %v3844_v49 = vmul.f32 1.442695, %v3837_v20  ;;  %v4045_v4 = vadd.f32 %v4044_v24, %v4043_v26  ;;  %v1936_v0 = vpop.f32.mrf.mxu1 }
 0x295   : > { %v5394_v15 = vpop.eup %5393  ;;  %v3901_v5 = vsub.f32 %v3821_v1, %v3897_v37  ;;  %v3913_v2 = vsub.f32 %v3893_v31, %v3897_v37  ;;  %v3973_v3 = vmax.f32 %v3897_v37, %v7747_v58  ;;  %v3992_v46 = vmul.f32 1.442695, %v3987_v51 }
 0x296   : > { %v7776_v8 = vpop.eup %5395  ;;  %v3924_v32 = vmul.f32 %v5392_v6, %v3852_v25  ;;  %5403 = vpow2.f32 %v3832_v60  ;;  %v3931_v34 = vmul.f32 %v7726_v13, %v3863_v21  ;;  %v3935_v55 = vmul.f32 %v5380_v50, %v7709_v44 }
 0x297   : > { %5405 = vpow2.f32 %v3844_v49  ;;  %v3908_v47 = vmul.f32 1.442695, %v3901_v5  ;;  %v3920_v40 = vmul.f32 1.442695, %v3913_v2  ;;  %v3977_v26 = vsub.f32 %v3897_v37, %v3973_v3 }
 0x298   : > { %v3928_v19 = vadd.f32 %v5394_v15, %v3924_v32  ;;  %v7782_v1 = vmax.f32 %v3973_v3, %v4045_v4  ;;  %5407 = vpow2.f32 %v3992_v46  ;;  %v3939_v31 = vadd.f32 %v3935_v55, %v3931_v34  ;;  %v1938_v46 = vpop.f32.mrf.mxu1 }
 0x299   : > { %v7784_v20 = vpop.eup %5397  ;;  %5409 = vpow2.f32 %v3908_v47  ;;  %v3984_v24 = vmul.f32 1.442695, %v3977_v26  ;;  %v7788_v13 = vmul.f32 %v7742_v42, %v7719_v38  ;;  %v3856_v44 = vmul.f32 %v5388_v63, %v7598_v23  ;;  %v2049_v23 = vpop.f32.mrf.mxu0 }
 0x29a   : > { %v7791_v50 = vpop.eup %5399  ;;  %v7794_v37 = vmul.f32 %v7776_v8, %v3928_v19  ;;  %5411 = vpow2.f32 %v3920_v40  ;;  %v4053_v21 = vsub.f32 %v3973_v3, %v7782_v1  ;;  %v4065_v51 = vsub.f32 %v4045_v4, %v7782_v1 }
 0x29b   : > { %5413 = vpow2.f32 %v3984_v24  ;;  %v7799_v25 = vmul.f32 %v7733_v10, %v3939_v31  ;;  %v3860_v60 = vmul.f32 %v5390_v61, %v7724_v11  ;;  %v3988_v38 = vsub.f32 %v7673_v56, %v7704_v35  ;;  %v2051_v55 = vpop.f32.mrf.mxu0 }
 0x29c   : > { %v4060_v63 = vmul.f32 1.442695, %v4053_v21  ;;  %v4072_v49 = vmul.f32 1.442695, %v4065_v51  ;;  %v3936_v5 = vmul.f32 %v5394_v15, %v7737_v53  ;;  %v7807_v2 = vmul.f32 %v7791_v50, %v7751_v41 }
 0x29d   : > { %v5402_v4 = vpop.eup %5401  ;;  %v3864_v32 = vadd.f32 %v3860_v60, %v3856_v44  ;;  %v3994_v34 = vmul.f32 1.442695, %v3988_v38  ;;  %v3989_v10 = vsub.f32 %v7747_v58, %v3973_v3  ;;  %v4094_v11 = vmul.f32 %v1936_v0, %v6134_v18  ;;  %v1942_v3 = vpop.f32.mrf.mxu1 }
 0x29e   : > { %5415 = vpow2.f32 %v4060_v63  ;;  %v4002_v56 = vadd.f32 %v5402_v4, %v7683_v28  ;;  %v4010_v35 = vmul.f32 %v5402_v4, %v7668_v12  ;;  %v4246_v61 = vmul.f32 %v2049_v23, %v6134_v18 }
 0x29f   : > { %5417 = vpow2.f32 %v4072_v49  ;;  %v3932_v53 = vmul.f32 %v5392_v6, %v3864_v32  ;;  %v3996_v15 = vmul.f32 1.442695, %v3989_v10  ;;  %v4098_v41 = vrot.slane %v4094_v11, 4 }
 0x2a0   : > { %v4014_v47 = vadd.f32 %v4010_v35, %v7767_v36  ;;  %5419 = vpow2.f32 %v3994_v34  ;;  %v4074_v40 = vmul.f32 %v7670_v14, %v4002_v56  ;;  %v4250_v58 = vrot.slane %v4246_v61, 4 }
 0x2a1   : > { %v3940_v26 = vadd.f32 %v3936_v5, %v3932_v53  ;;  %5421 = vpow2.f32 %v3996_v15  ;;  %v4099_v19 = vadd.f32 %v4098_v41, %v4094_v11  ;;  %v4170_v28 = vmul.f32 %v1938_v46, %v6134_v18 }
 0x2a2   : > { %v4082_v12 = vmul.f32 %v7670_v14, %v4014_v47  ;;  %v7819_v31 = vadd.f32 %v7677_v62, %v4074_v40  ;;  %v4251_v6 = vadd.f32 %v4250_v58, %v4246_v61  ;;  %v4322_v0 = vmul.f32 %v2051_v55, %v6134_v18 }
 0x2a3   : > { %v5404_v24 = vpop.eup %5403  ;;  %v7823_v36 = vmul.f32 %v7776_v8, %v3940_v26  ;;  %v4100_v44 = vrot.slane %v4099_v19, 2  ;;  %v4174_v21 = vrot.slane %v4170_v28, 4  ;;  %v7826_v51 = vmul.f32 %v6128_v16, %v1942_v3 }
 0x2a4   : > { %v5406_v60 = vpop.eup %5405  ;;  %v3849_v38 = vmul.f32 %v5404_v24, %v7648_v57  ;;  %v7830_v14 = vadd.f32 %v7756_v33, %v4082_v12  ;;  %v3857_v62 = vmul.f32 %v5404_v24, %v7604_v30  ;;  %v4252_v23 = vrot.slane %v4251_v6, 2 }
 0x2a5   : > { %v5408_v63 = vpop.eup %5407  ;;  %v3861_v49 = vmul.f32 %v5406_v60, %v7758_v7  ;;  %v4101_v5 = vadd.f32 %v4100_v44, %v4099_v19  ;;  %v4175_v8 = vadd.f32 %v4174_v21, %v4170_v28  ;;  %v4326_v46 = vrot.slane %v4322_v0, 4 }
 0x2a6   : > { %v5410_v4 = vpop.eup %5409  ;;  %v3853_v32 = vadd.f32 %v5406_v60, %v3849_v38  ;;  %v4003_v34 = vadd.f32 %v5408_v63, %v7745_v17  ;;  %v4011_v10 = vmul.f32 %v5408_v63, %v7706_v45  ;;  %v4253_v11 = vadd.f32 %v4252_v23, %v4251_v6  ;;  %v2055_v60 = vpop.f32.mrf.mxu0 }
 0x2a7   : > { %v5412_v57 = vpop.eup %5411  ;;  %v3865_v56 = vadd.f32 %v3861_v49, %v3857_v62  ;;  %v4102_v33 = vrot.slane %v4101_v5, 1  ;;  %v4176_v35 = vrot.slane %v4175_v8, 2  ;;  %v4327_v61 = vadd.f32 %v4326_v46, %v4322_v0 }
 0x2a8   : > { %v5414_v30 = vpop.eup %5413  ;;  %v3925_v53 = vmul.f32 %v5410_v4, %v3853_v32  ;;  %v4015_v15 = vadd.f32 %v4011_v10, %v7799_v25  ;;  %v3937_v7 = vmul.f32 %v5412_v57, %v7773_v52  ;;  %v4254_v41 = vrot.slane %v4253_v11, 1 }
 0x2a9   : > { %v3933_v55 = vmul.f32 %v5410_v4, %v3865_v56  ;;  %v4103_v47 = vadd.f32 %v4102_v33, %v4101_v5  ;;  %v4177_v40 = vadd.f32 %v4176_v35, %v4175_v8  ;;  %v4328_v58 = vrot.slane %v4327_v61, 2  ;;  %v2057_v56 = vpop.f32.mrf.mxu0 }
 0x2aa   : > { %v3929_v17 = vadd.f32 %v5412_v57, %v3925_v53  ;;  %v4083_v45 = vmul.f32 %v7739_v29, %v4015_v15  ;;  %v7839_v3 = vadd.f32 %v4254_v41, %v4253_v11  ;;  %v4075_v26 = vmul.f32 %v7739_v29, %v4003_v34 }
 0x2ab   : > { %v7842_v19 = vpop.eup %5415  ;;  %v3941_v28 = vadd.f32 %v3937_v7, %v3933_v55  ;;  %v4122_v12 = vmax.f32 %v7608_v9, %v4103_v47  ;;  %v4178_v25 = vrot.slane %v4177_v40, 1  ;;  %v4329_v6 = vadd.f32 %v4328_v58, %v4327_v61 }
 0x2ac   : > { %v7845_v52 = vpop.eup %5417  ;;  %v4001_v0 = vmul.f32 %v5414_v30, %v3929_v17  ;;  %v7848_v24 = vadd.f32 %v7788_v13, %v4083_v45  ;;  %v7851_v44 = vadd.f32 %v7742_v42, %v4075_v26  ;;  %v4104_v21 = vrot.slane %v7826_v51, 4  ;;  %v1944_v42 = vpop.f32.mrf.mxu1 }
 0x2ad   : > { %v5420_v29 = vpop.eup %5419  ;;  %v4009_v38 = vmul.f32 %v5414_v30, %v3941_v28  ;;  %v4089_v62 = vmul.f32 %v7845_v52, %v7780_v27  ;;  %v4126_v23 = vsub.f32 %v7608_v9, %v4122_v12  ;;  %v4138_v63 = vsub.f32 %v4103_v47, %v4122_v12 }
 0x2ae   : > { %v5422_v49 = vpop.eup %5421  ;;  %v4004_v5 = vadd.f32 %v5420_v29, %v7794_v37  ;;  %v4012_v13 = vmul.f32 %v5420_v29, %v7731_v54  ;;  %v4179_v8 = vadd.f32 %v4178_v25, %v4177_v40  ;;  %v4330_v46 = vrot.slane %v4329_v6, 1  ;;  %v1948_v47 = vpop.f32.mrf.mxu1 }
 0x2af   : > { %v7859_v4 = vadd.f32 %v5422_v49, %v4001_v0  ;;  %v4013_v32 = vmul.f32 %v5422_v49, %v7771_v43  ;;  %v4130_v34 = vmul.f32 1.442695, %v4126_v23  ;;  %v4142_v10 = vmul.f32 1.442695, %v4138_v63  ;;  %v2061_v40 = vpop.f32.mrf.mxu0 }
 0x2b0   : > { %v4016_v11 = vadd.f32 %v4012_v13, %v7823_v36  ;;  %v4198_v27 = vmax.f32 %v4122_v12, %v4179_v8  ;;  %v4331_v57 = vadd.f32 %v4330_v46, %v4329_v6  ;;  %v4105_v9 = vadd.f32 %v4104_v21, %v7826_v51 }
 0x2b1   : > { %v4017_v33 = vadd.f32 %v4013_v32, %v4009_v38  ;;  %5423 = vpow2.f32 %v4130_v34  ;;  %v4247_v54 = vmul.f32 %v6128_v16, %v2055_v60  ;;  %v4171_v37 = vmul.f32 %v6128_v16, %v1944_v42  ;;  %v7884_v23 = vpop.f32.mrf.mxu0 }
 0x2b2   : > { %v4084_v35 = vmul.f32 %v7784_v20, %v4016_v11  ;;  %5425 = vpow2.f32 %v4142_v10  ;;  %v4202_v61 = vsub.f32 %v4122_v12, %v4198_v27  ;;  %v4214_v43 = vsub.f32 %v4179_v8, %v4198_v27 }
 0x2b3   : > { %v4085_v30 = vmul.f32 %v7842_v19, %v4017_v33  ;;  %v7869_v36 = vmax.f32 %v4198_v27, %v7839_v3  ;;  %v4106_v53 = vrot.slane %v4105_v9, 2  ;;  %v4256_v15 = vrot.slane %v4247_v54, 4 }
 0x2b4   : > { %v7872_v51 = vadd.f32 %v7807_v2, %v4084_v35  ;;  %v4206_v7 = vmul.f32 1.442695, %v4202_v61  ;;  %v4218_v41 = vmul.f32 1.442695, %v4214_v43  ;;  %v4180_v55 = vrot.slane %v4171_v37, 4 }
 0x2b5   : > { %v7874_v58 = vadd.f32 %v4089_v62, %v4085_v30  ;;  %v4278_v17 = vsub.f32 %v4198_v27, %v7869_v36  ;;  %v7878_v45 = vmax.f32 %v7869_v36, %v4331_v57  ;;  %v4107_v26 = vadd.f32 %v4106_v53, %v4105_v9  ;;  %v1950_v62 = vpop.f32.mrf.mxu1 }
 0x2b6   : > { %5427 = vpow2.f32 %v4206_v7  ;;  %v4257_v28 = vadd.f32 %v4256_v15, %v4247_v54  ;;  %v4181_v12 = vadd.f32 %v4180_v55, %v4171_v37  ;;  %v4323_v25 = vmul.f32 %v6128_v16, %v2057_v56 }
 0x2b7   : > { %5429 = vpow2.f32 %v4218_v41  ;;  %v4282_v2 = vmul.f32 1.442695, %v4278_v17  ;;  %v4354_v6 = vsub.f32 %v7869_v36, %v7878_v45  ;;  %v4366_v0 = vsub.f32 %v4331_v57, %v7878_v45  ;;  %v7893_v56 = vpop.f32.mrf.mxu1 }
 0x2b8   : > { %v4108_v21 = vrot.slane %v4107_v26, 1  ;;  %v4258_v60 = vrot.slane %v4257_v28, 2  ;;  %v4182_v29 = vrot.slane %v4181_v12, 2  ;;  %v4332_v38 = vrot.slane %v4323_v25, 4 }
 0x2b9   : > { %5431 = vpow2.f32 %v4282_v2  ;;  %v4358_v63 = vmul.f32 1.442695, %v4354_v6  ;;  %v4370_v49 = vmul.f32 1.442695, %v4366_v0  ;;  %v4076_v13 = vmul.f32 %v7784_v20, %v4004_v5  ;;  %v7895_v20 = vpop.f32.mrf.mxu0 }
 0x2ba   : > { %v4109_v8 = vadd.f32 %v4108_v21, %v4107_v26  ;;  %v4259_v46 = vadd.f32 %v4258_v60, %v4257_v28  ;;  %v4183_v42 = vadd.f32 %v4182_v29, %v4181_v12  ;;  %v4333_v32 = vadd.f32 %v4332_v38, %v4323_v25  ;;  %v7907_v28 = vpop.f32.mrf.mxu1 }
 0x2bb   : > { %5433 = vpow2.f32 %v4358_v63  ;;  %v7888_v34 = vadd.f32 %v7791_v50, %v4076_v13  ;;  %v4096_v10 = vmul.f32 %v1948_v47, %v8327_v59  ;;  %v4248_v11 = vmul.f32 %v2061_v40, %v8327_v59  ;;  %v7909_v12 = vpop.f32.mrf.mxu0 }
 0x2bc   : > { %5435 = vpow2.f32 %v4370_v49  ;;  %v4123_v27 = vmax.f32 %v7666_v39, %v4109_v8  ;;  %v4260_v57 = vrot.slane %v4259_v46, 1  ;;  %v4184_v9 = vrot.slane %v4183_v42, 1 }
 0x2bd   : > { %v4334_v5 = vrot.slane %v4333_v32, 2  ;;  %v4110_v33 = vrot.slane %v4096_v10, 4  ;;  %v4262_v54 = vrot.slane %v4248_v11, 4  ;;  %v4172_v37 = vmul.f32 %v1950_v62, %v8327_v59 }
 0x2be   : > { %v7898_v50 = vpop.eup %5423  ;;  %v4127_v35 = vsub.f32 %v7666_v39, %v4123_v27  ;;  %v4139_v61 = vsub.f32 %v4109_v8, %v4123_v27  ;;  %v7901_v43 = vadd.f32 %v4260_v57, %v4259_v46  ;;  %v4185_v30 = vadd.f32 %v4184_v9, %v4183_v42  ;;  %v7921_v42 = vpop.f32.mrf.mxu1 }
 0x2bf   : > { %v7903_v53 = vpop.eup %5425  ;;  %v4150_v15 = vmul.f32 %v7898_v50, %v7819_v31  ;;  %v4335_v7 = vadd.f32 %v4334_v5, %v4333_v32  ;;  %v4111_v41 = vadd.f32 %v4110_v33, %v4096_v10  ;;  %v4263_v55 = vadd.f32 %v4262_v54, %v4248_v11  ;;  %v7923_v32 = vpop.f32.mrf.mxu0 }
 0x2c0   : > { %v4132_v47 = vmul.f32 1.442695, %v4127_v35  ;;  %v4144_v40 = vmul.f32 1.442695, %v4139_v61  ;;  %v4199_v17 = vmax.f32 %v4123_v27, %v4185_v30  ;;  %v4186_v26 = vrot.slane %v4172_v37, 4 }
 0x2c1   : > { %v4154_v39 = vadd.f32 %v7903_v53, %v4150_v15  ;;  %v4336_v25 = vrot.slane %v4335_v7, 1  ;;  %v4112_v2 = vrot.slane %v4111_v41, 2  ;;  %v4264_v6 = vrot.slane %v4263_v55, 2 }
 0x2c2   : > { %5437 = vpow2.f32 %v4132_v47  ;;  %v4203_v0 = vsub.f32 %v4123_v27, %v4199_v17  ;;  %v4215_v21 = vsub.f32 %v4185_v30, %v4199_v17  ;;  %v7913_v31 = vmax.f32 %v4199_v17, %v7901_v43  ;;  %v7945_v47 = vpop.f32.mrf.mxu0 }
 0x2c3   : > { %v7915_v60 = vpop.eup %5427  ;;  %5439 = vpow2.f32 %v4144_v40  ;;  %v4337_v29 = vadd.f32 %v4336_v25, %v4335_v7  ;;  %v4113_v38 = vadd.f32 %v4112_v2, %v4111_v41  ;;  %v4265_v62 = vadd.f32 %v4264_v6, %v4263_v55  ;;  %v7943_v55 = vpop.f32.mrf.mxu1 }
 0x2c4   : > { %v7917_v63 = vpop.eup %5429  ;;  %v4226_v49 = vmul.f32 %v7915_v60, %v4154_v39  ;;  %v4208_v13 = vmul.f32 1.442695, %v4203_v0  ;;  %v4220_v8 = vmul.f32 1.442695, %v4215_v21  ;;  %v4279_v46 = vsub.f32 %v4199_v17, %v7913_v31 }
 0x2c5   : > { %v7926_v10 = vmax.f32 %v7913_v31, %v4337_v29  ;;  %v4114_v11 = vrot.slane %v4113_v38, 1  ;;  %v4266_v27 = vrot.slane %v4265_v62, 1  ;;  %v4187_v57 = vadd.f32 %v4186_v26, %v4172_v37 }
 0x2c6   : > { %v7928_v9 = vpop.eup %5431  ;;  %v4230_v5 = vadd.f32 %v7917_v63, %v4226_v49  ;;  %5441 = vpow2.f32 %v4208_v13  ;;  %v4284_v33 = vmul.f32 1.442695, %v4279_v46  ;;  %v4324_v54 = vmul.f32 %v7884_v23, %v8327_v59 }
 0x2c7   : > { %5443 = vpow2.f32 %v4220_v8  ;;  %v4355_v35 = vsub.f32 %v7913_v31, %v7926_v10  ;;  %v4367_v61 = vsub.f32 %v4337_v29, %v7926_v10  ;;  %v4115_v30 = vadd.f32 %v4114_v11, %v4113_v38  ;;  %v7960_v8 = vpop.f32.mrf.mxu1 }
 0x2c8   : > { %v7936_v15 = vpop.eup %5433  ;;  %v7939_v37 = vmul.f32 %v7928_v9, %v4230_v5  ;;  %5445 = vpow2.f32 %v4284_v33  ;;  %v7941_v7 = vadd.f32 %v4266_v27, %v4265_v62  ;;  %v4188_v41 = vrot.slane %v4187_v57, 2 }
 0x2c9   : > { %v7947_v23 = vpop.eup %5435  ;;  %v4360_v40 = vmul.f32 1.442695, %v4355_v35  ;;  %v4372_v17 = vmul.f32 1.442695, %v4367_v61  ;;  %v4124_v26 = vmax.f32 %v7713_v22, %v4115_v30  ;;  %v4338_v39 = vrot.slane %v4324_v54, 4 }
 0x2ca   : > { %v4189_v25 = vadd.f32 %v4188_v41, %v4187_v57  ;;  %v4077_v2 = vmul.f32 %v7842_v19, %v7859_v4  ;;  %v4097_v6 = vmul.f32 %v8329_v48, %v7893_v56  ;;  %v4249_v0 = vmul.f32 %v8329_v48, %v7895_v20  ;;  %v7962_v19 = vpop.f32.mrf.mxu0  ;;  %v7978_v41 = vpop.f32.mrf.mxu1 }
 0x2cb   : > { %5447 = vpow2.f32 %v4360_v40  ;;  %v4128_v21 = vsub.f32 %v7713_v22, %v4124_v26  ;;  %v4140_v29 = vsub.f32 %v4115_v30, %v4124_v26  ;;  %v4339_v38 = vadd.f32 %v4338_v39, %v4324_v54 }
 0x2cc   : > { %5449 = vpow2.f32 %v4372_v17  ;;  %v4190_v62 = vrot.slane %v4189_v25, 1  ;;  %v7958_v49 = vadd.f32 %v7845_v52, %v4077_v2  ;;  %v4116_v13 = vrot.slane %v4097_v6, 4 }
 0x2cd   : > { %v4134_v4 = vmul.f32 1.442695, %v4128_v21  ;;  %v4146_v56 = vmul.f32 1.442695, %v4140_v29  ;;  %v4340_v46 = vrot.slane %v4339_v38, 2  ;;  %v4268_v11 = vrot.slane %v4249_v0, 4 }
 0x2ce   : > { %v4191_v20 = vadd.f32 %v4190_v62, %v4189_v25  ;;  %v4117_v27 = vadd.f32 %v4116_v13, %v4097_v6  ;;  %v4173_v22 = vmul.f32 %v8329_v48, %v7907_v28  ;;  %v4325_v57 = vmul.f32 %v8329_v48, %v7909_v12  ;;  %v7980_v12 = vpop.f32.mrf.mxu0 }
 0x2cf   : > { %v7968_v5 = vpop.eup %5437  ;;  %5451 = vpow2.f32 %v4134_v4  ;;  %v4341_v52 = vadd.f32 %v4340_v46, %v4339_v38  ;;  %v4269_v33 = vadd.f32 %v4268_v11, %v4249_v0  ;;  %v7972_v54 = vmul.f32 %v7898_v50, %v7830_v14  ;;  %v7992_v11 = vpop.f32.mrf.mxu1 }
 0x2d0   : > { %v7974_v35 = vpop.eup %5439  ;;  %v4151_v61 = vmul.f32 %v7968_v5, %v7851_v44  ;;  %5453 = vpow2.f32 %v4146_v56  ;;  %v4200_v30 = vmax.f32 %v4124_v26, %v4191_v20  ;;  %v4118_v28 = vrot.slane %v4117_v27, 2 }
 0x2d1   : > { %v4342_v40 = vrot.slane %v4341_v52, 1  ;;  %v4270_v17 = vrot.slane %v4269_v33, 2  ;;  %v4192_v39 = vrot.slane %v4173_v22, 4  ;;  %v4344_v25 = vrot.slane %v4325_v57, 4 }
 0x2d2   : > { %v4155_v2 = vadd.f32 %v7974_v35, %v4151_v61  ;;  %v4204_v14 = vsub.f32 %v4124_v26, %v4200_v30  ;;  %v4216_v50 = vsub.f32 %v4191_v20, %v4200_v30  ;;  %v7984_v6 = vmax.f32 %v4200_v30, %v7941_v7  ;;  %v7994_v26 = vpop.f32.mrf.mxu0 }
 0x2d3   : > { %v7986_v0 = vpop.eup %5441  ;;  %v4343_v44 = vadd.f32 %v4342_v40, %v4341_v52  ;;  %v4119_v21 = vadd.f32 %v4118_v28, %v4117_v27  ;;  %v4271_v29 = vadd.f32 %v4270_v17, %v4269_v33  ;;  %v4193_v38 = vadd.f32 %v4192_v39, %v4173_v22 }
 0x2d4   : > { %v7988_v62 = vpop.eup %5443  ;;  %v4227_v13 = vmul.f32 %v7986_v0, %v4155_v2  ;;  %v4210_v4 = vmul.f32 1.442695, %v4204_v14  ;;  %v4222_v56 = vmul.f32 1.442695, %v4216_v50  ;;  %v4280_v46 = vsub.f32 %v4200_v30, %v7984_v6 }
 0x2d5   : > { %v7996_v20 = vpop.eup %5445  ;;  %v7999_v61 = vmax.f32 %v7984_v6, %v4343_v44  ;;  %v4120_v27 = vrot.slane %v4119_v21, 1  ;;  %v4272_v52 = vrot.slane %v4271_v29, 1  ;;  %v4194_v22 = vrot.slane %v4193_v38, 2 }
 0x2d6   : > { %v4231_v33 = vadd.f32 %v7988_v62, %v4227_v13  ;;  %5455 = vpow2.f32 %v4210_v4  ;;  %v4286_v28 = vmul.f32 1.442695, %v4280_v46  ;;  %v4345_v40 = vadd.f32 %v4344_v25, %v4325_v57  ;;  %v8012_v13 = vpop.f32.mrf.mxu1  ;;  %v8014_v4 = vpop.f32.mrf.mxu0 }
 0x2d7   : > { %8330 = vst [vmem:[#allocation9_spill] sm:$0xff] %v7999_v61  ;;  %5457 = vpow2.f32 %v4222_v56  ;;  %v4356_v30 = vsub.f32 %v7984_v6, %v7999_v61  ;;  %v4368_v17 = vsub.f32 %v4343_v44, %v7999_v61  ;;  %v4121_v39 = vadd.f32 %v4120_v27, %v4119_v21 }
 0x2d8   : > { %v8005_v2 = vpop.eup %5447  ;;  %v8008_v14 = vmul.f32 %v7996_v20, %v4231_v33  ;;  %5459 = vpow2.f32 %v4286_v28  ;;  %v8010_v50 = vadd.f32 %v4272_v52, %v4271_v29  ;;  %v4195_v48 = vadd.f32 %v4194_v22, %v4193_v38  ;;  %v8027_v59 = vpop.f32.mrf.mxu1 }
 0x2d9   : > { %v8016_v57 = vpop.eup %5449  ;;  %v4362_v25 = vmul.f32 1.442695, %v4356_v30  ;;  %v4374_v56 = vmul.f32 1.442695, %v4368_v17  ;;  %v4125_v44 = vmax.f32 %v7782_v1, %v4121_v39  ;;  %v4346_v21 = vrot.slane %v4345_v40, 2 }
 0x2da   : > { %v4196_v46 = vrot.slane %v4195_v48, 1  ;;  %v4162_v27 = vmul.f32 %v7903_v53, %v7921_v42  ;;  %v4290_v29 = vsub.f32 %v7839_v3, %v7869_v36  ;;  %v4238_v38 = vmul.f32 %v7917_v63, %v7943_v55  ;;  %v8029_v53 = vpop.f32.mrf.mxu0 }
 0x2db   : > { %5461 = vpow2.f32 %v4362_v25  ;;  %v4129_v52 = vsub.f32 %v7782_v1, %v4125_v44  ;;  %v4141_v22 = vsub.f32 %v4121_v39, %v4125_v44  ;;  %v4347_v33 = vadd.f32 %v4346_v21, %v4345_v40 }
 0x2dc   : > { %v5452_v28 = vpop.eup %5451  ;;  %5463 = vpow2.f32 %v4374_v56  ;;  %v4197_v30 = vadd.f32 %v4196_v46, %v4195_v48  ;;  %v4166_v17 = vadd.f32 %v4162_v27, %v7972_v54  ;;  %v4294_v61 = vmul.f32 1.442695, %v4290_v29  ;;  %v8040_v46 = vpop.f32.mrf.mxu1 }
 0x2dd   : > { %v5454_v42 = vpop.eup %5453  ;;  %v4152_v3 = vmul.f32 %v5452_v28, %v7888_v34  ;;  %v4136_v36 = vmul.f32 1.442695, %v4129_v52  ;;  %v4148_v63 = vmul.f32 1.442695, %v4141_v22  ;;  %v4348_v55 = vrot.slane %v4347_v33, 1 }
 0x2de   : > { %v4201_v25 = vmax.f32 %v4125_v44, %v4197_v30  ;;  %5465 = vpow2.f32 %v4294_v61  ;;  %v4234_v1 = vmul.f32 %v7915_v60, %v4166_v17  ;;  %v8035_v48 = vmul.f32 %v7947_v23, %v7945_v47  ;;  %v8042_v61 = vpop.f32.mrf.mxu0 }
 0x2df   : > { %v4156_v54 = vadd.f32 %v5454_v42, %v4152_v3  ;;  %5467 = vpow2.f32 %v4136_v36  ;;  %v4349_v40 = vadd.f32 %v4348_v55, %v4347_v33  ;;  %v4159_v39 = vmul.f32 %v7968_v5, %v7848_v24 }
 0x2e0   : > { %5469 = vpow2.f32 %v4148_v63  ;;  %v4205_v56 = vsub.f32 %v4125_v44, %v4201_v25  ;;  %v4217_v34 = vsub.f32 %v4197_v30, %v4201_v25  ;;  %v4277_v21 = vmax.f32 %v4201_v25, %v8010_v50 }
 0x2e1   : > { %v4242_v60 = vadd.f32 %v4238_v38, %v4234_v1  ;;  %v4163_v47 = vmul.f32 %v7974_v35, %v7960_v8  ;;  %v4291_v27 = vsub.f32 %v7901_v43, %v7913_v31  ;;  %v4239_v29 = vmul.f32 %v7988_v62, %v7978_v41  ;;  %v2162_v41 = vpop.f32.mrf.mxu1  ;;  %v2275_v62 = vpop.f32.mrf.mxu0 }
 0x2e2   : > { %v4212_v24 = vmul.f32 1.442695, %v4205_v56  ;;  %v4224_v5 = vmul.f32 1.442695, %v4217_v34  ;;  %v4281_v44 = vsub.f32 %v4201_v25, %v4277_v21  ;;  %v8050_v52 = vmax.f32 %v4277_v21, %v4349_v40 }
 0x2e3   : > { %v5456_v22 = vpop.eup %5455  ;;  %v4310_v33 = vmul.f32 %v7928_v9, %v4242_v60  ;;  %v4167_v30 = vadd.f32 %v4163_v47, %v4159_v39  ;;  %v4296_v17 = vmul.f32 1.442695, %v4291_v27  ;;  %v8055_v38 = vmul.f32 %v8016_v57, %v7980_v12 }
 0x2e4   : > { %v5458_v8 = vpop.eup %5457  ;;  %v4228_v35 = vmul.f32 %v5456_v22, %v4156_v54  ;;  %5471 = vpow2.f32 %v4212_v24  ;;  %v4288_v43 = vmul.f32 1.442695, %v4281_v44  ;;  %v4357_v31 = vsub.f32 %v4277_v21, %v8050_v52 }
 0x2e5   : > { %v5460_v3 = vpop.eup %5459  ;;  %5473 = vpow2.f32 %v4224_v5  ;;  %v4369_v36 = vsub.f32 %v4349_v40, %v8050_v52  ;;  %v4235_v9 = vmul.f32 %v7986_v0, %v4167_v30  ;;  %v4160_v63 = vmul.f32 %v5452_v28, %v7872_v51  ;;  %v2164_v51 = vpop.f32.mrf.mxu1 }
 0x2e6   : > { %v4232_v55 = vadd.f32 %v5458_v8, %v4228_v35  ;;  %5475 = vpow2.f32 %v4288_v43  ;;  %v4364_v12 = vmul.f32 1.442695, %v4357_v31  ;;  %v4164_v25 = vmul.f32 %v5454_v42, %v7992_v11  ;;  %v2277_v28 = vpop.f32.mrf.mxu0 }
 0x2e7   : > { %v4376_v1 = vmul.f32 1.442695, %v4369_v36  ;;  %5477 = vpow2.f32 %v4296_v17  ;;  %v4243_v54 = vadd.f32 %v4239_v29, %v4235_v9  ;;  %v4292_v39 = vsub.f32 %v7941_v7, %v7984_v6 }
 0x2e8   : > { %v8064_v56 = vpop.eup %5461  ;;  %v8066_v34 = vmul.f32 %v5460_v3, %v4232_v55  ;;  %5479 = vpow2.f32 %v4364_v12  ;;  %v4168_v40 = vadd.f32 %v4164_v25, %v4160_v63  ;;  %v4240_v0 = vmul.f32 %v5458_v8, %v8012_v13 }
 0x2e9   : > { %v8069_v60 = vpop.eup %5463  ;;  %5481 = vpow2.f32 %v4376_v1  ;;  %v8072_v11 = vmul.f32 %v7996_v20, %v4243_v54  ;;  %v4298_v42 = vmul.f32 1.442695, %v4292_v39  ;;  %v4293_v47 = vsub.f32 %v8010_v50, %v4277_v21  ;;  %v2281_v1 = vpop.f32.mrf.mxu0 }
 0x2ea   : > { %v4236_v7 = vmul.f32 %v5456_v22, %v4168_v40  ;;  %v8077_v6 = vmul.f32 %v8069_v60, %v8014_v4  ;;  %v4398_v27 = vmul.f32 %v2162_v41, %v6134_v18  ;;  %v4550_v13 = vmul.f32 %v2275_v62, %v6134_v18  ;;  %v2168_v62 = vpop.f32.mrf.mxu1 }
 0x2eb   : > { %v5466_v29 = vpop.eup %5465  ;;  %5483 = vpow2.f32 %v4298_v42  ;;  %v4300_v24 = vmul.f32 1.442695, %v4293_v47  ;;  %v4474_v5 = vmul.f32 %v2164_v51, %v6134_v18  ;;  %v4626_v20 = vmul.f32 %v2277_v28, %v6134_v18 }
 0x2ec   : > { %v5468_v44 = vpop.eup %5467  ;;  %v4306_v30 = vadd.f32 %v5466_v29, %v7939_v37  ;;  %v4314_v50 = vmul.f32 %v5466_v29, %v7923_v32  ;;  %v4244_v21 = vadd.f32 %v4240_v0, %v4236_v7  ;;  %v4402_v22 = vrot.slane %v4398_v27, 4 }
 0x2ed   : > { %v5470_v4 = vpop.eup %5469  ;;  %v4153_v17 = vmul.f32 %v5468_v44, %v7958_v49  ;;  %v4161_v8 = vmul.f32 %v5468_v44, %v7874_v58  ;;  %5485 = vpow2.f32 %v4300_v24  ;;  %v4554_v35 = vrot.slane %v4550_v13, 4 }
 0x2ee   : > { %v4318_v43 = vadd.f32 %v4314_v50, %v4310_v33  ;;  %v8087_v31 = vmul.f32 %v5460_v3, %v4244_v21  ;;  %v4165_v41 = vmul.f32 %v5470_v4, %v8027_v59  ;;  %v4378_v18 = vmul.f32 %v7936_v15, %v4306_v30 }
 0x2ef   : > { %v4157_v37 = vadd.f32 %v5470_v4, %v4153_v17  ;;  %v4403_v36 = vadd.f32 %v4402_v22, %v4398_v27  ;;  %v4555_v32 = vadd.f32 %v4554_v35, %v4550_v13  ;;  %v4478_v9 = vrot.slane %v4474_v5, 4 }
 0x2f0   : > { %v4386_v63 = vmul.f32 %v7936_v15, %v4318_v43  ;;  %v4169_v55 = vadd.f32 %v4165_v41, %v4161_v8  ;;  %v8093_v49 = vadd.f32 %v7947_v23, %v4378_v18  ;;  %v4630_v58 = vrot.slane %v4626_v20, 4 }
 0x2f1   : > { %v5472_v12 = vpop.eup %5471  ;;  %v4404_v33 = vrot.slane %v4403_v36, 2  ;;  %v4556_v3 = vrot.slane %v4555_v32, 2  ;;  %v4479_v25 = vadd.f32 %v4478_v9, %v4474_v5  ;;  %v4399_v59 = vmul.f32 %v6128_v16, %v2168_v62 }
 0x2f2   : > { %v5474_v54 = vpop.eup %5473  ;;  %v4229_v39 = vmul.f32 %v5472_v12, %v4157_v37  ;;  %v8097_v40 = vadd.f32 %v8035_v48, %v4386_v63  ;;  %v4237_v0 = vmul.f32 %v5472_v12, %v4169_v55  ;;  %v4631_v51 = vadd.f32 %v4630_v58, %v4626_v20  ;;  %v2170_v12 = vpop.f32.mrf.mxu1 }
 0x2f3   : > { %v5476_v15 = vpop.eup %5475  ;;  %v4241_v28 = vmul.f32 %v5474_v54, %v8040_v46  ;;  %v4405_v23 = vadd.f32 %v4404_v33, %v4403_v36  ;;  %v4557_v42 = vadd.f32 %v4556_v3, %v4555_v32  ;;  %v4480_v47 = vrot.slane %v4479_v25, 2 }
 0x2f4   : > { %v5478_v7 = vpop.eup %5477  ;;  %v4233_v27 = vadd.f32 %v5474_v54, %v4229_v39  ;;  %v4632_v13 = vrot.slane %v4631_v51, 2  ;;  %v4408_v29 = vrot.slane %v4399_v59, 4  ;;  %v4551_v24 = vmul.f32 %v6128_v16, %v2281_v1 }
 0x2f5   : > { %v8101_v5 = vpop.eup %5479  ;;  %v4307_v44 = vadd.f32 %v5478_v7, %v8008_v14  ;;  %v4315_v48 = vmul.f32 %v5478_v7, %v7962_v19  ;;  %v4245_v30 = vadd.f32 %v4241_v28, %v4237_v0  ;;  %v4406_v20 = vrot.slane %v4405_v23, 1 }
 0x2f6   : > { %v8105_v50 = vpop.eup %5481  ;;  %v4305_v46 = vmul.f32 %v5476_v15, %v4233_v27  ;;  %v4558_v21 = vrot.slane %v4557_v42, 1  ;;  %v4481_v22 = vadd.f32 %v4480_v47, %v4479_v25  ;;  %v4633_v4 = vadd.f32 %v4632_v13, %v4631_v51 }
 0x2f7   : > { %v4319_v17 = vadd.f32 %v4315_v48, %v8072_v11  ;;  %v4313_v8 = vmul.f32 %v5476_v15, %v4245_v30  ;;  %v4393_v35 = vmul.f32 %v8105_v50, %v8042_v61  ;;  %v4407_v43 = vadd.f32 %v4406_v20, %v4405_v23 }
 0x2f8   : > { %v5484_v41 = vpop.eup %5483  ;;  %v8110_v18 = vadd.f32 %v4558_v21, %v4557_v42  ;;  %v4482_v14 = vrot.slane %v4481_v22, 1  ;;  %v4634_v19 = vrot.slane %v4633_v4, 1  ;;  %v4379_v62 = vmul.f32 %v8005_v2, %v4307_v44  ;;  %v2283_v42 = vpop.f32.mrf.mxu0 }
 0x2f9   : > { %v4387_v37 = vmul.f32 %v8005_v2, %v4319_v17  ;;  %v4308_v36 = vadd.f32 %v5484_v41, %v8066_v34  ;;  %v4316_v32 = vmul.f32 %v5484_v41, %v7994_v26  ;;  %v4426_v11 = vmax.f32 %v7878_v45, %v4407_v43 }
 0x2fa   : > { %v5486_v9 = vpop.eup %5485  ;;  %v4483_v63 = vadd.f32 %v4482_v14, %v4481_v22  ;;  %v4635_v55 = vadd.f32 %v4634_v19, %v4633_v4  ;;  %v8118_v61 = vadd.f32 %v8016_v57, %v4379_v62  ;;  %v4409_v58 = vadd.f32 %v4408_v29, %v4399_v59  ;;  %v2174_v22 = vpop.f32.mrf.mxu1 }
 0x2fb   : > { %v8121_v33 = vadd.f32 %v8055_v38, %v4387_v37  ;;  %v4320_v3 = vadd.f32 %v4316_v32, %v8087_v31  ;;  %v8124_v2 = vadd.f32 %v5486_v9, %v4305_v46  ;;  %v4317_v34 = vmul.f32 %v5486_v9, %v8029_v53  ;;  %v2287_v4 = vpop.f32.mrf.mxu0 }
 0x2fc   : > { %v4430_v26 = vsub.f32 %v7878_v45, %v4426_v11  ;;  %v4442_v25 = vsub.f32 %v4407_v43, %v4426_v11  ;;  %v4502_v1 = vmax.f32 %v4426_v11, %v4483_v63  ;;  %v4410_v54 = vrot.slane %v4409_v58, 2 }
 0x2fd   : > { %v4388_v39 = vmul.f32 %v8064_v56, %v4320_v3  ;;  %v4321_v57 = vadd.f32 %v4317_v34, %v4313_v8  ;;  %v4560_v0 = vrot.slane %v4551_v24, 4  ;;  %v4475_v59 = vmul.f32 %v6128_v16, %v2170_v12 }
 0x2fe   : > { %v4434_v51 = vmul.f32 1.442695, %v4430_v26  ;;  %v4446_v38 = vmul.f32 1.442695, %v4442_v25  ;;  %v4506_v15 = vsub.f32 %v4426_v11, %v4502_v1  ;;  %v4518_v28 = vsub.f32 %v4483_v63, %v4502_v1  ;;  %v8331_v11 = vld [vmem:[#allocation7_spill] sm:$0xff] }
 0x2ff   : > { %v8131_v31 = vadd.f32 %v8077_v6, %v4388_v39  ;;  %v4389_v53 = vmul.f32 %v8101_v5, %v4321_v57  ;;  %v8135_v45 = vmax.f32 %v4502_v1, %v8110_v18  ;;  %v4411_v23 = vadd.f32 %v4410_v54, %v4409_v58  ;;  %v2289_v58 = vpop.f32.mrf.mxu0 }
 0x300   : > { %5487 = vpow2.f32 %v4434_v51  ;;  %v4510_v47 = vmul.f32 1.442695, %v4506_v15  ;;  %v4522_v7 = vmul.f32 1.442695, %v4518_v28  ;;  %v4561_v27 = vadd.f32 %v4560_v0, %v4551_v24 }
 0x301   : > { %v8137_v13 = vadd.f32 %v4393_v35, %v4389_v53  ;;  %5489 = vpow2.f32 %v4446_v38  ;;  %v4582_v29 = vsub.f32 %v4502_v1, %v8135_v45  ;;  %v4654_v44 = vmax.f32 %v8135_v45, %v4635_v55 }
 0x302   : > { %5491 = vpow2.f32 %v4510_v47  ;;  %v4412_v6 = vrot.slane %v4411_v23, 1  ;;  %v4562_v48 = vrot.slane %v4561_v27, 2  ;;  %v4484_v30 = vrot.slane %v4475_v59, 4 }
 0x303   : > { %5493 = vpow2.f32 %v4522_v7  ;;  %v4586_v20 = vmul.f32 1.442695, %v4582_v29  ;;  %v4658_v46 = vsub.f32 %v8135_v45, %v4654_v44  ;;  %v4670_v21 = vsub.f32 %v4635_v55, %v4654_v44  ;;  %v2176_v55 = vpop.f32.mrf.mxu1 }
 0x304   : > { %v4413_v17 = vadd.f32 %v4412_v6, %v4411_v23  ;;  %v4563_v24 = vadd.f32 %v4562_v48, %v4561_v27  ;;  %v4485_v8 = vadd.f32 %v4484_v30, %v4475_v59  ;;  %v4627_v35 = vmul.f32 %v6128_v16, %v2283_v42 }
 0x305   : > { %5495 = vpow2.f32 %v4586_v20  ;;  %v4380_v43 = vmul.f32 %v8064_v56, %v4308_v36  ;;  %v4662_v37 = vmul.f32 1.442695, %v4658_v46  ;;  %v4400_v9 = vmul.f32 %v2174_v22, %v8331_v11 }
 0x306   : > { %v4427_v41 = vmax.f32 %v7926_v10, %v4413_v17  ;;  %v4564_v14 = vrot.slane %v4563_v24, 1  ;;  %v4486_v19 = vrot.slane %v4485_v8, 2  ;;  %v4636_v62 = vrot.slane %v4627_v35, 4 }
 0x307   : > { %v8146_v32 = vadd.f32 %v8069_v60, %v4380_v43  ;;  %v4552_v63 = vmul.f32 %v2287_v4, %v8331_v11  ;;  %v4674_v12 = vmul.f32 1.442695, %v4670_v21  ;;  %v4414_v26 = vrot.slane %v4400_v9, 4 }
 0x308   : > { %v4431_v16 = vsub.f32 %v7926_v10, %v4427_v41  ;;  %v4443_v3 = vsub.f32 %v4413_v17, %v4427_v41  ;;  %v8151_v56 = vadd.f32 %v4564_v14, %v4563_v24  ;;  %v4487_v36 = vadd.f32 %v4486_v19, %v4485_v8 }
 0x309   : > { %v4637_v34 = vadd.f32 %v4636_v62, %v4627_v35  ;;  %v4566_v25 = vrot.slane %v4552_v63, 4  ;;  %v4476_v60 = vmul.f32 %v2176_v55, %v8331_v11  ;;  %v4628_v39 = vmul.f32 %v2289_v58, %v8331_v11  ;;  %v2180_v11 = vpop.f32.mrf.mxu1 }
 0x30a   : > { %v4436_v1 = vmul.f32 1.442695, %v4431_v16  ;;  %v4448_v54 = vmul.f32 1.442695, %v4443_v3  ;;  %v4488_v57 = vrot.slane %v4487_v36, 1  ;;  %v4415_v59 = vadd.f32 %v4414_v26, %v4400_v9  ;;  %v8332_v16 = vld [vmem:[#allocation9_spill] sm:$0xff]  ;;  %v2293_v26 = vpop.f32.mrf.mxu0 }
 0x30b   : > { %v4638_v0 = vrot.slane %v4637_v34, 2  ;;  %v4567_v51 = vadd.f32 %v4566_v25, %v4552_v63  ;;  %v4490_v38 = vrot.slane %v4476_v60, 4  ;;  %v4642_v10 = vrot.slane %v4628_v39, 4 }
 0x30c   : > { %5497 = vpow2.f32 %v4436_v1  ;;  %v4381_v15 = vmul.f32 %v8101_v5, %v8124_v2  ;;  %v4489_v53 = vadd.f32 %v4488_v57, %v4487_v36  ;;  %v4416_v42 = vrot.slane %v4415_v59, 2 }
 0x30d   : > { %v8157_v28 = vpop.eup %5487  ;;  %5499 = vpow2.f32 %v4448_v54  ;;  %v4639_v23 = vadd.f32 %v4638_v0, %v4637_v34  ;;  %v4568_v27 = vrot.slane %v4567_v51, 2  ;;  %v4491_v29 = vadd.f32 %v4490_v38, %v4476_v60  ;;  %v8333_v54 = vld [vmem:[#allocation5_spill] sm:$0xff] }
 0x30e   : > { %v8159_v47 = vpop.eup %5489  ;;  %v4454_v7 = vmul.f32 %v8157_v28, %v8093_v49  ;;  %v4643_v44 = vadd.f32 %v4642_v10, %v4628_v39  ;;  %v4503_v48 = vmax.f32 %v4427_v41, %v4489_v53  ;;  %v4417_v20 = vadd.f32 %v4416_v42, %v4415_v59  ;;  %v2182_v39 = vpop.f32.mrf.mxu1 }
 0x30f   : > { %v8163_v6 = vpop.eup %5491  ;;  %v4640_v30 = vrot.slane %v4639_v23, 1  ;;  %v8166_v5 = vadd.f32 %v8105_v50, %v4381_v15  ;;  %5501 = vpow2.f32 %v4662_v37  ;;  %v4569_v21 = vadd.f32 %v4568_v27, %v4567_v51 }
 0x310   : > { %v8168_v2 = vpop.eup %5493  ;;  %v4458_v46 = vadd.f32 %v8159_v47, %v4454_v7  ;;  %v4492_v22 = vrot.slane %v4491_v29, 2  ;;  %v4507_v4 = vsub.f32 %v4427_v41, %v4503_v48  ;;  %v4519_v49 = vsub.f32 %v4489_v53, %v4503_v48 }
 0x311   : > { %v8172_v17 = vmax.f32 %v4503_v48, %v8151_v56  ;;  %v8174_v24 = vadd.f32 %v4640_v30, %v4639_v23  ;;  %v4418_v50 = vrot.slane %v4417_v20, 1  ;;  %v4644_v14 = vrot.slane %v4643_v44, 2 }
 0x312   : > { %v8176_v8 = vpop.eup %5495  ;;  %v4530_v35 = vmul.f32 %v8163_v6, %v4458_v46  ;;  %v4493_v43 = vadd.f32 %v4492_v22, %v4491_v29  ;;  %v4512_v19 = vmul.f32 1.442695, %v4507_v4  ;;  %v4524_v62 = vmul.f32 1.442695, %v4519_v49  ;;  %v2295_v49 = vpop.f32.mrf.mxu0 }
 0x313   : > { %v8181_v37 = vmax.f32 %v8172_v17, %v8174_v24  ;;  %v4570_v41 = vrot.slane %v4569_v21, 1  ;;  %v4583_v63 = vsub.f32 %v4503_v48, %v8172_v17  ;;  %v4419_v55 = vadd.f32 %v4418_v50, %v4417_v20 }
 0x314   : > { %v8184_v9 = vadd.f32 %v8168_v2, %v4530_v35  ;;  %v4494_v58 = vrot.slane %v4493_v43, 1  ;;  %5503 = vpow2.f32 %v4512_v19  ;;  %v4645_v34 = vadd.f32 %v4644_v14, %v4643_v44  ;;  %v2186_v44 = vpop.f32.mrf.mxu1 }
 0x315   : > { %5505 = vpow2.f32 %v4674_v12  ;;  %v4428_v3 = vmax.f32 %v8332_v16, %v4419_v55  ;;  %v4659_v25 = vsub.f32 %v8172_v17, %v8181_v37  ;;  %v8190_v1 = vadd.f32 %v4570_v41, %v4569_v21 }
 0x316   : > { %v4495_v36 = vadd.f32 %v4494_v58, %v4493_v43  ;;  %5507 = vpow2.f32 %v4524_v62  ;;  %v4401_v60 = vmul.f32 %v8333_v54, %v2180_v11  ;;  %v4588_v57 = vmul.f32 1.442695, %v4583_v63 }
 0x317   : > { %v4432_v0 = vsub.f32 %v8332_v16, %v4428_v3  ;;  %v4444_v59 = vsub.f32 %v4419_v55, %v4428_v3  ;;  %v4671_v38 = vsub.f32 %v8174_v24, %v8181_v37  ;;  %v4646_v10 = vrot.slane %v4645_v34, 1  ;;  %v2188_v37 = vpop.f32.mrf.mxu1 }
 0x318   : > { %v4504_v51 = vmax.f32 %v4428_v3, %v4495_v36  ;;  %v4420_v15 = vrot.slane %v4401_v60, 4  ;;  %v4553_v53 = vmul.f32 %v8333_v54, %v2293_v26  ;;  %v4477_v29 = vmul.f32 %v8333_v54, %v2182_v39 }
 0x319   : > { %v8194_v12 = vpop.eup %5497  ;;  %v4438_v7 = vmul.f32 1.442695, %v4432_v0  ;;  %v4450_v27 = vmul.f32 1.442695, %v4444_v59  ;;  %v4664_v48 = vmul.f32 1.442695, %v4659_v25  ;;  %v8211_v50 = vadd.f32 %v4646_v10, %v4645_v34 }
 0x31a   : > { %v8199_v23 = vpop.eup %5499  ;;  %v4455_v42 = vmul.f32 %v8194_v12, %v8118_v61  ;;  %v4508_v30 = vsub.f32 %v4428_v3, %v4504_v51  ;;  %v4520_v20 = vsub.f32 %v4495_v36, %v4504_v51  ;;  %v8205_v46 = vmax.f32 %v4504_v51, %v8190_v1 }
 0x31b   : > { %5509 = vpow2.f32 %v4438_v7  ;;  %v4421_v22 = vadd.f32 %v4420_v15, %v4401_v60  ;;  %v4572_v4 = vrot.slane %v4553_v53, 4  ;;  %v4496_v62 = vrot.slane %v4477_v29, 4  ;;  %v2192_v60 = vpop.f32.mrf.mxu1 }
 0x31c   : > { %v4459_v21 = vadd.f32 %v8199_v23, %v4455_v42  ;;  %v8208_v24 = vpop.eup %5501  ;;  %5511 = vpow2.f32 %v4450_v27  ;;  %v4514_v61 = vmul.f32 1.442695, %v4508_v30  ;;  %v4584_v35 = vsub.f32 %v4504_v51, %v8205_v46 }
 0x31d   : > { %v4526_v43 = vmul.f32 1.442695, %v4520_v20  ;;  %v4422_v14 = vrot.slane %v4421_v22, 2  ;;  %v4573_v19 = vadd.f32 %v4572_v4, %v4553_v53  ;;  %5513 = vpow2.f32 %v4588_v57 }
 0x31e   : > { %v4629_v41 = vmul.f32 %v8333_v54, %v2295_v49  ;;  %v4462_v11 = vmul.f32 %v8157_v28, %v8097_v40  ;;  %5515 = vpow2.f32 %v4514_v61  ;;  %v4590_v63 = vmul.f32 1.442695, %v4584_v35 }
 0x31f   : > { %v8218_v55 = vmax.f32 %v8205_v46, %v8211_v50  ;;  %v4423_v58 = vadd.f32 %v4422_v14, %v4421_v22  ;;  %5517 = vpow2.f32 %v4664_v48  ;;  %v4574_v16 = vrot.slane %v4573_v19, 2  ;;  %v2194_v48 = vpop.f32.mrf.mxu1 }
 0x320   : > { %v4497_v3 = vadd.f32 %v4496_v62, %v4477_v29  ;;  %v4648_v36 = vrot.slane %v4629_v41, 4  ;;  %v8220_v26 = vmul.f32 1.442695, %v4671_v38  ;;  %5519 = vpow2.f32 %v4526_v43 }
 0x321   : > { %v5504_v34 = vpop.eup %5503  ;;  %v4424_v25 = vrot.slane %v4423_v58, 1  ;;  %v4466_v54 = vmul.f32 %v8159_v47, %v2186_v44  ;;  %v4575_v39 = vadd.f32 %v4574_v16, %v4573_v19  ;;  %5521 = vpow2.f32 %v4590_v63 }
 0x322   : > { %v8223_v40 = vpop.eup %5505  ;;  %v4531_v28 = vmul.f32 %v5504_v34, %v4459_v21  ;;  %v4498_v57 = vrot.slane %v4497_v3, 2  ;;  %v4649_v0 = vadd.f32 %v4648_v36, %v4629_v41  ;;  %v4660_v51 = vsub.f32 %v8205_v46, %v8218_v55 }
 0x323   : > { %v5508_v59 = vpop.eup %5507  ;;  %v4425_v10 = vadd.f32 %v4424_v25, %v4423_v58  ;;  %v4470_v15 = vadd.f32 %v4466_v54, %v4462_v11  ;;  %v4576_v53 = vrot.slane %v4575_v39, 1  ;;  %v4542_v47 = vmul.f32 %v8168_v2, %v2188_v37  ;;  %v2299_v58 = vpop.f32.mrf.mxu0 }
 0x324   : > { %v8227_v38 = vadd.f32 %v5508_v59, %v4531_v28  ;;  %v4499_v42 = vadd.f32 %v4498_v57, %v4497_v3  ;;  %v4650_v27 = vrot.slane %v4649_v0, 2  ;;  %v4463_v44 = vmul.f32 %v8194_v12, %v8121_v33  ;;  %v2198_v54 = vpop.f32.mrf.mxu1 }
 0x325   : > { %v4429_v7 = vmax.f32 %v8050_v52, %v4425_v10  ;;  %v4538_v29 = vmul.f32 %v8163_v6, %v4470_v15  ;;  %v8234_v30 = vadd.f32 %v4576_v53, %v4575_v39  ;;  %v4467_v21 = vmul.f32 %v8199_v23, %v2192_v60  ;;  %v2301_v53 = vpop.f32.mrf.mxu0 }
 0x326   : > { %v4500_v20 = vrot.slane %v4499_v42, 1  ;;  %v4594_v22 = vsub.f32 %v8110_v18, %v8135_v45  ;;  %v4651_v49 = vadd.f32 %v4650_v27, %v4649_v0  ;;  %v4543_v19 = vmul.f32 %v5508_v59, %v2194_v48 }
 0x327   : > { %v4433_v4 = vsub.f32 %v8050_v52, %v4429_v7  ;;  %v4445_v2 = vsub.f32 %v4425_v10, %v4429_v7  ;;  %v4546_v61 = vadd.f32 %v4542_v47, %v4538_v29  ;;  %v4471_v6 = vadd.f32 %v4467_v21, %v4463_v44 }
 0x328   : > { %v5510_v35 = vpop.eup %5509  ;;  %v4501_v43 = vadd.f32 %v4500_v20, %v4499_v42  ;;  %v4598_v14 = vmul.f32 1.442695, %v4594_v22  ;;  %v4652_v41 = vrot.slane %v4651_v49, 1  ;;  %v4606_v16 = vmul.f32 %v8176_v8, %v8184_v9 }
 0x329   : > { %v5512_v33 = vpop.eup %5511  ;;  %v4456_v12 = vmul.f32 %v5510_v35, %v8146_v32  ;;  %v4440_v62 = vmul.f32 1.442695, %v4433_v4  ;;  %v4452_v37 = vmul.f32 1.442695, %v4445_v2  ;;  %v8242_v18 = vmul.f32 %v8176_v8, %v4546_v61  ;;  %v2305_v4 = vpop.f32.mrf.mxu0 }
 0x32a   : > { %v4505_v23 = vmax.f32 %v4429_v7, %v4501_v43  ;;  %5523 = vpow2.f32 %v4598_v14  ;;  %v4539_v52 = vmul.f32 %v5504_v34, %v4471_v6  ;;  %v5514_v45 = vpop.eup %5513  ;;  %v4653_v63 = vadd.f32 %v4652_v41, %v4651_v49 }
 0x32b   : > { %v4460_v11 = vadd.f32 %v5512_v33, %v4456_v12  ;;  %5525 = vpow2.f32 %v4440_v62  ;;  %v5516_v3 = vpop.eup %5515  ;;  %v4672_v34 = vsub.f32 %v8211_v50, %v8218_v55  ;;  %v4464_v57 = vmul.f32 %v5510_v35, %v8131_v31  ;;  %v2200_v55 = vpop.f32.mrf.mxu1 }
 0x32c   : > { %5527 = vpow2.f32 %v4452_v37  ;;  %v4509_v32 = vsub.f32 %v4429_v7, %v4505_v23  ;;  %v4521_v36 = vsub.f32 %v4501_v43, %v4505_v23  ;;  %v4581_v25 = vmax.f32 %v4505_v23, %v8234_v30  ;;  %v8247_v60 = vpop.eup %5517 }
 0x32d   : > { %v4532_v28 = vmul.f32 %v5516_v3, %v4460_v11  ;;  %v4547_v39 = vadd.f32 %v4543_v19, %v4539_v52  ;;  %v5520_v0 = vpop.eup %5519  ;;  %v4468_v42 = vmul.f32 %v5512_v33, %v2198_v54  ;;  %v4595_v47 = vsub.f32 %v8151_v56, %v8172_v17  ;;  %v2204_v19 = vpop.f32.mrf.mxu1 }
 0x32e   : > { %v4516_v59 = vmul.f32 1.442695, %v4509_v32  ;;  %v4528_v10 = vmul.f32 1.442695, %v4521_v36  ;;  %v4585_v8 = vsub.f32 %v4505_v23, %v4581_v25  ;;  %v4657_v9 = vmax.f32 %v4581_v25, %v4653_v63  ;;  %v5522_v27 = vpop.eup %5521 }
 0x32f   : > { %v4536_v15 = vadd.f32 %v5520_v0, %v4532_v28  ;;  %v8254_v7 = vmul.f32 %v5514_v45, %v4547_v39  ;;  %v4666_v29 = vmul.f32 1.442695, %v4660_v51  ;;  %v4472_v44 = vadd.f32 %v4468_v42, %v4464_v57  ;;  %v2206_v32 = vpop.f32.mrf.mxu1 }
 0x330   : > { %5529 = vpow2.f32 %v4516_v59  ;;  %v4592_v50 = vmul.f32 1.442695, %v4585_v8  ;;  %v4661_v31 = vsub.f32 %v4581_v25, %v4657_v9  ;;  %v4600_v48 = vmul.f32 1.442695, %v4595_v47 }
 0x331   : > { %5531 = vpow2.f32 %v4528_v10  ;;  %v4678_v20 = vmul.f32 1.442695, %v4672_v34  ;;  %v4673_v21 = vsub.f32 %v4653_v63, %v4657_v9  ;;  %v4607_v22 = vmul.f32 %v5514_v45, %v8227_v38  ;;  %v2307_v38 = vpop.f32.mrf.mxu0 }
 0x332   : > { %5533 = vpow2.f32 %v8220_v26  ;;  %v4540_v56 = vmul.f32 %v5516_v3, %v4472_v44  ;;  %v4544_v17 = vmul.f32 %v5520_v0, %v2200_v55  ;;  %v4596_v51 = vsub.f32 %v8190_v1, %v8205_v46 }
 0x333   : > { %5535 = vpow2.f32 %v4600_v48  ;;  %v4608_v2 = vmul.f32 %v5522_v27, %v4536_v15  ;;  %v4597_v49 = vsub.f32 %v8234_v30, %v4581_v25  ;;  %v4668_v61 = vmul.f32 1.442695, %v4661_v31  ;;  %v2311_v11 = vpop.f32.mrf.mxu0 }
 0x334   : > { %5537 = vpow2.f32 %v4592_v50  ;;  %v4548_v35 = vadd.f32 %v4544_v17, %v4540_v56  ;;  %v4602_v43 = vmul.f32 1.442695, %v4596_v51  ;;  %v4680_v26 = vmul.f32 1.442695, %v4673_v21 }
 0x335   : > { %5539 = vpow2.f32 %v4666_v29  ;;  %v4604_v6 = vmul.f32 1.442695, %v4597_v49  ;;  %v2313_v34 = vpop.f32.mrf.mxu0 }
 0x336   : > { %5541 = vpow2.f32 %v4678_v20  ;;  %v4616_v33 = vmul.f32 %v5522_v27, %v4548_v35 }
 0x337   : > { %v5524_v14 = vpop.eup %5523  ;;  %5543 = vpow2.f32 %v4602_v43  ;;  %v2317_v42 = vpop.f32.mrf.mxu0 }
 0x338   : > { %v5526_v12 = vpop.eup %5525  ;;  %v4618_v62 = vmul.f32 %v5524_v14, %v2299_v58  ;;  %v4610_v37 = vadd.f32 %v5524_v14, %v4606_v16  ;;  %5545 = vpow2.f32 %v4604_v6  ;;  %v4694_v16 = vmul.f32 %v8223_v40, %v2301_v53 }
 0x339   : > { %v5528_v1 = vpop.eup %5527  ;;  %v4457_v46 = vmul.f32 %v5526_v12, %v8166_v5  ;;  %5547 = vpow2.f32 %v4668_v61  ;;  %v4465_v30 = vmul.f32 %v5526_v12, %v8137_v13  ;;  %v2319_v51 = vpop.f32.mrf.mxu0 }
 0x33a   : > { %5549 = vpow2.f32 %v4680_v26  ;;  %v4622_v41 = vadd.f32 %v4618_v62, %v8242_v18  ;;  %v4682_v23 = vmul.f32 %v8208_v24, %v4610_v37  ;;  %v4469_v52 = vmul.f32 %v5528_v1, %v2204_v19  ;;  %v8334_v37 = vld [vmem:[#allocation4_spill] sm:$0xff] }
 0x33b   : > { %v4461_v45 = vadd.f32 %v5528_v1, %v4457_v46 }
 0x33c   : > { %v4686_v63 = vadd.f32 %v8223_v40, %v4682_v23  ;;  %v4690_v58 = vmul.f32 %v8208_v24, %v4622_v41  ;;  %v4473_v3 = vadd.f32 %v4469_v52, %v4465_v30  ;;  %v5568_v41 = vld [vmem:[%s5663_s6 + $0x8] sm:$0xff] }
 0x33d   : > { %v5530_v5 = vpop.eup %5529 }
 0x33e   : > { %v5532_v36 = vpop.eup %5531  ;;  %v4533_v25 = vmul.f32 %v5530_v5, %v4461_v45  ;;  %v4698_v13 = vadd.f32 %v4694_v16, %v4690_v58  ;;  %5551 = vrcp.f32 %v4686_v63  ;;  %v4541_v54 = vmul.f32 %v5530_v5, %v4473_v3  ;;  %v5569_v3 = vld [vmem:[%s5663_s6 + $0x10] sm:$0xff]  ;;  %v5570_v5 = vld [vmem:[%s5663_s6 + $0x18] sm:$0xff] }
 0x33f   : > { %v5534_v18 = vpop.eup %5533  ;;  %v4545_v28 = vmul.f32 %v5532_v36, %v2206_v32 }
 0x340   : > { %v5536_v39 = vpop.eup %5535  ;;  %v4537_v57 = vadd.f32 %v5532_v36, %v4533_v25  ;;  %v4695_v29 = vmul.f32 %v5534_v18, %v2307_v38  ;;  %v8336_v25 = vld [vmem:[#allocation8_spill] sm:$0xff] }
 0x341   : > { %v5538_v0 = vpop.eup %5537  ;;  %v4619_v59 = vmul.f32 %v5536_v39, %v2305_v4  ;;  %v4611_v10 = vadd.f32 %v5536_v39, %v4607_v22  ;;  %v4549_v8 = vadd.f32 %v4545_v28, %v4541_v54  ;;  %v8337_v54 = vld [vmem:[#allocation6_spill] sm:$0xff] }
 0x342   : > { %v5540_v24 = vpop.eup %5539  ;;  %v4609_v9 = vmul.f32 %v5538_v0, %v4537_v57 }
 0x343   : > { %v5542_v40 = vpop.eup %5541  ;;  %v4623_v15 = vadd.f32 %v4619_v59, %v8254_v7  ;;  %v4683_v53 = vmul.f32 %v8247_v60, %v4611_v10  ;;  %v4617_v47 = vmul.f32 %v5538_v0, %v4549_v8 }
 0x344   : > { %v5544_v27 = vpop.eup %5543  ;;  %v4696_v26 = vmul.f32 %v5542_v40, %v2313_v34 }
 0x345   : > { %v5546_v50 = vpop.eup %5545  ;;  %v4687_v55 = vadd.f32 %v5534_v18, %v4683_v53  ;;  %v4691_v31 = vmul.f32 %v8247_v60, %v4623_v15  ;;  %v4620_v44 = vmul.f32 %v5544_v27, %v2311_v11  ;;  %v4612_v48 = vadd.f32 %v5544_v27, %v4608_v2  ;;  %v8335_v11 = vld [vmem:[#allocation3_spill] sm:$0xff] }
 0x346   : > { %v5548_v20 = vpop.eup %5547  ;;  %v4621_v21 = vmul.f32 %v5546_v50, %v2317_v42  ;;  %v4613_v22 = vadd.f32 %v5546_v50, %v4609_v9 }
 0x347   : > { %v5550_v4 = vpop.eup %5549  ;;  %v4699_v56 = vadd.f32 %v4695_v29, %v4691_v31  ;;  %5553 = vrcp.f32 %v4687_v55  ;;  %v4624_v7 = vadd.f32 %v4620_v44, %v4616_v33  ;;  %v4684_v17 = vmul.f32 %v5540_v24, %v4612_v48  ;;  %v5567_v33 = vld [vmem:[%s5663_s6] sm:$0xff] }
 0x348   : > { %v4625_v49 = vadd.f32 %v4621_v21, %v4617_v47  ;;  %v4685_v61 = vmul.f32 %v5548_v20, %v4613_v22  ;;  %v4697_v2 = vmul.f32 %v5550_v4, %v2319_v51 }
 0x349   : > { %v4688_v35 = vadd.f32 %v5542_v40, %v4684_v17  ;;  %v4692_v43 = vmul.f32 %v5540_v24, %v4624_v7 }
 0x34a   : > { %v4689_v6 = vadd.f32 %v5550_v4, %v4685_v61  ;;  %v4693_v60 = vmul.f32 %v5548_v20, %v4625_v49 }
 0x34b   : > { %v5552_v14 = vpop.eup %5551  ;;  %v4700_v38 = vadd.f32 %v4696_v26, %v4692_v43  ;;  %5555 = vrcp.f32 %v4688_v35 }
 0x34c   : > { %v4706_v19 = vmul.f32 %v5552_v14, %v4698_v13  ;;  %v4701_v12 = vadd.f32 %v4697_v2, %v4693_v60  ;;  %5557 = vrcp.f32 %v4689_v6 }
 0x34e   : > { %v4710_v62 = vadd.f32 %v5567_v33, %v4706_v19 }
 0x350   : > { %v4714_v1 = vsub.f32 %v4710_v62, %v8334_v37 }
 0x352   : > { %4718 = vst [vmem:[%s201_s15] sm:$0xff] %v4714_v1 }
 0x354   : > { %v5554_v46 = vpop.eup %5553 }
 0x355   : > { %v4707_v30 = vmul.f32 %v5554_v46, %v4699_v56 }
 0x357   : > { %v4711_v23 = vadd.f32 %v5568_v41, %v4707_v30 }
 0x358   : > { %v5556_v52 = vpop.eup %5555 }
 0x359   : > { %v5558_v45 = vpop.eup %5557  ;;  %v4715_v63 = vsub.f32 %v4711_v23, %v8335_v11  ;;  %v4708_v58 = vmul.f32 %v5556_v52, %v4700_v38  ;;  %v4765_v28 = vld [vmem:[%s201_s15] sm:$0xff] (%p5646_p4) }
 0x35a   : > { %v4709_v16 = vmul.f32 %v5558_v45, %v4701_v12  ;;  %4766 = vst [vmem:[%s4730_s28] sm:$0xff] (%p5646_p4), %v4765_v28 }
 0x35b   : > { %4719 = vst [vmem:[%s201_s15 + $0x8] sm:$0xff] %v4715_v63  ;;  %v4712_v32 = vadd.f32 %v5569_v3, %v4708_v58 }
 0x35c   : > { %v4713_v36 = vadd.f32 %v5570_v5, %v4709_v16  ;;  %4728 = sbr.rel (!%p5646_p4) target bundleno = 873 (0x369), region = 40 }
 0x35d   : > { %v4716_v13 = vsub.f32 %v4712_v32, %v8336_v25 }
 0x35e   : > { %v4717_v18 = vsub.f32 %v4713_v36, %v8337_v54 }
 0x35f   : > { %4720 = vst [vmem:[%s201_s15 + $0x10] sm:$0xff] %v4716_v13 }
 0x360   : > { %4721 = vst [vmem:[%s201_s15 + $0x18] sm:$0xff] %v4717_v18 }
 0x362   : > { %v4767_v34 = vld [vmem:[%s201_s15 + $0x8] sm:$0xff] }
 0x363   : > { %4768 = vst [vmem:[%s4730_s28 + $0x10] sm:$0xff] %v4767_v34 }
 0x366   : > { %v4769_v39 = vld [vmem:[%s201_s15 + $0x10] sm:$0xff] }
 0x367   : > { %v4771_v57 = vld [vmem:[%s201_s15 + $0x18] sm:$0xff]  ;;  %4770 = vst [vmem:[%s4730_s28 + $0x20] sm:$0xff] %v4769_v39 }
 0x368   : > { %4772 = vst [vmem:[%s4730_s28 + $0x30] sm:$0xff] %v4771_v57 }
 0x369 PF: > { %p11_p8 = scmp.ge.s32.totalorder %s5636_s19, 4   ;;  %s8338_s15 = smov %s5589_s16 }
 0x36a   : > { %s8339_s16 = smov %s5644_s22  ;;  %s8340_s17 = smov %s5636_s19 }
 0x36b   :  { %13 = sbr.rel (!%p11_p8) target bundleno = 2 (0x2), region = 107 }

</bundles_post_ra>
